<compile_context>
chip_gen: v5e
topology: v5e:2x2
jax: 0.10.0
libtpu: 0.0.40
codegen_flags: <defaults>
</compile_context>

<pallas_src>
import functools

import numpy as np
import jax
import jax.numpy as jnp
from jax.experimental import pallas as pl
from jax.experimental.pallas import tpu as pltpu

NEG_SLOPE = 0.01          # nn.LeakyReLU default
IN_EPS = 1e-5             # nn.InstanceNorm1d default eps

CFG = {
    "ContentEncoder": dict(c_in=16, c_h=32, c_out=16, kernel_size=5, bank_size=8,
                           bank_scale=2, c_bank=8, n_conv_blocks=2,
                           subsample=[1, 2], act="relu", dropout_rate=0.0),
    "SpeakerEncoder": dict(c_in=16, c_h=32, c_out=16, kernel_size=5, bank_size=8,
                           bank_scale=2, c_bank=8, n_conv_blocks=2, n_dense_blocks=2,
                           subsample=[1, 2], act="relu", dropout_rate=0.0),
    "Decoder": dict(c_in=16, c_cond=16, c_h=32, c_out=16, kernel_size=5,
                    n_conv_blocks=2, upsample=[2, 1], act="relu", sn=False,
                    dropout_rate=0.0),
}


# ============================================================================
# Fused kernel: whole AdaInVC forward for one batch element per grid step.
# ============================================================================
def _adain_kernel(x_ref, eps_ref, w_ref, b_ref, *rest,
                  n_consts, layout, const_index, cfg, T):
    const_refs = rest[:n_consts]
    mu_ref, ls_ref, emb_ref, dec_ref = rest[n_consts:]

    cc = cfg["ContentEncoder"]
    sc = cfg["SpeakerEncoder"]
    dc = cfg["Decoder"]

    # ----------------------- small in-kernel helpers -----------------------
    def act(v, kind):
        if kind == "lrelu":
            return jnp.where(v > 0, v, NEG_SLOPE * v)
        return jnp.maximum(v, 0.0)                       # relu

    def inorm(v):
        # InstanceNorm1d(affine=False): per-channel mean/biased-var over time.
        m = jnp.mean(v, axis=1, keepdims=True)
        vc = v - m
        var = jnp.mean(vc * vc, axis=1, keepdims=True)
        return vc * jax.lax.rsqrt(var + IN_EPS)

    def load_wb(name):
        ro, co, ci = layout[name]                        # static python ints
        return w_ref[ro:ro + co, 0:ci], b_ref[ro:ro + co, :]

    def const(key):
        return const_refs[const_index[key]][...]

    def reflect_pad(v, padl, padr):
        t = v.shape[1]
        assert t > padl and t > padr, "reflect pad must be smaller than length"
        cols = [v[:, i:i + 1] for i in range(padl, 0, -1)]
        cols.append(v)
        cols += [v[:, i:i + 1] for i in range(t - 2, t - 2 - padr, -1)]
        return jnp.concatenate(cols, axis=1)             # (C, t + padl + padr)

    def im2col(v, k):
        # reflect pad + stack K shifted copies along sublanes -> (K*C, T)
        padl = k // 2
        padr = k // 2 - 1 if k % 2 == 0 else k // 2
        t = v.shape[1]
        xp = reflect_pad(v, padl, padr)
        return jnp.concatenate([xp[:, s:s + t] for s in range(k)], axis=0)

    def conv(name, v, k):
        # pad_layer(reflect) + Conv1d as ONE matmul over the im2col slab.
        w, b = load_wb(name)
        slab = im2col(v, k) if k > 1 else v
        return jnp.dot(w, slab, preferred_element_type=jnp.float32) + b

    def linear(name, v):
        # v: (C_in, 1) column
        w, b = load_wb(name)
        return jnp.dot(w, v, preferred_element_type=jnp.float32) + b

    def bank_stage(prefix, v, c, a):
        # All bank convs fused into one matmul over the max-K slab (weights
        # were scattered into the right tap/shift columns at pack time), then
        # the channel concat + 1x1 in-conv as a second matmul.
        slab = im2col(v, c["bank_size"])
        wbk, bbk = load_wb(prefix + "_bank")
        bank_out = act(jnp.dot(wbk, slab, preferred_element_type=jnp.float32) + bbk, a)
        cat = jnp.concatenate([bank_out, v], axis=0)
        win, bi = load_wb(prefix + "_in")
        return jnp.dot(win, cat, preferred_element_type=jnp.float32) + bi

    def flat_row(v):
        # (C, T) -> (1, C*T), c-major: lane-dense single store.
        c = v.shape[0]
        return jnp.concatenate([v[i:i + 1, :] for i in range(c)], axis=1)

    x = x_ref[0]                                          # (c_in, T)
    eps = eps_ref[0]                                      # (c_in_dec, T_sub)

    # --------------------------- content encoder ---------------------------
    a = cc["act"]
    ks = cc["kernel_size"]
    out = act(inorm(bank_stage("ce", x, cc, a)), a)       # dropout(p=0) == id
    t_cur = T
    for l in range(cc["n_conv_blocks"]):
        sub = cc["subsample"][l]
        y = act(inorm(conv("ce_first%d" % l, out, ks)), a)
        y = conv("ce_second%d" % l, y, ks)
        if sub > 1:
            y = jnp.dot(y, const(("sub", t_cur, sub)),
                        preferred_element_type=jnp.float32)       # strided conv
            out = jnp.dot(out, const(("avg", t_cur, sub)),
                          preferred_element_type=jnp.float32)     # AvgPool1d
            t_cur //= sub
        y = act(inorm(y), a)
        out = y + out
    mu = conv("ce_mean", out, 1)                          # (c_out, T_sub)
    log_sigma = conv("ce_std", out, 1)                    # (c_out, T_sub)

    # --------------------------- speaker encoder ---------------------------
    a = sc["act"]
    ks = sc["kernel_size"]
    out = act(bank_stage("se", x, sc, a), a)
    t_cur = T
    for l in range(sc["n_conv_blocks"]):
        sub = sc["subsample"][l]
        y = act(conv("se_first%d" % l, out, ks), a)
        y = conv("se_second%d" % l, y, ks)
        if sub > 1:
            y = jnp.dot(y, const(("sub", t_cur, sub)),
                        preferred_element_type=jnp.float32)
            out = jnp.dot(out, const(("avg", t_cur, sub)),
                          preferred_element_type=jnp.float32)
            t_cur //= sub
        y = act(y, a)
        out = y + out
    v = jnp.mean(out, axis=1, keepdims=True)              # AdaptiveAvgPool1d(1)
    for l in range(sc["n_dense_blocks"]):
        y = act(linear("se_d1_%d" % l, v), a)
        y = act(linear("se_d2_%d" % l, y), a)
        v = y + v
    emb = linear("se_out", v)                             # (c_out_spk, 1)

    # ------------------- VAE reparameterization + decoder ------------------
    a = dc["act"]
    ks = dc["kernel_size"]
    c_h = dc["c_h"]
    z = mu + jnp.exp(log_sigma * 0.5) * eps
    out = act(inorm(conv("de_in", z, 1)), a)
    t_cur = mu.shape[1]
    for l in range(dc["n_conv_blocks"]):
        up = dc["upsample"][l]
        y = conv("de_first%d" % l, out, ks)
        cnd = linear("de_aff%d" % (2 * l), emb)           # (2*c_h, 1): [mean; std]
        y = act(inorm(y) * cnd[c_h:, :] + cnd[:c_h, :], a)
        y = conv("de_second%d" % l, y, ks)                # (c_h*up, t_cur)
        if up > 1:
            # pixel_shuffle_1d: the second conv's output channels were
            # pre-permuted at pack time so sub-stream r is the contiguous row
            # block [r*c_h:(r+1)*c_h]; interleave columns via placement mats.
            shuf = jnp.dot(y[0:c_h, :], const(("pix", t_cur, up, 0)),
                           preferred_element_type=jnp.float32)
            up_mat = const(("pix", t_cur, up, 0))
            for r in range(1, up):
                p_r = const(("pix", t_cur, up, r))
                shuf = shuf + jnp.dot(y[r * c_h:(r + 1) * c_h, :], p_r,
                                      preferred_element_type=jnp.float32)
                up_mat = up_mat + p_r
            y = shuf
            out = jnp.dot(out, up_mat,
                          preferred_element_type=jnp.float32)    # nearest upsample
            t_cur *= up
        cnd2 = linear("de_aff%d" % (2 * l + 1), emb)
        y = act(inorm(y) * cnd2[c_h:, :] + cnd2[:c_h, :], a)
        out = y + out
    dec = conv("de_out", out, 1)                          # (c_out_dec, T_out)

    # --------------------------- lane-dense stores -------------------------
    mu_ref[0] = flat_row(mu)
    ls_ref[0] = flat_row(log_sigma)
    emb_ref[0] = emb                                       # (c_out, 1) tiny store
    dec_ref[0] = flat_row(dec)


# ============================================================================
# Host-side parameter generation and packing (matmul layout, 2 buffers).
# ============================================================================
def init_torch_params(key, cfg):
    """Random weights in PyTorch layout: conv (C_out, C_in, K), linear (C_out, C_in)."""
    ks = iter(jax.random.split(key, 128))

    def conv_p(c_out, c_in, k, scale=0.1):
        k1, k2 = jax.random.split(next(ks))
        return (np.asarray(jax.random.normal(k1, (c_out, c_in, k)) * scale, np.float32),
                np.asarray(jax.random.normal(k2, (c_out,)) * scale, np.float32))

    def lin_p(c_out, c_in, scale=0.1):
        k1, k2 = jax.random.split(next(ks))
        return (np.asarray(jax.random.normal(k1, (c_out, c_in)) * scale, np.float32),
                np.asarray(jax.random.normal(k2, (c_out,)) * scale, np.float32))

    cc, sc, dc = cfg["ContentEncoder"], cfg["SpeakerEncoder"], cfg["Decoder"]
    p = {}

    bank_ks = list(range(cc["bank_scale"], cc["bank_size"] + 1, cc["bank_scale"]))
    in_ch = cc["c_bank"] * (cc["bank_size"] // cc["bank_scale"]) + cc["c_in"]
    p["content"] = {
        "bank": [conv_p(cc["c_bank"], cc["c_in"], k) for k in bank_ks],
        "in": conv_p(cc["c_h"], in_ch, 1),
        "first": [conv_p(cc["c_h"], cc["c_h"], cc["kernel_size"])
                  for _ in range(cc["n_conv_blocks"])],
        "second": [conv_p(cc["c_h"], cc["c_h"], cc["kernel_size"])
                   for _ in range(cc["n_conv_blocks"])],
        "mean": conv_p(cc["c_out"], cc["c_h"], 1),
        "std": conv_p(cc["c_out"], cc["c_h"], 1),
    }

    bank_ks = list(range(sc["bank_scale"], sc["bank_size"] + 1, sc["bank_scale"]))
    in_ch = sc["c_bank"] * (sc["bank_size"] // sc["bank_scale"]) + sc["c_in"]
    p["speaker"] = {
        "bank": [conv_p(sc["c_bank"], sc["c_in"], k) for k in bank_ks],
        "in": conv_p(sc["c_h"], in_ch, 1),
        "first": [conv_p(sc["c_h"], sc["c_h"], sc["kernel_size"])
                  for _ in range(sc["n_conv_blocks"])],
        "second": [conv_p(sc["c_h"], sc["c_h"], sc["kernel_size"])
                   for _ in range(sc["n_conv_blocks"])],
        "d1": [lin_p(sc["c_h"], sc["c_h"]) for _ in range(sc["n_dense_blocks"])],
        "d2": [lin_p(sc["c_h"], sc["c_h"]) for _ in range(sc["n_dense_blocks"])],
        "out": lin_p(sc["c_out"], sc["c_h"]),
    }

    p["decoder"] = {
        "in": conv_p(dc["c_h"], dc["c_in"], 1),
        "first": [conv_p(dc["c_h"], dc["c_h"], dc["kernel_size"])
                  for _ in range(dc["n_conv_blocks"])],
        "second": [conv_p(dc["c_h"] * dc["upsample"][l], dc["c_h"], dc["kernel_size"])
                   for l in range(dc["n_conv_blocks"])],
        "affine": [lin_p(dc["c_h"] * 2, dc["c_cond"])
                   for _ in range(dc["n_conv_blocks"] * 2)],
        "out": conv_p(dc["c_out"], dc["c_h"], 1),
    }
    return p


def _flatten_conv(w):
    """(C_out, C_in, K) -> (C_out, K*C_in): tap-major columns matching the
    in-kernel im2col slab (rows [k*C_in:(k+1)*C_in] are the k-th shifted copy)."""
    c_out, c_in, k = w.shape
    return np.transpose(w, (0, 2, 1)).reshape(c_out, k * c_in)


def pack_params(tp, cfg):
    """Pack every layer into Wpack (R, NC) + Bpack (R, 1), return static layout."""
    cc, sc, dc = cfg["ContentEncoder"], cfg["SpeakerEncoder"], cfg["Decoder"]
    entries = []

    def add(name, w2d, b):
        entries.append((name, np.asarray(w2d, np.float32),
                        np.asarray(b, np.float32).reshape(-1, 1)))

    def add_conv(name, w, b):
        add(name, _flatten_conv(np.asarray(w)), b)

    def add_bank(prefix, bank, c):
        # Merge all bank convs into one matrix over the max-K im2col slab.
        kmax, cin, cb = c["bank_size"], c["c_in"], c["c_bank"]
        n = len(bank)
        w_all = np.zeros((n * cb, kmax * cin), np.float32)
        bs = []
        for i, (w, b) in enumerate(bank):
            w = np.asarray(w)
            k = w.shape[2]
            for j in range(k):
                s = j - k // 2 + kmax // 2           # shift in the max-padded slab
                w_all[i * cb:(i + 1) * cb, s * cin:(s + 1) * cin] = w[:, :, j]
            bs.append(np.asarray(b))
        add(prefix + "_bank", w_all, np.concatenate(bs))

    # content encoder
    add_bank("ce", tp["content"]["bank"], cc)
    add_conv("ce_in", *tp["content"]["in"])
    for l in range(cc["n_conv_blocks"]):
        add_conv("ce_first%d" % l, *tp["content"]["first"][l])
        add_conv("ce_second%d" % l, *tp["content"]["second"][l])
    add_conv("ce_mean", *tp["content"]["mean"])
    add_conv("ce_std", *tp["content"]["std"])

    # speaker encoder
    add_bank("se", tp["speaker"]["bank"], sc)
    add_conv("se_in", *tp["speaker"]["in"])
    for l in range(sc["n_conv_blocks"]):
        add_conv("se_first%d" % l, *tp["speaker"]["first"][l])
        add_conv("se_second%d" % l, *tp["speaker"]["second"][l])
    for l in range(sc["n_dense_blocks"]):
        add("se_d1_%d" % l, *tp["speaker"]["d1"][l])
        add("se_d2_%d" % l, *tp["speaker"]["d2"][l])
    add("se_out", *tp["speaker"]["out"])

    # decoder
    add_conv("de_in", *tp["decoder"]["in"])
    for l in range(dc["n_conv_blocks"]):
        add_conv("de_first%d" % l, *tp["decoder"]["first"][l])
        w, b = tp["decoder"]["second"][l]
        wf = _flatten_conv(np.asarray(w))
        bf = np.asarray(b)
        up = dc["upsample"][l]
        if up > 1:
            # Pre-permute output channels so pixel-shuffle sub-stream r becomes
            # the contiguous row block [r*c_h:(r+1)*c_h] in the kernel.
            c_h = dc["c_h"]
            perm = np.array([(i % c_h) * up + (i // c_h) for i in range(up * c_h)])
            wf, bf = wf[perm], bf[perm]
        add("de_second%d" % l, wf, bf)
    for j in range(2 * dc["n_conv_blocks"]):
        add("de_aff%d" % j, *tp["decoder"]["affine"][j])
    add_conv("de_out", *tp["decoder"]["out"])

    nc = max(w.shape[1] for _, w, _ in entries)
    layout, rows_w, rows_b, off = {}, [], [], 0
    for name, w, b in entries:
        co, ci = w.shape
        wp = np.zeros((co, nc), np.float32)
        wp[:, :ci] = w
        rows_w.append(wp)
        rows_b.append(b)
        layout[name] = (off, co, ci)
        off += co
    wpack = jnp.asarray(np.concatenate(rows_w, axis=0))
    bpack = jnp.asarray(np.concatenate(rows_b, axis=0))
    return wpack, bpack, layout


def build_consts(cfg, T):
    """Grid-invariant selection matrices, precomputed once host-side."""
    cc, sc, dc = cfg["ContentEncoder"], cfg["SpeakerEncoder"], cfg["Decoder"]
    consts = {}

    def add_sub(t_cur, s):
        if ("sub", t_cur, s) in consts:
            return
        assert t_cur % s == 0, "time length must be divisible by subsample factor"
        to = t_cur // s
        i = np.arange(t_cur)[:, None]
        o = np.arange(to)[None, :]
        consts[("sub", t_cur, s)] = (i == s * o).astype(np.float32)
        consts[("avg", t_cur, s)] = ((i // s) == o).astype(np.float32) / s

    def add_pix(t_cur, up):
        i = np.arange(t_cur)[:, None]
        o = np.arange(up * t_cur)[None, :]
        for r in range(up):
            if ("pix", t_cur, up, r) not in consts:
                consts[("pix", t_cur, up, r)] = (o == up * i + r).astype(np.float32)

    for enc in (cc, sc):
        t_cur = T
        for s in enc["subsample"][:enc["n_conv_blocks"]]:
            if s > 1:
                add_sub(t_cur, s)
                t_cur //= s

    t_dec = T
    for s in cc["subsample"][:cc["n_conv_blocks"]]:
        if s > 1:
            t_dec //= s
    for up in dc["upsample"][:dc["n_conv_blocks"]]:
        if up > 1:
            add_pix(t_dec, up)
            t_dec *= up

    keys = list(consts.keys())
    const_index = {k: i for i, k in enumerate(keys)}
    const_arrays = tuple(jnp.asarray(consts[k]) for k in keys)
    return const_arrays, const_index


# ============================================================================
# pallas_call wrapper (single fused launch).
# ============================================================================
def make_adain_forward(cfg, layout, const_index, n_consts, B, T):
    cc = cfg["ContentEncoder"]
    sc = cfg["SpeakerEncoder"]
    dc = cfg["Decoder"]

    assert T > cc["bank_size"] // 2, "reflect pad of the conv bank needs T > bank_size/2"
    t_sub = T
    for s in cc["subsample"][:cc["n_conv_blocks"]]:
        assert t_sub % s == 0
        t_sub //= s
    assert t_sub > cc["kernel_size"] // 2
    t_out = t_sub
    for u in dc["upsample"][:dc["n_conv_blocks"]]:
        t_out *= u

    c_mu, c_emb, c_dec = cc["c_out"], sc["c_out"], dc["c_out"]

    kernel = functools.partial(_adain_kernel, n_consts=n_consts, layout=layout,
                               const_index=const_index, cfg=cfg, T=T)

    def shared(shape):
        return pl.BlockSpec(tuple(shape), lambda b, _n=len(shape): (0,) * _n)

    def batched(shape):
        blk = (1,) + tuple(shape[1:])
        return pl.BlockSpec(blk, lambda b, _n=len(shape) - 1: (b,) + (0,) * _n)

    mu_shape = (B, 1, c_mu * t_sub)
    emb_shape = (B, c_emb, 1)
    dec_shape = (B, 1, c_dec * t_out)

    @jax.jit
    def fwd(wpack, bpack, consts, x, eps):
        mu_f, ls_f, emb, dec_f = pl.pallas_call(
            kernel,
            grid=(B,),
            in_specs=[batched(x.shape), batched(eps.shape),
                      shared(wpack.shape), shared(bpack.shape)]
                     + [shared(c.shape) for c in consts],
            out_specs=(batched(mu_shape), batched(mu_shape),
                       batched(emb_shape), batched(dec_shape)),
            out_shape=(jax.ShapeDtypeStruct(mu_shape, jnp.float32),
                       jax.ShapeDtypeStruct(mu_shape, jnp.float32),
                       jax.ShapeDtypeStruct(emb_shape, jnp.float32),
                       jax.ShapeDtypeStruct(dec_shape, jnp.float32)),
            compiler_params=pltpu.CompilerParams(
                dimension_semantics=("parallel",)),
        )(x, eps, wpack, bpack, *consts)
        mu = mu_f.reshape(B, c_mu, t_sub)
        log_sigma = ls_f.reshape(B, c_mu, t_sub)
        dec = dec_f.reshape(B, c_dec, t_out)
        return mu, log_sigma, emb[:, :, 0], dec

    return fwd, t_sub, t_out


# ============================================================================
if __name__ == "__main__":
    key = jax.random.PRNGKey(0)
    k_param, k_x, k_eps = jax.random.split(key, 3)

    B, C_IN, T = 2, 16, 16
    x = jax.random.normal(k_x, (B, C_IN, T), jnp.float32)

    torch_params = init_torch_params(k_param, CFG)
    wpack, bpack, layout = pack_params(torch_params, CFG)
    consts, const_index = build_consts(CFG, T)

    fwd, t_sub, t_out = make_adain_forward(CFG, layout, const_index,
                                           len(consts), B, T)

    # VAE noise (see TODO at top: kept as a tiny input instead of in-kernel PRNG).
    eps = jax.random.normal(k_eps, (B, CFG["ContentEncoder"]["c_out"], t_sub),
                            jnp.float32)

    mu, log_sigma, emb, dec = fwd(wpack, bpack, consts, x, eps)
    jax.block_until_ready((mu, log_sigma, emb, dec))

    assert mu.shape == (B, 16, 8)
    assert log_sigma.shape == (B, 16, 8)
    assert emb.shape == (B, 16)
    assert dec.shape == (B, 16, 16)
    print("KERNEL_OK")
</pallas_src>

<mosaic_0001>
module attributes {stable_mosaic.version = 11 : i64} {
  func.func @_adain_kernel(%arg0: i32, %arg1: memref<1x16x16xf32, #tpu.memory_space<vmem>>, %arg2: memref<1x16x8xf32, #tpu.memory_space<vmem>>, %arg3: memref<1024x160xf32, #tpu.memory_space<vmem>>, %arg4: memref<1024x1xf32, #tpu.memory_space<vmem>>, %arg5: memref<16x8xf32, #tpu.memory_space<vmem>>, %arg6: memref<16x8xf32, #tpu.memory_space<vmem>>, %arg7: memref<8x16xf32, #tpu.memory_space<vmem>>, %arg8: memref<8x16xf32, #tpu.memory_space<vmem>>, %arg9: memref<1x1x128xf32, #tpu.memory_space<vmem>>, %arg10: memref<1x1x128xf32, #tpu.memory_space<vmem>>, %arg11: memref<1x16x1xf32, #tpu.memory_space<vmem>>, %arg12: memref<1x1x256xf32, #tpu.memory_space<vmem>>) attributes {dimension_semantics = [#tpu.dimension_semantics<parallel>], iteration_bounds = array<i64: 2>, scalar_prefetch = 0 : i64, scratch_operands = 0 : i64, tpu.core_type = #tpu.core_type<tc>, window_params = [{transform_indices = @transform_0, window_bounds = array<i64: 1, 16, 16>}, {transform_indices = @transform_1, window_bounds = array<i64: 1, 16, 8>}, {pipeline_mode = #tpu.pipeline_mode<synchronous>, transform_indices = @transform_2, window_bounds = array<i64: 1024, 160>}, {pipeline_mode = #tpu.pipeline_mode<synchronous>, transform_indices = @transform_3, window_bounds = array<i64: 1024, 1>}, {pipeline_mode = #tpu.pipeline_mode<synchronous>, transform_indices = @transform_4, window_bounds = array<i64: 16, 8>}, {pipeline_mode = #tpu.pipeline_mode<synchronous>, transform_indices = @transform_5, window_bounds = array<i64: 16, 8>}, {pipeline_mode = #tpu.pipeline_mode<synchronous>, transform_indices = @transform_6, window_bounds = array<i64: 8, 16>}, {pipeline_mode = #tpu.pipeline_mode<synchronous>, transform_indices = @transform_7, window_bounds = array<i64: 8, 16>}, {transform_indices = @transform_8, window_bounds = array<i64: 1, 1, 128>}, {transform_indices = @transform_9, window_bounds = array<i64: 1, 1, 128>}, {transform_indices = @transform_10, window_bounds = array<i64: 1, 16, 1>}, {transform_indices = @transform_11, window_bounds = array<i64: 1, 1, 256>}]} {
    %c0 = arith.constant 0 : index
    %c0_0 = arith.constant 0 : index
    %c0_1 = arith.constant 0 : index
    %0 = vector.load %arg1[%c0, %c0_0, %c0_1] : memref<1x16x16xf32, #tpu.memory_space<vmem>>, vector<1x16x16xf32>
    %1 = vector.shape_cast %0 : vector<1x16x16xf32> to vector<16x16xf32>
    %c0_2 = arith.constant 0 : index
    %c0_3 = arith.constant 0 : index
    %c0_4 = arith.constant 0 : index
    %2 = vector.load %arg2[%c0_2, %c0_3, %c0_4] : memref<1x16x8xf32, #tpu.memory_space<vmem>>, vector<1x16x8xf32>
    %3 = vector.shape_cast %2 : vector<1x16x8xf32> to vector<16x8xf32>
    %4 = vector.extract_strided_slice %1 {offsets = [0, 4], sizes = [16, 1], strides = [1, 1]} : vector<16x16xf32> to vector<16x1xf32>
    %5 = vector.extract_strided_slice %1 {offsets = [0, 3], sizes = [16, 1], strides = [1, 1]} : vector<16x16xf32> to vector<16x1xf32>
    %6 = vector.extract_strided_slice %1 {offsets = [0, 2], sizes = [16, 1], strides = [1, 1]} : vector<16x16xf32> to vector<16x1xf32>
    %7 = vector.extract_strided_slice %1 {offsets = [0, 1], sizes = [16, 1], strides = [1, 1]} : vector<16x16xf32> to vector<16x1xf32>
    %8 = vector.extract_strided_slice %1 {offsets = [0, 14], sizes = [16, 1], strides = [1, 1]} : vector<16x16xf32> to vector<16x1xf32>
    %9 = vector.extract_strided_slice %1 {offsets = [0, 13], sizes = [16, 1], strides = [1, 1]} : vector<16x16xf32> to vector<16x1xf32>
    %10 = vector.extract_strided_slice %1 {offsets = [0, 12], sizes = [16, 1], strides = [1, 1]} : vector<16x16xf32> to vector<16x1xf32>
    %11 = tpu.concatenate %4, %5, %6, %7, %1, %8, %9, %10 in 1 : vector<16x1xf32>, vector<16x1xf32>, vector<16x1xf32>, vector<16x1xf32>, vector<16x16xf32>, vector<16x1xf32>, vector<16x1xf32>, vector<16x1xf32> -> vector<16x23xf32>
    %12 = vector.extract_strided_slice %11 {offsets = [0, 0], sizes = [16, 16], strides = [1, 1]} : vector<16x23xf32> to vector<16x16xf32>
    %13 = vector.extract_strided_slice %11 {offsets = [0, 1], sizes = [16, 16], strides = [1, 1]} : vector<16x23xf32> to vector<16x16xf32>
    %14 = vector.extract_strided_slice %11 {offsets = [0, 2], sizes = [16, 16], strides = [1, 1]} : vector<16x23xf32> to vector<16x16xf32>
    %15 = vector.extract_strided_slice %11 {offsets = [0, 3], sizes = [16, 16], strides = [1, 1]} : vector<16x23xf32> to vector<16x16xf32>
    %16 = vector.extract_strided_slice %11 {offsets = [0, 4], sizes = [16, 16], strides = [1, 1]} : vector<16x23xf32> to vector<16x16xf32>
    %17 = vector.extract_strided_slice %11 {offsets = [0, 5], sizes = [16, 16], strides = [1, 1]} : vector<16x23xf32> to vector<16x16xf32>
    %18 = vector.extract_strided_slice %11 {offsets = [0, 6], sizes = [16, 16], strides = [1, 1]} : vector<16x23xf32> to vector<16x16xf32>
    %19 = vector.extract_strided_slice %11 {offsets = [0, 7], sizes = [16, 16], strides = [1, 1]} : vector<16x23xf32> to vector<16x16xf32>
    %20 = tpu.concatenate %12, %13, %14, %15, %16, %17, %18, %19 in 0 : vector<16x16xf32>, vector<16x16xf32>, vector<16x16xf32>, vector<16x16xf32>, vector<16x16xf32>, vector<16x16xf32>, vector<16x16xf32>, vector<16x16xf32> -> vector<128x16xf32>
    %c0_5 = arith.constant 0 : index
    %c0_6 = arith.constant 0 : index
    %21 = vector.load %arg3[%c0_5, %c0_6] : memref<1024x160xf32, #tpu.memory_space<vmem>>, vector<32x128xf32>
    %c0_7 = arith.constant 0 : index
    %c0_8 = arith.constant 0 : index
    %22 = vector.load %arg4[%c0_7, %c0_8] : memref<1024x1xf32, #tpu.memory_space<vmem>>, vector<32x1xf32>
    %cst = arith.constant dense<0.000000e+00> : vector<32x16xf32>
    %23 = tpu.matmul %21, %20, %cst {dimension_numbers = #tpu.dot_dimension_numbers<[1], [0], [0], [1], [0, 0, 1, 1], [], []>} : vector<32x128xf32>, vector<128x16xf32>, vector<32x16xf32> -> vector<32x16xf32>
    %24 = vector.broadcast %22 : vector<32x1xf32> to vector<32x16xf32>
    %25 = arith.addf %23, %24 : vector<32x16xf32>
    %cst_9 = arith.constant 0.000000e+00 : f32
    %26 = vector.broadcast %cst_9 : f32 to vector<32x16xf32>
    %27 = arith.maximumf %25, %26 : vector<32x16xf32>
    %28 = tpu.concatenate %27, %1 in 0 : vector<32x16xf32>, vector<16x16xf32> -> vector<48x16xf32>
    %c32 = arith.constant 32 : index
    %c0_10 = arith.constant 0 : index
    %29 = vector.load %arg3[%c32, %c0_10] : memref<1024x160xf32, #tpu.memory_space<vmem>>, vector<32x48xf32>
    %c32_11 = arith.constant 32 : index
    %c0_12 = arith.constant 0 : index
    %30 = vector.load %arg4[%c32_11, %c0_12] : memref<1024x1xf32, #tpu.memory_space<vmem>>, vector<32x1xf32>
    %cst_13 = arith.constant dense<0.000000e+00> : vector<32x16xf32>
    %31 = tpu.matmul %29, %28, %cst_13 {dimension_numbers = #tpu.dot_dimension_numbers<[1], [0], [0], [1], [0, 0, 1, 1], [], []>} : vector<32x48xf32>, vector<48x16xf32>, vector<32x16xf32> -> vector<32x16xf32>
    %32 = vector.broadcast %30 : vector<32x1xf32> to vector<32x16xf32>
    %33 = arith.addf %31, %32 : vector<32x16xf32>
    %cst_14 = arith.constant dense<0.000000e+00> : vector<32xf32>
    %34 = vector.multi_reduction <add>, %33, %cst_14 [1] : vector<32x16xf32> to vector<32xf32>
    %35 = vector.shape_cast %34 : vector<32xf32> to vector<32x1xf32>
    %cst_15 = arith.constant 1.600000e+01 : f32
    %36 = vector.broadcast %cst_15 : f32 to vector<32x1xf32>
    %37 = arith.divf %35, %36 : vector<32x1xf32>
    %38 = vector.broadcast %37 : vector<32x1xf32> to vector<32x16xf32>
    %39 = arith.subf %33, %38 : vector<32x16xf32>
    %40 = arith.mulf %39, %39 : vector<32x16xf32>
    %cst_16 = arith.constant dense<0.000000e+00> : vector<32xf32>
    %41 = vector.multi_reduction <add>, %40, %cst_16 [1] : vector<32x16xf32> to vector<32xf32>
    %42 = vector.shape_cast %41 : vector<32xf32> to vector<32x1xf32>
    %cst_17 = arith.constant 1.600000e+01 : f32
    %43 = vector.broadcast %cst_17 : f32 to vector<32x1xf32>
    %44 = arith.divf %42, %43 : vector<32x1xf32>
    %cst_18 = arith.constant 9.99999974E-6 : f32
    %45 = vector.broadcast %cst_18 : f32 to vector<32x1xf32>
    %46 = arith.addf %44, %45 : vector<32x1xf32>
    %47 = math.rsqrt %46 : vector<32x1xf32>
    %48 = vector.broadcast %47 : vector<32x1xf32> to vector<32x16xf32>
    %49 = arith.mulf %39, %48 : vector<32x16xf32>
    %cst_19 = arith.constant 0.000000e+00 : f32
    %50 = vector.broadcast %cst_19 : f32 to vector<32x16xf32>
    %51 = arith.maximumf %49, %50 : vector<32x16xf32>
    %c64 = arith.constant 64 : index
    %c0_20 = arith.constant 0 : index
    %52 = vector.load %arg3[%c64, %c0_20] : memref<1024x160xf32, #tpu.memory_space<vmem>>, vector<32x160xf32>
    %c64_21 = arith.constant 64 : index
    %c0_22 = arith.constant 0 : index
    %53 = vector.load %arg4[%c64_21, %c0_22] : memref<1024x1xf32, #tpu.memory_space<vmem>>, vector<32x1xf32>
    %54 = vector.extract_strided_slice %51 {offsets = [0, 2], sizes = [32, 1], strides = [1, 1]} : vector<32x16xf32> to vector<32x1xf32>
    %55 = vector.extract_strided_slice %51 {offsets = [0, 1], sizes = [32, 1], strides = [1, 1]} : vector<32x16xf32> to vector<32x1xf32>
    %56 = vector.extract_strided_slice %51 {offsets = [0, 14], sizes = [32, 1], strides = [1, 1]} : vector<32x16xf32> to vector<32x1xf32>
    %57 = vector.extract_strided_slice %51 {offsets = [0, 13], sizes = [32, 1], strides = [1, 1]} : vector<32x16xf32> to vector<32x1xf32>
    %58 = tpu.concatenate %54, %55, %51, %56, %57 in 1 : vector<32x1xf32>, vector<32x1xf32>, vector<32x16xf32>, vector<32x1xf32>, vector<32x1xf32> -> vector<32x20xf32>
    %59 = vector.extract_strided_slice %58 {offsets = [0, 0], sizes = [32, 16], strides = [1, 1]} : vector<32x20xf32> to vector<32x16xf32>
    %60 = vector.extract_strided_slice %58 {offsets = [0, 1], sizes = [32, 16], strides = [1, 1]} : vector<32x20xf32> to vector<32x16xf32>
    %61 = vector.extract_strided_slice %58 {offsets = [0, 2], sizes = [32, 16], strides = [1, 1]} : vector<32x20xf32> to vector<32x16xf32>
    %62 = vector.extract_strided_slice %58 {offsets = [0, 3], sizes = [32, 16], strides = [1, 1]} : vector<32x20xf32> to vector<32x16xf32>
    %63 = vector.extract_strided_slice %58 {offsets = [0, 4], sizes = [32, 16], strides = [1, 1]} : vector<32x20xf32> to vector<32x16xf32>
    %64 = tpu.concatenate %59, %60, %61, %62, %63 in 0 : vector<32x16xf32>, vector<32x16xf32>, vector<32x16xf32>, vector<32x16xf32>, vector<32x16xf32> -> vector<160x16xf32>
    %cst_23 = arith.constant dense<0.000000e+00> : vector<32x16xf32>
    %65 = tpu.matmul %52, %64, %cst_23 {dimension_numbers = #tpu.dot_dimension_numbers<[1], [0], [0], [1], [0, 0, 1, 1], [], []>} : vector<32x160xf32>, vector<160x16xf32>, vector<32x16xf32> -> vector<32x16xf32>
    %66 = vector.broadcast %53 : vector<32x1xf32> to vector<32x16xf32>
    %67 = arith.addf %65, %66 : vector<32x16xf32>
    %cst_24 = arith.constant dense<0.000000e+00> : vector<32xf32>
    %68 = vector.multi_reduction <add>, %67, %cst_24 [1] : vector<32x16xf32> to vector<32xf32>
    %69 = vector.shape_cast %68 : vector<32xf32> to vector<32x1xf32>
    %cst_25 = arith.constant 1.600000e+01 : f32
    %70 = vector.broadcast %cst_25 : f32 to vector<32x1xf32>
    %71 = arith.divf %69, %70 : vector<32x1xf32>
    %72 = vector.broadcast %71 : vector<32x1xf32> to vector<32x16xf32>
    %73 = arith.subf %67, %72 : vector<32x16xf32>
    %74 = arith.mulf %73, %73 : vector<32x16xf32>
    %cst_26 = arith.constant dense<0.000000e+00> : vector<32xf32>
    %75 = vector.multi_reduction <add>, %74, %cst_26 [1] : vector<32x16xf32> to vector<32xf32>
    %76 = vector.shape_cast %75 : vector<32xf32> to vector<32x1xf32>
    %cst_27 = arith.constant 1.600000e+01 : f32
    %77 = vector.broadcast %cst_27 : f32 to vector<32x1xf32>
    %78 = arith.divf %76, %77 : vector<32x1xf32>
    %cst_28 = arith.constant 9.99999974E-6 : f32
    %79 = vector.broadcast %cst_28 : f32 to vector<32x1xf32>
    %80 = arith.addf %78, %79 : vector<32x1xf32>
    %81 = math.rsqrt %80 : vector<32x1xf32>
    %82 = vector.broadcast %81 : vector<32x1xf32> to vector<32x16xf32>
    %83 = arith.mulf %73, %82 : vector<32x16xf32>
    %cst_29 = arith.constant 0.000000e+00 : f32
    %84 = vector.broadcast %cst_29 : f32 to vector<32x16xf32>
    %85 = arith.maximumf %83, %84 : vector<32x16xf32>
    %c96 = arith.constant 96 : index
    %c0_30 = arith.constant 0 : index
    %86 = vector.load %arg3[%c96, %c0_30] : memref<1024x160xf32, #tpu.memory_space<vmem>>, vector<32x160xf32>
    %c96_31 = arith.constant 96 : index
    %c0_32 = arith.constant 0 : index
    %87 = vector.load %arg4[%c96_31, %c0_32] : memref<1024x1xf32, #tpu.memory_space<vmem>>, vector<32x1xf32>
    %88 = vector.extract_strided_slice %85 {offsets = [0, 2], sizes = [32, 1], strides = [1, 1]} : vector<32x16xf32> to vector<32x1xf32>
    %89 = vector.extract_strided_slice %85 {offsets = [0, 1], sizes = [32, 1], strides = [1, 1]} : vector<32x16xf32> to vector<32x1xf32>
    %90 = vector.extract_strided_slice %85 {offsets = [0, 14], sizes = [32, 1], strides = [1, 1]} : vector<32x16xf32> to vector<32x1xf32>
    %91 = vector.extract_strided_slice %85 {offsets = [0, 13], sizes = [32, 1], strides = [1, 1]} : vector<32x16xf32> to vector<32x1xf32>
    %92 = tpu.concatenate %88, %89, %85, %90, %91 in 1 : vector<32x1xf32>, vector<32x1xf32>, vector<32x16xf32>, vector<32x1xf32>, vector<32x1xf32> -> vector<32x20xf32>
    %93 = vector.extract_strided_slice %92 {offsets = [0, 0], sizes = [32, 16], strides = [1, 1]} : vector<32x20xf32> to vector<32x16xf32>
    %94 = vector.extract_strided_slice %92 {offsets = [0, 1], sizes = [32, 16], strides = [1, 1]} : vector<32x20xf32> to vector<32x16xf32>
    %95 = vector.extract_strided_slice %92 {offsets = [0, 2], sizes = [32, 16], strides = [1, 1]} : vector<32x20xf32> to vector<32x16xf32>
    %96 = vector.extract_strided_slice %92 {offsets = [0, 3], sizes = [32, 16], strides = [1, 1]} : vector<32x20xf32> to vector<32x16xf32>
    %97 = vector.extract_strided_slice %92 {offsets = [0, 4], sizes = [32, 16], strides = [1, 1]} : vector<32x20xf32> to vector<32x16xf32>
    %98 = tpu.concatenate %93, %94, %95, %96, %97 in 0 : vector<32x16xf32>, vector<32x16xf32>, vector<32x16xf32>, vector<32x16xf32>, vector<32x16xf32> -> vector<160x16xf32>
    %cst_33 = arith.constant dense<0.000000e+00> : vector<32x16xf32>
    %99 = tpu.matmul %86, %98, %cst_33 {dimension_numbers = #tpu.dot_dimension_numbers<[1], [0], [0], [1], [0, 0, 1, 1], [], []>} : vector<32x160xf32>, vector<160x16xf32>, vector<32x16xf32> -> vector<32x16xf32>
    %100 = vector.broadcast %87 : vector<32x1xf32> to vector<32x16xf32>
    %101 = arith.addf %99, %100 : vector<32x16xf32>
    %cst_34 = arith.constant dense<0.000000e+00> : vector<32xf32>
    %102 = vector.multi_reduction <add>, %101, %cst_34 [1] : vector<32x16xf32> to vector<32xf32>
    %103 = vector.shape_cast %102 : vector<32xf32> to vector<32x1xf32>
    %cst_35 = arith.constant 1.600000e+01 : f32
    %104 = vector.broadcast %cst_35 : f32 to vector<32x1xf32>
    %105 = arith.divf %103, %104 : vector<32x1xf32>
    %106 = vector.broadcast %105 : vector<32x1xf32> to vector<32x16xf32>
    %107 = arith.subf %101, %106 : vector<32x16xf32>
    %108 = arith.mulf %107, %107 : vector<32x16xf32>
    %cst_36 = arith.constant dense<0.000000e+00> : vector<32xf32>
    %109 = vector.multi_reduction <add>, %108, %cst_36 [1] : vector<32x16xf32> to vector<32xf32>
    %110 = vector.shape_cast %109 : vector<32xf32> to vector<32x1xf32>
    %cst_37 = arith.constant 1.600000e+01 : f32
    %111 = vector.broadcast %cst_37 : f32 to vector<32x1xf32>
    %112 = arith.divf %110, %111 : vector<32x1xf32>
    %cst_38 = arith.constant 9.99999974E-6 : f32
    %113 = vector.broadcast %cst_38 : f32 to vector<32x1xf32>
    %114 = arith.addf %112, %113 : vector<32x1xf32>
    %115 = math.rsqrt %114 : vector<32x1xf32>
    %116 = vector.broadcast %115 : vector<32x1xf32> to vector<32x16xf32>
    %117 = arith.mulf %107, %116 : vector<32x16xf32>
    %cst_39 = arith.constant 0.000000e+00 : f32
    %118 = vector.broadcast %cst_39 : f32 to vector<32x16xf32>
    %119 = arith.maximumf %117, %118 : vector<32x16xf32>
    %120 = arith.addf %119, %51 : vector<32x16xf32>
    %c128 = arith.constant 128 : index
    %c0_40 = arith.constant 0 : index
    %121 = vector.load %arg3[%c128, %c0_40] : memref<1024x160xf32, #tpu.memory_space<vmem>>, vector<32x160xf32>
    %c128_41 = arith.constant 128 : index
    %c0_42 = arith.constant 0 : index
    %122 = vector.load %arg4[%c128_41, %c0_42] : memref<1024x1xf32, #tpu.memory_space<vmem>>, vector<32x1xf32>
    %123 = vector.extract_strided_slice %120 {offsets = [0, 2], sizes = [32, 1], strides = [1, 1]} : vector<32x16xf32> to vector<32x1xf32>
    %124 = vector.extract_strided_slice %120 {offsets = [0, 1], sizes = [32, 1], strides = [1, 1]} : vector<32x16xf32> to vector<32x1xf32>
    %125 = vector.extract_strided_slice %120 {offsets = [0, 14], sizes = [32, 1], strides = [1, 1]} : vector<32x16xf32> to vector<32x1xf32>
    %126 = vector.extract_strided_slice %120 {offsets = [0, 13], sizes = [32, 1], strides = [1, 1]} : vector<32x16xf32> to vector<32x1xf32>
    %127 = tpu.concatenate %123, %124, %120, %125, %126 in 1 : vector<32x1xf32>, vector<32x1xf32>, vector<32x16xf32>, vector<32x1xf32>, vector<32x1xf32> -> vector<32x20xf32>
    %128 = vector.extract_strided_slice %127 {offsets = [0, 0], sizes = [32, 16], strides = [1, 1]} : vector<32x20xf32> to vector<32x16xf32>
    %129 = vector.extract_strided_slice %127 {offsets = [0, 1], sizes = [32, 16], strides = [1, 1]} : vector<32x20xf32> to vector<32x16xf32>
    %130 = vector.extract_strided_slice %127 {offsets = [0, 2], sizes = [32, 16], strides = [1, 1]} : vector<32x20xf32> to vector<32x16xf32>
    %131 = vector.extract_strided_slice %127 {offsets = [0, 3], sizes = [32, 16], strides = [1, 1]} : vector<32x20xf32> to vector<32x16xf32>
    %132 = vector.extract_strided_slice %127 {offsets = [0, 4], sizes = [32, 16], strides = [1, 1]} : vector<32x20xf32> to vector<32x16xf32>
    %133 = tpu.concatenate %128, %129, %130, %131, %132 in 0 : vector<32x16xf32>, vector<32x16xf32>, vector<32x16xf32>, vector<32x16xf32>, vector<32x16xf32> -> vector<160x16xf32>
    %cst_43 = arith.constant dense<0.000000e+00> : vector<32x16xf32>
    %134 = tpu.matmul %121, %133, %cst_43 {dimension_numbers = #tpu.dot_dimension_numbers<[1], [0], [0], [1], [0, 0, 1, 1], [], []>} : vector<32x160xf32>, vector<160x16xf32>, vector<32x16xf32> -> vector<32x16xf32>
    %135 = vector.broadcast %122 : vector<32x1xf32> to vector<32x16xf32>
    %136 = arith.addf %134, %135 : vector<32x16xf32>
    %cst_44 = arith.constant dense<0.000000e+00> : vector<32xf32>
    %137 = vector.multi_reduction <add>, %136, %cst_44 [1] : vector<32x16xf32> to vector<32xf32>
    %138 = vector.shape_cast %137 : vector<32xf32> to vector<32x1xf32>
    %cst_45 = arith.constant 1.600000e+01 : f32
    %139 = vector.broadcast %cst_45 : f32 to vector<32x1xf32>
    %140 = arith.divf %138, %139 : vector<32x1xf32>
    %141 = vector.broadcast %140 : vector<32x1xf32> to vector<32x16xf32>
    %142 = arith.subf %136, %141 : vector<32x16xf32>
    %143 = arith.mulf %142, %142 : vector<32x16xf32>
    %cst_46 = arith.constant dense<0.000000e+00> : vector<32xf32>
    %144 = vector.multi_reduction <add>, %143, %cst_46 [1] : vector<32x16xf32> to vector<32xf32>
    %145 = vector.shape_cast %144 : vector<32xf32> to vector<32x1xf32>
    %cst_47 = arith.constant 1.600000e+01 : f32
    %146 = vector.broadcast %cst_47 : f32 to vector<32x1xf32>
    %147 = arith.divf %145, %146 : vector<32x1xf32>
    %cst_48 = arith.constant 9.99999974E-6 : f32
    %148 = vector.broadcast %cst_48 : f32 to vector<32x1xf32>
    %149 = arith.addf %147, %148 : vector<32x1xf32>
    %150 = math.rsqrt %149 : vector<32x1xf32>
    %151 = vector.broadcast %150 : vector<32x1xf32> to vector<32x16xf32>
    %152 = arith.mulf %142, %151 : vector<32x16xf32>
    %cst_49 = arith.constant 0.000000e+00 : f32
    %153 = vector.broadcast %cst_49 : f32 to vector<32x16xf32>
    %154 = arith.maximumf %152, %153 : vector<32x16xf32>
    %c160 = arith.constant 160 : index
    %c0_50 = arith.constant 0 : index
    %155 = vector.load %arg3[%c160, %c0_50] : memref<1024x160xf32, #tpu.memory_space<vmem>>, vector<32x160xf32>
    %c160_51 = arith.constant 160 : index
    %c0_52 = arith.constant 0 : index
    %156 = vector.load %arg4[%c160_51, %c0_52] : memref<1024x1xf32, #tpu.memory_space<vmem>>, vector<32x1xf32>
    %157 = vector.extract_strided_slice %154 {offsets = [0, 2], sizes = [32, 1], strides = [1, 1]} : vector<32x16xf32> to vector<32x1xf32>
    %158 = vector.extract_strided_slice %154 {offsets = [0, 1], sizes = [32, 1], strides = [1, 1]} : vector<32x16xf32> to vector<32x1xf32>
    %159 = vector.extract_strided_slice %154 {offsets = [0, 14], sizes = [32, 1], strides = [1, 1]} : vector<32x16xf32> to vector<32x1xf32>
    %160 = vector.extract_strided_slice %154 {offsets = [0, 13], sizes = [32, 1], strides = [1, 1]} : vector<32x16xf32> to vector<32x1xf32>
    %161 = tpu.concatenate %157, %158, %154, %159, %160 in 1 : vector<32x1xf32>, vector<32x1xf32>, vector<32x16xf32>, vector<32x1xf32>, vector<32x1xf32> -> vector<32x20xf32>
    %162 = vector.extract_strided_slice %161 {offsets = [0, 0], sizes = [32, 16], strides = [1, 1]} : vector<32x20xf32> to vector<32x16xf32>
    %163 = vector.extract_strided_slice %161 {offsets = [0, 1], sizes = [32, 16], strides = [1, 1]} : vector<32x20xf32> to vector<32x16xf32>
    %164 = vector.extract_strided_slice %161 {offsets = [0, 2], sizes = [32, 16], strides = [1, 1]} : vector<32x20xf32> to vector<32x16xf32>
    %165 = vector.extract_strided_slice %161 {offsets = [0, 3], sizes = [32, 16], strides = [1, 1]} : vector<32x20xf32> to vector<32x16xf32>
    %166 = vector.extract_strided_slice %161 {offsets = [0, 4], sizes = [32, 16], strides = [1, 1]} : vector<32x20xf32> to vector<32x16xf32>
    %167 = tpu.concatenate %162, %163, %164, %165, %166 in 0 : vector<32x16xf32>, vector<32x16xf32>, vector<32x16xf32>, vector<32x16xf32>, vector<32x16xf32> -> vector<160x16xf32>
    %cst_53 = arith.constant dense<0.000000e+00> : vector<32x16xf32>
    %168 = tpu.matmul %155, %167, %cst_53 {dimension_numbers = #tpu.dot_dimension_numbers<[1], [0], [0], [1], [0, 0, 1, 1], [], []>} : vector<32x160xf32>, vector<160x16xf32>, vector<32x16xf32> -> vector<32x16xf32>
    %169 = vector.broadcast %156 : vector<32x1xf32> to vector<32x16xf32>
    %170 = arith.addf %168, %169 : vector<32x16xf32>
    %c0_54 = arith.constant 0 : index
    %c0_55 = arith.constant 0 : index
    %171 = vector.load %arg5[%c0_54, %c0_55] : memref<16x8xf32, #tpu.memory_space<vmem>>, vector<16x8xf32>
    %cst_56 = arith.constant dense<0.000000e+00> : vector<32x8xf32>
    %172 = tpu.matmul %170, %171, %cst_56 {dimension_numbers = #tpu.dot_dimension_numbers<[1], [0], [0], [1], [0, 0, 1, 1], [], []>} : vector<32x16xf32>, vector<16x8xf32>, vector<32x8xf32> -> vector<32x8xf32>
    %c0_57 = arith.constant 0 : index
    %c0_58 = arith.constant 0 : index
    %173 = vector.load %arg6[%c0_57, %c0_58] : memref<16x8xf32, #tpu.memory_space<vmem>>, vector<16x8xf32>
    %cst_59 = arith.constant dense<0.000000e+00> : vector<32x8xf32>
    %174 = tpu.matmul %120, %173, %cst_59 {dimension_numbers = #tpu.dot_dimension_numbers<[1], [0], [0], [1], [0, 0, 1, 1], [], []>} : vector<32x16xf32>, vector<16x8xf32>, vector<32x8xf32> -> vector<32x8xf32>
    %cst_60 = arith.constant dense<0.000000e+00> : vector<32xf32>
    %175 = vector.multi_reduction <add>, %172, %cst_60 [1] : vector<32x8xf32> to vector<32xf32>
    %176 = vector.shape_cast %175 : vector<32xf32> to vector<32x1xf32>
    %cst_61 = arith.constant 8.000000e+00 : f32
    %177 = vector.broadcast %cst_61 : f32 to vector<32x1xf32>
    %178 = arith.divf %176, %177 : vector<32x1xf32>
    %179 = vector.broadcast %178 : vector<32x1xf32> to vector<32x8xf32>
    %180 = arith.subf %172, %179 : vector<32x8xf32>
    %181 = arith.mulf %180, %180 : vector<32x8xf32>
    %cst_62 = arith.constant dense<0.000000e+00> : vector<32xf32>
    %182 = vector.multi_reduction <add>, %181, %cst_62 [1] : vector<32x8xf32> to vector<32xf32>
    %183 = vector.shape_cast %182 : vector<32xf32> to vector<32x1xf32>
    %cst_63 = arith.constant 8.000000e+00 : f32
    %184 = vector.broadcast %cst_63 : f32 to vector<32x1xf32>
    %185 = arith.divf %183, %184 : vector<32x1xf32>
    %cst_64 = arith.constant 9.99999974E-6 : f32
    %186 = vector.broadcast %cst_64 : f32 to vector<32x1xf32>
    %187 = arith.addf %185, %186 : vector<32x1xf32>
    %188 = math.rsqrt %187 : vector<32x1xf32>
    %189 = vector.broadcast %188 : vector<32x1xf32> to vector<32x8xf32>
    %190 = arith.mulf %180, %189 : vector<32x8xf32>
    %cst_65 = arith.constant 0.000000e+00 : f32
    %191 = vector.broadcast %cst_65 : f32 to vector<32x8xf32>
    %192 = arith.maximumf %190, %191 : vector<32x8xf32>
    %193 = arith.addf %192, %174 : vector<32x8xf32>
    %c192 = arith.constant 192 : index
    %c0_66 = arith.constant 0 : index
    %194 = vector.load %arg3[%c192, %c0_66] : memref<1024x160xf32, #tpu.memory_space<vmem>>, vector<16x32xf32>
    %c192_67 = arith.constant 192 : index
    %c0_68 = arith.constant 0 : index
    %195 = vector.load %arg4[%c192_67, %c0_68] : memref<1024x1xf32, #tpu.memory_space<vmem>>, vector<16x1xf32>
    %cst_69 = arith.constant dense<0.000000e+00> : vector<16x8xf32>
    %196 = tpu.matmul %194, %193, %cst_69 {dimension_numbers = #tpu.dot_dimension_numbers<[1], [0], [0], [1], [0, 0, 1, 1], [], []>} : vector<16x32xf32>, vector<32x8xf32>, vector<16x8xf32> -> vector<16x8xf32>
    %197 = vector.broadcast %195 : vector<16x1xf32> to vector<16x8xf32>
    %198 = arith.addf %196, %197 : vector<16x8xf32>
    %c208 = arith.constant 208 : index
    %c0_70 = arith.constant 0 : index
    %199 = vector.load %arg3[%c208, %c0_70] : memref<1024x160xf32, #tpu.memory_space<vmem>>, vector<16x32xf32>
    %c208_71 = arith.constant 208 : index
    %c0_72 = arith.constant 0 : index
    %200 = vector.load %arg4[%c208_71, %c0_72] : memref<1024x1xf32, #tpu.memory_space<vmem>>, vector<16x1xf32>
    %cst_73 = arith.constant dense<0.000000e+00> : vector<16x8xf32>
    %201 = tpu.matmul %199, %193, %cst_73 {dimension_numbers = #tpu.dot_dimension_numbers<[1], [0], [0], [1], [0, 0, 1, 1], [], []>} : vector<16x32xf32>, vector<32x8xf32>, vector<16x8xf32> -> vector<16x8xf32>
    %202 = vector.broadcast %200 : vector<16x1xf32> to vector<16x8xf32>
    %203 = arith.addf %201, %202 : vector<16x8xf32>
    %204 = vector.extract_strided_slice %1 {offsets = [0, 4], sizes = [16, 1], strides = [1, 1]} : vector<16x16xf32> to vector<16x1xf32>
    %205 = vector.extract_strided_slice %1 {offsets = [0, 3], sizes = [16, 1], strides = [1, 1]} : vector<16x16xf32> to vector<16x1xf32>
    %206 = vector.extract_strided_slice %1 {offsets = [0, 2], sizes = [16, 1], strides = [1, 1]} : vector<16x16xf32> to vector<16x1xf32>
    %207 = vector.extract_strided_slice %1 {offsets = [0, 1], sizes = [16, 1], strides = [1, 1]} : vector<16x16xf32> to vector<16x1xf32>
    %208 = vector.extract_strided_slice %1 {offsets = [0, 14], sizes = [16, 1], strides = [1, 1]} : vector<16x16xf32> to vector<16x1xf32>
    %209 = vector.extract_strided_slice %1 {offsets = [0, 13], sizes = [16, 1], strides = [1, 1]} : vector<16x16xf32> to vector<16x1xf32>
    %210 = vector.extract_strided_slice %1 {offsets = [0, 12], sizes = [16, 1], strides = [1, 1]} : vector<16x16xf32> to vector<16x1xf32>
    %211 = tpu.concatenate %204, %205, %206, %207, %1, %208, %209, %210 in 1 : vector<16x1xf32>, vector<16x1xf32>, vector<16x1xf32>, vector<16x1xf32>, vector<16x16xf32>, vector<16x1xf32>, vector<16x1xf32>, vector<16x1xf32> -> vector<16x23xf32>
    %212 = vector.extract_strided_slice %211 {offsets = [0, 0], sizes = [16, 16], strides = [1, 1]} : vector<16x23xf32> to vector<16x16xf32>
    %213 = vector.extract_strided_slice %211 {offsets = [0, 1], sizes = [16, 16], strides = [1, 1]} : vector<16x23xf32> to vector<16x16xf32>
    %214 = vector.extract_strided_slice %211 {offsets = [0, 2], sizes = [16, 16], strides = [1, 1]} : vector<16x23xf32> to vector<16x16xf32>
    %215 = vector.extract_strided_slice %211 {offsets = [0, 3], sizes = [16, 16], strides = [1, 1]} : vector<16x23xf32> to vector<16x16xf32>
    %216 = vector.extract_strided_slice %211 {offsets = [0, 4], sizes = [16, 16], strides = [1, 1]} : vector<16x23xf32> to vector<16x16xf32>
    %217 = vector.extract_strided_slice %211 {offsets = [0, 5], sizes = [16, 16], strides = [1, 1]} : vector<16x23xf32> to vector<16x16xf32>
    %218 = vector.extract_strided_slice %211 {offsets = [0, 6], sizes = [16, 16], strides = [1, 1]} : vector<16x23xf32> to vector<16x16xf32>
    %219 = vector.extract_strided_slice %211 {offsets = [0, 7], sizes = [16, 16], strides = [1, 1]} : vector<16x23xf32> to vector<16x16xf32>
    %220 = tpu.concatenate %212, %213, %214, %215, %216, %217, %218, %219 in 0 : vector<16x16xf32>, vector<16x16xf32>, vector<16x16xf32>, vector<16x16xf32>, vector<16x16xf32>, vector<16x16xf32>, vector<16x16xf32>, vector<16x16xf32> -> vector<128x16xf32>
    %c224 = arith.constant 224 : index
    %c0_74 = arith.constant 0 : index
    %221 = vector.load %arg3[%c224, %c0_74] : memref<1024x160xf32, #tpu.memory_space<vmem>>, vector<32x128xf32>
    %c224_75 = arith.constant 224 : index
    %c0_76 = arith.constant 0 : index
    %222 = vector.load %arg4[%c224_75, %c0_76] : memref<1024x1xf32, #tpu.memory_space<vmem>>, vector<32x1xf32>
    %cst_77 = arith.constant dense<0.000000e+00> : vector<32x16xf32>
    %223 = tpu.matmul %221, %220, %cst_77 {dimension_numbers = #tpu.dot_dimension_numbers<[1], [0], [0], [1], [0, 0, 1, 1], [], []>} : vector<32x128xf32>, vector<128x16xf32>, vector<32x16xf32> -> vector<32x16xf32>
    %224 = vector.broadcast %222 : vector<32x1xf32> to vector<32x16xf32>
    %225 = arith.addf %223, %224 : vector<32x16xf32>
    %cst_78 = arith.constant 0.000000e+00 : f32
    %226 = vector.broadcast %cst_78 : f32 to vector<32x16xf32>
    %227 = arith.maximumf %225, %226 : vector<32x16xf32>
    %228 = tpu.concatenate %227, %1 in 0 : vector<32x16xf32>, vector<16x16xf32> -> vector<48x16xf32>
    %c256 = arith.constant 256 : index
    %c0_79 = arith.constant 0 : index
    %229 = vector.load %arg3[%c256, %c0_79] : memref<1024x160xf32, #tpu.memory_space<vmem>>, vector<32x48xf32>
    %c256_80 = arith.constant 256 : index
    %c0_81 = arith.constant 0 : index
    %230 = vector.load %arg4[%c256_80, %c0_81] : memref<1024x1xf32, #tpu.memory_space<vmem>>, vector<32x1xf32>
    %cst_82 = arith.constant dense<0.000000e+00> : vector<32x16xf32>
    %231 = tpu.matmul %229, %228, %cst_82 {dimension_numbers = #tpu.dot_dimension_numbers<[1], [0], [0], [1], [0, 0, 1, 1], [], []>} : vector<32x48xf32>, vector<48x16xf32>, vector<32x16xf32> -> vector<32x16xf32>
    %232 = vector.broadcast %230 : vector<32x1xf32> to vector<32x16xf32>
    %233 = arith.addf %231, %232 : vector<32x16xf32>
    %cst_83 = arith.constant 0.000000e+00 : f32
    %234 = vector.broadcast %cst_83 : f32 to vector<32x16xf32>
    %235 = arith.maximumf %233, %234 : vector<32x16xf32>
    %c288 = arith.constant 288 : index
    %c0_84 = arith.constant 0 : index
    %236 = vector.load %arg3[%c288, %c0_84] : memref<1024x160xf32, #tpu.memory_space<vmem>>, vector<32x160xf32>
    %c288_85 = arith.constant 288 : index
    %c0_86 = arith.constant 0 : index
    %237 = vector.load %arg4[%c288_85, %c0_86] : memref<1024x1xf32, #tpu.memory_space<vmem>>, vector<32x1xf32>
    %238 = vector.extract_strided_slice %235 {offsets = [0, 2], sizes = [32, 1], strides = [1, 1]} : vector<32x16xf32> to vector<32x1xf32>
    %239 = vector.extract_strided_slice %235 {offsets = [0, 1], sizes = [32, 1], strides = [1, 1]} : vector<32x16xf32> to vector<32x1xf32>
    %240 = vector.extract_strided_slice %235 {offsets = [0, 14], sizes = [32, 1], strides = [1, 1]} : vector<32x16xf32> to vector<32x1xf32>
    %241 = vector.extract_strided_slice %235 {offsets = [0, 13], sizes = [32, 1], strides = [1, 1]} : vector<32x16xf32> to vector<32x1xf32>
    %242 = tpu.concatenate %238, %239, %235, %240, %241 in 1 : vector<32x1xf32>, vector<32x1xf32>, vector<32x16xf32>, vector<32x1xf32>, vector<32x1xf32> -> vector<32x20xf32>
    %243 = vector.extract_strided_slice %242 {offsets = [0, 0], sizes = [32, 16], strides = [1, 1]} : vector<32x20xf32> to vector<32x16xf32>
    %244 = vector.extract_strided_slice %242 {offsets = [0, 1], sizes = [32, 16], strides = [1, 1]} : vector<32x20xf32> to vector<32x16xf32>
    %245 = vector.extract_strided_slice %242 {offsets = [0, 2], sizes = [32, 16], strides = [1, 1]} : vector<32x20xf32> to vector<32x16xf32>
    %246 = vector.extract_strided_slice %242 {offsets = [0, 3], sizes = [32, 16], strides = [1, 1]} : vector<32x20xf32> to vector<32x16xf32>
    %247 = vector.extract_strided_slice %242 {offsets = [0, 4], sizes = [32, 16], strides = [1, 1]} : vector<32x20xf32> to vector<32x16xf32>
    %248 = tpu.concatenate %243, %244, %245, %246, %247 in 0 : vector<32x16xf32>, vector<32x16xf32>, vector<32x16xf32>, vector<32x16xf32>, vector<32x16xf32> -> vector<160x16xf32>
    %cst_87 = arith.constant dense<0.000000e+00> : vector<32x16xf32>
    %249 = tpu.matmul %236, %248, %cst_87 {dimension_numbers = #tpu.dot_dimension_numbers<[1], [0], [0], [1], [0, 0, 1, 1], [], []>} : vector<32x160xf32>, vector<160x16xf32>, vector<32x16xf32> -> vector<32x16xf32>
    %250 = vector.broadcast %237 : vector<32x1xf32> to vector<32x16xf32>
    %251 = arith.addf %249, %250 : vector<32x16xf32>
    %cst_88 = arith.constant 0.000000e+00 : f32
    %252 = vector.broadcast %cst_88 : f32 to vector<32x16xf32>
    %253 = arith.maximumf %251, %252 : vector<32x16xf32>
    %c320 = arith.constant 320 : index
    %c0_89 = arith.constant 0 : index
    %254 = vector.load %arg3[%c320, %c0_89] : memref<1024x160xf32, #tpu.memory_space<vmem>>, vector<32x160xf32>
    %c320_90 = arith.constant 320 : index
    %c0_91 = arith.constant 0 : index
    %255 = vector.load %arg4[%c320_90, %c0_91] : memref<1024x1xf32, #tpu.memory_space<vmem>>, vector<32x1xf32>
    %256 = vector.extract_strided_slice %253 {offsets = [0, 2], sizes = [32, 1], strides = [1, 1]} : vector<32x16xf32> to vector<32x1xf32>
    %257 = vector.extract_strided_slice %253 {offsets = [0, 1], sizes = [32, 1], strides = [1, 1]} : vector<32x16xf32> to vector<32x1xf32>
    %258 = vector.extract_strided_slice %253 {offsets = [0, 14], sizes = [32, 1], strides = [1, 1]} : vector<32x16xf32> to vector<32x1xf32>
    %259 = vector.extract_strided_slice %253 {offsets = [0, 13], sizes = [32, 1], strides = [1, 1]} : vector<32x16xf32> to vector<32x1xf32>
    %260 = tpu.concatenate %256, %257, %253, %258, %259 in 1 : vector<32x1xf32>, vector<32x1xf32>, vector<32x16xf32>, vector<32x1xf32>, vector<32x1xf32> -> vector<32x20xf32>
    %261 = vector.extract_strided_slice %260 {offsets = [0, 0], sizes = [32, 16], strides = [1, 1]} : vector<32x20xf32> to vector<32x16xf32>
    %262 = vector.extract_strided_slice %260 {offsets = [0, 1], sizes = [32, 16], strides = [1, 1]} : vector<32x20xf32> to vector<32x16xf32>
    %263 = vector.extract_strided_slice %260 {offsets = [0, 2], sizes = [32, 16], strides = [1, 1]} : vector<32x20xf32> to vector<32x16xf32>
    %264 = vector.extract_strided_slice %260 {offsets = [0, 3], sizes = [32, 16], strides = [1, 1]} : vector<32x20xf32> to vector<32x16xf32>
    %265 = vector.extract_strided_slice %260 {offsets = [0, 4], sizes = [32, 16], strides = [1, 1]} : vector<32x20xf32> to vector<32x16xf32>
    %266 = tpu.concatenate %261, %262, %263, %264, %265 in 0 : vector<32x16xf32>, vector<32x16xf32>, vector<32x16xf32>, vector<32x16xf32>, vector<32x16xf32> -> vector<160x16xf32>
    %cst_92 = arith.constant dense<0.000000e+00> : vector<32x16xf32>
    %267 = tpu.matmul %254, %266, %cst_92 {dimension_numbers = #tpu.dot_dimension_numbers<[1], [0], [0], [1], [0, 0, 1, 1], [], []>} : vector<32x160xf32>, vector<160x16xf32>, vector<32x16xf32> -> vector<32x16xf32>
    %268 = vector.broadcast %255 : vector<32x1xf32> to vector<32x16xf32>
    %269 = arith.addf %267, %268 : vector<32x16xf32>
    %cst_93 = arith.constant 0.000000e+00 : f32
    %270 = vector.broadcast %cst_93 : f32 to vector<32x16xf32>
    %271 = arith.maximumf %269, %270 : vector<32x16xf32>
    %272 = arith.addf %271, %235 : vector<32x16xf32>
    %c352 = arith.constant 352 : index
    %c0_94 = arith.constant 0 : index
    %273 = vector.load %arg3[%c352, %c0_94] : memref<1024x160xf32, #tpu.memory_space<vmem>>, vector<32x160xf32>
    %c352_95 = arith.constant 352 : index
    %c0_96 = arith.constant 0 : index
    %274 = vector.load %arg4[%c352_95, %c0_96] : memref<1024x1xf32, #tpu.memory_space<vmem>>, vector<32x1xf32>
    %275 = vector.extract_strided_slice %272 {offsets = [0, 2], sizes = [32, 1], strides = [1, 1]} : vector<32x16xf32> to vector<32x1xf32>
    %276 = vector.extract_strided_slice %272 {offsets = [0, 1], sizes = [32, 1], strides = [1, 1]} : vector<32x16xf32> to vector<32x1xf32>
    %277 = vector.extract_strided_slice %272 {offsets = [0, 14], sizes = [32, 1], strides = [1, 1]} : vector<32x16xf32> to vector<32x1xf32>
    %278 = vector.extract_strided_slice %272 {offsets = [0, 13], sizes = [32, 1], strides = [1, 1]} : vector<32x16xf32> to vector<32x1xf32>
    %279 = tpu.concatenate %275, %276, %272, %277, %278 in 1 : vector<32x1xf32>, vector<32x1xf32>, vector<32x16xf32>, vector<32x1xf32>, vector<32x1xf32> -> vector<32x20xf32>
    %280 = vector.extract_strided_slice %279 {offsets = [0, 0], sizes = [32, 16], strides = [1, 1]} : vector<32x20xf32> to vector<32x16xf32>
    %281 = vector.extract_strided_slice %279 {offsets = [0, 1], sizes = [32, 16], strides = [1, 1]} : vector<32x20xf32> to vector<32x16xf32>
    %282 = vector.extract_strided_slice %279 {offsets = [0, 2], sizes = [32, 16], strides = [1, 1]} : vector<32x20xf32> to vector<32x16xf32>
    %283 = vector.extract_strided_slice %279 {offsets = [0, 3], sizes = [32, 16], strides = [1, 1]} : vector<32x20xf32> to vector<32x16xf32>
    %284 = vector.extract_strided_slice %279 {offsets = [0, 4], sizes = [32, 16], strides = [1, 1]} : vector<32x20xf32> to vector<32x16xf32>
    %285 = tpu.concatenate %280, %281, %282, %283, %284 in 0 : vector<32x16xf32>, vector<32x16xf32>, vector<32x16xf32>, vector<32x16xf32>, vector<32x16xf32> -> vector<160x16xf32>
    %cst_97 = arith.constant dense<0.000000e+00> : vector<32x16xf32>
    %286 = tpu.matmul %273, %285, %cst_97 {dimension_numbers = #tpu.dot_dimension_numbers<[1], [0], [0], [1], [0, 0, 1, 1], [], []>} : vector<32x160xf32>, vector<160x16xf32>, vector<32x16xf32> -> vector<32x16xf32>
    %287 = vector.broadcast %274 : vector<32x1xf32> to vector<32x16xf32>
    %288 = arith.addf %286, %287 : vector<32x16xf32>
    %cst_98 = arith.constant 0.000000e+00 : f32
    %289 = vector.broadcast %cst_98 : f32 to vector<32x16xf32>
    %290 = arith.maximumf %288, %289 : vector<32x16xf32>
    %c384 = arith.constant 384 : index
    %c0_99 = arith.constant 0 : index
    %291 = vector.load %arg3[%c384, %c0_99] : memref<1024x160xf32, #tpu.memory_space<vmem>>, vector<32x160xf32>
    %c384_100 = arith.constant 384 : index
    %c0_101 = arith.constant 0 : index
    %292 = vector.load %arg4[%c384_100, %c0_101] : memref<1024x1xf32, #tpu.memory_space<vmem>>, vector<32x1xf32>
    %293 = vector.extract_strided_slice %290 {offsets = [0, 2], sizes = [32, 1], strides = [1, 1]} : vector<32x16xf32> to vector<32x1xf32>
    %294 = vector.extract_strided_slice %290 {offsets = [0, 1], sizes = [32, 1], strides = [1, 1]} : vector<32x16xf32> to vector<32x1xf32>
    %295 = vector.extract_strided_slice %290 {offsets = [0, 14], sizes = [32, 1], strides = [1, 1]} : vector<32x16xf32> to vector<32x1xf32>
    %296 = vector.extract_strided_slice %290 {offsets = [0, 13], sizes = [32, 1], strides = [1, 1]} : vector<32x16xf32> to vector<32x1xf32>
    %297 = tpu.concatenate %293, %294, %290, %295, %296 in 1 : vector<32x1xf32>, vector<32x1xf32>, vector<32x16xf32>, vector<32x1xf32>, vector<32x1xf32> -> vector<32x20xf32>
    %298 = vector.extract_strided_slice %297 {offsets = [0, 0], sizes = [32, 16], strides = [1, 1]} : vector<32x20xf32> to vector<32x16xf32>
    %299 = vector.extract_strided_slice %297 {offsets = [0, 1], sizes = [32, 16], strides = [1, 1]} : vector<32x20xf32> to vector<32x16xf32>
    %300 = vector.extract_strided_slice %297 {offsets = [0, 2], sizes = [32, 16], strides = [1, 1]} : vector<32x20xf32> to vector<32x16xf32>
    %301 = vector.extract_strided_slice %297 {offsets = [0, 3], sizes = [32, 16], strides = [1, 1]} : vector<32x20xf32> to vector<32x16xf32>
    %302 = vector.extract_strided_slice %297 {offsets = [0, 4], sizes = [32, 16], strides = [1, 1]} : vector<32x20xf32> to vector<32x16xf32>
    %303 = tpu.concatenate %298, %299, %300, %301, %302 in 0 : vector<32x16xf32>, vector<32x16xf32>, vector<32x16xf32>, vector<32x16xf32>, vector<32x16xf32> -> vector<160x16xf32>
    %cst_102 = arith.constant dense<0.000000e+00> : vector<32x16xf32>
    %304 = tpu.matmul %291, %303, %cst_102 {dimension_numbers = #tpu.dot_dimension_numbers<[1], [0], [0], [1], [0, 0, 1, 1], [], []>} : vector<32x160xf32>, vector<160x16xf32>, vector<32x16xf32> -> vector<32x16xf32>
    %305 = vector.broadcast %292 : vector<32x1xf32> to vector<32x16xf32>
    %306 = arith.addf %304, %305 : vector<32x16xf32>
    %c0_103 = arith.constant 0 : index
    %c0_104 = arith.constant 0 : index
    %307 = vector.load %arg5[%c0_103, %c0_104] : memref<16x8xf32, #tpu.memory_space<vmem>>, vector<16x8xf32>
    %cst_105 = arith.constant dense<0.000000e+00> : vector<32x8xf32>
    %308 = tpu.matmul %306, %307, %cst_105 {dimension_numbers = #tpu.dot_dimension_numbers<[1], [0], [0], [1], [0, 0, 1, 1], [], []>} : vector<32x16xf32>, vector<16x8xf32>, vector<32x8xf32> -> vector<32x8xf32>
    %c0_106 = arith.constant 0 : index
    %c0_107 = arith.constant 0 : index
    %309 = vector.load %arg6[%c0_106, %c0_107] : memref<16x8xf32, #tpu.memory_space<vmem>>, vector<16x8xf32>
    %cst_108 = arith.constant dense<0.000000e+00> : vector<32x8xf32>
    %310 = tpu.matmul %272, %309, %cst_108 {dimension_numbers = #tpu.dot_dimension_numbers<[1], [0], [0], [1], [0, 0, 1, 1], [], []>} : vector<32x16xf32>, vector<16x8xf32>, vector<32x8xf32> -> vector<32x8xf32>
    %cst_109 = arith.constant 0.000000e+00 : f32
    %311 = vector.broadcast %cst_109 : f32 to vector<32x8xf32>
    %312 = arith.maximumf %308, %311 : vector<32x8xf32>
    %313 = arith.addf %312, %310 : vector<32x8xf32>
    %cst_110 = arith.constant dense<0.000000e+00> : vector<32xf32>
    %314 = vector.multi_reduction <add>, %313, %cst_110 [1] : vector<32x8xf32> to vector<32xf32>
    %315 = vector.shape_cast %314 : vector<32xf32> to vector<32x1xf32>
    %cst_111 = arith.constant 8.000000e+00 : f32
    %316 = vector.broadcast %cst_111 : f32 to vector<32x1xf32>
    %317 = arith.divf %315, %316 : vector<32x1xf32>
    %c416 = arith.constant 416 : index
    %c0_112 = arith.constant 0 : index
    %318 = vector.load %arg3[%c416, %c0_112] : memref<1024x160xf32, #tpu.memory_space<vmem>>, vector<32x32xf32>
    %c416_113 = arith.constant 416 : index
    %c0_114 = arith.constant 0 : index
    %319 = vector.load %arg4[%c416_113, %c0_114] : memref<1024x1xf32, #tpu.memory_space<vmem>>, vector<32x1xf32>
    %cst_115 = arith.constant dense<0.000000e+00> : vector<32x1xf32>
    %320 = tpu.matmul %318, %317, %cst_115 {dimension_numbers = #tpu.dot_dimension_numbers<[1], [0], [0], [1], [0, 0, 1, 1], [], []>} : vector<32x32xf32>, vector<32x1xf32>, vector<32x1xf32> -> vector<32x1xf32>
    %321 = arith.addf %320, %319 : vector<32x1xf32>
    %cst_116 = arith.constant 0.000000e+00 : f32
    %322 = vector.broadcast %cst_116 : f32 to vector<32x1xf32>
    %323 = arith.maximumf %321, %322 : vector<32x1xf32>
    %c448 = arith.constant 448 : index
    %c0_117 = arith.constant 0 : index
    %324 = vector.load %arg3[%c448, %c0_117] : memref<1024x160xf32, #tpu.memory_space<vmem>>, vector<32x32xf32>
    %c448_118 = arith.constant 448 : index
    %c0_119 = arith.constant 0 : index
    %325 = vector.load %arg4[%c448_118, %c0_119] : memref<1024x1xf32, #tpu.memory_space<vmem>>, vector<32x1xf32>
    %cst_120 = arith.constant dense<0.000000e+00> : vector<32x1xf32>
    %326 = tpu.matmul %324, %323, %cst_120 {dimension_numbers = #tpu.dot_dimension_numbers<[1], [0], [0], [1], [0, 0, 1, 1], [], []>} : vector<32x32xf32>, vector<32x1xf32>, vector<32x1xf32> -> vector<32x1xf32>
    %327 = arith.addf %326, %325 : vector<32x1xf32>
    %cst_121 = arith.constant 0.000000e+00 : f32
    %328 = vector.broadcast %cst_121 : f32 to vector<32x1xf32>
    %329 = arith.maximumf %327, %328 : vector<32x1xf32>
    %330 = arith.addf %329, %317 : vector<32x1xf32>
    %c480 = arith.constant 480 : index
    %c0_122 = arith.constant 0 : index
    %331 = vector.load %arg3[%c480, %c0_122] : memref<1024x160xf32, #tpu.memory_space<vmem>>, vector<32x32xf32>
    %c480_123 = arith.constant 480 : index
    %c0_124 = arith.constant 0 : index
    %332 = vector.load %arg4[%c480_123, %c0_124] : memref<1024x1xf32, #tpu.memory_space<vmem>>, vector<32x1xf32>
    %cst_125 = arith.constant dense<0.000000e+00> : vector<32x1xf32>
    %333 = tpu.matmul %331, %330, %cst_125 {dimension_numbers = #tpu.dot_dimension_numbers<[1], [0], [0], [1], [0, 0, 1, 1], [], []>} : vector<32x32xf32>, vector<32x1xf32>, vector<32x1xf32> -> vector<32x1xf32>
    %334 = arith.addf %333, %332 : vector<32x1xf32>
    %cst_126 = arith.constant 0.000000e+00 : f32
    %335 = vector.broadcast %cst_126 : f32 to vector<32x1xf32>
    %336 = arith.maximumf %334, %335 : vector<32x1xf32>
    %c512 = arith.constant 512 : index
    %c0_127 = arith.constant 0 : index
    %337 = vector.load %arg3[%c512, %c0_127] : memref<1024x160xf32, #tpu.memory_space<vmem>>, vector<32x32xf32>
    %c512_128 = arith.constant 512 : index
    %c0_129 = arith.constant 0 : index
    %338 = vector.load %arg4[%c512_128, %c0_129] : memref<1024x1xf32, #tpu.memory_space<vmem>>, vector<32x1xf32>
    %cst_130 = arith.constant dense<0.000000e+00> : vector<32x1xf32>
    %339 = tpu.matmul %337, %336, %cst_130 {dimension_numbers = #tpu.dot_dimension_numbers<[1], [0], [0], [1], [0, 0, 1, 1], [], []>} : vector<32x32xf32>, vector<32x1xf32>, vector<32x1xf32> -> vector<32x1xf32>
    %340 = arith.addf %339, %338 : vector<32x1xf32>
    %cst_131 = arith.constant 0.000000e+00 : f32
    %341 = vector.broadcast %cst_131 : f32 to vector<32x1xf32>
    %342 = arith.maximumf %340, %341 : vector<32x1xf32>
    %343 = arith.addf %342, %330 : vector<32x1xf32>
    %c544 = arith.constant 544 : index
    %c0_132 = arith.constant 0 : index
    %344 = vector.load %arg3[%c544, %c0_132] : memref<1024x160xf32, #tpu.memory_space<vmem>>, vector<16x32xf32>
    %c544_133 = arith.constant 544 : index
    %c0_134 = arith.constant 0 : index
    %345 = vector.load %arg4[%c544_133, %c0_134] : memref<1024x1xf32, #tpu.memory_space<vmem>>, vector<16x1xf32>
    %cst_135 = arith.constant dense<0.000000e+00> : vector<16x1xf32>
    %346 = tpu.matmul %344, %343, %cst_135 {dimension_numbers = #tpu.dot_dimension_numbers<[1], [0], [0], [1], [0, 0, 1, 1], [], []>} : vector<16x32xf32>, vector<32x1xf32>, vector<16x1xf32> -> vector<16x1xf32>
    %347 = arith.addf %346, %345 : vector<16x1xf32>
    %cst_136 = arith.constant 5.000000e-01 : f32
    %348 = vector.broadcast %cst_136 : f32 to vector<16x8xf32>
    %349 = arith.mulf %203, %348 : vector<16x8xf32>
    %350 = math.exp %349 : vector<16x8xf32>
    %351 = arith.mulf %350, %3 : vector<16x8xf32>
    %352 = arith.addf %198, %351 : vector<16x8xf32>
    %c560 = arith.constant 560 : index
    %c0_137 = arith.constant 0 : index
    %353 = vector.load %arg3[%c560, %c0_137] : memref<1024x160xf32, #tpu.memory_space<vmem>>, vector<32x16xf32>
    %c560_138 = arith.constant 560 : index
    %c0_139 = arith.constant 0 : index
    %354 = vector.load %arg4[%c560_138, %c0_139] : memref<1024x1xf32, #tpu.memory_space<vmem>>, vector<32x1xf32>
    %cst_140 = arith.constant dense<0.000000e+00> : vector<32x8xf32>
    %355 = tpu.matmul %353, %352, %cst_140 {dimension_numbers = #tpu.dot_dimension_numbers<[1], [0], [0], [1], [0, 0, 1, 1], [], []>} : vector<32x16xf32>, vector<16x8xf32>, vector<32x8xf32> -> vector<32x8xf32>
    %356 = vector.broadcast %354 : vector<32x1xf32> to vector<32x8xf32>
    %357 = arith.addf %355, %356 : vector<32x8xf32>
    %cst_141 = arith.constant dense<0.000000e+00> : vector<32xf32>
    %358 = vector.multi_reduction <add>, %357, %cst_141 [1] : vector<32x8xf32> to vector<32xf32>
    %359 = vector.shape_cast %358 : vector<32xf32> to vector<32x1xf32>
    %cst_142 = arith.constant 8.000000e+00 : f32
    %360 = vector.broadcast %cst_142 : f32 to vector<32x1xf32>
    %361 = arith.divf %359, %360 : vector<32x1xf32>
    %362 = vector.broadcast %361 : vector<32x1xf32> to vector<32x8xf32>
    %363 = arith.subf %357, %362 : vector<32x8xf32>
    %364 = arith.mulf %363, %363 : vector<32x8xf32>
    %cst_143 = arith.constant dense<0.000000e+00> : vector<32xf32>
    %365 = vector.multi_reduction <add>, %364, %cst_143 [1] : vector<32x8xf32> to vector<32xf32>
    %366 = vector.shape_cast %365 : vector<32xf32> to vector<32x1xf32>
    %cst_144 = arith.constant 8.000000e+00 : f32
    %367 = vector.broadcast %cst_144 : f32 to vector<32x1xf32>
    %368 = arith.divf %366, %367 : vector<32x1xf32>
    %cst_145 = arith.constant 9.99999974E-6 : f32
    %369 = vector.broadcast %cst_145 : f32 to vector<32x1xf32>
    %370 = arith.addf %368, %369 : vector<32x1xf32>
    %371 = math.rsqrt %370 : vector<32x1xf32>
    %372 = vector.broadcast %371 : vector<32x1xf32> to vector<32x8xf32>
    %373 = arith.mulf %363, %372 : vector<32x8xf32>
    %cst_146 = arith.constant 0.000000e+00 : f32
    %374 = vector.broadcast %cst_146 : f32 to vector<32x8xf32>
    %375 = arith.maximumf %373, %374 : vector<32x8xf32>
    %c592 = arith.constant 592 : index
    %c0_147 = arith.constant 0 : index
    %376 = vector.load %arg3[%c592, %c0_147] : memref<1024x160xf32, #tpu.memory_space<vmem>>, vector<32x160xf32>
    %c592_148 = arith.constant 592 : index
    %c0_149 = arith.constant 0 : index
    %377 = vector.load %arg4[%c592_148, %c0_149] : memref<1024x1xf32, #tpu.memory_space<vmem>>, vector<32x1xf32>
    %378 = vector.extract_strided_slice %375 {offsets = [0, 2], sizes = [32, 1], strides = [1, 1]} : vector<32x8xf32> to vector<32x1xf32>
    %379 = vector.extract_strided_slice %375 {offsets = [0, 1], sizes = [32, 1], strides = [1, 1]} : vector<32x8xf32> to vector<32x1xf32>
    %380 = vector.extract_strided_slice %375 {offsets = [0, 6], sizes = [32, 1], strides = [1, 1]} : vector<32x8xf32> to vector<32x1xf32>
    %381 = vector.extract_strided_slice %375 {offsets = [0, 5], sizes = [32, 1], strides = [1, 1]} : vector<32x8xf32> to vector<32x1xf32>
    %382 = tpu.concatenate %378, %379, %375, %380, %381 in 1 : vector<32x1xf32>, vector<32x1xf32>, vector<32x8xf32>, vector<32x1xf32>, vector<32x1xf32> -> vector<32x12xf32>
    %383 = vector.extract_strided_slice %382 {offsets = [0, 0], sizes = [32, 8], strides = [1, 1]} : vector<32x12xf32> to vector<32x8xf32>
    %384 = vector.extract_strided_slice %382 {offsets = [0, 1], sizes = [32, 8], strides = [1, 1]} : vector<32x12xf32> to vector<32x8xf32>
    %385 = vector.extract_strided_slice %382 {offsets = [0, 2], sizes = [32, 8], strides = [1, 1]} : vector<32x12xf32> to vector<32x8xf32>
    %386 = vector.extract_strided_slice %382 {offsets = [0, 3], sizes = [32, 8], strides = [1, 1]} : vector<32x12xf32> to vector<32x8xf32>
    %387 = vector.extract_strided_slice %382 {offsets = [0, 4], sizes = [32, 8], strides = [1, 1]} : vector<32x12xf32> to vector<32x8xf32>
    %388 = tpu.concatenate %383, %384, %385, %386, %387 in 0 : vector<32x8xf32>, vector<32x8xf32>, vector<32x8xf32>, vector<32x8xf32>, vector<32x8xf32> -> vector<160x8xf32>
    %cst_150 = arith.constant dense<0.000000e+00> : vector<32x8xf32>
    %389 = tpu.matmul %376, %388, %cst_150 {dimension_numbers = #tpu.dot_dimension_numbers<[1], [0], [0], [1], [0, 0, 1, 1], [], []>} : vector<32x160xf32>, vector<160x8xf32>, vector<32x8xf32> -> vector<32x8xf32>
    %390 = vector.broadcast %377 : vector<32x1xf32> to vector<32x8xf32>
    %391 = arith.addf %389, %390 : vector<32x8xf32>
    %c752 = arith.constant 752 : index
    %c0_151 = arith.constant 0 : index
    %392 = vector.load %arg3[%c752, %c0_151] : memref<1024x160xf32, #tpu.memory_space<vmem>>, vector<64x16xf32>
    %c752_152 = arith.constant 752 : index
    %c0_153 = arith.constant 0 : index
    %393 = vector.load %arg4[%c752_152, %c0_153] : memref<1024x1xf32, #tpu.memory_space<vmem>>, vector<64x1xf32>
    %cst_154 = arith.constant dense<0.000000e+00> : vector<64x1xf32>
    %394 = tpu.matmul %392, %347, %cst_154 {dimension_numbers = #tpu.dot_dimension_numbers<[1], [0], [0], [1], [0, 0, 1, 1], [], []>} : vector<64x16xf32>, vector<16x1xf32>, vector<64x1xf32> -> vector<64x1xf32>
    %395 = arith.addf %394, %393 : vector<64x1xf32>
    %cst_155 = arith.constant dense<0.000000e+00> : vector<32xf32>
    %396 = vector.multi_reduction <add>, %391, %cst_155 [1] : vector<32x8xf32> to vector<32xf32>
    %397 = vector.shape_cast %396 : vector<32xf32> to vector<32x1xf32>
    %cst_156 = arith.constant 8.000000e+00 : f32
    %398 = vector.broadcast %cst_156 : f32 to vector<32x1xf32>
    %399 = arith.divf %397, %398 : vector<32x1xf32>
    %400 = vector.broadcast %399 : vector<32x1xf32> to vector<32x8xf32>
    %401 = arith.subf %391, %400 : vector<32x8xf32>
    %402 = arith.mulf %401, %401 : vector<32x8xf32>
    %cst_157 = arith.constant dense<0.000000e+00> : vector<32xf32>
    %403 = vector.multi_reduction <add>, %402, %cst_157 [1] : vector<32x8xf32> to vector<32xf32>
    %404 = vector.shape_cast %403 : vector<32xf32> to vector<32x1xf32>
    %cst_158 = arith.constant 8.000000e+00 : f32
    %405 = vector.broadcast %cst_158 : f32 to vector<32x1xf32>
    %406 = arith.divf %404, %405 : vector<32x1xf32>
    %cst_159 = arith.constant 9.99999974E-6 : f32
    %407 = vector.broadcast %cst_159 : f32 to vector<32x1xf32>
    %408 = arith.addf %406, %407 : vector<32x1xf32>
    %409 = math.rsqrt %408 : vector<32x1xf32>
    %410 = vector.broadcast %409 : vector<32x1xf32> to vector<32x8xf32>
    %411 = arith.mulf %401, %410 : vector<32x8xf32>
    %412 = vector.extract_strided_slice %395 {offsets = [32, 0], sizes = [32, 1], strides = [1, 1]} : vector<64x1xf32> to vector<32x1xf32>
    %413 = vector.broadcast %412 : vector<32x1xf32> to vector<32x8xf32>
    %414 = arith.mulf %411, %413 : vector<32x8xf32>
    %415 = vector.extract_strided_slice %395 {offsets = [0, 0], sizes = [32, 1], strides = [1, 1]} : vector<64x1xf32> to vector<32x1xf32>
    %416 = vector.broadcast %415 : vector<32x1xf32> to vector<32x8xf32>
    %417 = arith.addf %414, %416 : vector<32x8xf32>
    %cst_160 = arith.constant 0.000000e+00 : f32
    %418 = vector.broadcast %cst_160 : f32 to vector<32x8xf32>
    %419 = arith.maximumf %417, %418 : vector<32x8xf32>
    %c624 = arith.constant 624 : index
    %c0_161 = arith.constant 0 : index
    %420 = vector.load %arg3[%c624, %c0_161] : memref<1024x160xf32, #tpu.memory_space<vmem>>, vector<64x160xf32>
    %c624_162 = arith.constant 624 : index
    %c0_163 = arith.constant 0 : index
    %421 = vector.load %arg4[%c624_162, %c0_163] : memref<1024x1xf32, #tpu.memory_space<vmem>>, vector<64x1xf32>
    %422 = vector.extract_strided_slice %419 {offsets = [0, 2], sizes = [32, 1], strides = [1, 1]} : vector<32x8xf32> to vector<32x1xf32>
    %423 = vector.extract_strided_slice %419 {offsets = [0, 1], sizes = [32, 1], strides = [1, 1]} : vector<32x8xf32> to vector<32x1xf32>
    %424 = vector.extract_strided_slice %419 {offsets = [0, 6], sizes = [32, 1], strides = [1, 1]} : vector<32x8xf32> to vector<32x1xf32>
    %425 = vector.extract_strided_slice %419 {offsets = [0, 5], sizes = [32, 1], strides = [1, 1]} : vector<32x8xf32> to vector<32x1xf32>
    %426 = tpu.concatenate %422, %423, %419, %424, %425 in 1 : vector<32x1xf32>, vector<32x1xf32>, vector<32x8xf32>, vector<32x1xf32>, vector<32x1xf32> -> vector<32x12xf32>
    %427 = vector.extract_strided_slice %426 {offsets = [0, 0], sizes = [32, 8], strides = [1, 1]} : vector<32x12xf32> to vector<32x8xf32>
    %428 = vector.extract_strided_slice %426 {offsets = [0, 1], sizes = [32, 8], strides = [1, 1]} : vector<32x12xf32> to vector<32x8xf32>
    %429 = vector.extract_strided_slice %426 {offsets = [0, 2], sizes = [32, 8], strides = [1, 1]} : vector<32x12xf32> to vector<32x8xf32>
    %430 = vector.extract_strided_slice %426 {offsets = [0, 3], sizes = [32, 8], strides = [1, 1]} : vector<32x12xf32> to vector<32x8xf32>
    %431 = vector.extract_strided_slice %426 {offsets = [0, 4], sizes = [32, 8], strides = [1, 1]} : vector<32x12xf32> to vector<32x8xf32>
    %432 = tpu.concatenate %427, %428, %429, %430, %431 in 0 : vector<32x8xf32>, vector<32x8xf32>, vector<32x8xf32>, vector<32x8xf32>, vector<32x8xf32> -> vector<160x8xf32>
    %cst_164 = arith.constant dense<0.000000e+00> : vector<64x8xf32>
    %433 = tpu.matmul %420, %432, %cst_164 {dimension_numbers = #tpu.dot_dimension_numbers<[1], [0], [0], [1], [0, 0, 1, 1], [], []>} : vector<64x160xf32>, vector<160x8xf32>, vector<64x8xf32> -> vector<64x8xf32>
    %434 = vector.broadcast %421 : vector<64x1xf32> to vector<64x8xf32>
    %435 = arith.addf %433, %434 : vector<64x8xf32>
    %436 = vector.extract_strided_slice %435 {offsets = [0, 0], sizes = [32, 8], strides = [1, 1]} : vector<64x8xf32> to vector<32x8xf32>
    %c0_165 = arith.constant 0 : index
    %c0_166 = arith.constant 0 : index
    %437 = vector.load %arg7[%c0_165, %c0_166] : memref<8x16xf32, #tpu.memory_space<vmem>>, vector<8x16xf32>
    %cst_167 = arith.constant dense<0.000000e+00> : vector<32x16xf32>
    %438 = tpu.matmul %436, %437, %cst_167 {dimension_numbers = #tpu.dot_dimension_numbers<[1], [0], [0], [1], [0, 0, 1, 1], [], []>} : vector<32x8xf32>, vector<8x16xf32>, vector<32x16xf32> -> vector<32x16xf32>
    %c0_168 = arith.constant 0 : index
    %c0_169 = arith.constant 0 : index
    %439 = vector.load %arg7[%c0_168, %c0_169] : memref<8x16xf32, #tpu.memory_space<vmem>>, vector<8x16xf32>
    %c0_170 = arith.constant 0 : index
    %c0_171 = arith.constant 0 : index
    %440 = vector.load %arg8[%c0_170, %c0_171] : memref<8x16xf32, #tpu.memory_space<vmem>>, vector<8x16xf32>
    %441 = vector.extract_strided_slice %435 {offsets = [32, 0], sizes = [32, 8], strides = [1, 1]} : vector<64x8xf32> to vector<32x8xf32>
    %cst_172 = arith.constant dense<0.000000e+00> : vector<32x16xf32>
    %442 = tpu.matmul %441, %440, %cst_172 {dimension_numbers = #tpu.dot_dimension_numbers<[1], [0], [0], [1], [0, 0, 1, 1], [], []>} : vector<32x8xf32>, vector<8x16xf32>, vector<32x16xf32> -> vector<32x16xf32>
    %443 = arith.addf %438, %442 : vector<32x16xf32>
    %444 = arith.addf %439, %440 : vector<8x16xf32>
    %cst_173 = arith.constant dense<0.000000e+00> : vector<32x16xf32>
    %445 = tpu.matmul %375, %444, %cst_173 {dimension_numbers = #tpu.dot_dimension_numbers<[1], [0], [0], [1], [0, 0, 1, 1], [], []>} : vector<32x8xf32>, vector<8x16xf32>, vector<32x16xf32> -> vector<32x16xf32>
    %c816 = arith.constant 816 : index
    %c0_174 = arith.constant 0 : index
    %446 = vector.load %arg3[%c816, %c0_174] : memref<1024x160xf32, #tpu.memory_space<vmem>>, vector<64x16xf32>
    %c816_175 = arith.constant 816 : index
    %c0_176 = arith.constant 0 : index
    %447 = vector.load %arg4[%c816_175, %c0_176] : memref<1024x1xf32, #tpu.memory_space<vmem>>, vector<64x1xf32>
    %cst_177 = arith.constant dense<0.000000e+00> : vector<64x1xf32>
    %448 = tpu.matmul %446, %347, %cst_177 {dimension_numbers = #tpu.dot_dimension_numbers<[1], [0], [0], [1], [0, 0, 1, 1], [], []>} : vector<64x16xf32>, vector<16x1xf32>, vector<64x1xf32> -> vector<64x1xf32>
    %449 = arith.addf %448, %447 : vector<64x1xf32>
    %cst_178 = arith.constant dense<0.000000e+00> : vector<32xf32>
    %450 = vector.multi_reduction <add>, %443, %cst_178 [1] : vector<32x16xf32> to vector<32xf32>
    %451 = vector.shape_cast %450 : vector<32xf32> to vector<32x1xf32>
    %cst_179 = arith.constant 1.600000e+01 : f32
    %452 = vector.broadcast %cst_179 : f32 to vector<32x1xf32>
    %453 = arith.divf %451, %452 : vector<32x1xf32>
    %454 = vector.broadcast %453 : vector<32x1xf32> to vector<32x16xf32>
    %455 = arith.subf %443, %454 : vector<32x16xf32>
    %456 = arith.mulf %455, %455 : vector<32x16xf32>
    %cst_180 = arith.constant dense<0.000000e+00> : vector<32xf32>
    %457 = vector.multi_reduction <add>, %456, %cst_180 [1] : vector<32x16xf32> to vector<32xf32>
    %458 = vector.shape_cast %457 : vector<32xf32> to vector<32x1xf32>
    %cst_181 = arith.constant 1.600000e+01 : f32
    %459 = vector.broadcast %cst_181 : f32 to vector<32x1xf32>
    %460 = arith.divf %458, %459 : vector<32x1xf32>
    %cst_182 = arith.constant 9.99999974E-6 : f32
    %461 = vector.broadcast %cst_182 : f32 to vector<32x1xf32>
    %462 = arith.addf %460, %461 : vector<32x1xf32>
    %463 = math.rsqrt %462 : vector<32x1xf32>
    %464 = vector.broadcast %463 : vector<32x1xf32> to vector<32x16xf32>
    %465 = arith.mulf %455, %464 : vector<32x16xf32>
    %466 = vector.extract_strided_slice %449 {offsets = [32, 0], sizes = [32, 1], strides = [1, 1]} : vector<64x1xf32> to vector<32x1xf32>
    %467 = vector.broadcast %466 : vector<32x1xf32> to vector<32x16xf32>
    %468 = arith.mulf %465, %467 : vector<32x16xf32>
    %469 = vector.extract_strided_slice %449 {offsets = [0, 0], sizes = [32, 1], strides = [1, 1]} : vector<64x1xf32> to vector<32x1xf32>
    %470 = vector.broadcast %469 : vector<32x1xf32> to vector<32x16xf32>
    %471 = arith.addf %468, %470 : vector<32x16xf32>
    %cst_183 = arith.constant 0.000000e+00 : f32
    %472 = vector.broadcast %cst_183 : f32 to vector<32x16xf32>
    %473 = arith.maximumf %471, %472 : vector<32x16xf32>
    %474 = arith.addf %473, %445 : vector<32x16xf32>
    %c688 = arith.constant 688 : index
    %c0_184 = arith.constant 0 : index
    %475 = vector.load %arg3[%c688, %c0_184] : memref<1024x160xf32, #tpu.memory_space<vmem>>, vector<32x160xf32>
    %c688_185 = arith.constant 688 : index
    %c0_186 = arith.constant 0 : index
    %476 = vector.load %arg4[%c688_185, %c0_186] : memref<1024x1xf32, #tpu.memory_space<vmem>>, vector<32x1xf32>
    %477 = vector.extract_strided_slice %474 {offsets = [0, 2], sizes = [32, 1], strides = [1, 1]} : vector<32x16xf32> to vector<32x1xf32>
    %478 = vector.extract_strided_slice %474 {offsets = [0, 1], sizes = [32, 1], strides = [1, 1]} : vector<32x16xf32> to vector<32x1xf32>
    %479 = vector.extract_strided_slice %474 {offsets = [0, 14], sizes = [32, 1], strides = [1, 1]} : vector<32x16xf32> to vector<32x1xf32>
    %480 = vector.extract_strided_slice %474 {offsets = [0, 13], sizes = [32, 1], strides = [1, 1]} : vector<32x16xf32> to vector<32x1xf32>
    %481 = tpu.concatenate %477, %478, %474, %479, %480 in 1 : vector<32x1xf32>, vector<32x1xf32>, vector<32x16xf32>, vector<32x1xf32>, vector<32x1xf32> -> vector<32x20xf32>
    %482 = vector.extract_strided_slice %481 {offsets = [0, 0], sizes = [32, 16], strides = [1, 1]} : vector<32x20xf32> to vector<32x16xf32>
    %483 = vector.extract_strided_slice %481 {offsets = [0, 1], sizes = [32, 16], strides = [1, 1]} : vector<32x20xf32> to vector<32x16xf32>
    %484 = vector.extract_strided_slice %481 {offsets = [0, 2], sizes = [32, 16], strides = [1, 1]} : vector<32x20xf32> to vector<32x16xf32>
    %485 = vector.extract_strided_slice %481 {offsets = [0, 3], sizes = [32, 16], strides = [1, 1]} : vector<32x20xf32> to vector<32x16xf32>
    %486 = vector.extract_strided_slice %481 {offsets = [0, 4], sizes = [32, 16], strides = [1, 1]} : vector<32x20xf32> to vector<32x16xf32>
    %487 = tpu.concatenate %482, %483, %484, %485, %486 in 0 : vector<32x16xf32>, vector<32x16xf32>, vector<32x16xf32>, vector<32x16xf32>, vector<32x16xf32> -> vector<160x16xf32>
    %cst_187 = arith.constant dense<0.000000e+00> : vector<32x16xf32>
    %488 = tpu.matmul %475, %487, %cst_187 {dimension_numbers = #tpu.dot_dimension_numbers<[1], [0], [0], [1], [0, 0, 1, 1], [], []>} : vector<32x160xf32>, vector<160x16xf32>, vector<32x16xf32> -> vector<32x16xf32>
    %489 = vector.broadcast %476 : vector<32x1xf32> to vector<32x16xf32>
    %490 = arith.addf %488, %489 : vector<32x16xf32>
    %c880 = arith.constant 880 : index
    %c0_188 = arith.constant 0 : index
    %491 = vector.load %arg3[%c880, %c0_188] : memref<1024x160xf32, #tpu.memory_space<vmem>>, vector<64x16xf32>
    %c880_189 = arith.constant 880 : index
    %c0_190 = arith.constant 0 : index
    %492 = vector.load %arg4[%c880_189, %c0_190] : memref<1024x1xf32, #tpu.memory_space<vmem>>, vector<64x1xf32>
    %cst_191 = arith.constant dense<0.000000e+00> : vector<64x1xf32>
    %493 = tpu.matmul %491, %347, %cst_191 {dimension_numbers = #tpu.dot_dimension_numbers<[1], [0], [0], [1], [0, 0, 1, 1], [], []>} : vector<64x16xf32>, vector<16x1xf32>, vector<64x1xf32> -> vector<64x1xf32>
    %494 = arith.addf %493, %492 : vector<64x1xf32>
    %cst_192 = arith.constant dense<0.000000e+00> : vector<32xf32>
    %495 = vector.multi_reduction <add>, %490, %cst_192 [1] : vector<32x16xf32> to vector<32xf32>
    %496 = vector.shape_cast %495 : vector<32xf32> to vector<32x1xf32>
    %cst_193 = arith.constant 1.600000e+01 : f32
    %497 = vector.broadcast %cst_193 : f32 to vector<32x1xf32>
    %498 = arith.divf %496, %497 : vector<32x1xf32>
    %499 = vector.broadcast %498 : vector<32x1xf32> to vector<32x16xf32>
    %500 = arith.subf %490, %499 : vector<32x16xf32>
    %501 = arith.mulf %500, %500 : vector<32x16xf32>
    %cst_194 = arith.constant dense<0.000000e+00> : vector<32xf32>
    %502 = vector.multi_reduction <add>, %501, %cst_194 [1] : vector<32x16xf32> to vector<32xf32>
    %503 = vector.shape_cast %502 : vector<32xf32> to vector<32x1xf32>
    %cst_195 = arith.constant 1.600000e+01 : f32
    %504 = vector.broadcast %cst_195 : f32 to vector<32x1xf32>
    %505 = arith.divf %503, %504 : vector<32x1xf32>
    %cst_196 = arith.constant 9.99999974E-6 : f32
    %506 = vector.broadcast %cst_196 : f32 to vector<32x1xf32>
    %507 = arith.addf %505, %506 : vector<32x1xf32>
    %508 = math.rsqrt %507 : vector<32x1xf32>
    %509 = vector.broadcast %508 : vector<32x1xf32> to vector<32x16xf32>
    %510 = arith.mulf %500, %509 : vector<32x16xf32>
    %511 = vector.extract_strided_slice %494 {offsets = [32, 0], sizes = [32, 1], strides = [1, 1]} : vector<64x1xf32> to vector<32x1xf32>
    %512 = vector.broadcast %511 : vector<32x1xf32> to vector<32x16xf32>
    %513 = arith.mulf %510, %512 : vector<32x16xf32>
    %514 = vector.extract_strided_slice %494 {offsets = [0, 0], sizes = [32, 1], strides = [1, 1]} : vector<64x1xf32> to vector<32x1xf32>
    %515 = vector.broadcast %514 : vector<32x1xf32> to vector<32x16xf32>
    %516 = arith.addf %513, %515 : vector<32x16xf32>
    %cst_197 = arith.constant 0.000000e+00 : f32
    %517 = vector.broadcast %cst_197 : f32 to vector<32x16xf32>
    %518 = arith.maximumf %516, %517 : vector<32x16xf32>
    %c720 = arith.constant 720 : index
    %c0_198 = arith.constant 0 : index
    %519 = vector.load %arg3[%c720, %c0_198] : memref<1024x160xf32, #tpu.memory_space<vmem>>, vector<32x160xf32>
    %c720_199 = arith.constant 720 : index
    %c0_200 = arith.constant 0 : index
    %520 = vector.load %arg4[%c720_199, %c0_200] : memref<1024x1xf32, #tpu.memory_space<vmem>>, vector<32x1xf32>
    %521 = vector.extract_strided_slice %518 {offsets = [0, 2], sizes = [32, 1], strides = [1, 1]} : vector<32x16xf32> to vector<32x1xf32>
    %522 = vector.extract_strided_slice %518 {offsets = [0, 1], sizes = [32, 1], strides = [1, 1]} : vector<32x16xf32> to vector<32x1xf32>
    %523 = vector.extract_strided_slice %518 {offsets = [0, 14], sizes = [32, 1], strides = [1, 1]} : vector<32x16xf32> to vector<32x1xf32>
    %524 = vector.extract_strided_slice %518 {offsets = [0, 13], sizes = [32, 1], strides = [1, 1]} : vector<32x16xf32> to vector<32x1xf32>
    %525 = tpu.concatenate %521, %522, %518, %523, %524 in 1 : vector<32x1xf32>, vector<32x1xf32>, vector<32x16xf32>, vector<32x1xf32>, vector<32x1xf32> -> vector<32x20xf32>
    %526 = vector.extract_strided_slice %525 {offsets = [0, 0], sizes = [32, 16], strides = [1, 1]} : vector<32x20xf32> to vector<32x16xf32>
    %527 = vector.extract_strided_slice %525 {offsets = [0, 1], sizes = [32, 16], strides = [1, 1]} : vector<32x20xf32> to vector<32x16xf32>
    %528 = vector.extract_strided_slice %525 {offsets = [0, 2], sizes = [32, 16], strides = [1, 1]} : vector<32x20xf32> to vector<32x16xf32>
    %529 = vector.extract_strided_slice %525 {offsets = [0, 3], sizes = [32, 16], strides = [1, 1]} : vector<32x20xf32> to vector<32x16xf32>
    %530 = vector.extract_strided_slice %525 {offsets = [0, 4], sizes = [32, 16], strides = [1, 1]} : vector<32x20xf32> to vector<32x16xf32>
    %531 = tpu.concatenate %526, %527, %528, %529, %530 in 0 : vector<32x16xf32>, vector<32x16xf32>, vector<32x16xf32>, vector<32x16xf32>, vector<32x16xf32> -> vector<160x16xf32>
    %cst_201 = arith.constant dense<0.000000e+00> : vector<32x16xf32>
    %532 = tpu.matmul %519, %531, %cst_201 {dimension_numbers = #tpu.dot_dimension_numbers<[1], [0], [0], [1], [0, 0, 1, 1], [], []>} : vector<32x160xf32>, vector<160x16xf32>, vector<32x16xf32> -> vector<32x16xf32>
    %533 = vector.broadcast %520 : vector<32x1xf32> to vector<32x16xf32>
    %534 = arith.addf %532, %533 : vector<32x16xf32>
    %c944 = arith.constant 944 : index
    %c0_202 = arith.constant 0 : index
    %535 = vector.load %arg3[%c944, %c0_202] : memref<1024x160xf32, #tpu.memory_space<vmem>>, vector<64x16xf32>
    %c944_203 = arith.constant 944 : index
    %c0_204 = arith.constant 0 : index
    %536 = vector.load %arg4[%c944_203, %c0_204] : memref<1024x1xf32, #tpu.memory_space<vmem>>, vector<64x1xf32>
    %cst_205 = arith.constant dense<0.000000e+00> : vector<64x1xf32>
    %537 = tpu.matmul %535, %347, %cst_205 {dimension_numbers = #tpu.dot_dimension_numbers<[1], [0], [0], [1], [0, 0, 1, 1], [], []>} : vector<64x16xf32>, vector<16x1xf32>, vector<64x1xf32> -> vector<64x1xf32>
    %538 = arith.addf %537, %536 : vector<64x1xf32>
    %cst_206 = arith.constant dense<0.000000e+00> : vector<32xf32>
    %539 = vector.multi_reduction <add>, %534, %cst_206 [1] : vector<32x16xf32> to vector<32xf32>
    %540 = vector.shape_cast %539 : vector<32xf32> to vector<32x1xf32>
    %cst_207 = arith.constant 1.600000e+01 : f32
    %541 = vector.broadcast %cst_207 : f32 to vector<32x1xf32>
    %542 = arith.divf %540, %541 : vector<32x1xf32>
    %543 = vector.broadcast %542 : vector<32x1xf32> to vector<32x16xf32>
    %544 = arith.subf %534, %543 : vector<32x16xf32>
    %545 = arith.mulf %544, %544 : vector<32x16xf32>
    %cst_208 = arith.constant dense<0.000000e+00> : vector<32xf32>
    %546 = vector.multi_reduction <add>, %545, %cst_208 [1] : vector<32x16xf32> to vector<32xf32>
    %547 = vector.shape_cast %546 : vector<32xf32> to vector<32x1xf32>
    %cst_209 = arith.constant 1.600000e+01 : f32
    %548 = vector.broadcast %cst_209 : f32 to vector<32x1xf32>
    %549 = arith.divf %547, %548 : vector<32x1xf32>
    %cst_210 = arith.constant 9.99999974E-6 : f32
    %550 = vector.broadcast %cst_210 : f32 to vector<32x1xf32>
    %551 = arith.addf %549, %550 : vector<32x1xf32>
    %552 = math.rsqrt %551 : vector<32x1xf32>
    %553 = vector.broadcast %552 : vector<32x1xf32> to vector<32x16xf32>
    %554 = arith.mulf %544, %553 : vector<32x16xf32>
    %555 = vector.extract_strided_slice %538 {offsets = [32, 0], sizes = [32, 1], strides = [1, 1]} : vector<64x1xf32> to vector<32x1xf32>
    %556 = vector.broadcast %555 : vector<32x1xf32> to vector<32x16xf32>
    %557 = arith.mulf %554, %556 : vector<32x16xf32>
    %558 = vector.extract_strided_slice %538 {offsets = [0, 0], sizes = [32, 1], strides = [1, 1]} : vector<64x1xf32> to vector<32x1xf32>
    %559 = vector.broadcast %558 : vector<32x1xf32> to vector<32x16xf32>
    %560 = arith.addf %557, %559 : vector<32x16xf32>
    %cst_211 = arith.constant 0.000000e+00 : f32
    %561 = vector.broadcast %cst_211 : f32 to vector<32x16xf32>
    %562 = arith.maximumf %560, %561 : vector<32x16xf32>
    %563 = arith.addf %562, %474 : vector<32x16xf32>
    %c1008 = arith.constant 1008 : index
    %c0_212 = arith.constant 0 : index
    %564 = vector.load %arg3[%c1008, %c0_212] : memref<1024x160xf32, #tpu.memory_space<vmem>>, vector<16x32xf32>
    %c1008_213 = arith.constant 1008 : index
    %c0_214 = arith.constant 0 : index
    %565 = vector.load %arg4[%c1008_213, %c0_214] : memref<1024x1xf32, #tpu.memory_space<vmem>>, vector<16x1xf32>
    %cst_215 = arith.constant dense<0.000000e+00> : vector<16x16xf32>
    %566 = tpu.matmul %564, %563, %cst_215 {dimension_numbers = #tpu.dot_dimension_numbers<[1], [0], [0], [1], [0, 0, 1, 1], [], []>} : vector<16x32xf32>, vector<32x16xf32>, vector<16x16xf32> -> vector<16x16xf32>
    %567 = vector.broadcast %565 : vector<16x1xf32> to vector<16x16xf32>
    %568 = arith.addf %566, %567 : vector<16x16xf32>
    %569 = vector.extract_strided_slice %198 {offsets = [0, 0], sizes = [1, 8], strides = [1, 1]} : vector<16x8xf32> to vector<1x8xf32>
    %570 = vector.extract_strided_slice %198 {offsets = [1, 0], sizes = [1, 8], strides = [1, 1]} : vector<16x8xf32> to vector<1x8xf32>
    %571 = vector.extract_strided_slice %198 {offsets = [2, 0], sizes = [1, 8], strides = [1, 1]} : vector<16x8xf32> to vector<1x8xf32>
    %572 = vector.extract_strided_slice %198 {offsets = [3, 0], sizes = [1, 8], strides = [1, 1]} : vector<16x8xf32> to vector<1x8xf32>
    %573 = vector.extract_strided_slice %198 {offsets = [4, 0], sizes = [1, 8], strides = [1, 1]} : vector<16x8xf32> to vector<1x8xf32>
    %574 = vector.extract_strided_slice %198 {offsets = [5, 0], sizes = [1, 8], strides = [1, 1]} : vector<16x8xf32> to vector<1x8xf32>
    %575 = vector.extract_strided_slice %198 {offsets = [6, 0], sizes = [1, 8], strides = [1, 1]} : vector<16x8xf32> to vector<1x8xf32>
    %576 = vector.extract_strided_slice %198 {offsets = [7, 0], sizes = [1, 8], strides = [1, 1]} : vector<16x8xf32> to vector<1x8xf32>
    %577 = vector.extract_strided_slice %198 {offsets = [8, 0], sizes = [1, 8], strides = [1, 1]} : vector<16x8xf32> to vector<1x8xf32>
    %578 = vector.extract_strided_slice %198 {offsets = [9, 0], sizes = [1, 8], strides = [1, 1]} : vector<16x8xf32> to vector<1x8xf32>
    %579 = vector.extract_strided_slice %198 {offsets = [10, 0], sizes = [1, 8], strides = [1, 1]} : vector<16x8xf32> to vector<1x8xf32>
    %580 = vector.extract_strided_slice %198 {offsets = [11, 0], sizes = [1, 8], strides = [1, 1]} : vector<16x8xf32> to vector<1x8xf32>
    %581 = vector.extract_strided_slice %198 {offsets = [12, 0], sizes = [1, 8], strides = [1, 1]} : vector<16x8xf32> to vector<1x8xf32>
    %582 = vector.extract_strided_slice %198 {offsets = [13, 0], sizes = [1, 8], strides = [1, 1]} : vector<16x8xf32> to vector<1x8xf32>
    %583 = vector.extract_strided_slice %198 {offsets = [14, 0], sizes = [1, 8], strides = [1, 1]} : vector<16x8xf32> to vector<1x8xf32>
    %584 = vector.extract_strided_slice %198 {offsets = [15, 0], sizes = [1, 8], strides = [1, 1]} : vector<16x8xf32> to vector<1x8xf32>
    %585 = tpu.concatenate %569, %570, %571, %572, %573, %574, %575, %576, %577, %578, %579, %580, %581, %582, %583, %584 in 1 : vector<1x8xf32>, vector<1x8xf32>, vector<1x8xf32>, vector<1x8xf32>, vector<1x8xf32>, vector<1x8xf32>, vector<1x8xf32>, vector<1x8xf32>, vector<1x8xf32>, vector<1x8xf32>, vector<1x8xf32>, vector<1x8xf32>, vector<1x8xf32>, vector<1x8xf32>, vector<1x8xf32>, vector<1x8xf32> -> vector<1x128xf32>
    %c0_216 = arith.constant 0 : index
    %c0_217 = arith.constant 0 : index
    %c0_218 = arith.constant 0 : index
    %586 = vector.load %arg9[%c0_216, %c0_217, %c0_218] : memref<1x1x128xf32, #tpu.memory_space<vmem>>, vector<1x1x128xf32>
    %587 = vector.shape_cast %586 : vector<1x1x128xf32> to vector<1x128xf32>
    %588 = vector.shape_cast %585 : vector<1x128xf32> to vector<1x1x128xf32>
    tpu.vector_store %arg9[%c0_216, %c0_217, %c0_218], %588 {strides = array<i32>} : memref<1x1x128xf32, #tpu.memory_space<vmem>>, vector<1x1x128xf32>,
    %589 = vector.extract_strided_slice %203 {offsets = [0, 0], sizes = [1, 8], strides = [1, 1]} : vector<16x8xf32> to vector<1x8xf32>
    %590 = vector.extract_strided_slice %203 {offsets = [1, 0], sizes = [1, 8], strides = [1, 1]} : vector<16x8xf32> to vector<1x8xf32>
    %591 = vector.extract_strided_slice %203 {offsets = [2, 0], sizes = [1, 8], strides = [1, 1]} : vector<16x8xf32> to vector<1x8xf32>
    %592 = vector.extract_strided_slice %203 {offsets = [3, 0], sizes = [1, 8], strides = [1, 1]} : vector<16x8xf32> to vector<1x8xf32>
    %593 = vector.extract_strided_slice %203 {offsets = [4, 0], sizes = [1, 8], strides = [1, 1]} : vector<16x8xf32> to vector<1x8xf32>
    %594 = vector.extract_strided_slice %203 {offsets = [5, 0], sizes = [1, 8], strides = [1, 1]} : vector<16x8xf32> to vector<1x8xf32>
    %595 = vector.extract_strided_slice %203 {offsets = [6, 0], sizes = [1, 8], strides = [1, 1]} : vector<16x8xf32> to vector<1x8xf32>
    %596 = vector.extract_strided_slice %203 {offsets = [7, 0], sizes = [1, 8], strides = [1, 1]} : vector<16x8xf32> to vector<1x8xf32>
    %597 = vector.extract_strided_slice %203 {offsets = [8, 0], sizes = [1, 8], strides = [1, 1]} : vector<16x8xf32> to vector<1x8xf32>
    %598 = vector.extract_strided_slice %203 {offsets = [9, 0], sizes = [1, 8], strides = [1, 1]} : vector<16x8xf32> to vector<1x8xf32>
    %599 = vector.extract_strided_slice %203 {offsets = [10, 0], sizes = [1, 8], strides = [1, 1]} : vector<16x8xf32> to vector<1x8xf32>
    %600 = vector.extract_strided_slice %203 {offsets = [11, 0], sizes = [1, 8], strides = [1, 1]} : vector<16x8xf32> to vector<1x8xf32>
    %601 = vector.extract_strided_slice %203 {offsets = [12, 0], sizes = [1, 8], strides = [1, 1]} : vector<16x8xf32> to vector<1x8xf32>
    %602 = vector.extract_strided_slice %203 {offsets = [13, 0], sizes = [1, 8], strides = [1, 1]} : vector<16x8xf32> to vector<1x8xf32>
    %603 = vector.extract_strided_slice %203 {offsets = [14, 0], sizes = [1, 8], strides = [1, 1]} : vector<16x8xf32> to vector<1x8xf32>
    %604 = vector.extract_strided_slice %203 {offsets = [15, 0], sizes = [1, 8], strides = [1, 1]} : vector<16x8xf32> to vector<1x8xf32>
    %605 = tpu.concatenate %589, %590, %591, %592, %593, %594, %595, %596, %597, %598, %599, %600, %601, %602, %603, %604 in 1 : vector<1x8xf32>, vector<1x8xf32>, vector<1x8xf32>, vector<1x8xf32>, vector<1x8xf32>, vector<1x8xf32>, vector<1x8xf32>, vector<1x8xf32>, vector<1x8xf32>, vector<1x8xf32>, vector<1x8xf32>, vector<1x8xf32>, vector<1x8xf32>, vector<1x8xf32>, vector<1x8xf32>, vector<1x8xf32> -> vector<1x128xf32>
    %c0_219 = arith.constant 0 : index
    %c0_220 = arith.constant 0 : index
    %c0_221 = arith.constant 0 : index
    %606 = vector.load %arg10[%c0_219, %c0_220, %c0_221] : memref<1x1x128xf32, #tpu.memory_space<vmem>>, vector<1x1x128xf32>
    %607 = vector.shape_cast %606 : vector<1x1x128xf32> to vector<1x128xf32>
    %608 = vector.shape_cast %605 : vector<1x128xf32> to vector<1x1x128xf32>
    tpu.vector_store %arg10[%c0_219, %c0_220, %c0_221], %608 {strides = array<i32>} : memref<1x1x128xf32, #tpu.memory_space<vmem>>, vector<1x1x128xf32>,
    %c0_222 = arith.constant 0 : index
    %c0_223 = arith.constant 0 : index
    %c0_224 = arith.constant 0 : index
    %609 = vector.load %arg11[%c0_222, %c0_223, %c0_224] : memref<1x16x1xf32, #tpu.memory_space<vmem>>, vector<1x16x1xf32>
    %610 = vector.shape_cast %609 : vector<1x16x1xf32> to vector<16x1xf32>
    %611 = vector.shape_cast %347 : vector<16x1xf32> to vector<1x16x1xf32>
    tpu.vector_store %arg11[%c0_222, %c0_223, %c0_224], %611 {strides = array<i32>} : memref<1x16x1xf32, #tpu.memory_space<vmem>>, vector<1x16x1xf32>,
    %612 = vector.extract_strided_slice %568 {offsets = [0, 0], sizes = [1, 16], strides = [1, 1]} : vector<16x16xf32> to vector<1x16xf32>
    %613 = vector.extract_strided_slice %568 {offsets = [1, 0], sizes = [1, 16], strides = [1, 1]} : vector<16x16xf32> to vector<1x16xf32>
    %614 = vector.extract_strided_slice %568 {offsets = [2, 0], sizes = [1, 16], strides = [1, 1]} : vector<16x16xf32> to vector<1x16xf32>
    %615 = vector.extract_strided_slice %568 {offsets = [3, 0], sizes = [1, 16], strides = [1, 1]} : vector<16x16xf32> to vector<1x16xf32>
    %616 = vector.extract_strided_slice %568 {offsets = [4, 0], sizes = [1, 16], strides = [1, 1]} : vector<16x16xf32> to vector<1x16xf32>
    %617 = vector.extract_strided_slice %568 {offsets = [5, 0], sizes = [1, 16], strides = [1, 1]} : vector<16x16xf32> to vector<1x16xf32>
    %618 = vector.extract_strided_slice %568 {offsets = [6, 0], sizes = [1, 16], strides = [1, 1]} : vector<16x16xf32> to vector<1x16xf32>
    %619 = vector.extract_strided_slice %568 {offsets = [7, 0], sizes = [1, 16], strides = [1, 1]} : vector<16x16xf32> to vector<1x16xf32>
    %620 = vector.extract_strided_slice %568 {offsets = [8, 0], sizes = [1, 16], strides = [1, 1]} : vector<16x16xf32> to vector<1x16xf32>
    %621 = vector.extract_strided_slice %568 {offsets = [9, 0], sizes = [1, 16], strides = [1, 1]} : vector<16x16xf32> to vector<1x16xf32>
    %622 = vector.extract_strided_slice %568 {offsets = [10, 0], sizes = [1, 16], strides = [1, 1]} : vector<16x16xf32> to vector<1x16xf32>
    %623 = vector.extract_strided_slice %568 {offsets = [11, 0], sizes = [1, 16], strides = [1, 1]} : vector<16x16xf32> to vector<1x16xf32>
    %624 = vector.extract_strided_slice %568 {offsets = [12, 0], sizes = [1, 16], strides = [1, 1]} : vector<16x16xf32> to vector<1x16xf32>
    %625 = vector.extract_strided_slice %568 {offsets = [13, 0], sizes = [1, 16], strides = [1, 1]} : vector<16x16xf32> to vector<1x16xf32>
    %626 = vector.extract_strided_slice %568 {offsets = [14, 0], sizes = [1, 16], strides = [1, 1]} : vector<16x16xf32> to vector<1x16xf32>
    %627 = vector.extract_strided_slice %568 {offsets = [15, 0], sizes = [1, 16], strides = [1, 1]} : vector<16x16xf32> to vector<1x16xf32>
    %628 = tpu.concatenate %612, %613, %614, %615, %616, %617, %618, %619, %620, %621, %622, %623, %624, %625, %626, %627 in 1 : vector<1x16xf32>, vector<1x16xf32>, vector<1x16xf32>, vector<1x16xf32>, vector<1x16xf32>, vector<1x16xf32>, vector<1x16xf32>, vector<1x16xf32>, vector<1x16xf32>, vector<1x16xf32>, vector<1x16xf32>, vector<1x16xf32>, vector<1x16xf32>, vector<1x16xf32>, vector<1x16xf32>, vector<1x16xf32> -> vector<1x256xf32>
    %c0_225 = arith.constant 0 : index
    %c0_226 = arith.constant 0 : index
    %c0_227 = arith.constant 0 : index
    %629 = vector.load %arg12[%c0_225, %c0_226, %c0_227] : memref<1x1x256xf32, #tpu.memory_space<vmem>>, vector<1x1x256xf32>
    %630 = vector.shape_cast %629 : vector<1x1x256xf32> to vector<1x256xf32>
    %631 = vector.shape_cast %628 : vector<1x256xf32> to vector<1x1x256xf32>
    tpu.vector_store %arg12[%c0_225, %c0_226, %c0_227], %631 {strides = array<i32>} : memref<1x1x256xf32, #tpu.memory_space<vmem>>, vector<1x1x256xf32>,
    return
  }
  func.func @transform_0(%arg0: i32) -> (i32, i32, i32) {
    %c0_i32 = arith.constant 0 : i32
    %c0_i32_0 = arith.constant 0 : i32
    %c0_i32_1 = arith.constant 0 : i32
    return %arg0, %c0_i32, %c0_i32_0 : i32, i32, i32
  }
  func.func @transform_1(%arg0: i32) -> (i32, i32, i32) {
    %c0_i32 = arith.constant 0 : i32
    %c0_i32_0 = arith.constant 0 : i32
    %c0_i32_1 = arith.constant 0 : i32
    return %arg0, %c0_i32, %c0_i32_0 : i32, i32, i32
  }
  func.func @transform_2(%arg0: i32) -> (i32, i32) {
    %c0_i32 = arith.constant 0 : i32
    %c0_i32_0 = arith.constant 0 : i32
    %c0_i32_1 = arith.constant 0 : i32
    return %c0_i32, %c0_i32_0 : i32, i32
  }
  func.func @transform_3(%arg0: i32) -> (i32, i32) {
    %c0_i32 = arith.constant 0 : i32
    %c0_i32_0 = arith.constant 0 : i32
    %c0_i32_1 = arith.constant 0 : i32
    return %c0_i32, %c0_i32_0 : i32, i32
  }
  func.func @transform_4(%arg0: i32) -> (i32, i32) {
    %c0_i32 = arith.constant 0 : i32
    %c0_i32_0 = arith.constant 0 : i32
    %c0_i32_1 = arith.constant 0 : i32
    return %c0_i32, %c0_i32_0 : i32, i32
  }
  func.func @transform_5(%arg0: i32) -> (i32, i32) {
    %c0_i32 = arith.constant 0 : i32
    %c0_i32_0 = arith.constant 0 : i32
    %c0_i32_1 = arith.constant 0 : i32
    return %c0_i32, %c0_i32_0 : i32, i32
  }
  func.func @transform_6(%arg0: i32) -> (i32, i32) {
    %c0_i32 = arith.constant 0 : i32
    %c0_i32_0 = arith.constant 0 : i32
    %c0_i32_1 = arith.constant 0 : i32
    return %c0_i32, %c0_i32_0 : i32, i32
  }
  func.func @transform_7(%arg0: i32) -> (i32, i32) {
    %c0_i32 = arith.constant 0 : i32
    %c0_i32_0 = arith.constant 0 : i32
    %c0_i32_1 = arith.constant 0 : i32
    return %c0_i32, %c0_i32_0 : i32, i32
  }
  func.func @transform_8(%arg0: i32) -> (i32, i32, i32) {
    %c0_i32 = arith.constant 0 : i32
    %c0_i32_0 = arith.constant 0 : i32
    %c0_i32_1 = arith.constant 0 : i32
    return %arg0, %c0_i32, %c0_i32_0 : i32, i32, i32
  }
  func.func @transform_9(%arg0: i32) -> (i32, i32, i32) {
    %c0_i32 = arith.constant 0 : i32
    %c0_i32_0 = arith.constant 0 : i32
    %c0_i32_1 = arith.constant 0 : i32
    return %arg0, %c0_i32, %c0_i32_0 : i32, i32, i32
  }
  func.func @transform_10(%arg0: i32) -> (i32, i32, i32) {
    %c0_i32 = arith.constant 0 : i32
    %c0_i32_0 = arith.constant 0 : i32
    %c0_i32_1 = arith.constant 0 : i32
    return %arg0, %c0_i32, %c0_i32_0 : i32, i32, i32
  }
  func.func @transform_11(%arg0: i32) -> (i32, i32, i32) {
    %c0_i32 = arith.constant 0 : i32
    %c0_i32_0 = arith.constant 0 : i32
    %c0_i32_1 = arith.constant 0 : i32
    return %arg0, %c0_i32, %c0_i32_0 : i32, i32, i32
  }
}

</mosaic_0001>

<bundles_post_ra>
// kernel: fwd.1
= control target key start
LH: loop header
LB: loop body
LE: loop exit
PB: predicated region body
PF: predicated region fallthrough
CT: control target
= control target key end

     0   :  { %s7628_s17 = smov 0   ;;  %s10239_s0 = inlined_call_operand.vmem [shape: f32[2,16,16], index: 0, kind: input, shape index: {}]   ;;  %s10240_s1 = inlined_call_operand.vmem [shape: f32[2,16,8], index: 1, kind: input, shape index: {}]   ;;  %s10241_s2 = inlined_call_operand.vmem [shape: f32[1024,160], index: 2, kind: input, shape index: {}]   ;;  %s10242_s3 = inlined_call_operand.vmem [shape: f32[1024,1], index: 3, kind: input, shape index: {}]   ;;  %s10243_s4 = inlined_call_operand.vmem [shape: f32[16,8], index: 4, kind: input, shape index: {}]   ;;  %s10244_s5 = inlined_call_operand.vmem [shape: f32[16,8], index: 5, kind: input, shape index: {}]   ;;  %s10245_s6 = inlined_call_operand.vmem [shape: f32[8,16], index: 6, kind: input, shape index: {}]   ;;  %s10246_s7 = inlined_call_operand.vmem [shape: f32[8,16], index: 7, kind: input, shape index: {}]   ;;  %s10247_s8 = inlined_call_operand.vmem [shape: f32[2,1,128], index: 8, kind: output, shape index: {0}]   ;;  %s10248_s9 = inlined_call_operand.vmem [shape: f32[2,1,128], index: 9, kind: output, shape index: {1}]   ;;  %s10249_s10 = inlined_call_operand.vmem [shape: f32[2,16,1], index: 10, kind: output, shape index: {2}]   ;;  %s10250_s11 = inlined_call_operand.vmem [shape: f32[2,1,256], index: 11, kind: output, shape index: {3}]  }
   0x1 LB: > { %s6198_s18 = sadd.s32 4294967295, %s7537_s17   ;;  %p6202_p0 = scmp.ge.s32.totalorder %s7537_s17, 1  ;;  %s7537_s17 = sphi %s7628_s17, %s22_s17  }
   0x2   : > { %p354_p1 = scmp.lt.s32.totalorder %s7537_s17, 3 }
   0x4   : > { %p355_p2 = pnand %p6202_p0, %p354_p1 }
   0x5   : > { %p409_p3 = scmp.lt.s32.totalorder (!%p355_p2), %s6198_s18, 1  ;;  %s10253_s23 = smov (!%p355_p2), 124  }
   0x6   : > { %358 = sbr.rel (%p355_p2) target bundleno = 10016 (0x2720), region = 52  ;;  %s7540_s24 = smov (!%p355_p2), 2  }
   0x7   : > { %s7541_s25 = smov (!%p355_p2), 6   ;;  %s7542_s26 = smov (!%p355_p2), 126  }
   0x8   : > { %s10260_s27 = smov (!%p355_p2), 4   ;;  %s10251_s28 = smov (!%p355_p2), 8  }
   0x9   : > { %s7545_s29 = smov (!%p355_p2), 10   ;;  %s7546_s30 = smov (!%p355_p2), 123  }
   0xa   : > { %s7547_s12 = smov (!%p355_p2), 122   ;;  %s7548_s13 = smov (!%p355_p2), 121  }
   0xb   : > { %s10301_s18 = smov (!%p409_p3, %s6198_s18), 1  ;;  %vm482_vm0 = vcmask 7168   ;;  %vm485_vm1 = vcmask 15360   ;;  %vm488_vm2 = vcmask 23552   ;;  %vm491_vm3 = vcmask 31744   ;;  %s10258_s14 = smov 125  }
   0xc   : > { %s7639_s19 = sshll.u32 %s10301_s18, 4  ;;  %vm494_vm4 = vcmask 162816   ;;  %vm497_vm5 = vcmask 171008   ;;  %vm500_vm6 = vcmask 179200   ;;  %s10255_s15 = smov 127   ;;  %v552_v54 = vld [vmem:[%s10242_s3 + $0x8] sm:$0xff] }
   0xd   : > { %s7645_s22 = scalar_lea.vmem %s10239_s0, %s7639_s19  ;;  %v7551_v56 = vmov 0   ;;  %v553_v61 = vld [vmem:[%s10242_s3 + $0x10] sm:$0xff]  ;;  %v554_v62 = vld [vmem:[%s10242_s3 + $0x18] sm:$0xff]  ;;  %vm636_vm7 = vcmask 392192   ;;  %vm678_vm8 = vcmask 130048   ;;  %s10263_s20 = smov 124  }
   0xe   : > { %v434_v0 = vld [vmem:[%s7645_s22] sm:$0xff]  ;;  %v435_v1 = vld [vmem:[%s7645_s22 + $0x8] sm:$0xff]  ;;  %6476 = vset.pattern.permute.xlu1 %v7551_v56  ;;  %6475 = vset.pattern.permute.xlu0 %v7551_v56  ;;  %v615_v63 = vld [vmem:[%s10242_s3 + $0x38] sm:$0xff]  ;;  %s10277_s21 = smov 4   ;;  %s7555_s16 = smov 40  }
   0xf   : > { %v6404_v2 = vpack.i.bf16 %v434_v0, %v435_v1  ;;  %659 = vmatpush.msra.mxu2 %v435_v1  ;;  %6474 = vset.pattern.permute.xlu2 %v7551_v56 }
  0x11   : > { %6405 = vrot.lane.b32.xlu0 %v6404_v2, %s10253_s23  ;;  %6415 = vrot.lane.b32.xlu1 %v6404_v2, %s7540_s24 }
  0x12   : > { %6425 = vrot.lane.b32.xlu2 %v6404_v2, %s7541_s25  ;;  %660 = vmatpush.msra.mxu2 %v434_v0 }
  0x19   : > { %6410 = vrot.lane.b32.xlu0 %v6404_v2, %s7542_s26  ;;  %6420 = vrot.lane.b32.xlu1 %v6404_v2, %s10260_s27 }
  0x1a   : > { %6430 = vrot.lane.b32.xlu2 %v6404_v2, %s10251_s28  ;;  %s10297_s28 = smov 8  }
  0x21   : > { %6435 = vrot.lane.b32.xlu0 %v6404_v2, %s7545_s29  ;;  %v613_v2 = vld [vmem:[%s10242_s3 + $0x28] sm:$0xff]  ;;  %s7557_s29 = smov 32  }
  0x6c   : > { %v6426_v5 = vpop.permute.xlu2 %6425 }
  0x6d   : > { %v6428_v21 = vunpack.i.h.bf16 %v6426_v5  ;;  %v6427_v22 = vunpack.i.l.bf16 %v6426_v5  ;;  %v548_v5 = vld [vmem:[%s10241_s2 + $0x10] sm:$0xff] }
  0x74   : > { %v6431_v18 = vpop.permute.xlu2 %6430 }
  0x75   : > { %v6433_v27 = vunpack.i.h.bf16 %v6431_v18  ;;  %v6432_v28 = vunpack.i.l.bf16 %v6431_v18 }
  0x83   : > { %v6406_v3 = vpop.permute.xlu0 %6405  ;;  %v6416_v4 = vpop.permute.xlu1 %6415 }
  0x84   : > { %v6408_v8 = vunpack.i.h.bf16 %v6406_v3  ;;  %v6407_v9 = vunpack.i.l.bf16 %v6406_v3  ;;  %v6418_v14 = vunpack.i.h.bf16 %v6416_v4  ;;  %v6417_v15 = vunpack.i.l.bf16 %v6416_v4  ;;  %v551_v3 = vld [vmem:[%s10242_s3] sm:$0xff] }
  0x85   : > { %v612_v4 = vld [vmem:[%s10242_s3 + $0x20] sm:$0xff] }
  0x8b   : > { %v6411_v6 = vpop.permute.xlu0 %6410  ;;  %v6421_v7 = vpop.permute.xlu1 %6420 }
  0x8c   : > { %v6413_v10 = vunpack.i.h.bf16 %v6411_v6  ;;  %v6412_v11 = vunpack.i.l.bf16 %v6411_v6  ;;  %v6423_v12 = vunpack.i.h.bf16 %v6421_v7  ;;  %v6422_v13 = vunpack.i.l.bf16 %v6421_v7  ;;  %v614_v6 = vld [vmem:[%s10242_s3 + $0x30] sm:$0xff]  ;;  %v549_v7 = vld [vmem:[%s10241_s2 + $0x20] sm:$0xff] }
  0x8e   : > { %v483_v16 = vsel %vm482_vm0, %v6408_v8, %v6413_v10  ;;  %v484_v17 = vsel %vm482_vm0, %v6407_v9, %v6412_v11  ;;  %v550_v8 = vld [vmem:[%s10241_s2 + $0x30] sm:$0xff] }
  0x8f   : > { %v486_v19 = vsel %vm485_vm1, %v483_v16, %v434_v0  ;;  %v487_v20 = vsel %vm485_vm1, %v484_v17, %v435_v1  ;;  %v547_v1 = vld [vmem:[%s10241_s2] sm:$0xff] }
  0x90   : > { %v489_v23 = vsel %vm488_vm2, %v486_v19, %v6418_v14  ;;  %v490_v24 = vsel %vm488_vm2, %v487_v20, %v6417_v15 }
  0x91   : > { %v492_v25 = vsel %vm491_vm3, %v489_v23, %v6423_v12  ;;  %v493_v26 = vsel %vm491_vm3, %v490_v24, %v6422_v13 }
  0x92   : > { %v495_v29 = vsel %vm494_vm4, %v492_v25, %v6428_v21  ;;  %v496_v30 = vsel %vm494_vm4, %v493_v26, %v6427_v22  ;;  %v608_v25 = vld [vmem:[%s10241_s2 + $0x40] sm:$0xff]  ;;  %v609_v26 = vld [vmem:[%s10241_s2 + $0x50] sm:$0xff] }
  0x93   : > { %v6436_v31 = vpop.permute.xlu0 %6435  ;;  %v498_v34 = vsel %vm497_vm5, %v495_v29, %v6433_v27  ;;  %v499_v35 = vsel %vm497_vm5, %v496_v30, %v6432_v28  ;;  %v610_v27 = vld [vmem:[%s10241_s2 + $0x60] sm:$0xff]  ;;  %v611_v28 = vld [vmem:[%s10241_s2 + $0x70] sm:$0xff] }
  0x94   : > { %v6438_v32 = vunpack.i.h.bf16 %v6436_v31  ;;  %v6437_v33 = vunpack.i.l.bf16 %v6436_v31 }
  0x96   : > { %v7661_v36 = vsel %vm500_vm6, %v498_v34, %v6438_v32  ;;  %v7663_v37 = vsel %vm500_vm6, %v499_v35, %v6437_v33 }
  0x97   : > { %v6449_v38 = vpack.i.bf16 %v7661_v36, %v7663_v37 }
  0x99   : > { %6450 = vrot.lane.b32.xlu0 %v6449_v38, %s7546_s30  ;;  %6445 = vrot.lane.b32.xlu2 %v6449_v38, %s7547_s12  ;;  %s7559_s30 = smov 48   ;;  %s7565_s12 = smov 96  }
  0x9a   : > { %6440 = vrot.lane.b32.xlu1 %v6449_v38, %s7548_s13  ;;  %s7567_s13 = smov 120  }
  0xa1   : > { %6465 = vrot.lane.b32.xlu0 %v6449_v38, %s7542_s26  ;;  %6460 = vrot.lane.b32.xlu2 %v6449_v38, %s10258_s14 }
  0xa2   : > { %6455 = vrot.lane.b32.xlu1 %v6449_v38, %s10253_s23 }
  0xa9   : > { %567 = vperm.xlu0 %6475, %v553_v61   ;;  %572 = vperm.xlu2 %6474, %v554_v62  }
  0xaa   : > { %6470 = vrot.lane.b32.xlu1 %v6449_v38, %s10255_s15 }
  0xb1   : > { %623 = vperm.xlu0 %6475, %v613_v2   ;;  %557 = vperm.xlu2 %6474, %v551_v3  }
  0xb2   : > { %562 = vperm.xlu1 %6476, %v552_v54  }
  0xb9   : > { %628 = vperm.xlu2 %6474, %v614_v6  }
  0xba   : > { %633 = vperm.xlu1 %6476, %v615_v63  }
  0xc2   : > { %618 = vperm.xlu1 %6476, %v612_v4   ;;  %v7552_v4 = vmov 16.0  }
  0xc3   : > { %7437 = vrcp.f32 %v7552_v4 }
  0xf3   : > { %v7674_v41 = vpop.permute.xlu2 %6445 }
  0xf4   : > { %v6447_v43 = vunpack.i.l.bf16 %v7674_v41  ;;  %v6448_v45 = vunpack.i.h.bf16 %v7674_v41  ;;  %v1419_v41 = vld [vmem:[%s10241_s2 + $0x130] sm:$0xff] }
  0xfb   : > { %v7698_v50 = vpop.permute.xlu2 %6460 }
  0xfc   : > { %v6462_v52 = vunpack.i.l.bf16 %v7698_v50  ;;  %v6463_v55 = vunpack.i.h.bf16 %v7698_v50 }
 0x103   : > { %v573_v11 = vpop.permute.xlu2 %572 }
 0x10b   : > { %v7682_v44 = vpop.permute.xlu0 %6450  ;;  %v558_v18 = vpop.permute.xlu2 %557 }
 0x10c   : > { %v7671_v39 = vpop.permute.xlu1 %6440  ;;  %v6452_v46 = vunpack.i.l.bf16 %v7682_v44  ;;  %v6453_v48 = vunpack.i.h.bf16 %v7682_v44 }
 0x10d   : > { %v6442_v40 = vunpack.i.l.bf16 %v7671_v39  ;;  %v6443_v42 = vunpack.i.h.bf16 %v7671_v39  ;;  %v1420_v39 = vld [vmem:[%s10241_s2 + $0x138] sm:$0xff] }
 0x10f   : > { %575 = vmatpush.msra.mxu0 %v6442_v40 }
 0x111   : > { %576 = vmatpush.msra.mxu0 %v6443_v42 }
 0x113   : > { %577 = vmatpush.msra.mxu0 %v6447_v43  ;;  %v7706_v53 = vpop.permute.xlu0 %6465  ;;  %v629_v34 = vpop.permute.xlu2 %628 }
 0x114   : > { %v7690_v47 = vpop.permute.xlu1 %6455  ;;  %v6467_v57 = vunpack.i.l.bf16 %v7706_v53  ;;  %v6468_v59 = vunpack.i.h.bf16 %v7706_v53 }
 0x115   : > { %578 = vmatpush.msra.mxu0 %v6448_v45  ;;  %v6457_v49 = vunpack.i.l.bf16 %v7690_v47  ;;  %v6458_v51 = vunpack.i.h.bf16 %v7690_v47 }
 0x117   : > { %579 = vmatpush.msra.mxu0 %v6452_v46 }
 0x119   : > { %580 = vmatpush.msra.mxu0 %v6453_v48 }
 0x11b   : > { %581 = vmatpush.msra.mxu0 %v6457_v49  ;;  %v568_v13 = vpop.permute.xlu0 %567 }
 0x11c   : > { %v7717_v58 = vpop.permute.xlu1 %6470 }
 0x11d   : > { %582 = vmatpush.msra.mxu0 %v6458_v51  ;;  %v6472_v60 = vunpack.i.l.bf16 %v7717_v58  ;;  %v6473_v0 = vunpack.i.h.bf16 %v7717_v58 }
 0x11f   : > { %583 = vmatpush.msra.mxu0 %v6462_v52 }
 0x121   : > { %584 = vmatpush.msra.mxu0 %v6463_v55 }
 0x123   : > { %585 = vmatpush.msra.mxu0 %v6467_v57  ;;  %v624_v30 = vpop.permute.xlu0 %623 }
 0x124   : > { %v563_v14 = vpop.permute.xlu1 %562 }
 0x125   : > { %586 = vmatpush.msra.mxu0 %v6468_v59 }
 0x127   : > { %587 = vmatpush.msra.mxu0 %v6472_v60 }
 0x129   : > { %588 = vmatpush.msra.mxu0 %v6473_v0 }
 0x12b   : > { %589 = vmatpush.msra.mxu0 %v7663_v37 }
 0x12c   : > { %v634_v56 = vpop.permute.xlu1 %633 }
 0x12d   : > { %590 = vmatpush.msra.mxu0 %v7661_v36 }
 0x12e   : > { %591 = vmatmul.f32.vlgmr.msra.gmra.mxu0 %v547_v1 }
 0x134   : > { %v619_v1 = vpop.permute.xlu1 %618 }
 0x136   : > { %594 = vmatmul.f32.gmra.mxu0 %v548_v5  ;;  %v7438_v5 = vpop.eup %7437 }
 0x137   : > { %v692_v6 = vmul.f32 16.0, %v7438_v5  ;;  %vm696_vm9 = vweird.f32 %v7438_v5 }
 0x13e   : > { %597 = vmatmul.f32.gmra.mxu0 %v549_v7  ;;  %v693_v7 = vsub.f32 1.0, %v692_v6 }
 0x146   : > { %600 = vmatmul.f32.gmra.mxu0 %v550_v8  ;;  %v694_v8 = vmul.f32 %v7438_v5, %v693_v7 }
 0x1ab   : > { %v592_v9 = vpop.f32.mrf.mxu0 }
 0x1ac   : > { %v593_v21 = vadd.f32 %v592_v9, %v558_v18  ;;  %v695_v9 = vadd.f32 %v7438_v5, %v694_v8 }
 0x1ae   : > { %v604_v24 = vmax.f32 %v593_v21, 0.0 }
 0x1b3   : > { %v595_v10 = vpop.f32.mrf.mxu0 }
 0x1b4   : > { %v596_v19 = vadd.f32 %v595_v10, %v563_v14  ;;  %v7785_v10 = vsel %vm696_vm9, %v7438_v5, %v695_v9 }
 0x1b6   : > { %v605_v23 = vmax.f32 %v596_v19, 0.0 }
 0x1bb   : > { %v598_v12 = vpop.f32.mrf.mxu0 }
 0x1bc   : > { %v599_v16 = vadd.f32 %v598_v12, %v568_v13 }
 0x1be   : > { %v606_v22 = vmax.f32 %v599_v16, 0.0 }
 0x1c3   : > { %v601_v15 = vpop.f32.mrf.mxu0 }
 0x1c4   : > { %v602_v17 = vadd.f32 %v601_v15, %v573_v11 }
 0x1c6   : > { %v607_v20 = vmax.f32 %v602_v17, 0.0 }
 0x1c8   : > { %661 = vmatpush.msra.mxu2 %v607_v20 }
 0x1ca   : > { %662 = vmatpush.msra.mxu2 %v606_v22 }
 0x1cc   : > { %663 = vmatpush.msra.mxu2 %v605_v23 }
 0x1ce   : > { %664 = vmatpush.msra.mxu2 %v604_v24 }
 0x1cf   : > { %6210 = vmatmul.msk.f32.vlgmr.msra.gmra.mxu2 %vm636_vm7, %v608_v25 }
 0x1d7   : > { %6211 = vmatmul.msk.f32.gmra.mxu2 %vm636_vm7, %v609_v26 }
 0x1df   : > { %6212 = vmatmul.msk.f32.gmra.mxu2 %vm636_vm7, %v610_v27 }
 0x1e7   : > { %6213 = vmatmul.msk.f32.gmra.mxu2 %vm636_vm7, %v611_v28 }
 0x252   : > { %v666_v29 = vpop.f32.mrf.mxu2 }
 0x253   : > { %v667_v2 = vadd.f32 %v666_v29, %v619_v1 }
 0x255   : > { %v679_v3 = vsel %vm678_vm8, %v667_v2, 0.0 }
 0x25a   : > { %v669_v31 = vpop.f32.mrf.mxu2 }
 0x25b   : > { %v670_v32 = vadd.f32 %v669_v31, %v624_v30 }
 0x25d   : > { %v682_v33 = vsel %vm678_vm8, %v670_v32, 0.0 }
 0x25e   : > { %683 = vadd.xlane.f32.xlu1 %v682_v33 }
 0x262   : > { %v672_v35 = vpop.f32.mrf.mxu2 }
 0x263   : > { %v673_v38 = vadd.f32 %v672_v35, %v629_v34 }
 0x265   : > { %v685_v54 = vsel %vm678_vm8, %v673_v38, 0.0 }
 0x266   : > { %686 = vadd.xlane.f32.xlu0 %v685_v54 }
 0x26a   : > { %v675_v61 = vpop.f32.mrf.mxu2 }
 0x26b   : > { %v676_v62 = vadd.f32 %v675_v61, %v634_v56 }
 0x26d   : > { %v688_v63 = vsel %vm678_vm8, %v676_v62, 0.0 }
 0x26e   : > { %689 = vadd.xlane.f32.xlu2 %v688_v63 }
 0x276   : > { %680 = vadd.xlane.f32.xlu2 %v679_v3 }
 0x2d1   : > { %v684_v11 = vpop.xlane.xlu1 %683 }
 0x2d2   : > { %v699_v12 = vmul.f32 %v7785_v10, %v684_v11 }
 0x2d4   : > { %v7788_v13 = vsub.f32 %v670_v32, %v699_v12 }
 0x2d6   : > { %v707_v14 = vmul.f32 %v7788_v13, %v7788_v13 }
 0x2d8   : > { %v713_v15 = vsel %vm678_vm8, %v707_v14, 0.0 }
 0x2d9   : > { %v687_v16 = vpop.xlane.xlu0 %686  ;;  %714 = vadd.xlane.f32.xlu1 %v713_v15 }
 0x2da   : > { %v700_v17 = vmul.f32 %v7785_v10, %v687_v16 }
 0x2dc   : > { %v704_v18 = vsub.f32 %v673_v38, %v700_v17 }
 0x2de   : > { %v708_v19 = vmul.f32 %v704_v18, %v704_v18 }
 0x2e0   : > { %v716_v20 = vsel %vm678_vm8, %v708_v19, 0.0 }
 0x2e1   : > { %v690_v21 = vpop.xlane.xlu2 %689  ;;  %717 = vadd.xlane.f32.xlu0 %v716_v20 }
 0x2e2   : > { %v701_v22 = vmul.f32 %v7785_v10, %v690_v21 }
 0x2e4   : > { %v705_v23 = vsub.f32 %v676_v62, %v701_v22 }
 0x2e6   : > { %v709_v24 = vmul.f32 %v705_v23, %v705_v23 }
 0x2e8   : > { %v719_v25 = vsel %vm678_vm8, %v709_v24, 0.0 }
 0x2e9   : > { %720 = vadd.xlane.f32.xlu2 %v719_v25  ;;  %v681_v26 = vpop.xlane.xlu2 %680 }
 0x2ea   : > { %v698_v27 = vmul.f32 %v7785_v10, %v681_v26 }
 0x2ec   : > { %v7798_v28 = vsub.f32 %v667_v2, %v698_v27 }
 0x2ee   : > { %v706_v29 = vmul.f32 %v7798_v28, %v7798_v28 }
 0x2f0   : > { %v710_v30 = vsel %vm678_vm8, %v706_v29, 0.0 }
 0x2f1   : > { %711 = vadd.xlane.f32.xlu2 %v710_v30 }
 0x34c   : > { %v715_v31 = vpop.xlane.xlu1 %714 }
 0x34d   : > { %v723_v32 = vmul.f32 %v715_v31, %v7785_v10 }
 0x34f   : > { %v727_v33 = vadd.f32 1e-05, %v723_v32 }
 0x351   : > { %7439 = vrsqrt.f32 %v727_v33  ;;  %vm746_vm3 = vweird.f32 %v727_v33 }
 0x354   : > { %v718_v34 = vpop.xlane.xlu0 %717 }
 0x355   : > { %v724_v35 = vmul.f32 %v718_v34, %v7785_v10 }
 0x357   : > { %v728_v38 = vadd.f32 1e-05, %v724_v35  ;;  %v7440_v61 = vpop.eup %7439 }
 0x358   : > { %v741_v2 = vmul.f32 %v7440_v61, %v727_v33  ;;  %vm747_vm2 = vweird.f32 %v7440_v61 }
 0x359   : > { %7441 = vrsqrt.f32 %v728_v38  ;;  %vm756_vm11 = vweird.f32 %v728_v38  ;;  %vm748_vm4 = vmor %vm746_vm3, %vm747_vm2 }
 0x35a   : > { %v742_v7 = vmul.f32 %v7440_v61, %v741_v2 }
 0x35c   : > { %v721_v54 = vpop.xlane.xlu2 %720  ;;  %v743_v14 = vmul.f32 0.5, %v742_v7 }
 0x35d   : > { %v725_v56 = vmul.f32 %v721_v54, %v7785_v10 }
 0x35e   : > { %v744_v19 = vsub.f32 1.5, %v743_v14 }
 0x35f   : > { %v7442_v62 = vpop.eup %7441  ;;  %v729_v63 = vadd.f32 1e-05, %v725_v56 }
 0x360   : > { %v751_v1 = vmul.f32 %v7442_v62, %v728_v38  ;;  %vm757_vm10 = vweird.f32 %v7442_v62  ;;  %v745_v27 = vmul.f32 %v7440_v61, %v744_v19 }
 0x361   : > { %7443 = vrsqrt.f32 %v729_v63  ;;  %vm758_vm12 = vmor %vm756_vm11, %vm757_vm10  ;;  %vm766_vm14 = vweird.f32 %v729_v63  ;;  %vm850_vm10 = vcmask 146432   ;;  %vm855_vm11 = vcmask 154624  }
 0x362   : > { %v752_v3 = vmul.f32 %v7442_v62, %v751_v1  ;;  %v749_v38 = vsel %vm748_vm4, %v7440_v61, %v745_v27 }
 0x364   : > { %v753_v4 = vmul.f32 0.5, %v752_v3  ;;  %v712_v5 = vpop.xlane.xlu2 %711 }
 0x365   : > { %v722_v6 = vmul.f32 %v712_v5, %v7785_v10 }
 0x366   : > { %v754_v8 = vsub.f32 1.5, %v753_v4 }
 0x367   : > { %v7444_v9 = vpop.eup %7443  ;;  %v726_v11 = vadd.f32 1e-05, %v722_v6 }
 0x368   : > { %v761_v12 = vmul.f32 %v7444_v9, %v729_v63  ;;  %v755_v15 = vmul.f32 %v7442_v62, %v754_v8  ;;  %vm767_vm13 = vweird.f32 %v7444_v9 }
 0x369   : > { %7445 = vrsqrt.f32 %v726_v11  ;;  %vm768_vm15 = vmor %vm766_vm14, %vm767_vm13  ;;  %vm736_vm6 = vweird.f32 %v726_v11 }
 0x36a   : > { %v762_v16 = vmul.f32 %v7444_v9, %v761_v12  ;;  %v759_v20 = vsel %vm758_vm12, %v7442_v62, %v755_v15  ;;  %v771_v62 = vmul.f32 %v749_v38, %v7788_v13  ;;  %vm932_vm12 = vcmask 261120  }
 0x36b   : > { %v772_v26 = vmul.f32 %v759_v20, %v704_v18 }
 0x36c   : > { %v763_v17 = vmul.f32 0.5, %v762_v16  ;;  %v7817_v63 = vmax.f32 %v771_v62, 0.0 }
 0x36d   : > { %v7807_v34 = vmax.f32 %v772_v26, 0.0 }
 0x36e   : > { %v764_v21 = vsub.f32 1.5, %v763_v17 }
 0x36f   : > { %v7446_v22 = vpop.eup %7445 }
 0x370   : > { %v765_v24 = vmul.f32 %v7444_v9, %v764_v21  ;;  %v731_v25 = vmul.f32 %v7446_v22, %v726_v11  ;;  %vm737_vm5 = vweird.f32 %v7446_v22 }
 0x371   : > { %vm738_vm9 = vmor %vm736_vm6, %vm737_vm5 }
 0x372   : > { %v769_v29 = vsel %vm768_vm15, %v7444_v9, %v765_v24  ;;  %v732_v30 = vmul.f32 %v7446_v22, %v731_v25 }
 0x373   : > { %v773_v31 = vmul.f32 %v769_v29, %v705_v23 }
 0x374   : > { %v733_v32 = vmul.f32 0.5, %v732_v30 }
 0x375   : > { %v7809_v35 = vmax.f32 %v773_v31, 0.0 }
 0x376   : > { %v734_v54 = vsub.f32 1.5, %v733_v32 }
 0x377   : > { %v6492_v56 = vpack.i.bf16 %v7807_v34, %v7809_v35 }
 0x378   : > { %v735_v18 = vmul.f32 %v7446_v22, %v734_v54 }
 0x379   : > { %6493 = vrot.lane.b32.xlu2 %v6492_v56, %s10260_s27  ;;  %6483 = vrot.lane.b32.xlu0 %v6492_v56, %s7542_s26 }
 0x37a   : > { %v739_v23 = vsel %vm738_vm9, %v7446_v22, %v735_v18 }
 0x37b   : > { %v770_v33 = vmul.f32 %v739_v23, %v7798_v28 }
 0x37d   : > { %v7819_v61 = vmax.f32 %v770_v33, 0.0 }
 0x37f   : > { %v6507_v1 = vpack.i.bf16 %v7819_v61, %v7817_v63 }
 0x381   : > { %6498 = vrot.lane.b32.xlu0 %v6492_v56, %s7541_s25  ;;  %6508 = vrot.lane.b32.xlu2 %v6507_v1, %s10260_s27 }
 0x382   : > { %6478 = vrot.lane.b32.xlu1 %v6507_v1, %s7542_s26 }
 0x389   : > { %6503 = vrot.lane.b32.xlu0 %v6507_v1, %s7540_s24 }
 0x38a   : > { %6488 = vrot.lane.b32.xlu1 %v6492_v56, %s7540_s24 }
 0x392   : > { %6513 = vrot.lane.b32.xlu1 %v6507_v1, %s7541_s25 }
 0x3d3   : > { %v6494_v3 = vpop.permute.xlu2 %6493 }
 0x3d4   : > { %v6496_v6 = vunpack.i.h.bf16 %v6494_v3  ;;  %v6495_v7 = vunpack.i.l.bf16 %v6494_v3 }
 0x3db   : > { %v6509_v29 = vpop.permute.xlu2 %6508 }
 0x3dc   : > { %v6511_v62 = vunpack.i.h.bf16 %v6509_v29  ;;  %v6510_v23 = vunpack.i.l.bf16 %v6509_v29 }
 0x3eb   : > { %v6484_v13 = vpop.permute.xlu0 %6483 }
 0x3ec   : > { %v6486_v4 = vunpack.i.h.bf16 %v6484_v13  ;;  %v6485_v5 = vunpack.i.l.bf16 %v6484_v13 }
 0x3ee   : > { %v844_v11 = vsel %vm482_vm0, %v6486_v4, %v7807_v34  ;;  %v845_v12 = vsel %vm482_vm0, %v6485_v5, %v7809_v35 }
 0x3f3   : > { %v6499_v28 = vpop.permute.xlu0 %6498 }
 0x3f4   : > { %v6479_v2 = vpop.permute.xlu1 %6478  ;;  %v6501_v16 = vunpack.i.h.bf16 %v6499_v28  ;;  %v6500_v17 = vunpack.i.l.bf16 %v6499_v28 }
 0x3f5   : > { %v6481_v19 = vunpack.i.h.bf16 %v6479_v2  ;;  %v6480_v20 = vunpack.i.l.bf16 %v6479_v2 }
 0x3f7   : > { %v842_v32 = vsel %vm482_vm0, %v6481_v19, %v7819_v61  ;;  %v843_v38 = vsel %vm482_vm0, %v6480_v20, %v7817_v63 }
 0x3fb   : > { %v6504_v8 = vpop.permute.xlu0 %6503 }
 0x3fc   : > { %v6489_v9 = vpop.permute.xlu1 %6488  ;;  %v6506_v21 = vunpack.i.h.bf16 %v6504_v8  ;;  %v6505_v22 = vunpack.i.l.bf16 %v6504_v8  ;;  %v788_v8 = vld [vmem:[%s10242_s3 + $0x50] sm:$0xff] }
 0x3fd   : > { %v6491_v14 = vunpack.i.h.bf16 %v6489_v9  ;;  %v6490_v15 = vunpack.i.l.bf16 %v6489_v9  ;;  %v787_v9 = vld [vmem:[%s10242_s3 + $0x48] sm:$0xff] }
 0x3fe   : > { %v846_v56 = vsel %vm485_vm1, %v842_v32, %v6506_v21  ;;  %v847_v18 = vsel %vm485_vm1, %v843_v38, %v6505_v22 }
 0x3ff   : > { %v848_v24 = vsel %vm485_vm1, %v844_v11, %v6491_v14  ;;  %v849_v25 = vsel %vm485_vm1, %v845_v12, %v6490_v15  ;;  %v851_v28 = vsel %vm850_vm10, %v846_v56, %v6511_v62  ;;  %v852_v2 = vsel %vm850_vm10, %v847_v18, %v6510_v23 }
 0x400   : > { %v853_v26 = vsel %vm850_vm10, %v848_v24, %v6496_v6  ;;  %v854_v27 = vsel %vm850_vm10, %v849_v25, %v6495_v7  ;;  %v789_v6 = vld [vmem:[%s10242_s3 + $0x58] sm:$0xff]  ;;  %v786_v7 = vld [vmem:[%s10242_s3 + $0x40] sm:$0xff] }
 0x401   : > { %v7838_v30 = vsel %vm855_vm11, %v853_v26, %v6501_v16  ;;  %v7841_v31 = vsel %vm855_vm11, %v854_v27, %v6500_v17 }
 0x402   : > { %v6527_v54 = vpack.i.bf16 %v7838_v30, %v7841_v31 }
 0x404   : > { %v6514_v33 = vpop.permute.xlu1 %6513  ;;  %6528 = vrot.lane.b32.xlu1 %v6527_v54, %s7542_s26  ;;  %6518 = vrot.lane.b32.xlu0 %v6527_v54, %s10258_s14 }
 0x405   : > { %v6516_v1 = vunpack.i.h.bf16 %v6514_v33  ;;  %v6515_v13 = vunpack.i.l.bf16 %v6514_v33 }
 0x407   : > { %v7856_v3 = vsel %vm855_vm11, %v851_v28, %v6516_v1  ;;  %v857_v4 = vsel %vm855_vm11, %v852_v2, %v6515_v13  ;;  %v779_v13 = vld [vmem:[%s10241_s2 + $0x88] sm:$0xff]  ;;  %v778_v28 = vld [vmem:[%s10241_s2 + $0x80] sm:$0xff]  ;;  %v781_v2 = vld [vmem:[%s10241_s2 + $0x98] sm:$0xff] }
 0x408   : > { %v6522_v5 = vpack.i.bf16 %v7856_v3, %v857_v4 }
 0x40a   : > { %6523 = vrot.lane.b32.xlu2 %v6522_v5, %s10258_s14 }
 0x40c   : > { %6543 = vrot.lane.b32.xlu1 %v6522_v5, %s10255_s15  ;;  %6533 = vrot.lane.b32.xlu0 %v6522_v5, %s7542_s26 }
 0x412   : > { %6538 = vrot.lane.b32.xlu2 %v6527_v54, %s10255_s15 }
 0x414   : > { %929 = vperm.xlu1 %6476, %v789_v6   ;;  %6548 = vrot.lane.b32.xlu0 %v6527_v54, %s10253_s23 }
 0x41a   : > { %6553 = vrot.lane.b32.xlu2 %v6522_v5, %s10253_s23  ;;  %v784_v5 = vld [vmem:[%s10241_s2 + $0xb0] sm:$0xff] }
 0x41c   : > { %914 = vperm.xlu1 %6476, %v786_v7   ;;  %924 = vperm.xlu0 %6475, %v788_v8  }
 0x422   : > { %919 = vperm.xlu2 %6474, %v787_v9  }
 0x464   : > { %v6524_v11 = vpop.permute.xlu2 %6523 }
 0x465   : > { %v6525_v16 = vunpack.i.l.bf16 %v6524_v11  ;;  %v6526_v19 = vunpack.i.h.bf16 %v6524_v11 }
 0x46c   : > { %v6539_v20 = vpop.permute.xlu2 %6538 }
 0x46d   : > { %v6540_v29 = vunpack.i.l.bf16 %v6539_v20  ;;  %v6541_v56 = vunpack.i.h.bf16 %v6539_v20 }
 0x474   : > { %v6554_v38 = vpop.permute.xlu2 %6553 }
 0x475   : > { %v6555_v23 = vunpack.i.l.bf16 %v6554_v38  ;;  %v6556_v1 = vunpack.i.h.bf16 %v6554_v38 }
 0x476   : > { %v6519_v12 = vpop.permute.xlu0 %6518  ;;  %v6529_v17 = vpop.permute.xlu1 %6528 }
 0x477   : > { %v6520_v14 = vunpack.i.l.bf16 %v6519_v12  ;;  %v6521_v15 = vunpack.i.h.bf16 %v6519_v12  ;;  %v6530_v22 = vunpack.i.l.bf16 %v6529_v17  ;;  %v6531_v24 = vunpack.i.h.bf16 %v6529_v17 }
 0x479   : > { %945 = vmatpush.msrb.mxu2 %v6520_v14 }
 0x47b   : > { %946 = vmatpush.msrb.mxu2 %v6521_v15 }
 0x47c   : > { %v920_v9 = vpop.permute.xlu2 %919 }
 0x47d   : > { %947 = vmatpush.msrb.mxu2 %v6525_v16 }
 0x47e   : > { %v6534_v21 = vpop.permute.xlu0 %6533  ;;  %v6544_v54 = vpop.permute.xlu1 %6543 }
 0x47f   : > { %948 = vmatpush.msrb.mxu2 %v6526_v19  ;;  %v6535_v25 = vunpack.i.l.bf16 %v6534_v21  ;;  %v6536_v26 = vunpack.i.h.bf16 %v6534_v21  ;;  %v6545_v62 = vunpack.i.l.bf16 %v6544_v54  ;;  %v6546_v33 = vunpack.i.h.bf16 %v6544_v54 }
 0x481   : > { %949 = vmatpush.msrb.mxu2 %v6530_v22 }
 0x483   : > { %950 = vmatpush.msrb.mxu2 %v6531_v24 }
 0x485   : > { %951 = vmatpush.msrb.mxu2 %v6535_v25 }
 0x486   : > { %v6549_v27 = vpop.permute.xlu0 %6548  ;;  %v930_v21 = vpop.permute.xlu1 %929 }
 0x487   : > { %952 = vmatpush.msrb.mxu2 %v6536_v26  ;;  %v6550_v32 = vunpack.i.l.bf16 %v6549_v27  ;;  %v6551_v18 = vunpack.i.h.bf16 %v6549_v27 }
 0x489   : > { %953 = vmatpush.msrb.mxu2 %v6540_v29  ;;  %986 = vmatpush.msra.mxu3 %v6550_v32 }
 0x48b   : > { %954 = vmatpush.msrb.mxu2 %v6541_v56  ;;  %987 = vmatpush.msra.mxu3 %v6551_v18 }
 0x48d   : > { %955 = vmatpush.msrb.mxu2 %v6545_v62  ;;  %988 = vmatpush.msra.mxu3 %v6555_v23 }
 0x48e   : > { %v925_v17 = vpop.permute.xlu0 %924  ;;  %v915_v32 = vpop.permute.xlu1 %914 }
 0x48f   : > { %956 = vmatpush.msrb.mxu2 %v6546_v33  ;;  %989 = vmatpush.msra.mxu3 %v6556_v1 }
 0x490   : > { %6214 = vmatmul.msk.f32.vlgmr.msra.gmra.mxu3 %vm932_vm12, %v779_v13 }
 0x491   : > { %957 = vmatpush.msrb.mxu2 %v7841_v31  ;;  %v780_v31 = vld [vmem:[%s10241_s2 + $0x90] sm:$0xff] }
 0x493   : > { %958 = vmatpush.msrb.mxu2 %v7838_v30  ;;  %v783_v30 = vld [vmem:[%s10241_s2 + $0xa8] sm:$0xff] }
 0x495   : > { %959 = vmatpush.msrb.mxu2 %v857_v4  ;;  %v782_v4 = vld [vmem:[%s10241_s2 + $0xa0] sm:$0xff] }
 0x497   : > { %960 = vmatpush.msrb.mxu2 %v7856_v3  ;;  %v785_v3 = vld [vmem:[%s10241_s2 + $0xb8] sm:$0xff] }
 0x498   : > { %961 = vmatmul.f32.vlgmr.msrb.gmra.mxu2 %v778_v28  ;;  %6215 = vmatmul.msk.f32.gmra.mxu3 %vm932_vm12, %v781_v2 }
 0x4a0   : > { %964 = vmatmul.f32.gmra.mxu2 %v780_v31  ;;  %6216 = vmatmul.msk.f32.gmra.mxu3 %vm932_vm12, %v783_v30 }
 0x4a8   : > { %967 = vmatmul.f32.gmra.mxu2 %v782_v4  ;;  %6217 = vmatmul.msk.f32.gmra.mxu3 %vm932_vm12, %v785_v3 }
 0x4b0   : > { %970 = vmatmul.f32.gmra.mxu2 %v784_v5 }
 0x513   : > { %v991_v6 = vpop.f32.mrf.mxu3 }
 0x51b   : > { %v962_v7 = vpop.f32.mrf.mxu2  ;;  %v994_v8 = vpop.f32.mrf.mxu3 }
 0x51c   : > { %v963_v38 = vadd.f32 %v962_v7, %v915_v32 }
 0x51e   : > { %v992_v56 = vadd.f32 %v991_v6, %v963_v38 }
 0x520   : > { %v1003_v18 = vsel %vm678_vm8, %v992_v56, 0.0 }
 0x523   : > { %v965_v11 = vpop.f32.mrf.mxu2  ;;  %v997_v16 = vpop.f32.mrf.mxu3 }
 0x524   : > { %v966_v12 = vadd.f32 %v965_v11, %v920_v9 }
 0x526   : > { %v995_v14 = vadd.f32 %v994_v8, %v966_v12 }
 0x528   : > { %v1006_v15 = vsel %vm678_vm8, %v995_v14, 0.0 }
 0x529   : > { %1007 = vadd.xlane.f32.xlu1 %v1006_v15 }
 0x52b   : > { %v968_v19 = vpop.f32.mrf.mxu2  ;;  %v1000_v26 = vpop.f32.mrf.mxu3 }
 0x52c   : > { %v969_v20 = vadd.f32 %v968_v19, %v925_v17 }
 0x52e   : > { %v998_v22 = vadd.f32 %v997_v16, %v969_v20 }
 0x530   : > { %v1009_v24 = vsel %vm678_vm8, %v998_v22, 0.0 }
 0x531   : > { %1010 = vadd.xlane.f32.xlu2 %v1009_v24 }
 0x533   : > { %v971_v25 = vpop.f32.mrf.mxu2 }
 0x534   : > { %v972_v27 = vadd.f32 %v971_v25, %v930_v21 }
 0x536   : > { %v1001_v29 = vadd.f32 %v1000_v26, %v972_v27 }
 0x538   : > { %v1012_v54 = vsel %vm678_vm8, %v1001_v29, 0.0 }
 0x539   : > { %1013 = vadd.xlane.f32.xlu0 %v1012_v54 }
 0x541   : > { %1004 = vadd.xlane.f32.xlu0 %v1003_v18 }
 0x59c   : > { %v1008_v62 = vpop.xlane.xlu1 %1007 }
 0x59d   : > { %v1016_v23 = vmul.f32 %v1008_v62, %v7785_v10 }
 0x59f   : > { %v7914_v33 = vsub.f32 %v995_v14, %v1016_v23 }
 0x5a1   : > { %v1024_v1 = vmul.f32 %v7914_v33, %v7914_v33 }
 0x5a3   : > { %v1030_v13 = vsel %vm678_vm8, %v1024_v1, 0.0 }
 0x5a4   : > { %v1011_v28 = vpop.xlane.xlu2 %1010  ;;  %1031 = vadd.xlane.f32.xlu0 %v1030_v13 }
 0x5a5   : > { %v1017_v2 = vmul.f32 %v1011_v28, %v7785_v10 }
 0x5a7   : > { %v1021_v31 = vsub.f32 %v998_v22, %v1017_v2 }
 0x5a9   : > { %v1025_v30 = vmul.f32 %v1021_v31, %v1021_v31 }
 0x5ab   : > { %v1033_v4 = vsel %vm678_vm8, %v1025_v30, 0.0 }
 0x5ac   : > { %v1014_v3 = vpop.xlane.xlu0 %1013  ;;  %1034 = vadd.xlane.f32.xlu1 %v1033_v4 }
 0x5ad   : > { %v1018_v5 = vmul.f32 %v1014_v3, %v7785_v10 }
 0x5af   : > { %v1022_v6 = vsub.f32 %v1001_v29, %v1018_v5 }
 0x5b1   : > { %v1026_v7 = vmul.f32 %v1022_v6, %v1022_v6 }
 0x5b3   : > { %v1036_v8 = vsel %vm678_vm8, %v1026_v7, 0.0 }
 0x5b4   : > { %1037 = vadd.xlane.f32.xlu2 %v1036_v8  ;;  %v1005_v9 = vpop.xlane.xlu0 %1004 }
 0x5b5   : > { %v1015_v11 = vmul.f32 %v1005_v9, %v7785_v10 }
 0x5b7   : > { %v7924_v12 = vsub.f32 %v992_v56, %v1015_v11 }
 0x5b9   : > { %v1023_v14 = vmul.f32 %v7924_v12, %v7924_v12 }
 0x5bb   : > { %v1027_v15 = vsel %vm678_vm8, %v1023_v14, 0.0 }
 0x5bc   : > { %1028 = vadd.xlane.f32.xlu2 %v1027_v15 }
 0x617   : > { %v1032_v16 = vpop.xlane.xlu0 %1031 }
 0x618   : > { %v1040_v17 = vmul.f32 %v1032_v16, %v7785_v10 }
 0x61a   : > { %v1044_v19 = vadd.f32 1e-05, %v1040_v17 }
 0x61c   : > { %7447 = vrsqrt.f32 %v1044_v19  ;;  %vm1063_vm6 = vweird.f32 %v1044_v19 }
 0x61f   : > { %v1035_v20 = vpop.xlane.xlu1 %1034 }
 0x620   : > { %v1041_v21 = vmul.f32 %v1035_v20, %v7785_v10 }
 0x622   : > { %v1045_v22 = vadd.f32 1e-05, %v1041_v21  ;;  %v7448_v26 = vpop.eup %7447 }
 0x623   : > { %v1058_v38 = vmul.f32 %v7448_v26, %v1044_v19  ;;  %vm1064_vm5 = vweird.f32 %v7448_v26 }
 0x624   : > { %7449 = vrsqrt.f32 %v1045_v22  ;;  %vm1073_vm14 = vweird.f32 %v1045_v22  ;;  %vm1065_vm9 = vmor %vm1063_vm6, %vm1064_vm5 }
 0x625   : > { %v1059_v23 = vmul.f32 %v7448_v26, %v1058_v38 }
 0x627   : > { %v1038_v24 = vpop.xlane.xlu2 %1037  ;;  %v1060_v30 = vmul.f32 0.5, %v1059_v23 }
 0x628   : > { %v1042_v25 = vmul.f32 %v1038_v24, %v7785_v10 }
 0x629   : > { %v1061_v7 = vsub.f32 1.5, %v1060_v30 }
 0x62a   : > { %v7450_v27 = vpop.eup %7449  ;;  %v1046_v29 = vadd.f32 1e-05, %v1042_v25 }
 0x62b   : > { %v1068_v32 = vmul.f32 %v7450_v27, %v1045_v22  ;;  %vm1074_vm13 = vweird.f32 %v7450_v27  ;;  %v1062_v17 = vmul.f32 %v7448_v26, %v1061_v7 }
 0x62c   : > { %7451 = vrsqrt.f32 %v1046_v29  ;;  %vm1075_vm15 = vmor %vm1073_vm14, %vm1074_vm13  ;;  %vm1083_vm3 = vweird.f32 %v1046_v29 }
 0x62d   : > { %v1069_v54 = vmul.f32 %v7450_v27, %v1068_v32  ;;  %v1066_v38 = vsel %vm1065_vm9, %v7448_v26, %v1062_v17 }
 0x62f   : > { %v1070_v56 = vmul.f32 0.5, %v1069_v54  ;;  %v1029_v18 = vpop.xlane.xlu2 %1028 }
 0x630   : > { %v1039_v62 = vmul.f32 %v1029_v18, %v7785_v10 }
 0x631   : > { %v1071_v1 = vsub.f32 1.5, %v1070_v56 }
 0x632   : > { %v7452_v13 = vpop.eup %7451  ;;  %v1043_v28 = vadd.f32 1e-05, %v1039_v62 }
 0x633   : > { %v1078_v2 = vmul.f32 %v7452_v13, %v1046_v29  ;;  %v1072_v4 = vmul.f32 %v7450_v27, %v1071_v1  ;;  %vm1084_vm2 = vweird.f32 %v7452_v13  ;;  %v1088_v29 = vmul.f32 %v1066_v38, %v7914_v33 }
 0x634   : > { %7453 = vrsqrt.f32 %v1043_v28  ;;  %vm1085_vm4 = vmor %vm1083_vm3, %vm1084_vm2  ;;  %vm1053_vm14 = vweird.f32 %v1043_v28 }
 0x635   : > { %v1079_v3 = vmul.f32 %v7452_v13, %v1078_v2  ;;  %v1076_v8 = vsel %vm1075_vm15, %v7450_v27, %v1072_v4  ;;  %v1092_v19 = vmax.f32 %v1088_v29, 0.0 }
 0x636   : > { %v1089_v16 = vmul.f32 %v1076_v8, %v1021_v31 }
 0x637   : > { %v1080_v5 = vmul.f32 0.5, %v1079_v3 }
 0x638   : > { %v1093_v22 = vmax.f32 %v1089_v16, 0.0 }
 0x639   : > { %v1081_v9 = vsub.f32 1.5, %v1080_v5 }
 0x63a   : > { %v7454_v11 = vpop.eup %7453 }
 0x63b   : > { %v1082_v14 = vmul.f32 %v7452_v13, %v1081_v9  ;;  %v1048_v15 = vmul.f32 %v7454_v11, %v1043_v28  ;;  %vm1054_vm13 = vweird.f32 %v7454_v11 }
 0x63c   : > { %vm1055_vm15 = vmor %vm1053_vm14, %vm1054_vm13 }
 0x63d   : > { %v1086_v20 = vsel %vm1085_vm4, %v7452_v13, %v1082_v14  ;;  %v1049_v21 = vmul.f32 %v7454_v11, %v1048_v15 }
 0x63e   : > { %v1090_v24 = vmul.f32 %v1086_v20, %v1022_v6 }
 0x63f   : > { %v1050_v25 = vmul.f32 0.5, %v1049_v21 }
 0x640   : > { %v1094_v32 = vmax.f32 %v1090_v24, 0.0 }
 0x641   : > { %v1051_v27 = vsub.f32 1.5, %v1050_v25 }
 0x642   : > { %v6567_v54 = vpack.i.bf16 %v1093_v22, %v1094_v32 }
 0x643   : > { %v1052_v56 = vmul.f32 %v7454_v11, %v1051_v27 }
 0x644   : > { %6568 = vrot.lane.b32.xlu0 %v6567_v54, %s7540_s24  ;;  %6573 = vrot.lane.b32.xlu2 %v6567_v54, %s10260_s27 }
 0x645   : > { %v1056_v31 = vsel %vm1055_vm15, %v7454_v11, %v1052_v56 }
 0x646   : > { %v1087_v6 = vmul.f32 %v1056_v31, %v7924_v12 }
 0x648   : > { %v1091_v18 = vmax.f32 %v1087_v6, 0.0 }
 0x64a   : > { %v6577_v62 = vpack.i.bf16 %v1091_v18, %v1092_v19 }
 0x64c   : > { %6583 = vrot.lane.b32.xlu0 %v6567_v54, %s7541_s25  ;;  %6578 = vrot.lane.b32.xlu2 %v6577_v62, %s7540_s24 }
 0x64d   : > { %6558 = vrot.lane.b32.xlu1 %v6577_v62, %s7542_s26 }
 0x654   : > { %6588 = vrot.lane.b32.xlu0 %v6577_v62, %s10260_s27 }
 0x655   : > { %6563 = vrot.lane.b32.xlu1 %v6567_v54, %s7542_s26 }
 0x65d   : > { %6593 = vrot.lane.b32.xlu1 %v6577_v62, %s7541_s25 }
 0x69e   : > { %v6574_v1 = vpop.permute.xlu2 %6573 }
 0x69f   : > { %v6576_v5 = vunpack.i.h.bf16 %v6574_v1  ;;  %v6575_v7 = vunpack.i.l.bf16 %v6574_v1 }
 0x6a6   : > { %v6579_v14 = vpop.permute.xlu2 %6578 }
 0x6a7   : > { %v6581_v56 = vunpack.i.h.bf16 %v6579_v14  ;;  %v6580_v29 = vunpack.i.l.bf16 %v6579_v14 }
 0x6b6   : > { %v6569_v33 = vpop.permute.xlu0 %6568 }
 0x6b7   : > { %v6571_v4 = vunpack.i.h.bf16 %v6569_v33  ;;  %v6570_v3 = vunpack.i.l.bf16 %v6569_v33 }
 0x6be   : > { %v6584_v23 = vpop.permute.xlu0 %6583 }
 0x6bf   : > { %v6559_v26 = vpop.permute.xlu1 %6558  ;;  %v6586_v15 = vunpack.i.h.bf16 %v6584_v23  ;;  %v6585_v16 = vunpack.i.l.bf16 %v6584_v23 }
 0x6c0   : > { %v6561_v13 = vunpack.i.h.bf16 %v6559_v26  ;;  %v6560_v28 = vunpack.i.l.bf16 %v6559_v26 }
 0x6c2   : > { %v1159_v21 = vsel %vm482_vm0, %v6561_v13, %v1091_v18  ;;  %v1160_v24 = vsel %vm482_vm0, %v6560_v28, %v1092_v19  ;;  %v1106_v28 = vld [vmem:[%s10242_s3 + $0x78] sm:$0xff] }
 0x6c3   : > { %v1163_v19 = vsel %vm485_vm1, %v1159_v21, %v6581_v56  ;;  %v1164_v18 = vsel %vm485_vm1, %v1160_v24, %v6580_v29 }
 0x6c6   : > { %v6589_v11 = vpop.permute.xlu0 %6588 }
 0x6c7   : > { %v6564_v12 = vpop.permute.xlu1 %6563  ;;  %v6591_v27 = vunpack.i.h.bf16 %v6589_v11 }
 0x6c8   : > { %v6566_v2 = vunpack.i.h.bf16 %v6564_v12  ;;  %v6565_v30 = vunpack.i.l.bf16 %v6564_v12 }
 0x6c9   : > { %v1167_v26 = vsel %vm850_vm10, %v1163_v19, %v6591_v27 }
 0x6ca   : > { %v1161_v8 = vsel %vm482_vm0, %v6566_v2, %v1093_v22  ;;  %v1162_v9 = vsel %vm482_vm0, %v6565_v30, %v1094_v32  ;;  %v6590_v22 = vunpack.i.l.bf16 %v6589_v11  ;;  %v1103_v2 = vld [vmem:[%s10242_s3 + $0x60] sm:$0xff]  ;;  %v1105_v30 = vld [vmem:[%s10242_s3 + $0x70] sm:$0xff] }
 0x6cb   : > { %v1165_v17 = vsel %vm485_vm1, %v1161_v8, %v6571_v4  ;;  %v1166_v20 = vsel %vm485_vm1, %v1162_v9, %v6570_v3  ;;  %v1104_v4 = vld [vmem:[%s10242_s3 + $0x68] sm:$0xff] }
 0x6cc   : > { %v1169_v25 = vsel %vm850_vm10, %v1165_v17, %v6576_v5  ;;  %v1170_v38 = vsel %vm850_vm10, %v1166_v20, %v6575_v7  ;;  %v1168_v23 = vsel %vm850_vm10, %v1164_v18, %v6590_v22 }
 0x6cd   : > { %v7952_v32 = vsel %vm855_vm11, %v1169_v25, %v6586_v15  ;;  %v7955_v54 = vsel %vm855_vm11, %v1170_v38, %v6585_v16 }
 0x6ce   : > { %v6607_v31 = vpack.i.bf16 %v7952_v32, %v7955_v54 }
 0x6cf   : > { %v6594_v6 = vpop.permute.xlu1 %6593 }
 0x6d0   : > { %v6596_v62 = vunpack.i.h.bf16 %v6594_v6  ;;  %v6595_v33 = vunpack.i.l.bf16 %v6594_v6  ;;  %6608 = vrot.lane.b32.xlu1 %v6607_v31, %s7542_s26  ;;  %6598 = vrot.lane.b32.xlu2 %v6607_v31, %s10258_s14 }
 0x6d2   : > { %v7966_v1 = vsel %vm855_vm11, %v1167_v26, %v6596_v62  ;;  %v1172_v12 = vsel %vm855_vm11, %v1168_v23, %v6595_v33  ;;  %v1096_v33 = vld [vmem:[%s10241_s2 + $0xc8] sm:$0xff]  ;;  %v1095_v26 = vld [vmem:[%s10241_s2 + $0xc0] sm:$0xff]  ;;  %v1098_v23 = vld [vmem:[%s10241_s2 + $0xd8] sm:$0xff] }
 0x6d3   : > { %v6602_v13 = vpack.i.bf16 %v7966_v1, %v1172_v12 }
 0x6d5   : > { %6603 = vrot.lane.b32.xlu0 %v6602_v13, %s10258_s14 }
 0x6d8   : > { %6623 = vrot.lane.b32.xlu1 %v6602_v13, %s10255_s15  ;;  %6613 = vrot.lane.b32.xlu2 %v6602_v13, %s7542_s26 }
 0x6dd   : > { %6618 = vrot.lane.b32.xlu0 %v6607_v31, %s10255_s15 }
 0x6e0   : > { %1244 = vperm.xlu1 %6476, %v1106_v28   ;;  %6628 = vrot.lane.b32.xlu2 %v6607_v31, %s10253_s23 }
 0x6e5   : > { %6633 = vrot.lane.b32.xlu0 %v6602_v13, %s10253_s23  ;;  %v1101_v13 = vld [vmem:[%s10241_s2 + $0xf0] sm:$0xff] }
 0x6e8   : > { %1229 = vperm.xlu1 %6476, %v1103_v2   ;;  %1239 = vperm.xlu2 %6474, %v1105_v30  }
 0x6ed   : > { %1234 = vperm.xlu0 %6475, %v1104_v4  }
 0x72a   : > { %v6599_v3 = vpop.permute.xlu2 %6598 }
 0x72b   : > { %v6600_v5 = vunpack.i.l.bf16 %v6599_v3  ;;  %v6601_v7 = vunpack.i.h.bf16 %v6599_v3 }
 0x72d   : > { %1259 = vmatpush.msrb.mxu3 %v6600_v5 }
 0x72f   : > { %1260 = vmatpush.msrb.mxu3 %v6601_v7 }
 0x732   : > { %v6614_v8 = vpop.permute.xlu2 %6613 }
 0x733   : > { %v6615_v38 = vunpack.i.l.bf16 %v6614_v8  ;;  %v6616_v27 = vunpack.i.h.bf16 %v6614_v8 }
 0x73a   : > { %v6629_v9 = vpop.permute.xlu2 %6628 }
 0x73b   : > { %v6630_v11 = vunpack.i.l.bf16 %v6629_v9  ;;  %v6631_v14 = vunpack.i.h.bf16 %v6629_v9 }
 0x73d   : > { %1300 = vmatpush.msra.mxu1 %v6630_v11 }
 0x73f   : > { %1301 = vmatpush.msra.mxu1 %v6631_v14 }
 0x742   : > { %v6609_v17 = vpop.permute.xlu1 %6608  ;;  %v1240_v11 = vpop.permute.xlu2 %1239 }
 0x743   : > { %v6610_v21 = vunpack.i.l.bf16 %v6609_v17  ;;  %v6611_v24 = vunpack.i.h.bf16 %v6609_v17 }
 0x747   : > { %v6604_v15 = vpop.permute.xlu0 %6603 }
 0x748   : > { %v6605_v16 = vunpack.i.l.bf16 %v6604_v15  ;;  %v6606_v20 = vunpack.i.h.bf16 %v6604_v15 }
 0x74a   : > { %1261 = vmatpush.msrb.mxu3 %v6605_v16  ;;  %v6624_v56 = vpop.permute.xlu1 %6623 }
 0x74b   : > { %v6625_v6 = vunpack.i.l.bf16 %v6624_v56  ;;  %v6626_v18 = vunpack.i.h.bf16 %v6624_v56 }
 0x74c   : > { %1262 = vmatpush.msrb.mxu3 %v6606_v20 }
 0x74e   : > { %1263 = vmatpush.msrb.mxu3 %v6610_v21 }
 0x74f   : > { %v6619_v25 = vpop.permute.xlu0 %6618 }
 0x750   : > { %1264 = vmatpush.msrb.mxu3 %v6611_v24  ;;  %v6620_v22 = vunpack.i.l.bf16 %v6619_v25  ;;  %v6621_v29 = vunpack.i.h.bf16 %v6619_v25 }
 0x752   : > { %1265 = vmatpush.msrb.mxu3 %v6615_v38  ;;  %v1245_v16 = vpop.permute.xlu1 %1244 }
 0x754   : > { %1266 = vmatpush.msrb.mxu3 %v6616_v27 }
 0x756   : > { %1267 = vmatpush.msrb.mxu3 %v6620_v22 }
 0x757   : > { %v6634_v31 = vpop.permute.xlu0 %6633 }
 0x758   : > { %1268 = vmatpush.msrb.mxu3 %v6621_v29  ;;  %v6635_v19 = vunpack.i.l.bf16 %v6634_v31  ;;  %v6636_v62 = vunpack.i.h.bf16 %v6634_v31 }
 0x75a   : > { %1269 = vmatpush.msrb.mxu3 %v6625_v6  ;;  %1302 = vmatpush.msra.mxu1 %v6635_v19  ;;  %v1230_v27 = vpop.permute.xlu1 %1229 }
 0x75c   : > { %1270 = vmatpush.msrb.mxu3 %v6626_v18  ;;  %1303 = vmatpush.msra.mxu1 %v6636_v62 }
 0x75d   : > { %6218 = vmatmul.msk.f32.vlgmr.msra.gmra.mxu1 %vm932_vm12, %v1096_v33 }
 0x75e   : > { %1271 = vmatpush.msrb.mxu3 %v7955_v54  ;;  %v1097_v54 = vld [vmem:[%s10241_s2 + $0xd0] sm:$0xff] }
 0x75f   : > { %v1235_v4 = vpop.permute.xlu0 %1234 }
 0x760   : > { %1272 = vmatpush.msrb.mxu3 %v7952_v32  ;;  %v1100_v32 = vld [vmem:[%s10241_s2 + $0xe8] sm:$0xff] }
 0x762   : > { %1273 = vmatpush.msrb.mxu3 %v1172_v12  ;;  %v1099_v12 = vld [vmem:[%s10241_s2 + $0xe0] sm:$0xff] }
 0x764   : > { %1274 = vmatpush.msrb.mxu3 %v7966_v1  ;;  %v1102_v1 = vld [vmem:[%s10241_s2 + $0xf8] sm:$0xff] }
 0x765   : > { %1275 = vmatmul.f32.vlgmr.msrb.gmra.mxu3 %v1095_v26  ;;  %6219 = vmatmul.msk.f32.gmra.mxu1 %vm932_vm12, %v1098_v23 }
 0x76d   : > { %1278 = vmatmul.f32.gmra.mxu3 %v1097_v54  ;;  %6220 = vmatmul.msk.f32.gmra.mxu1 %vm932_vm12, %v1100_v32 }
 0x775   : > { %1281 = vmatmul.f32.gmra.mxu3 %v1099_v12  ;;  %6221 = vmatmul.msk.f32.gmra.mxu1 %vm932_vm12, %v1102_v1 }
 0x77d   : > { %1284 = vmatmul.f32.gmra.mxu3 %v1101_v13 }
 0x7da   : > { %v1305_v28 = vpop.f32.mrf.mxu1 }
 0x7e2   : > { %v1308_v30 = vpop.f32.mrf.mxu1 }
 0x7e8   : > { %v1276_v2 = vpop.f32.mrf.mxu3 }
 0x7e9   : > { %v1277_v22 = vadd.f32 %v1276_v2, %v1230_v27 }
 0x7ea   : > { %v1311_v9 = vpop.f32.mrf.mxu1 }
 0x7eb   : > { %v1306_v29 = vadd.f32 %v1305_v28, %v1277_v22 }
 0x7ed   : > { %v1317_v31 = vsel %vm678_vm8, %v1306_v29, 0.0 }
 0x7f0   : > { %v1279_v3 = vpop.f32.mrf.mxu3 }
 0x7f1   : > { %v1280_v5 = vadd.f32 %v1279_v3, %v1235_v4 }
 0x7f2   : > { %v1314_v24 = vpop.f32.mrf.mxu1 }
 0x7f3   : > { %v1309_v7 = vadd.f32 %v1308_v30, %v1280_v5 }
 0x7f5   : > { %v1320_v8 = vsel %vm678_vm8, %v1309_v7, 0.0 }
 0x7f6   : > { %1321 = vadd.xlane.f32.xlu1 %v1320_v8 }
 0x7f8   : > { %v1282_v14 = vpop.f32.mrf.mxu3 }
 0x7f9   : > { %v1283_v15 = vadd.f32 %v1282_v14, %v1240_v11 }
 0x7fb   : > { %v1312_v17 = vadd.f32 %v1311_v9, %v1283_v15 }
 0x7fd   : > { %v1323_v20 = vsel %vm678_vm8, %v1312_v17, 0.0 }
 0x7fe   : > { %1324 = vadd.xlane.f32.xlu0 %v1323_v20 }
 0x800   : > { %v1285_v21 = vpop.f32.mrf.mxu3 }
 0x801   : > { %v1286_v25 = vadd.f32 %v1285_v21, %v1245_v16 }
 0x803   : > { %v1315_v38 = vadd.f32 %v1314_v24, %v1286_v25 }
 0x805   : > { %v1326_v56 = vsel %vm678_vm8, %v1315_v38, 0.0 }
 0x806   : > { %1327 = vadd.xlane.f32.xlu2 %v1326_v56 }
 0x80e   : > { %1318 = vadd.xlane.f32.xlu2 %v1317_v31 }
 0x869   : > { %v1322_v6 = vpop.xlane.xlu1 %1321 }
 0x86a   : > { %v1330_v19 = vmul.f32 %v1322_v6, %v7785_v10 }
 0x86c   : > { %v8024_v18 = vsub.f32 %v1309_v7, %v1330_v19 }
 0x86e   : > { %v1338_v62 = vmul.f32 %v8024_v18, %v8024_v18 }
 0x870   : > { %v1344_v33 = vsel %vm678_vm8, %v1338_v62, 0.0 }
 0x871   : > { %v1325_v26 = vpop.xlane.xlu0 %1324  ;;  %1345 = vadd.xlane.f32.xlu2 %v1344_v33 }
 0x872   : > { %v1331_v23 = vmul.f32 %v1325_v26, %v7785_v10 }
 0x874   : > { %v1335_v54 = vsub.f32 %v1312_v17, %v1331_v23 }
 0x876   : > { %v1339_v32 = vmul.f32 %v1335_v54, %v1335_v54 }
 0x878   : > { %v1347_v12 = vsel %vm678_vm8, %v1339_v32, 0.0 }
 0x879   : > { %v1328_v1 = vpop.xlane.xlu2 %1327  ;;  %1348 = vadd.xlane.f32.xlu1 %v1347_v12 }
 0x87a   : > { %v1332_v13 = vmul.f32 %v1328_v1, %v7785_v10 }
 0x87c   : > { %v1336_v28 = vsub.f32 %v1315_v38, %v1332_v13 }
 0x87e   : > { %v1340_v2 = vmul.f32 %v1336_v28, %v1336_v28 }
 0x880   : > { %v1350_v30 = vsel %vm678_vm8, %v1340_v2, 0.0 }
 0x881   : > { %1351 = vadd.xlane.f32.xlu0 %v1350_v30  ;;  %v1319_v4 = vpop.xlane.xlu2 %1318 }
 0x882   : > { %v1329_v3 = vmul.f32 %v1319_v4, %v7785_v10 }
 0x884   : > { %v8034_v5 = vsub.f32 %v1306_v29, %v1329_v3 }
 0x886   : > { %v1337_v7 = vmul.f32 %v8034_v5, %v8034_v5 }
 0x888   : > { %v1341_v8 = vsel %vm678_vm8, %v1337_v7, 0.0 }
 0x889   : > { %1342 = vadd.xlane.f32.xlu0 %v1341_v8 }
 0x8e4   : > { %v1346_v9 = vpop.xlane.xlu2 %1345 }
 0x8e5   : > { %v1354_v11 = vmul.f32 %v1346_v9, %v7785_v10 }
 0x8e7   : > { %v1358_v14 = vadd.f32 1e-05, %v1354_v11 }
 0x8e9   : > { %7455 = vrsqrt.f32 %v1358_v14  ;;  %vm1377_vm14 = vweird.f32 %v1358_v14 }
 0x8ec   : > { %v1349_v15 = vpop.xlane.xlu1 %1348 }
 0x8ed   : > { %v1355_v16 = vmul.f32 %v1349_v15, %v7785_v10 }
 0x8ef   : > { %v1359_v17 = vadd.f32 1e-05, %v1355_v16  ;;  %v7456_v21 = vpop.eup %7455 }
 0x8f0   : > { %v1372_v27 = vmul.f32 %v7456_v21, %v1358_v14  ;;  %vm1378_vm6 = vweird.f32 %v7456_v21 }
 0x8f1   : > { %7457 = vrsqrt.f32 %v1359_v17  ;;  %vm1387_vm3 = vweird.f32 %v1359_v17  ;;  %vm1379_vm15 = vmor %vm1377_vm14, %vm1378_vm6 }
 0x8f2   : > { %v1373_v29 = vmul.f32 %v7456_v21, %v1372_v27 }
 0x8f4   : > { %v1352_v20 = vpop.xlane.xlu0 %1351  ;;  %v1374_v23 = vmul.f32 0.5, %v1373_v29 }
 0x8f5   : > { %v1356_v24 = vmul.f32 %v1352_v20, %v7785_v10 }
 0x8f6   : > { %v1375_v13 = vsub.f32 1.5, %v1374_v23 }
 0x8f7   : > { %v7458_v25 = vpop.eup %7457  ;;  %v1360_v38 = vadd.f32 1e-05, %v1356_v24 }
 0x8f8   : > { %v1382_v22 = vmul.f32 %v7458_v25, %v1359_v17  ;;  %vm1388_vm2 = vweird.f32 %v7458_v25  ;;  %v1376_v8 = vmul.f32 %v7456_v21, %v1375_v13 }
 0x8f9   : > { %7459 = vrsqrt.f32 %v1360_v38  ;;  %vm1389_vm4 = vmor %vm1387_vm3, %vm1388_vm2  ;;  %vm1397_vm9 = vweird.f32 %v1360_v38 }
 0x8fa   : > { %v1383_v56 = vmul.f32 %v7458_v25, %v1382_v22  ;;  %v1380_v24 = vsel %vm1379_vm15, %v7456_v21, %v1376_v8 }
 0x8fc   : > { %v1384_v31 = vmul.f32 0.5, %v1383_v56  ;;  %v1343_v6 = vpop.xlane.xlu0 %1342  ;;  %v1402_v56 = vmul.f32 %v1380_v24, %v8024_v18 }
 0x8fd   : > { %v1353_v19 = vmul.f32 %v1343_v6, %v7785_v10 }
 0x8fe   : > { %v1385_v62 = vsub.f32 1.5, %v1384_v31  ;;  %v1406_v21 = vmax.f32 %v1402_v56, 0.0 }
 0x8ff   : > { %v7460_v33 = vpop.eup %7459  ;;  %v1357_v26 = vadd.f32 1e-05, %v1353_v19 }
 0x900   : > { %v1386_v32 = vmul.f32 %v7458_v25, %v1385_v62  ;;  %v1392_v12 = vmul.f32 %v7460_v33, %v1360_v38  ;;  %vm1398_vm5 = vweird.f32 %v7460_v33 }
 0x901   : > { %7461 = vrsqrt.f32 %v1357_v26  ;;  %vm1399_vm13 = vmor %vm1397_vm9, %vm1398_vm5  ;;  %vm1367_vm3 = vweird.f32 %v1357_v26 }
 0x902   : > { %v1393_v1 = vmul.f32 %v7460_v33, %v1392_v12  ;;  %v1390_v2 = vsel %vm1389_vm4, %v7458_v25, %v1386_v32 }
 0x903   : > { %v1403_v7 = vmul.f32 %v1390_v2, %v1335_v54 }
 0x904   : > { %v1394_v30 = vmul.f32 0.5, %v1393_v1 }
 0x905   : > { %v1407_v17 = vmax.f32 %v1403_v7, 0.0 }
 0x906   : > { %v1395_v4 = vsub.f32 1.5, %v1394_v30 }
 0x907   : > { %v7462_v3 = vpop.eup %7461  ;;  %v8045_v54 = vadd.f32 %v1407_v17, %v7807_v34  ;;  %v8056_v34 = vadd.f32 %v1406_v21, %v7817_v63 }
 0x908   : > { %v1396_v9 = vmul.f32 %v7460_v33, %v1395_v4  ;;  %v1362_v11 = vmul.f32 %v7462_v3, %v1357_v26  ;;  %vm1368_vm2 = vweird.f32 %v7462_v3 }
 0x909   : > { %vm1369_vm4 = vmor %vm1367_vm3, %vm1368_vm2 }
 0x90a   : > { %v1400_v15 = vsel %vm1399_vm13, %v7460_v33, %v1396_v9  ;;  %v1363_v16 = vmul.f32 %v7462_v3, %v1362_v11 }
 0x90b   : > { %v1404_v20 = vmul.f32 %v1400_v15, %v1336_v28 }
 0x90c   : > { %v1364_v27 = vmul.f32 0.5, %v1363_v16 }
 0x90d   : > { %v1408_v25 = vmax.f32 %v1404_v20, 0.0 }
 0x90e   : > { %v1365_v22 = vsub.f32 1.5, %v1364_v27 }
 0x90f   : > { %v8048_v38 = vadd.f32 %v1408_v25, %v7809_v35 }
 0x910   : > { %v1366_v29 = vmul.f32 %v7462_v3, %v1365_v22 }
 0x911   : > { %v6642_v14 = vpack.i.bf16 %v8045_v54, %v8048_v38 }
 0x912   : > { %v1370_v28 = vsel %vm1369_vm4, %v7462_v3, %v1366_v29 }
 0x913   : > { %v1401_v31 = vmul.f32 %v1370_v28, %v8034_v5  ;;  %6643 = vrot.lane.b32.xlu1 %v6642_v14, %s7542_s26  ;;  %6648 = vrot.lane.b32.xlu2 %v6642_v14, %s7540_s24 }
 0x915   : > { %v1405_v18 = vmax.f32 %v1401_v31, 0.0 }
 0x917   : > { %v8059_v35 = vadd.f32 %v1405_v18, %v7819_v61 }
 0x919   : > { %v6652_v6 = vpack.i.bf16 %v8059_v35, %v8056_v34 }
 0x91b   : > { %6663 = vrot.lane.b32.xlu1 %v6642_v14, %s7541_s25  ;;  %6653 = vrot.lane.b32.xlu2 %v6652_v6, %s7540_s24 }
 0x91c   : > { %6638 = vrot.lane.b32.xlu0 %v6652_v6, %s7542_s26 }
 0x923   : > { %6668 = vrot.lane.b32.xlu1 %v6652_v6, %s10260_s27 }
 0x924   : > { %6658 = vrot.lane.b32.xlu0 %v6642_v14, %s10260_s27 }
 0x92c   : > { %6673 = vrot.lane.b32.xlu0 %v6652_v6, %s7541_s25 }
 0x96d   : > { %v6649_v61 = vpop.permute.xlu2 %6648 }
 0x96e   : > { %v6651_v32 = vunpack.i.h.bf16 %v6649_v61  ;;  %v6650_v12 = vunpack.i.l.bf16 %v6649_v61 }
 0x975   : > { %v6654_v17 = vpop.permute.xlu2 %6653 }
 0x976   : > { %v6656_v14 = vunpack.i.h.bf16 %v6654_v17  ;;  %v6655_v28 = vunpack.i.l.bf16 %v6654_v17 }
 0x985   : > { %v6644_v63 = vpop.permute.xlu1 %6643 }
 0x986   : > { %v6646_v62 = vunpack.i.h.bf16 %v6644_v63  ;;  %v6645_v33 = vunpack.i.l.bf16 %v6644_v63 }
 0x988   : > { %v1479_v26 = vsel %vm482_vm0, %v6646_v62, %v8045_v54  ;;  %v1480_v23 = vsel %vm482_vm0, %v6645_v33, %v8048_v38 }
 0x989   : > { %v1483_v30 = vsel %vm485_vm1, %v1479_v26, %v6651_v32  ;;  %v1484_v4 = vsel %vm485_vm1, %v1480_v23, %v6650_v12  ;;  %v1424_v26 = vld [vmem:[%s10242_s3 + $0x98] sm:$0xff]  ;;  %v1421_v23 = vld [vmem:[%s10242_s3 + $0x80] sm:$0xff]  ;;  %v1423_v32 = vld [vmem:[%s10242_s3 + $0x90] sm:$0xff] }
 0x98a   : > { %v1422_v12 = vld [vmem:[%s10242_s3 + $0x88] sm:$0xff] }
 0x98d   : > { %v6664_v19 = vpop.permute.xlu1 %6663 }
 0x98e   : > { %v6639_v5 = vpop.permute.xlu0 %6638  ;;  %v6666_v3 = vunpack.i.h.bf16 %v6664_v19  ;;  %v6665_v7 = vunpack.i.l.bf16 %v6664_v19 }
 0x98f   : > { %v6641_v8 = vunpack.i.h.bf16 %v6639_v5  ;;  %v6640_v9 = vunpack.i.l.bf16 %v6639_v5 }
 0x991   : > { %v1477_v25 = vsel %vm482_vm0, %v6641_v8, %v8059_v35  ;;  %v1478_v22 = vsel %vm482_vm0, %v6640_v9, %v8056_v34 }
 0x992   : > { %v1481_v31 = vsel %vm485_vm1, %v1477_v25, %v6656_v14  ;;  %v1482_v18 = vsel %vm485_vm1, %v1478_v22, %v6655_v28 }
 0x995   : > { %v6669_v11 = vpop.permute.xlu1 %6668 }
 0x996   : > { %v6659_v1 = vpop.permute.xlu0 %6658  ;;  %v6671_v56 = vunpack.i.h.bf16 %v6669_v11  ;;  %v6670_v29 = vunpack.i.l.bf16 %v6669_v11 }
 0x997   : > { %v6661_v13 = vunpack.i.h.bf16 %v6659_v1  ;;  %v6660_v2 = vunpack.i.l.bf16 %v6659_v1 }
 0x998   : > { %v1485_v5 = vsel %vm850_vm10, %v1481_v31, %v6671_v56  ;;  %v1486_v19 = vsel %vm850_vm10, %v1482_v18, %v6670_v29 }
 0x999   : > { %v1487_v15 = vsel %vm850_vm10, %v1483_v30, %v6661_v13  ;;  %v1488_v16 = vsel %vm850_vm10, %v1484_v4, %v6660_v2 }
 0x99a   : > { %v8078_v20 = vsel %vm855_vm11, %v1487_v15, %v6666_v3  ;;  %v8081_v24 = vsel %vm855_vm11, %v1488_v16, %v6665_v7 }
 0x99b   : > { %v6687_v27 = vpack.i.bf16 %v8078_v20, %v8081_v24 }
 0x99d   : > { %6688 = vrot.lane.b32.xlu0 %v6687_v27, %s7542_s26  ;;  %6678 = vrot.lane.b32.xlu2 %v6687_v27, %s10258_s14 }
 0x99e   : > { %v6674_v21 = vpop.permute.xlu0 %6673 }
 0x99f   : > { %v6676_v6 = vunpack.i.h.bf16 %v6674_v21  ;;  %v6675_v63 = vunpack.i.l.bf16 %v6674_v21 }
 0x9a1   : > { %v8096_v61 = vsel %vm855_vm11, %v1485_v5, %v6676_v6  ;;  %v8099_v62 = vsel %vm855_vm11, %v1486_v19, %v6675_v63  ;;  %v1414_v63 = vld [vmem:[%s10241_s2 + $0x108] sm:$0xff]  ;;  %v1992_v19 = vld [vmem:[%s10244_s5] sm:$0xff] }
 0x9a2   : > { %v6682_v33 = vpack.i.bf16 %v8096_v61, %v8099_v62  ;;  %v1993_v5 = vld [vmem:[%s10244_s5 + $0x8] sm:$0xff] }
 0x9a4   : > { %6683 = vrot.lane.b32.xlu1 %v6682_v33, %s10258_s14 }
 0x9a5   : > { %6698 = vrot.lane.b32.xlu0 %v6682_v33, %s10255_s15  ;;  %6693 = vrot.lane.b32.xlu2 %v6682_v33, %s7542_s26 }
 0x9ac   : > { %6703 = vrot.lane.b32.xlu1 %v6687_v27, %s10255_s15 }
 0x9ad   : > { %1562 = vperm.xlu0 %6475, %v1424_v26   ;;  %6708 = vrot.lane.b32.xlu2 %v6687_v27, %s10253_s23  ;;  %v1416_v26 = vld [vmem:[%s10241_s2 + $0x118] sm:$0xff] }
 0x9b4   : > { %6713 = vrot.lane.b32.xlu1 %v6682_v33, %s10253_s23  ;;  %v1413_v33 = vld [vmem:[%s10241_s2 + $0x100] sm:$0xff] }
 0x9b5   : > { %1547 = vperm.xlu0 %6475, %v1421_v23   ;;  %1557 = vperm.xlu2 %6474, %v1423_v32   ;;  %v1950_v23 = vld [vmem:[%s10243_s4 + $0x8] sm:$0xff] }
 0x9bc   : > { %1552 = vperm.xlu1 %6476, %v1422_v12  }
 0x9f7   : > { %v6679_v1 = vpop.permute.xlu2 %6678 }
 0x9f8   : > { %v6680_v13 = vunpack.i.l.bf16 %v6679_v1  ;;  %v6681_v2 = vunpack.i.h.bf16 %v6679_v1 }
 0x9fa   : > { %1577 = vmatpush.msrb.mxu0 %v6680_v13 }
 0x9fc   : > { %1578 = vmatpush.msrb.mxu0 %v6681_v2 }
 0x9ff   : > { %v6694_v30 = vpop.permute.xlu2 %6693 }
 0xa00   : > { %v6695_v25 = vunpack.i.l.bf16 %v6694_v30  ;;  %v6696_v22 = vunpack.i.h.bf16 %v6694_v30 }
 0xa07   : > { %v6709_v4 = vpop.permute.xlu2 %6708 }
 0xa08   : > { %v6710_v3 = vunpack.i.l.bf16 %v6709_v4  ;;  %v6711_v7 = vunpack.i.h.bf16 %v6709_v4 }
 0xa0a   : > { %1618 = vmatpush.msra.mxu2 %v6710_v3 }
 0xa0c   : > { %1619 = vmatpush.msra.mxu2 %v6711_v7 }
 0xa0f   : > { %v6689_v11 = vpop.permute.xlu0 %6688 }
 0xa10   : > { %v6690_v16 = vunpack.i.l.bf16 %v6689_v11  ;;  %v6691_v17 = vunpack.i.h.bf16 %v6689_v11 }
 0xa16   : > { %v6684_v8 = vpop.permute.xlu1 %6683 }
 0xa17   : > { %v6685_v9 = vunpack.i.l.bf16 %v6684_v8  ;;  %v6686_v15 = vunpack.i.h.bf16 %v6684_v8  ;;  %v6699_v29 = vpop.permute.xlu0 %6698 }
 0xa18   : > { %v6700_v31 = vunpack.i.l.bf16 %v6699_v29  ;;  %v6701_v6 = vunpack.i.h.bf16 %v6699_v29 }
 0xa19   : > { %1579 = vmatpush.msrb.mxu0 %v6685_v9 }
 0xa1b   : > { %1580 = vmatpush.msrb.mxu0 %v6686_v15 }
 0xa1d   : > { %1581 = vmatpush.msrb.mxu0 %v6690_v16 }
 0xa1e   : > { %v6704_v27 = vpop.permute.xlu1 %6703 }
 0xa1f   : > { %1582 = vmatpush.msrb.mxu0 %v6691_v17  ;;  %v6705_v56 = vunpack.i.l.bf16 %v6704_v27  ;;  %v6706_v14 = vunpack.i.h.bf16 %v6704_v27 }
 0xa21   : > { %1583 = vmatpush.msrb.mxu0 %v6695_v25 }
 0xa23   : > { %1584 = vmatpush.msrb.mxu0 %v6696_v22 }
 0xa25   : > { %1585 = vmatpush.msrb.mxu0 %v6705_v56 }
 0xa26   : > { %v6714_v28 = vpop.permute.xlu1 %6713 }
 0xa27   : > { %v6715_v21 = vunpack.i.l.bf16 %v6714_v28  ;;  %1586 = vmatpush.msrb.mxu0 %v6706_v14  ;;  %v6716_v18 = vunpack.i.h.bf16 %v6714_v28 }
 0xa29   : > { %1587 = vmatpush.msrb.mxu0 %v6700_v31  ;;  %1620 = vmatpush.msra.mxu2 %v6715_v21 }
 0xa2b   : > { %1588 = vmatpush.msrb.mxu0 %v6701_v6  ;;  %1621 = vmatpush.msra.mxu2 %v6716_v18 }
 0xa2c   : > { %6222 = vmatmul.msk.f32.vlgmr.msra.gmra.mxu2 %vm932_vm12, %v1414_v63 }
 0xa2d   : > { %1589 = vmatpush.msrb.mxu0 %v8081_v24  ;;  %2016 = vmatpush.msrb.mxu2 %v1993_v5  ;;  %v1418_v24 = vld [vmem:[%s10241_s2 + $0x128] sm:$0xff] }
 0xa2f   : > { %1590 = vmatpush.msrb.mxu0 %v8078_v20  ;;  %2017 = vmatpush.msrb.mxu2 %v1992_v19  ;;  %v1949_v20 = vld [vmem:[%s10243_s4] sm:$0xff] }
 0xa31   : > { %1591 = vmatpush.msrb.mxu0 %v8099_v62 }
 0xa33   : > { %1592 = vmatpush.msrb.mxu0 %v8096_v61  ;;  %v1415_v61 = vld [vmem:[%s10241_s2 + $0x110] sm:$0xff] }
 0xa34   : > { %1593 = vmatmul.f32.vlgmr.msrb.gmra.mxu0 %v1413_v33  ;;  %6223 = vmatmul.msk.f32.gmra.mxu2 %vm932_vm12, %v1416_v26 }
 0xa35   : > { %1977 = vmatpush.msra.mxu0 %v1950_v23 }
 0xa37   : > { %1978 = vmatpush.msra.mxu0 %v1949_v20 }
 0xa39   : > { %2249 = vmatpush.msrb.mxu0 %v6442_v40  ;;  %v1417_v40 = vld [vmem:[%s10241_s2 + $0x120] sm:$0xff] }
 0xa3b   : > { %2250 = vmatpush.msrb.mxu0 %v6443_v42 }
 0xa3c   : > { %6224 = vmatmul.msk.f32.gmra.mxu2 %vm932_vm12, %v1418_v24  ;;  %1596 = vmatmul.f32.gmra.mxu0 %v1415_v61 }
 0xa3d   : > { %2251 = vmatpush.msrb.mxu0 %v6447_v43 }
 0xa3f   : > { %2252 = vmatpush.msrb.mxu0 %v6448_v45  ;;  %v1553_v45 = vpop.permute.xlu1 %1552 }
 0xa41   : > { %2253 = vmatpush.msrb.mxu0 %v6452_v46 }
 0xa43   : > { %2254 = vmatpush.msrb.mxu0 %v6453_v48 }
 0xa44   : > { %6225 = vmatmul.msk.f32.gmra.mxu2 %vm932_vm12, %v1420_v39  ;;  %1599 = vmatmul.f32.gmra.mxu0 %v1417_v40 }
 0xa45   : > { %2255 = vmatpush.msrb.mxu0 %v6457_v49  ;;  %v1558_v49 = vpop.permute.xlu2 %1557 }
 0xa47   : > { %2256 = vmatpush.msrb.mxu0 %v6458_v51 }
 0xa49   : > { %2257 = vmatpush.msrb.mxu0 %v6462_v52  ;;  %v1563_v52 = vpop.permute.xlu0 %1562 }
 0xa4b   : > { %2258 = vmatpush.msrb.mxu0 %v6463_v55 }
 0xa4c   : > { %6234 = vmatmul.msk.f32.vlgmr.msrb.gmra.mxu2 %vm678_vm8, %v8059_v35  ;;  %1602 = vmatmul.f32.gmra.mxu0 %v1419_v41 }
 0xa4d   : > { %2259 = vmatpush.msrb.mxu0 %v6467_v57 }
 0xa4f   : > { %2260 = vmatpush.msrb.mxu0 %v6468_v59 }
 0xa51   : > { %2261 = vmatpush.msrb.mxu0 %v6472_v60 }
 0xa53   : > { %2262 = vmatpush.msrb.mxu0 %v6473_v0  ;;  %v1548_v0 = vpop.permute.xlu0 %1547 }
 0xa54   : > { %6235 = vmatmul.msk.f32.gmra.mxu2 %vm678_vm8, %v8056_v34 }
 0xa55   : > { %2263 = vmatpush.msrb.mxu0 %v7663_v37 }
 0xa57   : > { %2264 = vmatpush.msrb.mxu0 %v7661_v36 }
 0xa5c   : > { %6236 = vmatmul.msk.f32.gmra.mxu2 %vm678_vm8, %v8045_v54 }
 0xa64   : > { %6237 = vmatmul.msk.f32.gmra.mxu2 %vm678_vm8, %v8048_v38 }
 0xaaf   : > { %v1623_v42 = vpop.f32.mrf.mxu2 }
 0xab1   : > { %v1594_v43 = vpop.f32.mrf.mxu0 }
 0xab2   : > { %v1595_v54 = vadd.f32 %v1594_v43, %v1548_v0 }
 0xab4   : > { %v1624_v34 = vadd.f32 %v1623_v42, %v1595_v54 }
 0xab6   : > { %v1635_v35 = vsel %vm678_vm8, %v1624_v34, 0.0 }
 0xab7   : > { %v1626_v44 = vpop.f32.mrf.mxu2 }
 0xab9   : > { %v1597_v46 = vpop.f32.mrf.mxu0 }
 0xaba   : > { %v1598_v47 = vadd.f32 %v1597_v46, %v1553_v45 }
 0xabc   : > { %v1627_v48 = vadd.f32 %v1626_v44, %v1598_v47 }
 0xabe   : > { %v1638_v37 = vsel %vm678_vm8, %v1627_v48, 0.0 }
 0xabf   : > { %1639 = vadd.xlane.f32.xlu0 %v1638_v37  ;;  %v1629_v50 = vpop.f32.mrf.mxu2 }
 0xac1   : > { %v1600_v51 = vpop.f32.mrf.mxu0 }
 0xac2   : > { %v1601_v36 = vadd.f32 %v1600_v51, %v1558_v49 }
 0xac4   : > { %v1630_v53 = vadd.f32 %v1629_v50, %v1601_v36 }
 0xac6   : > { %v1641_v55 = vsel %vm678_vm8, %v1630_v53, 0.0 }
 0xac7   : > { %1642 = vadd.xlane.f32.xlu1 %v1641_v55  ;;  %v1632_v59 = vpop.f32.mrf.mxu2 }
 0xac9   : > { %v1603_v57 = vpop.f32.mrf.mxu0 }
 0xaca   : > { %v1604_v58 = vadd.f32 %v1603_v57, %v1563_v52 }
 0xacc   : > { %v1633_v60 = vadd.f32 %v1632_v59, %v1604_v58 }
 0xace   : > { %v1644_v38 = vsel %vm678_vm8, %v1633_v60, 0.0 }
 0xacf   : > { %1645 = vadd.xlane.f32.xlu2 %v1644_v38 }
 0xad7   : > { %1636 = vadd.xlane.f32.xlu2 %v1635_v35 }
 0xb32   : > { %v1640_v62 = vpop.xlane.xlu0 %1639 }
 0xb33   : > { %v1648_v32 = vmul.f32 %v1640_v62, %v7785_v10 }
 0xb35   : > { %v8208_v12 = vsub.f32 %v1627_v48, %v1648_v32 }
 0xb37   : > { %v1656_v1 = vmul.f32 %v8208_v12, %v8208_v12 }
 0xb39   : > { %v1662_v13 = vsel %vm678_vm8, %v1656_v1, 0.0 }
 0xb3a   : > { %v1643_v2 = vpop.xlane.xlu1 %1642  ;;  %1663 = vadd.xlane.f32.xlu2 %v1662_v13 }
 0xb3b   : > { %v1649_v30 = vmul.f32 %v1643_v2, %v7785_v10 }
 0xb3d   : > { %v1653_v4 = vsub.f32 %v1630_v53, %v1649_v30 }
 0xb3f   : > { %v1657_v3 = vmul.f32 %v1653_v4, %v1653_v4 }
 0xb41   : > { %v1665_v7 = vsel %vm678_vm8, %v1657_v3, 0.0 }
 0xb42   : > { %v1646_v8 = vpop.xlane.xlu2 %1645  ;;  %1666 = vadd.xlane.f32.xlu0 %v1665_v7 }
 0xb43   : > { %v1650_v9 = vmul.f32 %v1646_v8, %v7785_v10 }
 0xb45   : > { %v1654_v11 = vsub.f32 %v1633_v60, %v1650_v9 }
 0xb47   : > { %v1658_v15 = vmul.f32 %v1654_v11, %v1654_v11 }
 0xb49   : > { %v1668_v16 = vsel %vm678_vm8, %v1658_v15, 0.0 }
 0xb4a   : > { %1669 = vadd.xlane.f32.xlu1 %v1668_v16  ;;  %v1637_v17 = vpop.xlane.xlu2 %1636 }
 0xb4b   : > { %v1647_v27 = vmul.f32 %v1637_v17, %v7785_v10 }
 0xb4d   : > { %v8218_v25 = vsub.f32 %v1624_v34, %v1647_v27 }
 0xb4f   : > { %v1655_v22 = vmul.f32 %v8218_v25, %v8218_v25 }
 0xb51   : > { %v1659_v56 = vsel %vm678_vm8, %v1655_v22, 0.0 }
 0xb52   : > { %1660 = vadd.xlane.f32.xlu1 %v1659_v56 }
 0xbad   : > { %v1664_v29 = vpop.xlane.xlu2 %1663 }
 0xbae   : > { %v1672_v14 = vmul.f32 %v1664_v29, %v7785_v10 }
 0xbb0   : > { %v1676_v28 = vadd.f32 1e-05, %v1672_v14 }
 0xbb2   : > { %7463 = vrsqrt.f32 %v1676_v28  ;;  %vm1695_vm3 = vweird.f32 %v1676_v28 }
 0xbb5   : > { %v1667_v21 = vpop.xlane.xlu0 %1666 }
 0xbb6   : > { %v1673_v31 = vmul.f32 %v1667_v21, %v7785_v10 }
 0xbb8   : > { %v1677_v18 = vadd.f32 1e-05, %v1673_v31  ;;  %v7464_v5 = vpop.eup %7463 }
 0xbb9   : > { %v1690_v23 = vmul.f32 %v7464_v5, %v1676_v28  ;;  %vm1696_vm2 = vweird.f32 %v7464_v5 }
 0xbba   : > { %7465 = vrsqrt.f32 %v1677_v18  ;;  %vm1705_vm6 = vweird.f32 %v1677_v18  ;;  %vm1697_vm4 = vmor %vm1695_vm3, %vm1696_vm2 }
 0xbbb   : > { %v1691_v40 = vmul.f32 %v7464_v5, %v1690_v23 }
 0xbbd   : > { %v1670_v6 = vpop.xlane.xlu1 %1669  ;;  %v1692_v45 = vmul.f32 0.5, %v1691_v40 }
 0xbbe   : > { %v1674_v63 = vmul.f32 %v1670_v6, %v7785_v10 }
 0xbbf   : > { %v1693_v37 = vsub.f32 1.5, %v1692_v45 }
 0xbc0   : > { %v7466_v19 = vpop.eup %7465  ;;  %v1678_v33 = vadd.f32 1e-05, %v1674_v63 }
 0xbc1   : > { %v1700_v26 = vmul.f32 %v7466_v19, %v1677_v18  ;;  %vm1706_vm5 = vweird.f32 %v7466_v19  ;;  %v1694_v55 = vmul.f32 %v7464_v5, %v1693_v37 }
 0xbc2   : > { %7467 = vrsqrt.f32 %v1678_v33  ;;  %vm1707_vm9 = vmor %vm1705_vm6, %vm1706_vm5  ;;  %vm1715_vm14 = vweird.f32 %v1678_v33 }
 0xbc3   : > { %v1701_v20 = vmul.f32 %v7466_v19, %v1700_v26  ;;  %v1698_v38 = vsel %vm1697_vm4, %v7464_v5, %v1694_v55 }
 0xbc4   : > { %v1720_v32 = vmul.f32 %v1698_v38, %v8208_v12 }
 0xbc5   : > { %v1702_v24 = vmul.f32 0.5, %v1701_v20  ;;  %v1661_v61 = vpop.xlane.xlu1 %1660 }
 0xbc6   : > { %v1671_v39 = vmul.f32 %v1661_v61, %v7785_v10  ;;  %v1724_v2 = vmax.f32 %v1720_v32, 0.0 }
 0xbc7   : > { %v1703_v41 = vsub.f32 1.5, %v1702_v24 }
 0xbc8   : > { %v7468_v42 = vpop.eup %7467  ;;  %v1675_v43 = vadd.f32 1e-05, %v1671_v39 }
 0xbc9   : > { %v1710_v44 = vmul.f32 %v7468_v42, %v1678_v33  ;;  %v1704_v46 = vmul.f32 %v7466_v19, %v1703_v41  ;;  %vm1716_vm13 = vweird.f32 %v7468_v42 }
 0xbca   : > { %7469 = vrsqrt.f32 %v1675_v43  ;;  %vm1717_vm15 = vmor %vm1715_vm14, %vm1716_vm13  ;;  %vm1685_vm6 = vweird.f32 %v1675_v43  ;;  %vm10257_vm13 = vcmask 64512  }
 0xbcb   : > { %v1711_v47 = vmul.f32 %v7468_v42, %v1710_v44  ;;  %v1708_v49 = vsel %vm1707_vm9, %v7466_v19, %v1704_v46 }
 0xbcc   : > { %v1721_v53 = vmul.f32 %v1708_v49, %v1653_v4 }
 0xbcd   : > { %v1712_v48 = vmul.f32 0.5, %v1711_v47 }
 0xbce   : > { %v1725_v0 = vmax.f32 %v1721_v53, 0.0  ;;  %v1737_v53 = vld [vmem:[%s10242_s3 + $0xb0] sm:$0xff] }
 0xbcf   : > { %v1713_v50 = vsub.f32 1.5, %v1712_v48 }
 0xbd0   : > { %v7470_v51 = vpop.eup %7469 }
 0xbd1   : > { %v1714_v36 = vmul.f32 %v7468_v42, %v1713_v50  ;;  %v1680_v52 = vmul.f32 %v7470_v51, %v1675_v43  ;;  %vm1686_vm5 = vweird.f32 %v7470_v51 }
 0xbd2   : > { %vm1687_vm9 = vmor %vm1685_vm6, %vm1686_vm5 }
 0xbd3   : > { %v1718_v57 = vsel %vm1717_vm15, %v7468_v42, %v1714_v36  ;;  %v1681_v58 = vmul.f32 %v7470_v51, %v1680_v52  ;;  %v1738_v36 = vld [vmem:[%s10242_s3 + $0xb8] sm:$0xff]  ;;  %v1736_v52 = vld [vmem:[%s10242_s3 + $0xa8] sm:$0xff] }
 0xbd4   : > { %v1722_v59 = vmul.f32 %v1718_v57, %v1654_v11 }
 0xbd5   : > { %v1682_v60 = vmul.f32 0.5, %v1681_v58 }
 0xbd6   : > { %v1726_v54 = vmax.f32 %v1722_v59, 0.0 }
 0xbd7   : > { %v1683_v34 = vsub.f32 1.5, %v1682_v60 }
 0xbd8   : > { %v6722_v35 = vpack.i.bf16 %v1725_v0, %v1726_v54 }
 0xbd9   : > { %v1684_v62 = vmul.f32 %v7470_v51, %v1683_v34 }
 0xbda   : > { %6723 = vrot.lane.b32.xlu0 %v6722_v35, %s7542_s26  ;;  %6733 = vrot.lane.b32.xlu1 %v6722_v35, %s10260_s27 }
 0xbdb   : > { %v1688_v1 = vsel %vm1687_vm9, %v7470_v51, %v1684_v62  ;;  %v1735_v51 = vld [vmem:[%s10242_s3 + $0xa0] sm:$0xff] }
 0xbdc   : > { %v1719_v13 = vmul.f32 %v1688_v1, %v8218_v25 }
 0xbde   : > { %v1723_v30 = vmax.f32 %v1719_v13, 0.0 }
 0xbe0   : > { %v6747_v4 = vpack.i.bf16 %v1723_v30, %v1724_v2 }
 0xbe2   : > { %6738 = vrot.lane.b32.xlu0 %v6722_v35, %s7541_s25  ;;  %6748 = vrot.lane.b32.xlu1 %v6747_v4, %s10260_s27 }
 0xbe3   : > { %6718 = vrot.lane.b32.xlu2 %v6747_v4, %s7542_s26 }
 0xbea   : > { %6743 = vrot.lane.b32.xlu0 %v6747_v4, %s7540_s24 }
 0xbeb   : > { %6728 = vrot.lane.b32.xlu2 %v6722_v35, %s7540_s24 }
 0xbf3   : > { %6753 = vrot.lane.b32.xlu2 %v6747_v4, %s7541_s25 }
 0xc3d   : > { %v6719_v12 = vpop.permute.xlu2 %6718 }
 0xc3e   : > { %v6721_v19 = vunpack.i.h.bf16 %v6719_v12  ;;  %v6720_v33 = vunpack.i.l.bf16 %v6719_v12 }
 0xc40   : > { %v1791_v39 = vsel %vm482_vm0, %v6721_v19, %v1723_v30  ;;  %v1792_v40 = vsel %vm482_vm0, %v6720_v33, %v1724_v2 }
 0xc45   : > { %v6729_v9 = vpop.permute.xlu2 %6728 }
 0xc46   : > { %v6731_v16 = vunpack.i.h.bf16 %v6729_v9  ;;  %v6730_v17 = vunpack.i.l.bf16 %v6729_v9 }
 0xc4c   : > { %v6724_v3 = vpop.permute.xlu0 %6723  ;;  %v6734_v27 = vpop.permute.xlu1 %6733 }
 0xc4d   : > { %v6726_v7 = vunpack.i.h.bf16 %v6724_v3  ;;  %v6725_v8 = vunpack.i.l.bf16 %v6724_v3  ;;  %v6736_v56 = vunpack.i.h.bf16 %v6734_v27  ;;  %v6735_v29 = vunpack.i.l.bf16 %v6734_v27  ;;  %v6754_v23 = vpop.permute.xlu2 %6753  ;;  %v1730_v27 = vld [vmem:[%s10241_s2 + $0x158] sm:$0xff] }
 0xc4e   : > { %v6756_v43 = vunpack.i.h.bf16 %v6754_v23  ;;  %v6755_v44 = vunpack.i.l.bf16 %v6754_v23 }
 0xc4f   : > { %v1793_v11 = vsel %vm482_vm0, %v6726_v7, %v1725_v0  ;;  %v1794_v15 = vsel %vm482_vm0, %v6725_v8, %v1726_v54 }
 0xc50   : > { %v1797_v25 = vsel %vm485_vm1, %v1793_v11, %v6731_v16  ;;  %v1798_v22 = vsel %vm485_vm1, %v1794_v15, %v6730_v17  ;;  %v1728_v16 = vld [vmem:[%s10241_s2 + $0x148] sm:$0xff]  ;;  %v1727_v17 = vld [vmem:[%s10241_s2 + $0x140] sm:$0xff] }
 0xc51   : > { %v1801_v31 = vsel %vm850_vm10, %v1797_v25, %v6736_v56  ;;  %v1802_v18 = vsel %vm850_vm10, %v1798_v22, %v6735_v29  ;;  %v1729_v25 = vld [vmem:[%s10241_s2 + $0x150] sm:$0xff]  ;;  %v1732_v22 = vld [vmem:[%s10241_s2 + $0x168] sm:$0xff]  ;;  %v1731_v56 = vld [vmem:[%s10241_s2 + $0x160] sm:$0xff] }
 0xc52   : > { %v1733_v29 = vld [vmem:[%s10241_s2 + $0x170] sm:$0xff] }
 0xc54   : > { %v6739_v14 = vpop.permute.xlu0 %6738  ;;  %v6749_v26 = vpop.permute.xlu1 %6748 }
 0xc55   : > { %v6741_v28 = vunpack.i.h.bf16 %v6739_v14  ;;  %v6740_v21 = vunpack.i.l.bf16 %v6739_v14  ;;  %v6751_v41 = vunpack.i.h.bf16 %v6749_v26  ;;  %v6750_v42 = vunpack.i.l.bf16 %v6749_v26  ;;  %v1734_v14 = vld [vmem:[%s10241_s2 + $0x178] sm:$0xff] }
 0xc57   : > { %v8244_v6 = vsel %vm855_vm11, %v1801_v31, %v6741_v28  ;;  %v8247_v63 = vsel %vm855_vm11, %v1802_v18, %v6740_v21 }
 0xc58   : > { %v6767_v5 = vpack.i.bf16 %v8244_v6, %v8247_v63 }
 0xc5a   : > { %6768 = vrot.lane.b32.xlu2 %v6767_v5, %s7542_s26  ;;  %6758 = vrot.lane.b32.xlu0 %v6767_v5, %s10258_s14 }
 0xc5c   : > { %v6744_v20 = vpop.permute.xlu0 %6743 }
 0xc5d   : > { %v6746_v24 = vunpack.i.h.bf16 %v6744_v20  ;;  %v6745_v61 = vunpack.i.l.bf16 %v6744_v20 }
 0xc5f   : > { %v1795_v45 = vsel %vm485_vm1, %v1791_v39, %v6746_v24  ;;  %v1796_v46 = vsel %vm485_vm1, %v1792_v40, %v6745_v61 }
 0xc60   : > { %v1799_v47 = vsel %vm850_vm10, %v1795_v45, %v6751_v41  ;;  %v1800_v48 = vsel %vm850_vm10, %v1796_v46, %v6750_v42 }
 0xc61   : > { %v8260_v37 = vsel %vm855_vm11, %v1799_v47, %v6756_v43  ;;  %v1804_v49 = vsel %vm855_vm11, %v1800_v48, %v6755_v44 }
 0xc62   : > { %v6782_v50 = vpack.i.bf16 %v8260_v37, %v1804_v49 }
 0xc64   : > { %6783 = vrot.lane.b32.xlu2 %v6782_v50, %s10255_s15  ;;  %6773 = vrot.lane.b32.xlu0 %v6782_v50, %s7542_s26 }
 0xc65   : > { %6763 = vrot.lane.b32.xlu1 %v6782_v50, %s10258_s14 }
 0xc6c   : > { %1861 = vperm.xlu2 %6474, %v1735_v51   ;;  %6788 = vrot.lane.b32.xlu0 %v6767_v5, %s10253_s23 }
 0xc6d   : > { %6778 = vrot.lane.b32.xlu1 %v6767_v5, %s10255_s15  ;;  %s10262_s15 = smov 127  }
 0xc74   : > { %1876 = vperm.xlu2 %6474, %v1738_v36   ;;  %1866 = vperm.xlu0 %6475, %v1736_v52   ;;  %v2221_v36 = vld [vmem:[%s10241_s2 + $0x1c0] sm:$0xff]  ;;  %v7553_v52 = vmov 8.0  }
 0xc75   : > { %6793 = vrot.lane.b32.xlu1 %v6782_v50, %s10253_s23  ;;  %7471 = vrcp.f32 %v7553_v52  ;;  %s429_s23 = scalar_lea.vmem %s10249_s10, %s7639_s19 }
 0xc7d   : > { %1871 = vperm.xlu1 %6476, %v1737_v53   ;;  %v2222_v53 = vld [vmem:[%s10241_s2 + $0x1d0] sm:$0xff] }
 0xcb4   : > { %v6769_v54 = vpop.permute.xlu2 %6768 }
 0xcb5   : > { %v6770_v34 = vunpack.i.l.bf16 %v6769_v54  ;;  %v6771_v35 = vunpack.i.h.bf16 %v6769_v54  ;;  %v2224_v54 = vld [vmem:[%s10241_s2 + $0x1f0] sm:$0xff] }
 0xcbe   : > { %v6784_v12 = vpop.permute.xlu2 %6783 }
 0xcbf   : > { %v6785_v8 = vunpack.i.l.bf16 %v6784_v12  ;;  %v6786_v11 = vunpack.i.h.bf16 %v6784_v12 }
 0xcc6   : > { %v1862_v21 = vpop.permute.xlu2 %1861 }
 0xccc   : > { %v6759_v55 = vpop.permute.xlu0 %6758 }
 0xccd   : > { %v6760_v57 = vunpack.i.l.bf16 %v6759_v55  ;;  %v6761_v58 = vunpack.i.h.bf16 %v6759_v55  ;;  %v7472_v55 = vpop.eup %7471 }
 0xcce   : > { %v1877_v41 = vpop.permute.xlu2 %1876  ;;  %vm2049_vm14 = vweird.f32 %v7472_v55 }
 0xccf   : > { %1891 = vmatpush.msra.mxu3 %v6760_v57  ;;  %v2045_v57 = vmul.f32 8.0, %v7472_v55 }
 0xcd1   : > { %1892 = vmatpush.msra.mxu3 %v6761_v58  ;;  %v2223_v58 = vld [vmem:[%s10241_s2 + $0x1e0] sm:$0xff] }
 0xcd6   : > { %v6774_v59 = vpop.permute.xlu0 %6773 }
 0xcd7   : > { %v6764_v60 = vpop.permute.xlu1 %6763  ;;  %v6775_v13 = vunpack.i.l.bf16 %v6774_v59  ;;  %v6776_v30 = vunpack.i.h.bf16 %v6774_v59  ;;  %v2046_v59 = vsub.f32 1.0, %v2045_v57 }
 0xcd8   : > { %v6765_v0 = vunpack.i.l.bf16 %v6764_v60  ;;  %v6766_v38 = vunpack.i.h.bf16 %v6764_v60 }
 0xcd9   : > { %v2047_v60 = vmul.f32 %v7472_v55, %v2046_v59 }
 0xcda   : > { %1893 = vmatpush.msra.mxu3 %v6765_v0 }
 0xcdb   : > { %v2048_v0 = vadd.f32 %v7472_v55, %v2047_v60 }
 0xcdc   : > { %1894 = vmatpush.msra.mxu3 %v6766_v38 }
 0xcdd   : > { %v8333_v38 = vsel %vm2049_vm14, %v7472_v55, %v2048_v0 }
 0xcde   : > { %1895 = vmatpush.msra.mxu3 %v6770_v34  ;;  %v6789_v62 = vpop.permute.xlu0 %6788 }
 0xcdf   : > { %v6779_v32 = vpop.permute.xlu1 %6778  ;;  %v6790_v1 = vunpack.i.l.bf16 %v6789_v62  ;;  %v6791_v2 = vunpack.i.h.bf16 %v6789_v62 }
 0xce0   : > { %1896 = vmatpush.msra.mxu3 %v6771_v35  ;;  %v6780_v4 = vunpack.i.l.bf16 %v6779_v32  ;;  %v6781_v3 = vunpack.i.h.bf16 %v6779_v32 }
 0xce1   : > { %1932 = vmatpush.msrb.mxu1 %v6790_v1 }
 0xce2   : > { %1897 = vmatpush.msra.mxu3 %v6775_v13 }
 0xce3   : > { %1933 = vmatpush.msrb.mxu1 %v6791_v2 }
 0xce4   : > { %1898 = vmatpush.msra.mxu3 %v6776_v30 }
 0xce6   : > { %1899 = vmatpush.msra.mxu3 %v6780_v4  ;;  %v1867_v5 = vpop.permute.xlu0 %1866 }
 0xce7   : > { %v6794_v7 = vpop.permute.xlu1 %6793 }
 0xce8   : > { %1900 = vmatpush.msra.mxu3 %v6781_v3  ;;  %v6795_v9 = vunpack.i.l.bf16 %v6794_v7  ;;  %v6796_v15 = vunpack.i.h.bf16 %v6794_v7 }
 0xcea   : > { %1901 = vmatpush.msra.mxu3 %v6785_v8  ;;  %1934 = vmatpush.msrb.mxu1 %v6795_v9 }
 0xcec   : > { %1902 = vmatpush.msra.mxu3 %v6786_v11  ;;  %1935 = vmatpush.msrb.mxu1 %v6796_v15 }
 0xced   : > { %6226 = vmatmul.msk.f32.vlgmr.msrb.gmra.mxu1 %vm932_vm12, %v1728_v16 }
 0xcee   : > { %1903 = vmatpush.msra.mxu3 %v8247_v63 }
 0xcef   : > { %v1872_v23 = vpop.permute.xlu1 %1871 }
 0xcf0   : > { %1904 = vmatpush.msra.mxu3 %v8244_v6 }
 0xcf2   : > { %1905 = vmatpush.msra.mxu3 %v1804_v49 }
 0xcf4   : > { %1906 = vmatpush.msra.mxu3 %v8260_v37 }
 0xcf5   : > { %1907 = vmatmul.f32.vlgmr.msra.gmra.mxu3 %v1727_v17  ;;  %6227 = vmatmul.msk.f32.gmra.mxu1 %vm932_vm12, %v1730_v27 }
 0xcf6   : > { %6363 = vmatpush.msrb.mxu3 %v6790_v1 }
 0xcf8   : > { %6364 = vmatpush.msrb.mxu3 %v6791_v2 }
 0xcfa   : > { %6365 = vmatpush.msrb.mxu3 %v6795_v9  ;;  %v2227_v9 = vld [vmem:[%s10242_s3 + $0xf0] sm:$0xff] }
 0xcfc   : > { %6366 = vmatpush.msrb.mxu3 %v6796_v15 }
 0xcfd   : > { %1910 = vmatmul.f32.gmra.mxu3 %v1729_v25  ;;  %6228 = vmatmul.msk.f32.gmra.mxu1 %vm932_vm12, %v1732_v22  ;;  %v2225_v25 = vld [vmem:[%s10242_s3 + $0xe0] sm:$0xff] }
 0xd05   : > { %1913 = vmatmul.f32.gmra.mxu3 %v1731_v56 }
 0xd0d   : > { %1916 = vmatmul.f32.gmra.mxu3 %v1733_v29  ;;  %v2228_v29 = vld [vmem:[%s10242_s3 + $0xf8] sm:$0xff] }
 0xd15   : > { %6229 = vmatmul.msk.f32.vlgmr.msrb.gmra.mxu3 %vm932_vm12, %v1734_v14  ;;  %v2287_v14 = vld [vmem:[%s10242_s3 + $0x108] sm:$0xff] }
 0xd6a   : > { %v1937_v28 = vpop.f32.mrf.mxu1 }
 0xd72   : > { %v1940_v63 = vpop.f32.mrf.mxu1 }
 0xd78   : > { %v1908_v31 = vpop.f32.mrf.mxu3 }
 0xd79   : > { %v1909_v18 = vadd.f32 %v1908_v31, %v1862_v21  ;;  %v2286_v21 = vld [vmem:[%s10242_s3 + $0x100] sm:$0xff]  ;;  %v2226_v31 = vld [vmem:[%s10242_s3 + $0xe8] sm:$0xff] }
 0xd7a   : > { %v1943_v24 = vpop.f32.mrf.mxu1 }
 0xd7b   : > { %v1938_v6 = vadd.f32 %v1937_v28, %v1909_v18  ;;  %v2289_v28 = vld [vmem:[%s10242_s3 + $0x118] sm:$0xff]  ;;  %v2288_v18 = vld [vmem:[%s10242_s3 + $0x110] sm:$0xff] }
 0xd7d   : > { %6230 = vmatmul.msk.f32.vlgmr.msra.gmra.mxu0 %vm678_vm8, %v1938_v6 }
 0xd80   : > { %v1911_v19 = vpop.f32.mrf.mxu3 }
 0xd81   : > { %v1912_v33 = vadd.f32 %v1911_v19, %v1867_v5 }
 0xd83   : > { %v1941_v26 = vadd.f32 %v1940_v63, %v1912_v33 }
 0xd85   : > { %6231 = vmatmul.msk.f32.gmra.mxu0 %vm678_vm8, %v1941_v26 }
 0xd88   : > { %v1914_v20 = vpop.f32.mrf.mxu3 }
 0xd89   : > { %v1915_v61 = vadd.f32 %v1914_v20, %v1872_v23  ;;  %v8385_v20 = vpop.f32.mrf.mxu2 }
 0xd8b   : > { %v1944_v39 = vadd.f32 %v1943_v24, %v1915_v61 }
 0xd8d   : > { %6232 = vmatmul.msk.f32.gmra.mxu0 %vm678_vm8, %v1944_v39 }
 0xd90   : > { %v1917_v40 = vpop.f32.mrf.mxu3 }
 0xd91   : > { %v1918_v42 = vadd.f32 %v1917_v40, %v1877_v41 }
 0xd98   : > { %v1946_v43 = vpop.f32.mrf.mxu3 }
 0xd99   : > { %v1947_v44 = vadd.f32 %v1946_v43, %v1918_v42 }
 0xd9b   : > { %6233 = vmatmul.msk.f32.gmra.mxu0 %vm678_vm8, %v1947_v44 }
 0xda3   : > { %2265 = vmatmul.f32.vlgmr.msrb.gmra.mxu0 %v2221_v36 }
 0xdab   : > { %2268 = vmatmul.f32.gmra.mxu0 %v2222_v53 }
 0xdb3   : > { %2271 = vmatmul.f32.gmra.mxu0 %v2223_v58 }
 0xdbb   : > { %2274 = vmatmul.f32.gmra.mxu0 %v2224_v54 }
 0xdfa   : > { %v1980_v45 = vpop.f32.mrf.mxu0 }
 0xdfb   : > { %v2032_v51 = vsel %vm10257_vm13, %v1980_v45, 0.0 }
 0xe02   : > { %v1983_v46 = vpop.f32.mrf.mxu0 }
 0xe03   : > { %v2035_v47 = vsel %vm10257_vm13, %v1983_v46, 0.0 }
 0xe04   : > { %2036 = vadd.xlane.f32.xlu2 %v2035_v47 }
 0xe0a   : > { %v1986_v48 = vpop.f32.mrf.mxu0 }
 0xe0b   : > { %v2038_v37 = vsel %vm10257_vm13, %v1986_v48, 0.0 }
 0xe0c   : > { %2039 = vadd.xlane.f32.xlu1 %v2038_v37 }
 0xe18   : > { %v1989_v49 = vpop.f32.mrf.mxu0 }
 0xe19   : > { %v2041_v50 = vsel %vm10257_vm13, %v1989_v49, 0.0 }
 0xe1a   : > { %2042 = vadd.xlane.f32.xlu0 %v2041_v50 }
 0xe22   : > { %2033 = vadd.xlane.f32.xlu0 %v2032_v51 }
 0xe77   : > { %v2037_v34 = vpop.xlane.xlu2 %2036 }
 0xe78   : > { %v2052_v35 = vmul.f32 %v8333_v38, %v2037_v34 }
 0xe7a   : > { %v8336_v62 = vsub.f32 %v1983_v46, %v2052_v35  ;;  %v8388_v46 = vpop.f32.mrf.mxu0 }
 0xe7c   : > { %v2060_v32 = vmul.f32 %v8336_v62, %v8336_v62 }
 0xe7e   : > { %v2066_v1 = vsel %vm10257_vm13, %v2060_v32, 0.0 }
 0xe7f   : > { %v2040_v13 = vpop.xlane.xlu1 %2039  ;;  %2067 = vadd.xlane.f32.xlu0 %v2066_v1 }
 0xe80   : > { %v2053_v2 = vmul.f32 %v8333_v38, %v2040_v13 }
 0xe82   : > { %v8342_v30 = vsub.f32 %v1986_v48, %v2053_v2  ;;  %v2269_v60 = vpop.f32.mrf.mxu0 }
 0xe84   : > { %v2061_v4 = vmul.f32 %v8342_v30, %v8342_v30 }
 0xe86   : > { %v2069_v12 = vsel %vm10257_vm13, %v2061_v4, 0.0 }
 0xe87   : > { %2070 = vadd.xlane.f32.xlu1 %v2069_v12 }
 0xe8d   : > { %v2043_v3 = vpop.xlane.xlu0 %2042 }
 0xe8e   : > { %v2054_v7 = vmul.f32 %v8333_v38, %v2043_v3 }
 0xe90   : > { %v8348_v8 = vsub.f32 %v1989_v49, %v2054_v7 }
 0xe92   : > { %v2062_v11 = vmul.f32 %v8348_v8, %v8348_v8 }
 0xe93   : > { %2241 = vperm.xlu0 %6475, %v2227_v9  }
 0xe94   : > { %v2072_v15 = vsel %vm10257_vm13, %v2062_v11, 0.0 }
 0xe95   : > { %2073 = vadd.xlane.f32.xlu2 %v2072_v15  ;;  %v2034_v16 = vpop.xlane.xlu0 %2033 }
 0xe96   : > { %v2051_v17 = vmul.f32 %v8333_v38, %v2034_v16 }
 0xe98   : > { %v8357_v27 = vsub.f32 %v1980_v45, %v2051_v17  ;;  %v2022_v45 = vpop.f32.mrf.mxu2  ;;  %v2272_v17 = vpop.f32.mrf.mxu0 }
 0xe9a   : > { %v2059_v22 = vmul.f32 %v8357_v27, %v8357_v27 }
 0xe9b   : > { %2231 = vperm.xlu0 %6475, %v2225_v25  }
 0xe9c   : > { %v2063_v56 = vsel %vm10257_vm13, %v2059_v22, 0.0 }
 0xe9d   : > { %2064 = vadd.xlane.f32.xlu2 %v2063_v56 }
 0xea0   : > { %2246 = vperm.xlu1 %6476, %v2228_v29   ;;  %v2025_v58 = vpop.f32.mrf.mxu2 }
 0xea3   : > { %2297 = vperm.xlu0 %6475, %v2287_v14  }
 0xea8   : > { %2307 = vperm.xlu1 %6476, %v2289_v28   ;;  %v2028_v16 = vpop.f32.mrf.mxu2 }
 0xeb0   : > { %2292 = vperm.xlu1 %6476, %v2286_v21  }
 0xeb5   : > { %2236 = vperm.xlu2 %6474, %v2226_v31  }
 0xebd   : > { %2302 = vperm.xlu2 %6474, %v2288_v18   ;;  %v2275_v18 = vpop.f32.mrf.mxu0 }
 0xef2   : > { %v2068_v6 = vpop.xlane.xlu0 %2067 }
 0xef3   : > { %v2076_v63 = vmul.f32 %v2068_v6, %v8333_v38 }
 0xef5   : > { %v2080_v5 = vadd.f32 1e-05, %v2076_v63  ;;  %v2135_v63 = vld [vmem:[%s10241_s2 + $0x180] sm:$0xff] }
 0xef7   : > { %7473 = vrsqrt.f32 %v2080_v5  ;;  %vm2099_vm5 = vweird.f32 %v2080_v5 }
 0xefa   : > { %v2071_v19 = vpop.xlane.xlu1 %2070 }
 0xefb   : > { %v2077_v33 = vmul.f32 %v2071_v19, %v8333_v38 }
 0xefd   : > { %v2081_v26 = vadd.f32 1e-05, %v2077_v33  ;;  %v7474_v23 = vpop.eup %7473 }
 0xefe   : > { %v2094_v39 = vmul.f32 %v7474_v23, %v2080_v5  ;;  %vm2100_vm2 = vweird.f32 %v7474_v23 }
 0xeff   : > { %7475 = vrsqrt.f32 %v2081_v26  ;;  %vm2109_vm3 = vweird.f32 %v2081_v26  ;;  %vm2101_vm9 = vmor %vm2099_vm5, %vm2100_vm2 }
 0xf00   : > { %v2095_v44 = vmul.f32 %v7474_v23, %v2094_v39 }
 0xf02   : > { %v2096_v48 = vmul.f32 0.5, %v2095_v44  ;;  %v2283_v44 = vld [vmem:[%s10241_s2 + $0x210] sm:$0xff] }
 0xf04   : > { %v2097_v52 = vsub.f32 1.5, %v2096_v48 }
 0xf05   : > { %v7476_v24 = vpop.eup %7475  ;;  %v2242_v14 = vpop.permute.xlu0 %2241 }
 0xf06   : > { %v2104_v61 = vmul.f32 %v7476_v24, %v2081_v26  ;;  %vm2110_vm15 = vweird.f32 %v7476_v24  ;;  %v2098_v59 = vmul.f32 %v7474_v23, %v2097_v52  ;;  %v2273_v33 = vadd.f32 %v2272_v17, %v2242_v14 }
 0xf07   : > { %vm2111_vm4 = vmor %vm2109_vm3, %vm2110_vm15 }
 0xf08   : > { %v2074_v40 = vpop.xlane.xlu2 %2073  ;;  %v2105_v42 = vmul.f32 %v7476_v24, %v2104_v61  ;;  %v2102_v13 = vsel %vm2101_vm9, %v7474_v23, %v2098_v59  ;;  %v7526_v61 = vld [vmem:[%s7645_s22] sm:$0xff]  ;;  %v2280_v39 = vmax.f32 %v2273_v33, 0.0 }
 0xf09   : > { %v2078_v41 = vmul.f32 %v2074_v40, %v8333_v38  ;;  %v2124_v7 = vmul.f32 %v2102_v13, %v8336_v62  ;;  %v2136_v40 = vld [vmem:[%s10241_s2 + $0x190] sm:$0xff] }
 0xf0a   : > { %v2106_v47 = vmul.f32 0.5, %v2105_v42 }
 0xf0b   : > { %v2082_v43 = vadd.f32 1e-05, %v2078_v41  ;;  %v2128_v56 = vmax.f32 %v2124_v7, 0.0 }
 0xf0c   : > { %v2107_v50 = vsub.f32 1.5, %v2106_v47 }
 0xf0d   : > { %7477 = vrsqrt.f32 %v2082_v43  ;;  %vm2119_vm14 = vweird.f32 %v2082_v43  ;;  %v2132_v62 = vadd.f32 %v2128_v56, %v2022_v45  ;;  %v2232_v26 = vpop.permute.xlu0 %2231  ;;  %v2284_v45 = vld [vmem:[%s10241_s2 + $0x220] sm:$0xff] }
 0xf0e   : > { %v2108_v55 = vmul.f32 %v7476_v24, %v2107_v50 }
 0xf10   : > { %v2065_v37 = vpop.xlane.xlu2 %2064  ;;  %v2112_v34 = vsel %vm2111_vm4, %v7476_v24, %v2108_v55 }
 0xf11   : > { %v2075_v49 = vmul.f32 %v2065_v37, %v8333_v38  ;;  %v2125_v2 = vmul.f32 %v2112_v34, %v8342_v30 }
 0xf12   : > { %v2247_v31 = vpop.permute.xlu1 %2246 }
 0xf13   : > { %v7478_v51 = vpop.eup %7477  ;;  %v2079_v36 = vadd.f32 1e-05, %v2075_v49  ;;  %v2129_v15 = vmax.f32 %v2125_v2, 0.0  ;;  %v2276_v5 = vadd.f32 %v2275_v18, %v2247_v31 }
 0xf14   : > { %v2114_v53 = vmul.f32 %v7478_v51, %v2082_v43  ;;  %vm2120_vm6 = vweird.f32 %v7478_v51  ;;  %v2282_v43 = vld [vmem:[%s10241_s2 + $0x200] sm:$0xff] }
 0xf15   : > { %7479 = vrsqrt.f32 %v2079_v36  ;;  %vm2121_vm13 = vmor %vm2119_vm14, %vm2120_vm6  ;;  %vm2089_vm2 = vweird.f32 %v2079_v36  ;;  %v2133_v30 = vadd.f32 %v2129_v15, %v2025_v58  ;;  %v2281_v23 = vmax.f32 %v2276_v5, 0.0 }
 0xf16   : > { %v2115_v57 = vmul.f32 %v7478_v51, %v2114_v53 }
 0xf18   : > { %v2116_v0 = vmul.f32 0.5, %v2115_v57  ;;  %v2237_v19 = vpop.permute.xlu2 %2236 }
 0xf19   : > { %v2270_v24 = vadd.f32 %v2269_v60, %v2237_v19 }
 0xf1a   : > { %v2117_v54 = vsub.f32 1.5, %v2116_v0  ;;  %v2308_v37 = vpop.permute.xlu1 %2307 }
 0xf1b   : > { %v7480_v35 = vpop.eup %7479  ;;  %v2279_v41 = vmax.f32 %v2270_v24, 0.0 }
 0xf1c   : > { %v2118_v32 = vmul.f32 %v7478_v51, %v2117_v54  ;;  %v2084_v1 = vmul.f32 %v7480_v35, %v2079_v36  ;;  %vm2090_vm15 = vweird.f32 %v7480_v35  ;;  %v2298_v36 = vpop.permute.xlu0 %2297 }
 0xf1d   : > { %vm2091_vm3 = vmor %vm2089_vm2, %vm2090_vm15 }
 0xf1e   : > { %v2122_v4 = vsel %vm2121_vm13, %v7478_v51, %v2118_v32  ;;  %v2085_v12 = vmul.f32 %v7480_v35, %v2084_v1  ;;  %vm10265_vm13 = vcmask 64512  }
 0xf1f   : > { %v2126_v3 = vmul.f32 %v2122_v4, %v8348_v8  ;;  %vm10266_vm4 = vmmov %vm10265_vm13 }
 0xf20   : > { %v2086_v9 = vmul.f32 0.5, %v2085_v12  ;;  %v2303_v60 = vpop.permute.xlu2 %2302  ;;  %vm10267_vm5 = vmmov %vm10266_vm4 }
 0xf21   : > { %v2130_v11 = vmax.f32 %v2126_v3, 0.0  ;;  %vm10268_vm6 = vmmov %vm10266_vm4 }
 0xf22   : > { %v2087_v25 = vsub.f32 1.5, %v2086_v9  ;;  %v2293_v50 = vpop.permute.xlu1 %2292  ;;  %vm10269_vm9 = vmmov %vm10266_vm4 }
 0xf23   : > { %v2134_v22 = vadd.f32 %v2130_v11, %v2028_v16  ;;  %vm10270_vm14 = vmmov %vm10266_vm4 }
 0xf24   : > { %v2088_v29 = vmul.f32 %v7480_v35, %v2087_v25  ;;  %vm10271_vm15 = vmmov %vm10266_vm4 }
 0xf25   : > { %2167 = vmatpush.msra.mxu3 %v2134_v22  ;;  %2210 = vmatpush.msra.mxu1 %v2134_v22  ;;  %vm10272_vm2 = vmmov %vm10266_vm4 }
 0xf26   : > { %v2092_v28 = vsel %vm2091_vm3, %v7480_v35, %v2088_v29  ;;  %vm10273_vm3 = vmmov %vm10272_vm2 }
 0xf27   : > { %2168 = vmatpush.msra.mxu3 %v2133_v30  ;;  %2211 = vmatpush.msra.mxu1 %v2133_v30  ;;  %v2123_v8 = vmul.f32 %v2092_v28, %v8357_v27  ;;  %v7525_v27 = vld [vmem:[%s7645_s22 + $0x8] sm:$0xff]  ;;  %s418_s22 = scalar_lea.vmem %s10240_s1, %s7639_s19  ;;  %s7563_s19 = smov 80  }
 0xf29   : > { %2169 = vmatpush.msra.mxu3 %v2132_v62  ;;  %2212 = vmatpush.msra.mxu1 %v2132_v62  ;;  %v2127_v21 = vmax.f32 %v2123_v8, 0.0 }
 0xf2b   : > { %v2131_v6 = vadd.f32 %v2127_v21, %v8385_v20  ;;  %v2267_v20 = vadd.f32 %v8388_v46, %v2232_v26  ;;  %v2285_v46 = vld [vmem:[%s10241_s2 + $0x230] sm:$0xff] }
 0xf2d   : > { %2170 = vmatpush.msra.mxu3 %v2131_v6  ;;  %2213 = vmatpush.msra.mxu1 %v2131_v6  ;;  %v2278_v42 = vmax.f32 %v2267_v20, 0.0 }
 0xf2e   : > { %6238 = vmatmul.msk.f32.vlgmr.msra.gmra.mxu3 %vm932_vm12, %v2135_v63 }
 0xf2f   : > { %2332 = vmatpush.msrb.mxu3 %v7525_v27 }
 0xf31   : > { %2333 = vmatpush.msrb.mxu3 %v7526_v61 }
 0xf33   : > { %2334 = vmatpush.msrb.mxu3 %v2281_v23 }
 0xf35   : > { %2335 = vmatpush.msrb.mxu3 %v2280_v39 }
 0xf36   : > { %6239 = vmatmul.msk.f32.gmra.mxu3 %vm932_vm12, %v2136_v40 }
 0xf37   : > { %2336 = vmatpush.msrb.mxu3 %v2279_v41 }
 0xf39   : > { %2337 = vmatpush.msrb.mxu3 %v2278_v42 }
 0xf3e   : > { %6242 = vmatmul.msk.f32.vlgmr.msrb.gmra.mxu3 %vm636_vm7, %v2282_v43 }
 0xf46   : > { %6243 = vmatmul.msk.f32.gmra.mxu3 %vm636_vm7, %v2283_v44 }
 0xf4e   : > { %6244 = vmatmul.msk.f32.gmra.mxu3 %vm636_vm7, %v2284_v45 }
 0xf56   : > { %6245 = vmatmul.msk.f32.gmra.mxu3 %vm636_vm7, %v2285_v46 }
 0xfb1   : > { %v8423_v47 = vpop.f32.mrf.mxu3 }
 0xfb9   : > { %v8425_v48 = vpop.f32.mrf.mxu3 }
 0xfc1   : > { %v2339_v49 = vpop.f32.mrf.mxu3 }
 0xfc2   : > { %v2340_v51 = vadd.f32 %v2339_v49, %v2293_v50  ;;  %v2363_v49 = vld [vmem:[%s10242_s3 + $0x120] sm:$0xff]  ;;  %v2365_v50 = vld [vmem:[%s10242_s3 + $0x130] sm:$0xff] }
 0xfc4   : > { %v8427_v55 = vmax.f32 %v2340_v51, 0.0  ;;  %v2364_v51 = vld [vmem:[%s10242_s3 + $0x128] sm:$0xff] }
 0xfc9   : > { %v2342_v52 = vpop.f32.mrf.mxu3 }
 0xfca   : > { %v2343_v53 = vadd.f32 %v2342_v52, %v2298_v36  ;;  %v2178_v36 = vld [vmem:[%s10241_s2 + $0x1a0] sm:$0xff] }
 0xfcb   : > { %6240 = vmatmul.msk.f32.vlgmr.msra.gmra.mxu1 %vm932_vm12, %v2178_v36 }
 0xfcc   : > { %v8429_v57 = vmax.f32 %v2343_v53, 0.0 }
 0xfce   : > { %v6797_v58 = vpack.i.bf16 %v8427_v55, %v8429_v57 }
 0xfd0   : > { %6798 = vrot.lane.b32.xlu0 %v6797_v58, %s7542_s26 }
 0xfd1   : > { %v2345_v59 = vpop.f32.mrf.mxu3 }
 0xfd2   : > { %v2346_v0 = vadd.f32 %v2345_v59, %v2303_v60  ;;  %v2179_v59 = vld [vmem:[%s10241_s2 + $0x1b0] sm:$0xff] }
 0xfd3   : > { %6241 = vmatmul.msk.f32.gmra.mxu1 %vm932_vm12, %v2179_v59 }
 0xfd4   : > { %v8434_v35 = vmax.f32 %v2346_v0, 0.0 }
 0xfd9   : > { %v2348_v54 = vpop.f32.mrf.mxu3 }
 0xfda   : > { %v2349_v34 = vadd.f32 %v2348_v54, %v2308_v37  ;;  %v2366_v37 = vld [vmem:[%s10242_s3 + $0x138] sm:$0xff] }
 0xfdc   : > { %v8436_v32 = vmax.f32 %v2349_v34, 0.0 }
 0xfde   : > { %v6812_v1 = vpack.i.bf16 %v8434_v35, %v8436_v32 }
 0xfe0   : > { %6813 = vrot.lane.b32.xlu1 %v6812_v1, %s10260_s27  ;;  %6803 = vrot.lane.b32.xlu2 %v6812_v1, %s7542_s26 }
 0xfe1   : > { %6808 = vrot.lane.b32.xlu0 %v6812_v1, %s7540_s24 }
 0xfe8   : > { %6823 = vrot.lane.b32.xlu2 %v6812_v1, %s7541_s25  ;;  %6818 = vrot.lane.b32.xlu1 %v6797_v58, %s7540_s24 }
 0xfe9   : > { %6833 = vrot.lane.b32.xlu0 %v6797_v58, %s7541_s25 }
 0xff0   : > { %6828 = vrot.lane.b32.xlu2 %v6797_v58, %s10260_s27 }
0x103a   : > { %v6804_v13 = vpop.permute.xlu2 %6803 }
0x103b   : > { %v6806_v12 = vunpack.i.h.bf16 %v6804_v13  ;;  %v6805_v3 = vunpack.i.l.bf16 %v6804_v13 }
0x103d   : > { %v2421_v25 = vsel %vm482_vm0, %v6806_v12, %v8434_v35  ;;  %v2422_v22 = vsel %vm482_vm0, %v6805_v3, %v8436_v32 }
0x1042   : > { %v6799_v2 = vpop.permute.xlu0 %6798  ;;  %v6824_v4 = vpop.permute.xlu2 %6823 }
0x1043   : > { %v6826_v56 = vunpack.i.h.bf16 %v6824_v4  ;;  %v6825_v29 = vunpack.i.l.bf16 %v6824_v4  ;;  %v6801_v8 = vunpack.i.h.bf16 %v6799_v2  ;;  %v6800_v21 = vunpack.i.l.bf16 %v6799_v2 }
0x1045   : > { %v2419_v26 = vsel %vm482_vm0, %v6801_v8, %v8427_v55  ;;  %v2420_v23 = vsel %vm482_vm0, %v6800_v21, %v8429_v57  ;;  %v2357_v8 = vld [vmem:[%s10241_s2 + $0x250] sm:$0xff]  ;;  %v2360_v21 = vld [vmem:[%s10241_s2 + $0x268] sm:$0xff] }
0x104a   : > { %v6829_v6 = vpop.permute.xlu2 %6828 }
0x104b   : > { %v6831_v24 = vunpack.i.h.bf16 %v6829_v6  ;;  %v6830_v61 = vunpack.i.l.bf16 %v6829_v6  ;;  %v2361_v6 = vld [vmem:[%s10241_s2 + $0x270] sm:$0xff] }
0x1052   : > { %v6814_v7 = vpop.permute.xlu1 %6813 }
0x1053   : > { %v6816_v9 = vunpack.i.h.bf16 %v6814_v7  ;;  %v6815_v11 = vunpack.i.l.bf16 %v6814_v7  ;;  %v6809_v15 = vpop.permute.xlu0 %6808 }
0x1054   : > { %v6811_v16 = vunpack.i.h.bf16 %v6809_v15  ;;  %v6810_v17 = vunpack.i.l.bf16 %v6809_v15 }
0x1056   : > { %v2425_v30 = vsel %vm485_vm1, %v2421_v25, %v6811_v16  ;;  %v2426_v14 = vsel %vm485_vm1, %v2422_v22, %v6810_v17 }
0x1057   : > { %v2429_v28 = vsel %vm850_vm10, %v2425_v30, %v6816_v9  ;;  %v2430_v62 = vsel %vm850_vm10, %v2426_v14, %v6815_v11  ;;  %v2356_v14 = vld [vmem:[%s10241_s2 + $0x248] sm:$0xff] }
0x1058   : > { %v8456_v31 = vsel %vm855_vm11, %v2429_v28, %v6826_v56  ;;  %v8459_v18 = vsel %vm855_vm11, %v2430_v62, %v6825_v29  ;;  %v2355_v28 = vld [vmem:[%s10241_s2 + $0x240] sm:$0xff]  ;;  %v2358_v62 = vld [vmem:[%s10241_s2 + $0x258] sm:$0xff] }
0x1059   : > { %v6847_v63 = vpack.i.bf16 %v8456_v31, %v8459_v18 }
0x105a   : > { %v6819_v5 = vpop.permute.xlu1 %6818 }
0x105b   : > { %v6821_v19 = vunpack.i.h.bf16 %v6819_v5  ;;  %v6820_v33 = vunpack.i.l.bf16 %v6819_v5  ;;  %v6834_v27 = vpop.permute.xlu0 %6833  ;;  %6848 = vrot.lane.b32.xlu0 %v6847_v63, %s7542_s26  ;;  %6838 = vrot.lane.b32.xlu1 %v6847_v63, %s10258_s14 }
0x105c   : > { %v6836_v40 = vunpack.i.h.bf16 %v6834_v27  ;;  %v6835_v41 = vunpack.i.l.bf16 %v6834_v27 }
0x105d   : > { %v2423_v39 = vsel %vm485_vm1, %v2419_v26, %v6821_v19  ;;  %v2424_v20 = vsel %vm485_vm1, %v2420_v23, %v6820_v33 }
0x105e   : > { %v2427_v42 = vsel %vm850_vm10, %v2423_v39, %v6831_v24  ;;  %v2428_v43 = vsel %vm850_vm10, %v2424_v20, %v6830_v61 }
0x105f   : > { %v8474_v44 = vsel %vm855_vm11, %v2427_v42, %v6836_v40  ;;  %v8477_v45 = vsel %vm855_vm11, %v2428_v43, %v6835_v41 }
0x1060   : > { %v6862_v46 = vpack.i.bf16 %v8474_v44, %v8477_v45 }
0x1062   : > { %6843 = vrot.lane.b32.xlu2 %v6862_v46, %s10258_s14 }
0x1063   : > { %6863 = vrot.lane.b32.xlu0 %v6862_v46, %s10262_s15  ;;  %6853 = vrot.lane.b32.xlu1 %v6862_v46, %s7542_s26 }
0x106a   : > { %6858 = vrot.lane.b32.xlu2 %v6847_v63, %s10262_s15 }
0x106b   : > { %2504 = vperm.xlu0 %6475, %v2366_v37   ;;  %6868 = vrot.lane.b32.xlu1 %v6847_v63, %s10263_s20  ;;  %v8539_v63 = vpop.f32.mrf.mxu1 }
0x1072   : > { %6873 = vrot.lane.b32.xlu2 %v6862_v46, %s10263_s20 }
0x1073   : > { %2489 = vperm.xlu0 %6475, %v2363_v49   ;;  %2499 = vperm.xlu1 %6476, %v2365_v50   ;;  %v8541_v5 = vpop.f32.mrf.mxu1 }
0x107a   : > { %2494 = vperm.xlu2 %6474, %v2364_v51  }
0x10bc   : > { %v6844_v52 = vpop.permute.xlu2 %6843 }
0x10bd   : > { %v6845_v0 = vunpack.i.l.bf16 %v6844_v52  ;;  %v6846_v34 = vunpack.i.h.bf16 %v6844_v52 }
0x10c4   : > { %v6859_v1 = vpop.permute.xlu2 %6858 }
0x10c5   : > { %v6860_v9 = vunpack.i.l.bf16 %v6859_v1  ;;  %v6861_v17 = vunpack.i.h.bf16 %v6859_v1 }
0x10cc   : > { %v6874_v15 = vpop.permute.xlu2 %6873 }
0x10cd   : > { %v6839_v53 = vpop.permute.xlu1 %6838  ;;  %v6849_v54 = vpop.permute.xlu0 %6848  ;;  %v6875_v22 = vunpack.i.l.bf16 %v6874_v15  ;;  %v6876_v29 = vunpack.i.h.bf16 %v6874_v15 }
0x10ce   : > { %v6840_v58 = vunpack.i.l.bf16 %v6839_v53  ;;  %v6841_v60 = vunpack.i.h.bf16 %v6839_v53  ;;  %v6850_v2 = vunpack.i.l.bf16 %v6849_v54  ;;  %v6851_v4 = vunpack.i.h.bf16 %v6849_v54 }
0x10d0   : > { %2519 = vmatpush.msra.mxu2 %v6840_v58 }
0x10d2   : > { %2520 = vmatpush.msra.mxu2 %v6841_v60 }
0x10d4   : > { %2521 = vmatpush.msra.mxu2 %v6845_v0  ;;  %v2495_v61 = vpop.permute.xlu2 %2494 }
0x10d5   : > { %v6854_v13 = vpop.permute.xlu1 %6853  ;;  %v6864_v16 = vpop.permute.xlu0 %6863 }
0x10d6   : > { %2522 = vmatpush.msra.mxu2 %v6846_v34  ;;  %v6855_v12 = vunpack.i.l.bf16 %v6854_v13  ;;  %v6856_v3 = vunpack.i.h.bf16 %v6854_v13  ;;  %v6865_v56 = vunpack.i.l.bf16 %v6864_v16  ;;  %v6866_v30 = vunpack.i.h.bf16 %v6864_v16 }
0x10d8   : > { %2523 = vmatpush.msra.mxu2 %v6850_v2 }
0x10da   : > { %2524 = vmatpush.msra.mxu2 %v6851_v4 }
0x10dc   : > { %2525 = vmatpush.msra.mxu2 %v6855_v12 }
0x10dd   : > { %v6869_v7 = vpop.permute.xlu1 %6868  ;;  %v2505_v19 = vpop.permute.xlu0 %2504 }
0x10de   : > { %v6870_v11 = vunpack.i.l.bf16 %v6869_v7  ;;  %2526 = vmatpush.msra.mxu2 %v6856_v3  ;;  %v6871_v25 = vunpack.i.h.bf16 %v6869_v7 }
0x10e0   : > { %2527 = vmatpush.msra.mxu2 %v6860_v9  ;;  %2560 = vmatpush.msrb.mxu1 %v6870_v11 }
0x10e2   : > { %2528 = vmatpush.msra.mxu2 %v6861_v17  ;;  %2561 = vmatpush.msrb.mxu1 %v6871_v25 }
0x10e4   : > { %2529 = vmatpush.msra.mxu2 %v6865_v56  ;;  %2562 = vmatpush.msrb.mxu1 %v6875_v22 }
0x10e5   : > { %v2490_v26 = vpop.permute.xlu0 %2489  ;;  %v2500_v37 = vpop.permute.xlu1 %2499 }
0x10e6   : > { %2530 = vmatpush.msra.mxu2 %v6866_v30  ;;  %2563 = vmatpush.msrb.mxu1 %v6876_v29 }
0x10e7   : > { %6246 = vmatmul.msk.f32.vlgmr.msrb.gmra.mxu1 %vm932_vm12, %v2356_v14 }
0x10e8   : > { %2531 = vmatpush.msra.mxu2 %v8459_v18  ;;  %v2362_v18 = vld [vmem:[%s10241_s2 + $0x278] sm:$0xff] }
0x10ea   : > { %2532 = vmatpush.msra.mxu2 %v8456_v31  ;;  %v2359_v31 = vld [vmem:[%s10241_s2 + $0x260] sm:$0xff] }
0x10ec   : > { %2533 = vmatpush.msra.mxu2 %v8477_v45 }
0x10ee   : > { %2534 = vmatpush.msra.mxu2 %v8474_v44 }
0x10ef   : > { %2535 = vmatmul.f32.vlgmr.msra.gmra.mxu2 %v2355_v28  ;;  %6247 = vmatmul.msk.f32.gmra.mxu1 %vm932_vm12, %v2358_v62 }
0x10f7   : > { %2538 = vmatmul.f32.gmra.mxu2 %v2357_v8  ;;  %6248 = vmatmul.msk.f32.gmra.mxu1 %vm932_vm12, %v2360_v21 }
0x10ff   : > { %2541 = vmatmul.f32.gmra.mxu2 %v2359_v31  ;;  %6249 = vmatmul.msk.f32.gmra.mxu1 %vm932_vm12, %v2362_v18 }
0x1107   : > { %2544 = vmatmul.f32.gmra.mxu2 %v2361_v6 }
0x1164   : > { %v2565_v33 = vpop.f32.mrf.mxu1 }
0x116c   : > { %v2568_v23 = vpop.f32.mrf.mxu1 }
0x1172   : > { %v2536_v27 = vpop.f32.mrf.mxu2 }
0x1173   : > { %v2537_v24 = vadd.f32 %v2536_v27, %v2490_v26 }
0x1174   : > { %v2571_v44 = vpop.f32.mrf.mxu1 }
0x1175   : > { %v2566_v20 = vadd.f32 %v2565_v33, %v2537_v24 }
0x1177   : > { %v2577_v42 = vmax.f32 %v2566_v20, 0.0 }
0x117a   : > { %v2539_v39 = vpop.f32.mrf.mxu2 }
0x117b   : > { %v2540_v40 = vadd.f32 %v2539_v39, %v2495_v61 }
0x117c   : > { %v2574_v51 = vpop.f32.mrf.mxu1 }
0x117d   : > { %v2569_v41 = vadd.f32 %v2568_v23, %v2540_v40 }
0x117f   : > { %v2578_v43 = vmax.f32 %v2569_v41, 0.0 }
0x1181   : > { %v6877_v45 = vpack.i.bf16 %v2577_v42, %v2578_v43 }
0x1182   : > { %v2542_v46 = vpop.f32.mrf.mxu2 }
0x1183   : > { %6878 = vrot.lane.b32.xlu2 %v6877_v45, %s7542_s26  ;;  %v2543_v49 = vadd.f32 %v2542_v46, %v2500_v37  ;;  %v2589_v46 = vld [vmem:[%s10242_s3 + $0x140] sm:$0xff]  ;;  %v2591_v37 = vld [vmem:[%s10242_s3 + $0x150] sm:$0xff] }
0x1185   : > { %v2572_v36 = vadd.f32 %v2571_v44, %v2543_v49  ;;  %v2590_v49 = vld [vmem:[%s10242_s3 + $0x148] sm:$0xff] }
0x1187   : > { %v2579_v58 = vmax.f32 %v2572_v36, 0.0 }
0x118a   : > { %v2545_v50 = vpop.f32.mrf.mxu2 }
0x118b   : > { %v2546_v52 = vadd.f32 %v2545_v50, %v2505_v19 }
0x118d   : > { %v2575_v53 = vadd.f32 %v2574_v51, %v2546_v52 }
0x118f   : > { %v2580_v59 = vmax.f32 %v2575_v53, 0.0 }
0x1191   : > { %v6892_v60 = vpack.i.bf16 %v2579_v58, %v2580_v59 }
0x1193   : > { %6893 = vrot.lane.b32.xlu0 %v6892_v60, %s10260_s27  ;;  %6883 = vrot.lane.b32.xlu1 %v6892_v60, %s7542_s26 }
0x1194   : > { %6888 = vrot.lane.b32.xlu2 %v6892_v60, %s7540_s24 }
0x119b   : > { %6903 = vrot.lane.b32.xlu1 %v6892_v60, %s7541_s25  ;;  %6898 = vrot.lane.b32.xlu0 %v6877_v45, %s7540_s24 }
0x119c   : > { %6913 = vrot.lane.b32.xlu2 %v6877_v45, %s7541_s25 }
0x11a3   : > { %6908 = vrot.lane.b32.xlu1 %v6877_v45, %s10260_s27 }
0x11dd   : > { %v6879_v0 = vpop.permute.xlu2 %6878 }
0x11de   : > { %v6881_v8 = vunpack.i.h.bf16 %v6879_v0  ;;  %v6880_v21 = vunpack.i.l.bf16 %v6879_v0 }
0x11e0   : > { %v2645_v33 = vsel %vm482_vm0, %v6881_v8, %v2577_v42  ;;  %v2646_v27 = vsel %vm482_vm0, %v6880_v21, %v2578_v43  ;;  %v2592_v43 = vld [vmem:[%s10242_s3 + $0x158] sm:$0xff]  ;;  %v2587_v8 = vld [vmem:[%s10241_s2 + $0x2b0] sm:$0xff] }
0x11ee   : > { %v6889_v2 = vpop.permute.xlu2 %6888 }
0x11ef   : > { %v6891_v3 = vunpack.i.h.bf16 %v6889_v2  ;;  %v6890_v7 = vunpack.i.l.bf16 %v6889_v2 }
0x11f6   : > { %v6914_v6 = vpop.permute.xlu2 %6913 }
0x11f7   : > { %v6916_v24 = vunpack.i.h.bf16 %v6914_v6  ;;  %v6915_v61 = vunpack.i.l.bf16 %v6914_v6 }
0x1205   : > { %v6884_v54 = vpop.permute.xlu1 %6883  ;;  %v6894_v34 = vpop.permute.xlu0 %6893 }
0x1206   : > { %v6886_v1 = vunpack.i.h.bf16 %v6884_v54  ;;  %v6885_v13 = vunpack.i.l.bf16 %v6884_v54  ;;  %v6896_v15 = vunpack.i.h.bf16 %v6894_v34  ;;  %v6895_v16 = vunpack.i.l.bf16 %v6894_v34 }
0x1208   : > { %v2647_v4 = vsel %vm482_vm0, %v6886_v1, %v2579_v58  ;;  %v2648_v12 = vsel %vm482_vm0, %v6885_v13, %v2580_v59 }
0x1209   : > { %v2651_v9 = vsel %vm485_vm1, %v2647_v4, %v6891_v3  ;;  %v2652_v11 = vsel %vm485_vm1, %v2648_v12, %v6890_v7 }
0x120a   : > { %v2655_v56 = vsel %vm850_vm10, %v2651_v9, %v6896_v15  ;;  %v2656_v29 = vsel %vm850_vm10, %v2652_v11, %v6895_v16 }
0x120d   : > { %v6904_v17 = vpop.permute.xlu1 %6903  ;;  %v6899_v28 = vpop.permute.xlu0 %6898 }
0x120e   : > { %v6906_v25 = vunpack.i.h.bf16 %v6904_v17  ;;  %v6905_v22 = vunpack.i.l.bf16 %v6904_v17  ;;  %v6901_v31 = vunpack.i.h.bf16 %v6899_v28  ;;  %v6900_v18 = vunpack.i.l.bf16 %v6899_v28  ;;  %v2585_v28 = vld [vmem:[%s10241_s2 + $0x2a0] sm:$0xff] }
0x1210   : > { %v8558_v30 = vsel %vm855_vm11, %v2655_v56, %v6906_v25  ;;  %v8561_v14 = vsel %vm855_vm11, %v2656_v29, %v6905_v22  ;;  %v2649_v39 = vsel %vm485_vm1, %v2645_v33, %v6901_v31  ;;  %v2650_v20 = vsel %vm485_vm1, %v2646_v27, %v6900_v18  ;;  %v2582_v22 = vld [vmem:[%s10241_s2 + $0x288] sm:$0xff]  ;;  %v2581_v56 = vld [vmem:[%s10241_s2 + $0x280] sm:$0xff]  ;;  %v2584_v29 = vld [vmem:[%s10241_s2 + $0x298] sm:$0xff] }
0x1211   : > { %v6927_v62 = vpack.i.bf16 %v8558_v30, %v8561_v14 }
0x1213   : > { %6928 = vrot.lane.b32.xlu2 %v6927_v62, %s7542_s26  ;;  %6918 = vrot.lane.b32.xlu0 %v6927_v62, %s10258_s14 }
0x1215   : > { %v6909_v19 = vpop.permute.xlu1 %6908 }
0x1216   : > { %v6911_v26 = vunpack.i.h.bf16 %v6909_v19  ;;  %v6910_v23 = vunpack.i.l.bf16 %v6909_v19 }
0x1218   : > { %v2653_v40 = vsel %vm850_vm10, %v2649_v39, %v6911_v26  ;;  %v2654_v41 = vsel %vm850_vm10, %v2650_v20, %v6910_v23 }
0x1219   : > { %v8574_v44 = vsel %vm855_vm11, %v2653_v40, %v6916_v24  ;;  %v2658_v45 = vsel %vm855_vm11, %v2654_v41, %v6915_v61 }
0x121a   : > { %v6942_v42 = vpack.i.bf16 %v8574_v44, %v2658_v45 }
0x121c   : > { %6943 = vrot.lane.b32.xlu2 %v6942_v42, %s10262_s15  ;;  %6933 = vrot.lane.b32.xlu0 %v6942_v42, %s7542_s26 }
0x121d   : > { %6923 = vrot.lane.b32.xlu1 %v6942_v42, %s10258_s14 }
0x1224   : > { %2730 = vperm.xlu2 %6474, %v2592_v43   ;;  %6948 = vrot.lane.b32.xlu0 %v6927_v62, %s10263_s20 }
0x1225   : > { %6938 = vrot.lane.b32.xlu1 %v6927_v62, %s10262_s15  ;;  %v2588_v62 = vld [vmem:[%s10241_s2 + $0x2b8] sm:$0xff] }
0x122c   : > { %2715 = vperm.xlu2 %6474, %v2589_v46   ;;  %2725 = vperm.xlu0 %6475, %v2591_v37  }
0x122d   : > { %6953 = vrot.lane.b32.xlu1 %v6942_v42, %s10263_s20 }
0x1235   : > { %2720 = vperm.xlu1 %6476, %v2590_v49  }
0x126d   : > { %v6929_v59 = vpop.permute.xlu2 %6928 }
0x126e   : > { %v6930_v0 = vunpack.i.l.bf16 %v6929_v59  ;;  %v6931_v54 = vunpack.i.h.bf16 %v6929_v59 }
0x1276   : > { %v6944_v7 = vpop.permute.xlu2 %6943 }
0x1277   : > { %v6945_v15 = vunpack.i.l.bf16 %v6944_v7  ;;  %v6946_v17 = vunpack.i.h.bf16 %v6944_v7 }
0x127e   : > { %v2731_v21 = vpop.permute.xlu2 %2730 }
0x1285   : > { %v6919_v50 = vpop.permute.xlu0 %6918 }
0x1286   : > { %v6920_v51 = vunpack.i.l.bf16 %v6919_v50  ;;  %v6921_v36 = vunpack.i.h.bf16 %v6919_v50  ;;  %v2716_v6 = vpop.permute.xlu2 %2715 }
0x1288   : > { %2745 = vmatpush.msra.mxu3 %v6920_v51 }
0x128a   : > { %2746 = vmatpush.msra.mxu3 %v6921_v36 }
0x128e   : > { %v6934_v52 = vpop.permute.xlu0 %6933 }
0x128f   : > { %v6924_v53 = vpop.permute.xlu1 %6923  ;;  %v6935_v2 = vunpack.i.l.bf16 %v6934_v52  ;;  %v6936_v12 = vunpack.i.h.bf16 %v6934_v52 }
0x1290   : > { %v6925_v58 = vunpack.i.l.bf16 %v6924_v53  ;;  %v6926_v60 = vunpack.i.h.bf16 %v6924_v53 }
0x1292   : > { %2747 = vmatpush.msra.mxu3 %v6925_v58 }
0x1294   : > { %2748 = vmatpush.msra.mxu3 %v6926_v60 }
0x1296   : > { %2749 = vmatpush.msra.mxu3 %v6930_v0  ;;  %v6949_v34 = vpop.permute.xlu0 %6948 }
0x1297   : > { %v6950_v1 = vunpack.i.l.bf16 %v6949_v34  ;;  %v6939_v13 = vpop.permute.xlu1 %6938  ;;  %v6951_v4 = vunpack.i.h.bf16 %v6949_v34 }
0x1298   : > { %2750 = vmatpush.msra.mxu3 %v6931_v54  ;;  %v6940_v3 = vunpack.i.l.bf16 %v6939_v13  ;;  %v6941_v9 = vunpack.i.h.bf16 %v6939_v13 }
0x1299   : > { %2786 = vmatpush.msra.mxu1 %v6950_v1 }
0x129a   : > { %2751 = vmatpush.msra.mxu3 %v6935_v2 }
0x129b   : > { %2787 = vmatpush.msra.mxu1 %v6951_v4 }
0x129c   : > { %2752 = vmatpush.msra.mxu3 %v6936_v12 }
0x129e   : > { %2753 = vmatpush.msra.mxu3 %v6940_v3  ;;  %v2726_v43 = vpop.permute.xlu0 %2725 }
0x129f   : > { %v6954_v11 = vpop.permute.xlu1 %6953 }
0x12a0   : > { %v6955_v16 = vunpack.i.l.bf16 %v6954_v11  ;;  %2754 = vmatpush.msra.mxu3 %v6941_v9  ;;  %v6956_v25 = vunpack.i.h.bf16 %v6954_v11 }
0x12a2   : > { %2755 = vmatpush.msra.mxu3 %v6945_v15  ;;  %2788 = vmatpush.msra.mxu1 %v6955_v16 }
0x12a4   : > { %2756 = vmatpush.msra.mxu3 %v6946_v17  ;;  %2789 = vmatpush.msra.mxu1 %v6956_v25 }
0x12a5   : > { %6250 = vmatmul.msk.f32.vlgmr.msra.gmra.mxu1 %vm932_vm12, %v2582_v22 }
0x12a6   : > { %2757 = vmatpush.msra.mxu3 %v8561_v14  ;;  %v2583_v14 = vld [vmem:[%s10241_s2 + $0x290] sm:$0xff] }
0x12a7   : > { %v2721_v26 = vpop.permute.xlu1 %2720 }
0x12a8   : > { %2758 = vmatpush.msra.mxu3 %v8558_v30  ;;  %v2586_v30 = vld [vmem:[%s10241_s2 + $0x2a8] sm:$0xff] }
0x12aa   : > { %2759 = vmatpush.msra.mxu3 %v2658_v45 }
0x12ac   : > { %2760 = vmatpush.msra.mxu3 %v8574_v44 }
0x12ad   : > { %2761 = vmatmul.f32.vlgmr.msra.gmra.mxu3 %v2581_v56  ;;  %6251 = vmatmul.msk.f32.gmra.mxu1 %vm932_vm12, %v2584_v29 }
0x12b5   : > { %2764 = vmatmul.f32.gmra.mxu3 %v2583_v14  ;;  %6252 = vmatmul.msk.f32.gmra.mxu1 %vm932_vm12, %v2586_v30 }
0x12bd   : > { %2767 = vmatmul.f32.gmra.mxu3 %v2585_v28  ;;  %6253 = vmatmul.msk.f32.gmra.mxu1 %vm932_vm12, %v2588_v62 }
0x12c5   : > { %2770 = vmatmul.f32.gmra.mxu3 %v2587_v8 }
0x1322   : > { %v2791_v31 = vpop.f32.mrf.mxu1 }
0x132a   : > { %v2794_v33 = vpop.f32.mrf.mxu1 }
0x1330   : > { %v2762_v18 = vpop.f32.mrf.mxu3 }
0x1331   : > { %v2763_v19 = vadd.f32 %v2762_v18, %v2716_v6 }
0x1332   : > { %v2797_v40 = vpop.f32.mrf.mxu1 }
0x1333   : > { %v2792_v27 = vadd.f32 %v2791_v31, %v2763_v19 }
0x1335   : > { %v2803_v61 = vmax.f32 %v2792_v27, 0.0 }
0x1337   : > { %v8628_v41 = vadd.f32 %v2803_v61, %v8427_v55 }
0x1338   : > { %v2765_v23 = vpop.f32.mrf.mxu3 }
0x1339   : > { %v2766_v24 = vadd.f32 %v2765_v23, %v2721_v26 }
0x133a   : > { %v2800_v50 = vpop.f32.mrf.mxu1 }
0x133b   : > { %v2795_v39 = vadd.f32 %v2794_v33, %v2766_v24 }
0x133d   : > { %v2804_v20 = vmax.f32 %v2795_v39, 0.0 }
0x133f   : > { %v8631_v44 = vadd.f32 %v2804_v20, %v8429_v57 }
0x1340   : > { %v2768_v45 = vpop.f32.mrf.mxu3 }
0x1341   : > { %v6957_v42 = vpack.i.bf16 %v8628_v41, %v8631_v44  ;;  %v2769_v46 = vadd.f32 %v2768_v45, %v2726_v43  ;;  %v2822_v45 = vld [vmem:[%s10242_s3 + $0x178] sm:$0xff]  ;;  %v2821_v43 = vld [vmem:[%s10242_s3 + $0x170] sm:$0xff] }
0x1343   : > { %6958 = vrot.lane.b32.xlu1 %v6957_v42, %s7542_s26  ;;  %v2798_v37 = vadd.f32 %v2797_v40, %v2769_v46  ;;  %v2820_v46 = vld [vmem:[%s10242_s3 + $0x168] sm:$0xff] }
0x1345   : > { %v2805_v36 = vmax.f32 %v2798_v37, 0.0 }
0x1347   : > { %v8637_v55 = vadd.f32 %v2805_v36, %v8434_v35 }
0x1348   : > { %v2771_v49 = vpop.f32.mrf.mxu3 }
0x1349   : > { %v2772_v51 = vadd.f32 %v2771_v49, %v2731_v21 }
0x134b   : > { %v2801_v52 = vadd.f32 %v2800_v50, %v2772_v51 }
0x134d   : > { %v2806_v53 = vmax.f32 %v2801_v52, 0.0 }
0x134f   : > { %v8640_v57 = vadd.f32 %v2806_v53, %v8436_v32 }
0x1351   : > { %v6972_v58 = vpack.i.bf16 %v8637_v55, %v8640_v57 }
0x1353   : > { %6973 = vrot.lane.b32.xlu2 %v6972_v58, %s10260_s27  ;;  %6963 = vrot.lane.b32.xlu0 %v6972_v58, %s7542_s26 }
0x1354   : > { %6968 = vrot.lane.b32.xlu1 %v6972_v58, %s7540_s24 }
0x135b   : > { %6983 = vrot.lane.b32.xlu0 %v6972_v58, %s7541_s25  ;;  %6978 = vrot.lane.b32.xlu2 %v6957_v42, %s7540_s24 }
0x135c   : > { %6993 = vrot.lane.b32.xlu1 %v6957_v42, %s7541_s25 }
0x1363   : > { %6988 = vrot.lane.b32.xlu0 %v6957_v42, %s10260_s27  ;;  %v2819_v42 = vld [vmem:[%s10242_s3 + $0x160] sm:$0xff] }
0x13ad   : > { %v6974_v59 = vpop.permute.xlu2 %6973 }
0x13ae   : > { %v6976_v3 = vunpack.i.h.bf16 %v6974_v59  ;;  %v6975_v7 = vunpack.i.l.bf16 %v6974_v59 }
0x13b5   : > { %v6959_v35 = vpop.permute.xlu1 %6958  ;;  %v6979_v25 = vpop.permute.xlu2 %6978 }
0x13b6   : > { %v6961_v22 = vunpack.i.h.bf16 %v6959_v35  ;;  %v6960_v56 = vunpack.i.l.bf16 %v6959_v35  ;;  %v6981_v28 = vunpack.i.h.bf16 %v6979_v25  ;;  %v6980_v62 = vunpack.i.l.bf16 %v6979_v25  ;;  %v2811_v25 = vld [vmem:[%s10241_s2 + $0x2c0] sm:$0xff] }
0x13b8   : > { %v2875_v8 = vsel %vm482_vm0, %v6961_v22, %v8628_v41  ;;  %v2876_v21 = vsel %vm482_vm0, %v6960_v56, %v8631_v44  ;;  %v2814_v22 = vld [vmem:[%s10241_s2 + $0x2d8] sm:$0xff]  ;;  %v7529_v56 = vld [vmem:[%s10243_s4 + $0x8] sm:$0xff] }
0x13b9   : > { %v2879_v26 = vsel %vm485_vm1, %v2875_v8, %v6981_v28  ;;  %v2880_v23 = vsel %vm485_vm1, %v2876_v21, %v6980_v62  ;;  %v2815_v28 = vld [vmem:[%s10241_s2 + $0x2e0] sm:$0xff]  ;;  %v2818_v62 = vld [vmem:[%s10241_s2 + $0x2f8] sm:$0xff]  ;;  %v2817_v8 = vld [vmem:[%s10241_s2 + $0x2f0] sm:$0xff] }
0x13c5   : > { %v6964_v32 = vpop.permute.xlu0 %6963 }
0x13c6   : > { %v6966_v60 = vunpack.i.h.bf16 %v6964_v32  ;;  %v6965_v0 = vunpack.i.l.bf16 %v6964_v32  ;;  %v6969_v54 = vpop.permute.xlu1 %6968 }
0x13c7   : > { %v6971_v34 = vunpack.i.h.bf16 %v6969_v54  ;;  %v6970_v1 = vunpack.i.l.bf16 %v6969_v54 }
0x13c8   : > { %v2877_v13 = vsel %vm482_vm0, %v6966_v60, %v8637_v55  ;;  %v2878_v2 = vsel %vm482_vm0, %v6965_v0, %v8640_v57 }
0x13c9   : > { %v2881_v4 = vsel %vm485_vm1, %v2877_v13, %v6971_v34  ;;  %v2882_v12 = vsel %vm485_vm1, %v2878_v2, %v6970_v1 }
0x13ca   : > { %v2885_v16 = vsel %vm850_vm10, %v2881_v4, %v6976_v3  ;;  %v2886_v17 = vsel %vm850_vm10, %v2882_v12, %v6975_v7 }
0x13cd   : > { %v6984_v9 = vpop.permute.xlu0 %6983 }
0x13ce   : > { %v6986_v11 = vunpack.i.h.bf16 %v6984_v9  ;;  %v6985_v15 = vunpack.i.l.bf16 %v6984_v9  ;;  %v6994_v31 = vpop.permute.xlu1 %6993 }
0x13cf   : > { %v6996_v33 = vunpack.i.h.bf16 %v6994_v31  ;;  %v6995_v27 = vunpack.i.l.bf16 %v6994_v31 }
0x13d0   : > { %v8660_v29 = vsel %vm855_vm11, %v2885_v16, %v6986_v11  ;;  %v8663_v14 = vsel %vm855_vm11, %v2886_v17, %v6985_v15  ;;  %v2812_v15 = vld [vmem:[%s10241_s2 + $0x2c8] sm:$0xff]  ;;  %v7528_v17 = vld [vmem:[%s10244_s5] sm:$0xff] }
0x13d1   : > { %v7007_v30 = vpack.i.bf16 %v8660_v29, %v8663_v14  ;;  %v7527_v16 = vld [vmem:[%s10244_s5 + $0x8] sm:$0xff] }
0x13d3   : > { %7008 = vrot.lane.b32.xlu1 %v7007_v30, %s7542_s26  ;;  %6998 = vrot.lane.b32.xlu2 %v7007_v30, %s10258_s14 }
0x13d5   : > { %v6989_v18 = vpop.permute.xlu0 %6988 }
0x13d6   : > { %v6991_v6 = vunpack.i.h.bf16 %v6989_v18  ;;  %v6990_v19 = vunpack.i.l.bf16 %v6989_v18 }
0x13d8   : > { %v2883_v24 = vsel %vm850_vm10, %v2879_v26, %v6991_v6  ;;  %v2884_v61 = vsel %vm850_vm10, %v2880_v23, %v6990_v19 }
0x13d9   : > { %v8678_v39 = vsel %vm855_vm11, %v2883_v24, %v6996_v33  ;;  %v8681_v20 = vsel %vm855_vm11, %v2884_v61, %v6995_v27 }
0x13da   : > { %v7017_v40 = vpack.i.bf16 %v8678_v39, %v8681_v20 }
0x13dc   : > { %7018 = vrot.lane.b32.xlu1 %v7017_v40, %s10262_s15  ;;  %7013 = vrot.lane.b32.xlu2 %v7017_v40, %s7542_s26 }
0x13dd   : > { %7003 = vrot.lane.b32.xlu0 %v7017_v40, %s10258_s14  ;;  %s10264_s14 = smov 125  }
0x13e4   : > { %2960 = vperm.xlu1 %6476, %v2822_v45   ;;  %7028 = vrot.lane.b32.xlu2 %v7007_v30, %s10263_s20 }
0x13e5   : > { %7023 = vrot.lane.b32.xlu0 %v7007_v30, %s10262_s15  ;;  %v2816_v30 = vld [vmem:[%s10241_s2 + $0x2e8] sm:$0xff] }
0x13ec   : > { %2945 = vperm.xlu1 %6476, %v2819_v42   ;;  %2955 = vperm.xlu2 %6474, %v2821_v43  }
0x13ed   : > { %7033 = vrot.lane.b32.xlu0 %v7017_v40, %s10263_s20 }
0x13f5   : > { %2950 = vperm.xlu0 %6475, %v2820_v46  }
0x142d   : > { %v6999_v37 = vpop.permute.xlu2 %6998 }
0x142e   : > { %v7000_v49 = vunpack.i.l.bf16 %v6999_v37  ;;  %v7001_v50 = vunpack.i.h.bf16 %v6999_v37 }
0x1430   : > { %2975 = vmatpush.msra.mxu0 %v7000_v49 }
0x1432   : > { %2976 = vmatpush.msra.mxu0 %v7001_v50 }
0x1436   : > { %v7014_v51 = vpop.permute.xlu2 %7013 }
0x1437   : > { %v7015_v34 = vunpack.i.l.bf16 %v7014_v51  ;;  %v7016_v1 = vunpack.i.h.bf16 %v7014_v51 }
0x143e   : > { %v7029_v36 = vpop.permute.xlu2 %7028 }
0x143f   : > { %v7030_v52 = vunpack.i.l.bf16 %v7029_v36  ;;  %v7031_v53 = vunpack.i.h.bf16 %v7029_v36 }
0x1441   : > { %3016 = vmatpush.msrb.mxu2 %v7030_v52 }
0x1443   : > { %3017 = vmatpush.msrb.mxu2 %v7031_v53 }
0x1445   : > { %v7009_v32 = vpop.permute.xlu1 %7008 }
0x1446   : > { %v7010_v60 = vunpack.i.l.bf16 %v7009_v32  ;;  %v7011_v0 = vunpack.i.h.bf16 %v7009_v32 }
0x144e   : > { %v7019_v2 = vpop.permute.xlu1 %7018 }
0x144f   : > { %v7004_v58 = vpop.permute.xlu0 %7003  ;;  %v7020_v3 = vunpack.i.l.bf16 %v7019_v2  ;;  %v7021_v9 = vunpack.i.h.bf16 %v7019_v2 }
0x1450   : > { %v7005_v35 = vunpack.i.l.bf16 %v7004_v58  ;;  %v7006_v59 = vunpack.i.h.bf16 %v7004_v58 }
0x1452   : > { %2977 = vmatpush.msra.mxu0 %v7005_v35 }
0x1454   : > { %2978 = vmatpush.msra.mxu0 %v7006_v59 }
0x1456   : > { %2979 = vmatpush.msra.mxu0 %v7010_v60  ;;  %v2961_v21 = vpop.permute.xlu1 %2960 }
0x1457   : > { %v7024_v54 = vpop.permute.xlu0 %7023 }
0x1458   : > { %2980 = vmatpush.msra.mxu0 %v7011_v0  ;;  %v7025_v13 = vunpack.i.l.bf16 %v7024_v54  ;;  %v7026_v4 = vunpack.i.h.bf16 %v7024_v54 }
0x145a   : > { %2981 = vmatpush.msra.mxu0 %v7015_v34 }
0x145c   : > { %2982 = vmatpush.msra.mxu0 %v7016_v1 }
0x145e   : > { %2983 = vmatpush.msra.mxu0 %v7025_v13  ;;  %v2946_v6 = vpop.permute.xlu1 %2945 }
0x145f   : > { %v7034_v12 = vpop.permute.xlu0 %7033 }
0x1460   : > { %v7035_v7 = vunpack.i.l.bf16 %v7034_v12  ;;  %2984 = vmatpush.msra.mxu0 %v7026_v4  ;;  %v7036_v11 = vunpack.i.h.bf16 %v7034_v12 }
0x1462   : > { %2985 = vmatpush.msra.mxu0 %v7020_v3  ;;  %3018 = vmatpush.msrb.mxu2 %v7035_v7 }
0x1464   : > { %2986 = vmatpush.msra.mxu0 %v7021_v9  ;;  %3019 = vmatpush.msrb.mxu2 %v7036_v11 }
0x1465   : > { %6254 = vmatmul.msk.f32.vlgmr.msrb.gmra.mxu2 %vm932_vm12, %v2812_v15 }
0x1466   : > { %2987 = vmatpush.msra.mxu0 %v8663_v14  ;;  %3322 = vmatpush.msra.mxu2 %v7527_v16  ;;  %v2813_v14 = vld [vmem:[%s10241_s2 + $0x2d0] sm:$0xff] }
0x1467   : > { %v2951_v27 = vpop.permute.xlu0 %2950 }
0x1468   : > { %2988 = vmatpush.msra.mxu0 %v8660_v29  ;;  %3323 = vmatpush.msra.mxu2 %v7528_v17  ;;  %v7530_v29 = vld [vmem:[%s10243_s4] sm:$0xff] }
0x146a   : > { %2989 = vmatpush.msra.mxu0 %v8681_v20 }
0x146c   : > { %2990 = vmatpush.msra.mxu0 %v8678_v39 }
0x146d   : > { %2991 = vmatmul.f32.vlgmr.msra.gmra.mxu0 %v2811_v25  ;;  %6255 = vmatmul.msk.f32.gmra.mxu2 %vm932_vm12, %v2814_v22 }
0x146e   : > { %3285 = vmatpush.msrb.mxu0 %v7529_v56 }
0x1470   : > { %3286 = vmatpush.msrb.mxu0 %v7530_v29 }
0x1475   : > { %2994 = vmatmul.f32.gmra.mxu0 %v2813_v14  ;;  %6256 = vmatmul.msk.f32.gmra.mxu2 %vm932_vm12, %v2816_v30 }
0x147d   : > { %2997 = vmatmul.f32.gmra.mxu0 %v2815_v28  ;;  %6257 = vmatmul.msk.f32.gmra.mxu2 %vm932_vm12, %v2818_v62 }
0x1485   : > { %3000 = vmatmul.f32.gmra.mxu0 %v2817_v8  ;;  %6266 = vmatmul.msk.f32.vlgmr.msra.gmra.mxu2 %vm678_vm8, %v8628_v41 }
0x148d   : > { %6267 = vmatmul.msk.f32.gmra.mxu2 %vm678_vm8, %v8631_v44 }
0x1495   : > { %6268 = vmatmul.msk.f32.gmra.mxu2 %vm678_vm8, %v8637_v55  ;;  %v2956_v55 = vpop.permute.xlu2 %2955 }
0x149d   : > { %6269 = vmatmul.msk.f32.gmra.mxu2 %vm678_vm8, %v8640_v57 }
0x14e8   : > { %v3021_v31 = vpop.f32.mrf.mxu2 }
0x14ea   : > { %v2992_v18 = vpop.f32.mrf.mxu0 }
0x14eb   : > { %v2993_v19 = vadd.f32 %v2992_v18, %v2946_v6 }
0x14ed   : > { %v3022_v23 = vadd.f32 %v3021_v31, %v2993_v19 }
0x14ef   : > { %v3033_v61 = vmax.f32 %v3022_v23, 0.0 }
0x14f0   : > { %v3024_v33 = vpop.f32.mrf.mxu2 }
0x14f2   : > { %v2995_v26 = vpop.f32.mrf.mxu0 }
0x14f3   : > { %v2996_v24 = vadd.f32 %v2995_v26, %v2951_v27 }
0x14f5   : > { %v3025_v41 = vadd.f32 %v3024_v33, %v2996_v24 }
0x14f7   : > { %v3034_v39 = vmax.f32 %v3025_v41, 0.0  ;;  %v3045_v41 = vld [vmem:[%s10242_s3 + $0x180] sm:$0xff] }
0x14f8   : > { %v3027_v20 = vpop.f32.mrf.mxu2 }
0x14f9   : > { %v7037_v44 = vpack.i.bf16 %v3033_v61, %v3034_v39 }
0x14fa   : > { %v2998_v40 = vpop.f32.mrf.mxu0 }
0x14fb   : > { %7038 = vrot.lane.b32.xlu0 %v7037_v44, %s7542_s26  ;;  %v2999_v57 = vadd.f32 %v2998_v40, %v2956_v55 }
0x14fd   : > { %v3028_v42 = vadd.f32 %v3027_v20, %v2999_v57 }
0x14ff   : > { %v3035_v49 = vmax.f32 %v3028_v42, 0.0 }
0x1500   : > { %v3030_v46 = vpop.f32.mrf.mxu2 }
0x1502   : > { %v3001_v45 = vpop.f32.mrf.mxu0 }
0x1503   : > { %v3002_v43 = vadd.f32 %v3001_v45, %v2961_v21 }
0x1505   : > { %v3031_v37 = vadd.f32 %v3030_v46, %v3002_v43 }
0x1507   : > { %v3036_v50 = vmax.f32 %v3031_v37, 0.0 }
0x1509   : > { %v7052_v51 = vpack.i.bf16 %v3035_v49, %v3036_v50 }
0x150b   : > { %7053 = vrot.lane.b32.xlu1 %v7052_v51, %s10260_s27  ;;  %7043 = vrot.lane.b32.xlu2 %v7052_v51, %s7542_s26 }
0x150c   : > { %7048 = vrot.lane.b32.xlu0 %v7052_v51, %s7540_s24 }
0x1513   : > { %7063 = vrot.lane.b32.xlu2 %v7052_v51, %s7541_s25  ;;  %7058 = vrot.lane.b32.xlu1 %v7037_v44, %s7540_s24 }
0x1514   : > { %7073 = vrot.lane.b32.xlu0 %v7037_v44, %s7541_s25 }
0x151b   : > { %7068 = vrot.lane.b32.xlu2 %v7037_v44, %s10260_s27  ;;  %v3047_v44 = vld [vmem:[%s10242_s3 + $0x190] sm:$0xff]  ;;  %s7558_s27 = smov 64  }
0x1565   : > { %v7044_v36 = vpop.permute.xlu2 %7043 }
0x1566   : > { %v7046_v58 = vunpack.i.h.bf16 %v7044_v36  ;;  %v7045_v35 = vunpack.i.l.bf16 %v7044_v36 }
0x1568   : > { %v3103_v1 = vsel %vm482_vm0, %v7046_v58, %v3035_v49  ;;  %v3104_v13 = vsel %vm482_vm0, %v7045_v35, %v3036_v50 }
0x156d   : > { %v7039_v52 = vpop.permute.xlu0 %7038  ;;  %v7064_v53 = vpop.permute.xlu2 %7063 }
0x156e   : > { %v7066_v2 = vunpack.i.h.bf16 %v7064_v53  ;;  %v7065_v4 = vunpack.i.l.bf16 %v7064_v53  ;;  %v7041_v11 = vunpack.i.h.bf16 %v7039_v52  ;;  %v7040_v15 = vunpack.i.l.bf16 %v7039_v52 }
0x1570   : > { %v3101_v28 = vsel %vm482_vm0, %v7041_v11, %v3033_v61  ;;  %v3102_v62 = vsel %vm482_vm0, %v7040_v15, %v3034_v39  ;;  %v3048_v61 = vld [vmem:[%s10242_s3 + $0x198] sm:$0xff]  ;;  %v3046_v39 = vld [vmem:[%s10242_s3 + $0x188] sm:$0xff]  ;;  %v3043_v11 = vld [vmem:[%s10241_s2 + $0x330] sm:$0xff] }
0x1575   : > { %v7069_v25 = vpop.permute.xlu2 %7068 }
0x1576   : > { %v7071_v8 = vunpack.i.h.bf16 %v7069_v25  ;;  %v7070_v21 = vunpack.i.l.bf16 %v7069_v25 }
0x157d   : > { %v7054_v32 = vpop.permute.xlu1 %7053 }
0x157e   : > { %v7056_v59 = vunpack.i.h.bf16 %v7054_v32  ;;  %v7055_v60 = vunpack.i.l.bf16 %v7054_v32  ;;  %v7049_v0 = vpop.permute.xlu0 %7048 }
0x157f   : > { %v7051_v54 = vunpack.i.h.bf16 %v7049_v0  ;;  %v7050_v34 = vunpack.i.l.bf16 %v7049_v0 }
0x1581   : > { %v3107_v12 = vsel %vm485_vm1, %v3103_v1, %v7051_v54  ;;  %v3108_v3 = vsel %vm485_vm1, %v3104_v13, %v7050_v34  ;;  %v3038_v13 = vld [vmem:[%s10241_s2 + $0x308] sm:$0xff] }
0x1582   : > { %v3111_v7 = vsel %vm850_vm10, %v3107_v12, %v7056_v59  ;;  %v3112_v9 = vsel %vm850_vm10, %v3108_v3, %v7055_v60  ;;  %v3039_v12 = vld [vmem:[%s10241_s2 + $0x310] sm:$0xff]  ;;  %v3042_v3 = vld [vmem:[%s10241_s2 + $0x328] sm:$0xff] }
0x1583   : > { %v8770_v16 = vsel %vm855_vm11, %v3111_v7, %v7066_v2  ;;  %v8773_v17 = vsel %vm855_vm11, %v3112_v9, %v7065_v4  ;;  %v3037_v2 = vld [vmem:[%s10241_s2 + $0x300] sm:$0xff]  ;;  %v3040_v4 = vld [vmem:[%s10241_s2 + $0x318] sm:$0xff] }
0x1584   : > { %v7087_v22 = vpack.i.bf16 %v8770_v16, %v8773_v17  ;;  %v3041_v7 = vld [vmem:[%s10241_s2 + $0x320] sm:$0xff]  ;;  %v3044_v9 = vld [vmem:[%s10241_s2 + $0x338] sm:$0xff] }
0x1585   : > { %v7059_v56 = vpop.permute.xlu1 %7058 }
0x1586   : > { %v7061_v29 = vunpack.i.h.bf16 %v7059_v56  ;;  %v7060_v14 = vunpack.i.l.bf16 %v7059_v56  ;;  %v7074_v30 = vpop.permute.xlu0 %7073  ;;  %7088 = vrot.lane.b32.xlu0 %v7087_v22, %s7542_s26  ;;  %7078 = vrot.lane.b32.xlu1 %v7087_v22, %s10264_s14 }
0x1587   : > { %v7076_v6 = vunpack.i.h.bf16 %v7074_v30  ;;  %v7075_v19 = vunpack.i.l.bf16 %v7074_v30 }
0x1588   : > { %v3105_v31 = vsel %vm485_vm1, %v3101_v28, %v7061_v29  ;;  %v3106_v18 = vsel %vm485_vm1, %v3102_v62, %v7060_v14 }
0x1589   : > { %v3109_v33 = vsel %vm850_vm10, %v3105_v31, %v7071_v8  ;;  %v3110_v27 = vsel %vm850_vm10, %v3106_v18, %v7070_v21 }
0x158a   : > { %v8786_v26 = vsel %vm855_vm11, %v3109_v33, %v7076_v6  ;;  %v3114_v23 = vsel %vm855_vm11, %v3110_v27, %v7075_v19 }
0x158b   : > { %v7102_v24 = vpack.i.bf16 %v8786_v26, %v3114_v23 }
0x158d   : > { %7083 = vrot.lane.b32.xlu2 %v7102_v24, %s10264_s14 }
0x158e   : > { %7103 = vrot.lane.b32.xlu0 %v7102_v24, %s10262_s15  ;;  %7093 = vrot.lane.b32.xlu1 %v7102_v24, %s7542_s26 }
0x1595   : > { %7098 = vrot.lane.b32.xlu2 %v7087_v22, %s10262_s15 }
0x1596   : > { %3171 = vperm.xlu0 %6475, %v3045_v41   ;;  %7108 = vrot.lane.b32.xlu1 %v7087_v22, %s10263_s20 }
0x159d   : > { %7113 = vrot.lane.b32.xlu2 %v7102_v24, %s10263_s20 }
0x159e   : > { %3186 = vperm.xlu0 %6475, %v3048_v61   ;;  %3176 = vperm.xlu1 %6476, %v3046_v39  }
0x15a5   : > { %3181 = vperm.xlu2 %6474, %v3047_v44  }
0x15e7   : > { %v7084_v20 = vpop.permute.xlu2 %7083 }
0x15e8   : > { %v7085_v45 = vunpack.i.l.bf16 %v7084_v20  ;;  %v7086_v43 = vunpack.i.h.bf16 %v7084_v20 }
0x15ef   : > { %v7099_v46 = vpop.permute.xlu2 %7098 }
0x15f0   : > { %v7100_v53 = vunpack.i.l.bf16 %v7099_v46  ;;  %v7101_v59 = vunpack.i.h.bf16 %v7099_v46 }
0x15f7   : > { %v7114_v35 = vpop.permute.xlu2 %7113 }
0x15f8   : > { %v7079_v40 = vpop.permute.xlu1 %7078  ;;  %v7089_v42 = vpop.permute.xlu0 %7088  ;;  %v7115_v0 = vunpack.i.l.bf16 %v7114_v35  ;;  %v7116_v34 = vunpack.i.h.bf16 %v7114_v35  ;;  %v2181_v35 = vld [vmem:[%s10242_s3 + $0xd8] sm:$0xff] }
0x15f9   : > { %v7080_v55 = vunpack.i.l.bf16 %v7079_v40  ;;  %v7081_v57 = vunpack.i.h.bf16 %v7079_v40  ;;  %v7090_v49 = vunpack.i.l.bf16 %v7089_v42  ;;  %v7091_v50 = vunpack.i.h.bf16 %v7089_v42 }
0x15fb   : > { %3201 = vmatpush.msrb.mxu3 %v7080_v55 }
0x15fd   : > { %3202 = vmatpush.msrb.mxu3 %v7081_v57 }
0x15ff   : > { %3203 = vmatpush.msrb.mxu3 %v7085_v45  ;;  %v3182_v8 = vpop.permute.xlu2 %3181 }
0x1600   : > { %v7094_v37 = vpop.permute.xlu1 %7093  ;;  %v7104_v32 = vpop.permute.xlu0 %7103 }
0x1601   : > { %3204 = vmatpush.msrb.mxu3 %v7086_v43  ;;  %v7095_v51 = vunpack.i.l.bf16 %v7094_v37  ;;  %v7096_v36 = vunpack.i.h.bf16 %v7094_v37  ;;  %v7105_v54 = vunpack.i.l.bf16 %v7104_v32  ;;  %v7106_v1 = vunpack.i.h.bf16 %v7104_v32  ;;  %v3629_v32 = vld [vmem:[%s10242_s3 + $0x238] sm:$0xff] }
0x1603   : > { %3205 = vmatpush.msrb.mxu3 %v7090_v49 }
0x1605   : > { %3206 = vmatpush.msrb.mxu3 %v7091_v50 }
0x1607   : > { %3207 = vmatpush.msrb.mxu3 %v7095_v51 }
0x1608   : > { %v7109_v52 = vpop.permute.xlu1 %7108 }
0x1609   : > { %v7110_v58 = vunpack.i.l.bf16 %v7109_v52  ;;  %3208 = vmatpush.msrb.mxu3 %v7096_v36  ;;  %v7111_v60 = vunpack.i.h.bf16 %v7109_v52  ;;  %v2180_v36 = vld [vmem:[%s10242_s3 + $0xd0] sm:$0xff] }
0x160b   : > { %3209 = vmatpush.msrb.mxu3 %v7100_v53  ;;  %3242 = vmatpush.msrb.mxu1 %v7110_v58  ;;  %v2137_v58 = vld [vmem:[%s10242_s3 + $0xc0] sm:$0xff] }
0x160d   : > { %3210 = vmatpush.msrb.mxu3 %v7101_v59  ;;  %3243 = vmatpush.msrb.mxu1 %v7111_v60  ;;  %v3631_v59 = vld [vmem:[%s10242_s3 + $0x248] sm:$0xff]  ;;  %v3628_v60 = vld [vmem:[%s10242_s3 + $0x230] sm:$0xff] }
0x160f   : > { %3211 = vmatpush.msrb.mxu3 %v7105_v54  ;;  %3244 = vmatpush.msrb.mxu1 %v7115_v0  ;;  %v2138_v0 = vld [vmem:[%s10242_s3 + $0xc8] sm:$0xff]  ;;  %v3630_v54 = vld [vmem:[%s10242_s3 + $0x240] sm:$0xff] }
0x1610   : > { %v3177_v29 = vpop.permute.xlu1 %3176 }
0x1611   : > { %3212 = vmatpush.msrb.mxu3 %v7106_v1  ;;  %3245 = vmatpush.msrb.mxu1 %v7116_v34 }
0x1612   : > { %6258 = vmatmul.msk.f32.vlgmr.msrb.gmra.mxu1 %vm932_vm12, %v3038_v13 }
0x1613   : > { %3213 = vmatpush.msrb.mxu3 %v8773_v17 }
0x1615   : > { %3214 = vmatpush.msrb.mxu3 %v8770_v16  ;;  %v3172_v16 = vpop.permute.xlu0 %3171 }
0x1617   : > { %3215 = vmatpush.msrb.mxu3 %v3114_v23  ;;  %v3325_v23 = vpop.f32.mrf.mxu2 }
0x1619   : > { %3216 = vmatpush.msrb.mxu3 %v8786_v26 }
0x161a   : > { %3217 = vmatmul.f32.vlgmr.msrb.gmra.mxu3 %v3037_v2  ;;  %6259 = vmatmul.msk.f32.gmra.mxu1 %vm932_vm12, %v3040_v4 }
0x161d   : > { %v3187_v6 = vpop.permute.xlu0 %3186 }
0x161f   : > { %v3328_v41 = vpop.f32.mrf.mxu2 }
0x1622   : > { %3220 = vmatmul.f32.gmra.mxu3 %v3039_v12  ;;  %6260 = vmatmul.msk.f32.gmra.mxu1 %vm932_vm12, %v3042_v3 }
0x1627   : > { %v3331_v40 = vpop.f32.mrf.mxu2 }
0x162a   : > { %3223 = vmatmul.f32.gmra.mxu3 %v3041_v7  ;;  %6261 = vmatmul.msk.f32.gmra.mxu1 %vm932_vm12, %v3044_v9  ;;  %v3361_v9 = vld [vmem:[%s10241_s2 + $0x340] sm:$0xff] }
0x162f   : > { %v3334_v37 = vpop.f32.mrf.mxu2 }
0x1632   : > { %3226 = vmatmul.f32.gmra.mxu3 %v3043_v11  ;;  %v3362_v11 = vld [vmem:[%s10241_s2 + $0x350] sm:$0xff] }
0x168f   : > { %v3247_v15 = vpop.f32.mrf.mxu1 }
0x1697   : > { %v3250_v56 = vpop.f32.mrf.mxu1 }
0x169d   : > { %v3218_v17 = vpop.f32.mrf.mxu3 }
0x169e   : > { %v3219_v25 = vadd.f32 %v3218_v17, %v3172_v16  ;;  %v3364_v16 = vld [vmem:[%s10241_s2 + $0x370] sm:$0xff] }
0x169f   : > { %v3253_v62 = vpop.f32.mrf.mxu1 }
0x16a0   : > { %v3248_v22 = vadd.f32 %v3247_v15, %v3219_v25  ;;  %v3363_v15 = vld [vmem:[%s10241_s2 + $0x360] sm:$0xff] }
0x16a2   : > { %6262 = vmatmul.msk.f32.vlgmr.msrb.gmra.mxu0 %vm678_vm8, %v3248_v22 }
0x16a5   : > { %v3221_v14 = vpop.f32.mrf.mxu3 }
0x16a6   : > { %v3222_v30 = vadd.f32 %v3221_v14, %v3177_v29 }
0x16a7   : > { %v3256_v33 = vpop.f32.mrf.mxu1 }
0x16a8   : > { %v3251_v28 = vadd.f32 %v3250_v56, %v3222_v30 }
0x16aa   : > { %6263 = vmatmul.msk.f32.gmra.mxu0 %vm678_vm8, %v3251_v28 }
0x16ad   : > { %v3224_v21 = vpop.f32.mrf.mxu3 }
0x16ae   : > { %v3225_v31 = vadd.f32 %v3224_v21, %v3182_v8 }
0x16b0   : > { %v3254_v18 = vadd.f32 %v3253_v62, %v3225_v31  ;;  %v3367_v31 = vld [vmem:[%s10242_s3 + $0x1b0] sm:$0xff] }
0x16b2   : > { %6264 = vmatmul.msk.f32.gmra.mxu0 %vm678_vm8, %v3254_v18 }
0x16b5   : > { %v3227_v19 = vpop.f32.mrf.mxu3 }
0x16b6   : > { %v3228_v27 = vadd.f32 %v3227_v19, %v3187_v6 }
0x16b8   : > { %v3257_v26 = vadd.f32 %v3256_v33, %v3228_v27  ;;  %v3365_v33 = vld [vmem:[%s10242_s3 + $0x1a0] sm:$0xff] }
0x16ba   : > { %6265 = vmatmul.msk.f32.gmra.mxu0 %vm678_vm8, %v3257_v26 }
0x171f   : > { %v3288_v24 = vpop.f32.mrf.mxu0 }
0x1720   : > { %v3337_v50 = vmax.f32 %v3288_v24, 0.0 }
0x1722   : > { %v3341_v52 = vadd.f32 %v3337_v50, %v3325_v23  ;;  %v3415_v50 = vld [vmem:[%s10241_s2 + $0x390] sm:$0xff] }
0x1724   : > { %v3345_v53 = vsel %vm10268_vm6, %v3341_v52, 0.0  ;;  %v3625_v52 = vld [vmem:[%s10241_s2 + $0x470] sm:$0xff] }
0x1727   : > { %v3291_v61 = vpop.f32.mrf.mxu0 }
0x1728   : > { %v3338_v39 = vmax.f32 %v3291_v61, 0.0 }
0x172a   : > { %v3342_v44 = vadd.f32 %v3338_v39, %v3328_v41 }
0x172c   : > { %v3348_v20 = vsel %vm10265_vm13, %v3342_v44, 0.0  ;;  %v437_v44 = vld [vmem:[%s418_s22 + $0x8] sm:$0xff]  ;;  %vm10274_vm13 = vmmov %vm10272_vm2 }
0x172d   : > { %3349 = vadd.xlane.f32.xlu0 %v3348_v20  ;;  %v436_v20 = vld [vmem:[%s418_s22] sm:$0xff]  ;;  %s7556_s22 = smov 24  }
0x172f   : > { %v3294_v55 = vpop.f32.mrf.mxu0 }
0x1730   : > { %v3339_v57 = vmax.f32 %v3294_v55, 0.0 }
0x1732   : > { %v3343_v45 = vadd.f32 %v3339_v57, %v3331_v40 }
0x1734   : > { %v3351_v42 = vsel %vm10266_vm4, %v3343_v45, 0.0  ;;  %vm10275_vm4 = vmmov %vm10272_vm2 }
0x1735   : > { %3352 = vadd.xlane.f32.xlu2 %v3351_v42  ;;  %v3414_v42 = vld [vmem:[%s10241_s2 + $0x380] sm:$0xff] }
0x1737   : > { %v3297_v43 = vpop.f32.mrf.mxu0 }
0x1738   : > { %v3340_v46 = vmax.f32 %v3297_v43, 0.0 }
0x173a   : > { %v3344_v49 = vadd.f32 %v3340_v46, %v3334_v37 }
0x173c   : > { %v3354_v51 = vsel %vm10267_vm5, %v3344_v49, 0.0  ;;  %vm10276_vm5 = vmmov %vm10272_vm2 }
0x173d   : > { %3355 = vadd.xlane.f32.xlu1 %v3354_v51  ;;  %v3417_v51 = vld [vmem:[%s10241_s2 + $0x3b0] sm:$0xff] }
0x1741   : > { %2184 = vperm.xlu0 %6475, %v2180_v36   ;;  %v3624_v36 = vld [vmem:[%s10241_s2 + $0x460] sm:$0xff] }
0x1745   : > { %3346 = vadd.xlane.f32.xlu1 %v3345_v53  ;;  %v3626_v53 = vld [vmem:[%s10241_s2 + $0x480] sm:$0xff] }
0x1749   : > { %2141 = vperm.xlu0 %6475, %v2137_v58   ;;  %v3627_v58 = vld [vmem:[%s10241_s2 + $0x490] sm:$0xff] }
0x174d   : > { %2189 = vperm.xlu2 %6474, %v2181_v35  }
0x1751   : > { %3639 = vperm.xlu0 %6475, %v3629_v32  }
0x1755   : > { %3649 = vperm.xlu2 %6474, %v3631_v59  }
0x175d   : > { %3634 = vperm.xlu2 %6474, %v3628_v60   ;;  %v3420_v60 = vld [vmem:[%s10242_s3 + $0x1d0] sm:$0xff] }
0x175e   : > { %2146 = vperm.xlu1 %6476, %v2138_v0   ;;  %v3419_v0 = vld [vmem:[%s10242_s3 + $0x1c8] sm:$0xff] }
0x1766   : > { %3644 = vperm.xlu1 %6476, %v3630_v54   ;;  %v3421_v54 = vld [vmem:[%s10242_s3 + $0x1d8] sm:$0xff] }
0x17a0   : > { %v3350_v2 = vpop.xlane.xlu0 %3349 }
0x17a1   : > { %v8879_v12 = vmul.f32 %v3350_v2, %v8333_v38 }
0x17a8   : > { %v3353_v34 = vpop.xlane.xlu2 %3352 }
0x17a9   : > { %v8875_v4 = vmul.f32 %v3353_v34, %v8333_v38 }
0x17b0   : > { %v3356_v1 = vpop.xlane.xlu1 %3355  ;;  %v2190_v25 = vpop.permute.xlu2 %2189 }
0x17b1   : > { %v8872_v13 = vmul.f32 %v3356_v1, %v8333_v38  ;;  %v8904_v29 = vadd.f32 %v8541_v5, %v2190_v25  ;;  %v3368_v5 = vld [vmem:[%s10242_s3 + $0x1b8] sm:$0xff]  ;;  %v3418_v1 = vld [vmem:[%s10242_s3 + $0x1c0] sm:$0xff] }
0x17b3   : > { %3393 = vmatpush.msra.mxu3 %v8872_v13  ;;  %v2185_v56 = vpop.permute.xlu0 %2184  ;;  %v3615_v30 = vmul.f32 0.5, %v8904_v29 }
0x17b4   : > { %v8907_v14 = vadd.f32 %v8539_v63, %v2185_v56  ;;  %v3366_v63 = vld [vmem:[%s10242_s3 + $0x1a8] sm:$0xff] }
0x17b5   : > { %3394 = vmatpush.msra.mxu3 %v8875_v4  ;;  %v3618_v8 = vmul.f32 1.442695, %v3615_v30 }
0x17b6   : > { %v3614_v62 = vmul.f32 0.5, %v8907_v14 }
0x17b7   : > { %3395 = vmatpush.msra.mxu3 %v8879_v12  ;;  %7481 = vpow2.f32 %v3618_v8 }
0x17b8   : > { %v3347_v3 = vpop.xlane.xlu1 %3346  ;;  %v3616_v21 = vmul.f32 1.442695, %v3614_v62 }
0x17b9   : > { %v8884_v7 = vmul.f32 %v3347_v3, %v8333_v38 }
0x17ba   : > { %7483 = vpow2.f32 %v3616_v21 }
0x17bb   : > { %3396 = vmatpush.msra.mxu3 %v8884_v7  ;;  %v2142_v57 = vpop.permute.xlu0 %2141 }
0x17bc   : > { %6270 = vmatmul.msk.f32.vlgmr.msra.gmra.mxu3 %vm932_vm12, %v3361_v9  ;;  %v8934_v37 = vadd.f32 %v8423_v47, %v2142_v57  ;;  %v3416_v47 = vld [vmem:[%s10241_s2 + $0x3a0] sm:$0xff] }
0x17bd   : > { %v7482_v24 = vpop.eup %7481 }
0x17be   : > { %v3621_v43 = vmul.f32 %v7482_v24, %v437_v44 }
0x17c0   : > { %v7484_v39 = vpop.eup %7483 }
0x17c1   : > { %v3620_v46 = vmul.f32 %v7484_v39, %v436_v20 }
0x17c4   : > { %6271 = vmatmul.msk.f32.gmra.mxu3 %vm932_vm12, %v3362_v11 }
0x17cc   : > { %6272 = vmatmul.msk.f32.gmra.mxu3 %vm932_vm12, %v3363_v15 }
0x17d0   : > { %v2147_v23 = vpop.permute.xlu1 %2146 }
0x17d1   : > { %v8928_v40 = vadd.f32 %v8425_v48, %v2147_v23  ;;  %v3622_v48 = vadd.f32 %v3620_v46, %v8934_v37  ;;  %v3474_v23 = vld [vmem:[%s10241_s2 + $0x3f0] sm:$0xff] }
0x17d3   : > { %v3623_v49 = vadd.f32 %v3621_v43, %v8928_v40 }
0x17d4   : > { %6273 = vmatmul.msk.f32.gmra.mxu3 %vm932_vm12, %v3364_v16 }
0x183f   : > { %v3398_v17 = vpop.f32.mrf.mxu3 }
0x1840   : > { %v3399_v41 = vadd.f32 %v3398_v17, %v3365_v33 }
0x1842   : > { %v3410_v45 = vmax.f32 %v3399_v41, 0.0 }
0x1847   : > { %v3401_v22 = vpop.f32.mrf.mxu3 }
0x1848   : > { %v3402_v27 = vadd.f32 %v3401_v22, %v3366_v63 }
0x184a   : > { %v3411_v55 = vmax.f32 %v3402_v27, 0.0 }
0x184f   : > { %v3404_v28 = vpop.f32.mrf.mxu3 }
0x1850   : > { %v3405_v6 = vadd.f32 %v3404_v28, %v3367_v31 }
0x1852   : > { %v3412_v61 = vmax.f32 %v3405_v6, 0.0  ;;  %v3473_v6 = vld [vmem:[%s10241_s2 + $0x3e0] sm:$0xff] }
0x1857   : > { %v3407_v18 = vpop.f32.mrf.mxu3 }
0x1858   : > { %v3408_v19 = vadd.f32 %v3407_v18, %v3368_v5 }
0x185a   : > { %v3413_v26 = vmax.f32 %v3408_v19, 0.0  ;;  %v3650_v19 = vpop.permute.xlu2 %3649 }
0x185c   : > { %3446 = vmatpush.msra.mxu1 %v3413_v26 }
0x185e   : > { %3447 = vmatpush.msra.mxu1 %v3412_v61 }
0x1860   : > { %3448 = vmatpush.msra.mxu1 %v3411_v55 }
0x1862   : > { %3449 = vmatpush.msra.mxu1 %v3410_v45  ;;  %v3635_v24 = vpop.permute.xlu2 %3634 }
0x1863   : > { %6274 = vmatmul.msk.f32.vlgmr.msra.gmra.mxu1 %vm932_vm12, %v3414_v42 }
0x1864   : > { %3678 = vmatpush.msrb.mxu1 %v3623_v49 }
0x1866   : > { %3679 = vmatpush.msrb.mxu1 %v3622_v48 }
0x186b   : > { %6275 = vmatmul.msk.f32.gmra.mxu1 %vm932_vm12, %v3415_v50 }
0x1873   : > { %6276 = vmatmul.msk.f32.gmra.mxu1 %vm932_vm12, %v3416_v47 }
0x187b   : > { %6277 = vmatmul.msk.f32.gmra.mxu1 %vm932_vm12, %v3417_v51 }
0x1883   : > { %6288 = vmatmul.msk.f32.vlgmr.msrb.gmra.mxu1 %vm678_vm8, %v3624_v36 }
0x188b   : > { %6289 = vmatmul.msk.f32.gmra.mxu1 %vm678_vm8, %v3625_v52 }
0x1893   : > { %6290 = vmatmul.msk.f32.gmra.mxu1 %vm678_vm8, %v3626_v53 }
0x189b   : > { %6291 = vmatmul.msk.f32.gmra.mxu1 %vm678_vm8, %v3627_v58 }
0x18e0   : > { %v3451_v35 = vpop.f32.mrf.mxu1 }
0x18e1   : > { %v3452_v11 = vadd.f32 %v3451_v35, %v3418_v1  ;;  %v3477_v35 = vld [vmem:[%s10242_s3 + $0x1f0] sm:$0xff]  ;;  %v3475_v1 = vld [vmem:[%s10242_s3 + $0x1e0] sm:$0xff] }
0x18e3   : > { %v3463_v22 = vmax.f32 %v3452_v11, 0.0 }
0x18e5   : > { %v8992_v62 = vadd.f32 %v3463_v22, %v8884_v7  ;;  %v3645_v7 = vpop.permute.xlu1 %3644 }
0x18e8   : > { %v3454_v32 = vpop.f32.mrf.mxu1 }
0x18e9   : > { %v3455_v3 = vadd.f32 %v3454_v32, %v3419_v0  ;;  %v3478_v0 = vld [vmem:[%s10242_s3 + $0x1f8] sm:$0xff] }
0x18eb   : > { %v3464_v17 = vmax.f32 %v3455_v3, 0.0 }
0x18ed   : > { %v8988_v28 = vadd.f32 %v3464_v17, %v8879_v12  ;;  %v3472_v12 = vld [vmem:[%s10241_s2 + $0x3d0] sm:$0xff] }
0x18f0   : > { %v3457_v59 = vpop.f32.mrf.mxu1 }
0x18f1   : > { %v3458_v34 = vadd.f32 %v3457_v59, %v3420_v60  ;;  %v3476_v60 = vld [vmem:[%s10242_s3 + $0x1e8] sm:$0xff] }
0x18f3   : > { %v3465_v15 = vmax.f32 %v3458_v34, 0.0 }
0x18f5   : > { %v8984_v56 = vadd.f32 %v3465_v15, %v8875_v4  ;;  %v3640_v4 = vpop.permute.xlu0 %3639 }
0x18f8   : > { %v3460_v2 = vpop.f32.mrf.mxu1 }
0x18f9   : > { %v3461_v9 = vadd.f32 %v3460_v2, %v3421_v54 }
0x18fb   : > { %v3466_v16 = vmax.f32 %v3461_v9, 0.0 }
0x18fd   : > { %v8980_v25 = vadd.f32 %v3466_v16, %v8872_v13  ;;  %v3471_v13 = vld [vmem:[%s10241_s2 + $0x3c0] sm:$0xff] }
0x18ff   : > { %3503 = vmatpush.msra.mxu0 %v8980_v25 }
0x1900   : > { %v3681_v30 = vpop.f32.mrf.mxu1 }
0x1901   : > { %3504 = vmatpush.msra.mxu0 %v8984_v56  ;;  %v3682_v41 = vadd.f32 %v3681_v30, %v3635_v24 }
0x1903   : > { %3505 = vmatpush.msra.mxu0 %v8988_v28  ;;  %v3693_v61 = vsel %vm10272_vm2, %v3682_v41, 0.0 }
0x1905   : > { %3506 = vmatpush.msra.mxu0 %v8992_v62 }
0x1906   : > { %6278 = vmatmul.msk.f32.vlgmr.msra.gmra.mxu0 %vm932_vm12, %v3471_v13 }
0x1908   : > { %v3684_v8 = vpop.f32.mrf.mxu1 }
0x1909   : > { %v3685_v21 = vadd.f32 %v3684_v8, %v3640_v4  ;;  %v3524_v4 = vld [vmem:[%s10241_s2 + $0x400] sm:$0xff]  ;;  %v3525_v8 = vld [vmem:[%s10241_s2 + $0x410] sm:$0xff] }
0x190b   : > { %v3696_v31 = vsel %vm10269_vm9, %v3685_v21, 0.0 }
0x190c   : > { %3697 = vadd.xlane.f32.xlu2 %v3696_v31  ;;  %v3527_v31 = vld [vmem:[%s10241_s2 + $0x430] sm:$0xff] }
0x190e   : > { %6279 = vmatmul.msk.f32.gmra.mxu0 %vm932_vm12, %v3472_v12 }
0x1910   : > { %v3687_v5 = vpop.f32.mrf.mxu1 }
0x1911   : > { %v3688_v63 = vadd.f32 %v3687_v5, %v3645_v7 }
0x1913   : > { %v3699_v18 = vsel %vm10270_vm14, %v3688_v63, 0.0 }
0x1914   : > { %3700 = vadd.xlane.f32.xlu0 %v3699_v18 }
0x1916   : > { %6280 = vmatmul.msk.f32.gmra.mxu0 %vm932_vm12, %v3473_v6 }
0x1918   : > { %v3690_v33 = vpop.f32.mrf.mxu1 }
0x1919   : > { %v3691_v27 = vadd.f32 %v3690_v33, %v3650_v19 }
0x191b   : > { %v3702_v26 = vsel %vm10271_vm15, %v3691_v27, 0.0 }
0x191c   : > { %3703 = vadd.xlane.f32.xlu1 %v3702_v26 }
0x191e   : > { %6281 = vmatmul.msk.f32.gmra.mxu0 %vm932_vm12, %v3474_v23 }
0x1924   : > { %3694 = vadd.xlane.f32.xlu1 %v3693_v61 }
0x197f   : > { %v3698_v39 = vpop.xlane.xlu2 %3697 }
0x1980   : > { %v3706_v44 = vmul.f32 %v3698_v39, %v8333_v38 }
0x1982   : > { %v9016_v20 = vsub.f32 %v3685_v21, %v3706_v44  ;;  %v3526_v21 = vld [vmem:[%s10241_s2 + $0x420] sm:$0xff] }
0x1983   : > { %v3508_v55 = vpop.f32.mrf.mxu0 }
0x1984   : > { %v3714_v57 = vmul.f32 %v9016_v20, %v9016_v20  ;;  %v3509_v15 = vadd.f32 %v3508_v55, %v3475_v1 }
0x1986   : > { %v3720_v45 = vsel %vm10273_vm3, %v3714_v57, 0.0  ;;  %v3520_v13 = vmax.f32 %v3509_v15, 0.0 }
0x1987   : > { %3721 = vadd.xlane.f32.xlu1 %v3720_v45  ;;  %v3701_v42 = vpop.xlane.xlu0 %3700 }
0x1988   : > { %v3707_v43 = vmul.f32 %v3701_v42, %v8333_v38 }
0x198a   : > { %v9022_v46 = vsub.f32 %v3688_v63, %v3707_v43 }
0x198b   : > { %v3511_v49 = vpop.f32.mrf.mxu0 }
0x198c   : > { %v3715_v48 = vmul.f32 %v9022_v46, %v9022_v46  ;;  %v3512_v3 = vadd.f32 %v3511_v49, %v3476_v60 }
0x198e   : > { %v3723_v50 = vsel %vm10274_vm13, %v3715_v48, 0.0  ;;  %v3521_v30 = vmax.f32 %v3512_v3, 0.0 }
0x198f   : > { %3724 = vadd.xlane.f32.xlu2 %v3723_v50  ;;  %v3704_v47 = vpop.xlane.xlu1 %3703 }
0x1990   : > { %v3708_v51 = vmul.f32 %v3704_v47, %v8333_v38 }
0x1992   : > { %v9028_v36 = vsub.f32 %v3691_v27, %v3708_v51 }
0x1993   : > { %v3514_v52 = vpop.f32.mrf.mxu0 }
0x1994   : > { %v3716_v53 = vmul.f32 %v9028_v36, %v9028_v36  ;;  %v3515_v54 = vadd.f32 %v3514_v52, %v3477_v35 }
0x1996   : > { %v3726_v58 = vsel %vm10275_vm4, %v3716_v53, 0.0  ;;  %v3522_v16 = vmax.f32 %v3515_v54, 0.0 }
0x1997   : > { %3727 = vadd.xlane.f32.xlu0 %v3726_v58  ;;  %v3695_v32 = vpop.xlane.xlu1 %3694 }
0x1998   : > { %v3705_v59 = vmul.f32 %v3695_v32, %v8333_v38 }
0x199a   : > { %v9043_v34 = vsub.f32 %v3682_v41, %v3705_v59 }
0x199b   : > { %v3517_v2 = vpop.f32.mrf.mxu0 }
0x199c   : > { %v3518_v9 = vadd.f32 %v3517_v2, %v3478_v0  ;;  %v3713_v11 = vmul.f32 %v9043_v34, %v9043_v34 }
0x199e   : > { %v3523_v17 = vmax.f32 %v3518_v9, 0.0  ;;  %v3717_v22 = vsel %vm10276_vm5, %v3713_v11, 0.0 }
0x199f   : > { %3718 = vadd.xlane.f32.xlu0 %v3717_v22 }
0x19a0   : > { %3556 = vmatpush.msrb.mxu2 %v3523_v17 }
0x19a2   : > { %3557 = vmatpush.msrb.mxu2 %v3522_v16 }
0x19a4   : > { %3558 = vmatpush.msrb.mxu2 %v3521_v30 }
0x19a6   : > { %3559 = vmatpush.msrb.mxu2 %v3520_v13 }
0x19a7   : > { %6282 = vmatmul.msk.f32.vlgmr.msrb.gmra.mxu2 %vm932_vm12, %v3524_v4 }
0x19af   : > { %6283 = vmatmul.msk.f32.gmra.mxu2 %vm932_vm12, %v3525_v8 }
0x19b7   : > { %6284 = vmatmul.msk.f32.gmra.mxu2 %vm932_vm12, %v3526_v21 }
0x19bf   : > { %6285 = vmatmul.msk.f32.gmra.mxu2 %vm932_vm12, %v3527_v31  ;;  %v3530_v31 = vld [vmem:[%s10242_s3 + $0x210] sm:$0xff] }
0x19fa   : > { %v3722_v12 = vpop.xlane.xlu1 %3721 }
0x19fb   : > { %v3730_v7 = vmul.f32 %v3722_v12, %v8333_v38  ;;  %v3529_v12 = vld [vmem:[%s10242_s3 + $0x208] sm:$0xff] }
0x19fd   : > { %v3734_v5 = vadd.f32 1e-05, %v3730_v7  ;;  %v3531_v7 = vld [vmem:[%s10242_s3 + $0x218] sm:$0xff] }
0x19ff   : > { %7485 = vrsqrt.f32 %v3734_v5  ;;  %vm3753_vm4 = vweird.f32 %v3734_v5 }
0x1a02   : > { %v3725_v63 = vpop.xlane.xlu2 %3724 }
0x1a03   : > { %v3731_v18 = vmul.f32 %v3725_v63, %v8333_v38  ;;  %v3528_v63 = vld [vmem:[%s10242_s3 + $0x200] sm:$0xff] }
0x1a05   : > { %v3735_v6 = vadd.f32 1e-05, %v3731_v18  ;;  %v7486_v27 = vpop.eup %7485 }
0x1a06   : > { %v3748_v41 = vmul.f32 %v7486_v27, %v3734_v5  ;;  %vm3754_vm13 = vweird.f32 %v7486_v27 }
0x1a07   : > { %7487 = vrsqrt.f32 %v3735_v6  ;;  %vm3763_vm9 = vweird.f32 %v3735_v6  ;;  %vm3755_vm5 = vmor %vm3753_vm4, %vm3754_vm13 }
0x1a08   : > { %v3749_v57 = vmul.f32 %v7486_v27, %v3748_v41 }
0x1a0a   : > { %v3728_v19 = vpop.xlane.xlu0 %3727  ;;  %v3750_v48 = vmul.f32 0.5, %v3749_v57 }
0x1a0b   : > { %v3732_v33 = vmul.f32 %v3728_v19, %v8333_v38 }
0x1a0c   : > { %v3751_v52 = vsub.f32 1.5, %v3750_v48 }
0x1a0d   : > { %v7488_v26 = vpop.eup %7487  ;;  %v3736_v23 = vadd.f32 1e-05, %v3732_v33 }
0x1a0e   : > { %v3758_v24 = vmul.f32 %v7488_v26, %v3735_v6  ;;  %vm3764_vm6 = vweird.f32 %v7488_v26  ;;  %v3752_v0 = vmul.f32 %v7486_v27, %v3751_v52 }
0x1a0f   : > { %7489 = vrsqrt.f32 %v3736_v23  ;;  %vm3765_vm14 = vmor %vm3763_vm9, %vm3764_vm6  ;;  %vm3773_vm2 = vweird.f32 %v3736_v23 }
0x1a10   : > { %v3759_v61 = vmul.f32 %v7488_v26, %v3758_v24  ;;  %v3756_v15 = vsel %vm3755_vm5, %v7486_v27, %v3752_v0 }
0x1a11   : > { %v3778_v22 = vmul.f32 %v3756_v15, %v9016_v20 }
0x1a12   : > { %v3760_v39 = vmul.f32 0.5, %v3759_v61  ;;  %v3719_v44 = vpop.xlane.xlu0 %3718 }
0x1a13   : > { %v3729_v55 = vmul.f32 %v3719_v44, %v8333_v38  ;;  %v9083_v4 = vmax.f32 %v3778_v22, 0.0 }
0x1a14   : > { %v3761_v45 = vsub.f32 1.5, %v3760_v39 }
0x1a15   : > { %v7490_v42 = vpop.eup %7489  ;;  %v3733_v43 = vadd.f32 1e-05, %v3729_v55  ;;  %v3581_v55 = vld [vmem:[%s10241_s2 + $0x440] sm:$0xff] }
0x1a16   : > { %v3768_v49 = vmul.f32 %v7490_v42, %v3736_v23  ;;  %v3762_v50 = vmul.f32 %v7488_v26, %v3761_v45  ;;  %vm3774_vm15 = vweird.f32 %v7490_v42 }
0x1a17   : > { %7491 = vrsqrt.f32 %v3733_v43  ;;  %vm3775_vm3 = vmor %vm3773_vm2, %vm3774_vm15  ;;  %vm3743_vm9 = vweird.f32 %v3733_v43  ;;  %vm3857_vm15 = vcmask 80896   ;;  %vm3862_vm2 = vcmask 89088  }
0x1a18   : > { %v3769_v47 = vmul.f32 %v7490_v42, %v3768_v49  ;;  %v3766_v53 = vsel %vm3765_vm14, %v7488_v26, %v3762_v50 }
0x1a19   : > { %v3779_v60 = vmul.f32 %v3766_v53, %v9022_v46 }
0x1a1a   : > { %v3770_v51 = vmul.f32 0.5, %v3769_v47 }
0x1a1b   : > { %v9073_v9 = vmax.f32 %v3779_v60, 0.0 }
0x1a1c   : > { %v3771_v58 = vsub.f32 1.5, %v3770_v51 }
0x1a1d   : > { %v7492_v35 = vpop.eup %7491 }
0x1a1e   : > { %v3772_v32 = vmul.f32 %v7490_v42, %v3771_v58  ;;  %v3738_v59 = vmul.f32 %v7492_v35, %v3733_v43  ;;  %vm3744_vm6 = vweird.f32 %v7492_v35 }
0x1a1f   : > { %vm3745_vm14 = vmor %vm3743_vm9, %vm3744_vm6 }
0x1a20   : > { %v3776_v54 = vsel %vm3775_vm3, %v7490_v42, %v3772_v32  ;;  %v3739_v1 = vmul.f32 %v7492_v35, %v3738_v59  ;;  %vm10278_vm3 = vcmask 64512  }
0x1a21   : > { %v3780_v2 = vmul.f32 %v3776_v54, %v9028_v36  ;;  %vm10279_vm13 = vmmov %vm10278_vm3 }
0x1a22   : > { %v3740_v3 = vmul.f32 0.5, %v3739_v1  ;;  %vm10280_vm4 = vmmov %vm10278_vm3 }
0x1a23   : > { %v9075_v11 = vmax.f32 %v3780_v2, 0.0  ;;  %vm10281_vm5 = vmmov %vm10278_vm3 }
0x1a24   : > { %v3741_v16 = vsub.f32 1.5, %v3740_v3  ;;  %vm10282_vm6 = vmmov %vm10278_vm3 }
0x1a25   : > { %v7127_v46 = vpack.i.bf16 %v9073_v9, %v9075_v11  ;;  %vm10283_vm9 = vmmov %vm10278_vm3 }
0x1a26   : > { %v3742_v17 = vmul.f32 %v7492_v35, %v3741_v16 }
0x1a27   : > { %7128 = vrot.lane.b32.xlu1 %v7127_v46, %s7540_s24  ;;  %7123 = vrot.lane.b32.xlu2 %v7127_v46, %s7542_s26 }
0x1a28   : > { %v3746_v36 = vsel %vm3745_vm14, %v7492_v35, %v3742_v17  ;;  %vm10284_vm14 = vmmov %vm10278_vm3 }
0x1a29   : > { %v3777_v30 = vmul.f32 %v3746_v36, %v9043_v34 }
0x1a2a   : > { %v3561_v13 = vpop.f32.mrf.mxu2 }
0x1a2b   : > { %v9085_v8 = vmax.f32 %v3777_v30, 0.0  ;;  %v3562_v33 = vadd.f32 %v3561_v13, %v3528_v63 }
0x1a2d   : > { %v7132_v21 = vpack.i.bf16 %v9085_v8, %v9083_v4  ;;  %v3573_v41 = vmax.f32 %v3562_v33, 0.0  ;;  %v3793_v33 = vld [vmem:[%s10242_s3 + $0x250] sm:$0xff] }
0x1a2f   : > { %7143 = vrot.lane.b32.xlu2 %v7127_v46, %s7541_s25  ;;  %7133 = vrot.lane.b32.xlu1 %v7132_v21, %s7540_s24  ;;  %v3577_v44 = vadd.f32 %v3573_v41, %v8992_v62 }
0x1a30   : > { %7118 = vrot.lane.b32.xlu0 %v7132_v21, %s7542_s26 }
0x1a32   : > { %v3564_v20 = vpop.f32.mrf.mxu2 }
0x1a33   : > { %v3565_v6 = vadd.f32 %v3564_v20, %v3529_v12 }
0x1a35   : > { %v3574_v23 = vmax.f32 %v3565_v6, 0.0 }
0x1a37   : > { %7148 = vrot.lane.b32.xlu2 %v7132_v21, %s10277_s21  ;;  %v3578_v39 = vadd.f32 %v3574_v23, %v8988_v28  ;;  %v3583_v23 = vld [vmem:[%s10242_s3 + $0x220] sm:$0xff] }
0x1a38   : > { %7138 = vrot.lane.b32.xlu0 %v7127_v46, %s10277_s21 }
0x1a3a   : > { %v3567_v34 = vpop.f32.mrf.mxu2 }
0x1a3b   : > { %v3568_v5 = vadd.f32 %v3567_v34, %v3530_v31 }
0x1a3d   : > { %v3575_v27 = vmax.f32 %v3568_v5, 0.0 }
0x1a3f   : > { %v3579_v61 = vadd.f32 %v3575_v27, %v8984_v56  ;;  %v3795_v27 = vld [vmem:[%s10242_s3 + $0x260] sm:$0xff] }
0x1a40   : > { %7153 = vrot.lane.b32.xlu0 %v7132_v21, %s7541_s25 }
0x1a42   : > { %v3570_v18 = vpop.f32.mrf.mxu2 }
0x1a43   : > { %v3571_v19 = vadd.f32 %v3570_v18, %v3531_v7 }
0x1a45   : > { %v3576_v26 = vmax.f32 %v3571_v19, 0.0  ;;  %v3796_v19 = vld [vmem:[%s10242_s3 + $0x268] sm:$0xff] }
0x1a47   : > { %v3580_v24 = vadd.f32 %v3576_v26, %v8980_v25  ;;  %v3582_v25 = vld [vmem:[%s10241_s2 + $0x450] sm:$0xff]  ;;  %v3794_v26 = vld [vmem:[%s10242_s3 + $0x258] sm:$0xff] }
0x1a49   : > { %3603 = vmatpush.msrb.mxu3 %v3580_v24 }
0x1a4b   : > { %3604 = vmatpush.msrb.mxu3 %v3579_v61  ;;  %v3584_v61 = vld [vmem:[%s10242_s3 + $0x228] sm:$0xff] }
0x1a4d   : > { %3605 = vmatpush.msrb.mxu3 %v3578_v39 }
0x1a4f   : > { %3606 = vmatpush.msrb.mxu3 %v3577_v44  ;;  %v9188_v44 = vld [vmem:[%s10245_s6] sm:$0xff] }
0x1a50   : > { %6286 = vmatmul.msk.f32.vlgmr.msrb.gmra.mxu3 %vm932_vm12, %v3581_v55  ;;  %v9193_v55 = vld [vmem:[%s10246_s7] sm:$0xff] }
0x1a58   : > { %6287 = vmatmul.msk.f32.gmra.mxu3 %vm932_vm12, %v3582_v25 }
0x1a81   : > { %v7124_v56 = vpop.permute.xlu2 %7123 }
0x1a82   : > { %v7126_v42 = vunpack.i.h.bf16 %v7124_v56  ;;  %v7125_v62 = vunpack.i.l.bf16 %v7124_v56  ;;  %v4009_v56 = vld [vmem:[%s10241_s2 + $0x5e0] sm:$0xff] }
0x1a84   : > { %v3851_v48 = vsel %vm482_vm0, %v7126_v42, %v9073_v9  ;;  %v3852_v50 = vsel %vm482_vm0, %v7125_v62, %v9075_v11  ;;  %v4012_v42 = vld [vmem:[%s10241_s2 + $0x610] sm:$0xff]  ;;  %v4013_v62 = vld [vmem:[%s10241_s2 + $0x620] sm:$0xff] }
0x1a89   : > { %v7144_v45 = vpop.permute.xlu2 %7143 }
0x1a8a   : > { %v7146_v32 = vunpack.i.h.bf16 %v7144_v45  ;;  %v7145_v59 = vunpack.i.l.bf16 %v7144_v45  ;;  %v4011_v45 = vld [vmem:[%s10241_s2 + $0x600] sm:$0xff] }
0x1a91   : > { %v7149_v22 = vpop.permute.xlu2 %7148 }
0x1a92   : > { %v7151_v21 = vunpack.i.h.bf16 %v7149_v22  ;;  %v7150_v20 = vunpack.i.l.bf16 %v7149_v22 }
0x1a99   : > { %v7129_v57 = vpop.permute.xlu1 %7128 }
0x1a9a   : > { %v7131_v43 = vunpack.i.h.bf16 %v7129_v57  ;;  %v7130_v49 = vunpack.i.l.bf16 %v7129_v57  ;;  %v4604_v57 = vadd.f32 %v9193_v55, %v9188_v44 }
0x1a9c   : > { %v3855_v60 = vsel %vm485_vm1, %v3851_v48, %v7131_v43  ;;  %v3856_v0 = vsel %vm485_vm1, %v3852_v50, %v7130_v49  ;;  %v4014_v43 = vld [vmem:[%s10241_s2 + $0x630] sm:$0xff]  ;;  %v4015_v49 = vld [vmem:[%s10241_s2 + $0x640] sm:$0xff] }
0x1a9d   : > { %v4016_v48 = vld [vmem:[%s10241_s2 + $0x650] sm:$0xff] }
0x1aa1   : > { %v7134_v52 = vpop.permute.xlu1 %7133 }
0x1aa2   : > { %v7119_v28 = vpop.permute.xlu0 %7118  ;;  %v7136_v54 = vunpack.i.h.bf16 %v7134_v52  ;;  %v7135_v1 = vunpack.i.l.bf16 %v7134_v52 }
0x1aa3   : > { %v7121_v47 = vunpack.i.h.bf16 %v7119_v28  ;;  %v7120_v51 = vunpack.i.l.bf16 %v7119_v28  ;;  %v4010_v28 = vld [vmem:[%s10241_s2 + $0x5f0] sm:$0xff] }
0x1aa5   : > { %v3849_v15 = vsel %vm482_vm0, %v7121_v47, %v9085_v8  ;;  %v3850_v16 = vsel %vm482_vm0, %v7120_v51, %v9083_v4 }
0x1aa6   : > { %v3853_v30 = vsel %vm485_vm1, %v3849_v15, %v7136_v54  ;;  %v3854_v13 = vsel %vm485_vm1, %v3850_v16, %v7135_v1 }
0x1aa7   : > { %v3858_v7 = vsel %vm3857_vm15, %v3853_v30, %v7151_v21  ;;  %v3859_v5 = vsel %vm3857_vm15, %v3854_v13, %v7150_v20  ;;  %v3786_v21 = vld [vmem:[%s10241_s2 + $0x4a8] sm:$0xff]  ;;  %v3788_v20 = vld [vmem:[%s10241_s2 + $0x4b8] sm:$0xff] }
0x1aaa   : > { %v7139_v53 = vpop.permute.xlu0 %7138 }
0x1aab   : > { %v7141_v58 = vunpack.i.h.bf16 %v7139_v53  ;;  %v7140_v35 = vunpack.i.l.bf16 %v7139_v53 }
0x1aad   : > { %v3860_v2 = vsel %vm3857_vm15, %v3855_v60, %v7141_v58  ;;  %v3861_v3 = vsel %vm3857_vm15, %v3856_v0, %v7140_v35 }
0x1aae   : > { %v9132_v46 = vsel %vm3862_vm2, %v3860_v2, %v7146_v32  ;;  %v9135_v17 = vsel %vm3862_vm2, %v3861_v3, %v7145_v59 }
0x1aaf   : > { %v7167_v36 = vpack.i.bf16 %v9132_v46, %v9135_v17 }
0x1ab1   : > { %7168 = vrot.lane.b32.xlu0 %v7167_v36, %s7542_s26  ;;  %7158 = vrot.lane.b32.xlu1 %v7167_v36, %s10264_s14 }
0x1ab2   : > { %v7154_v34 = vpop.permute.xlu0 %7153 }
0x1ab3   : > { %v7156_v31 = vunpack.i.h.bf16 %v7154_v34  ;;  %v7155_v12 = vunpack.i.l.bf16 %v7154_v34  ;;  %v3789_v34 = vld [vmem:[%s10241_s2 + $0x4c0] sm:$0xff] }
0x1ab5   : > { %v9146_v63 = vsel %vm3862_vm2, %v3858_v7, %v7156_v31  ;;  %v9149_v18 = vsel %vm3862_vm2, %v3859_v5, %v7155_v12  ;;  %v3792_v31 = vld [vmem:[%s10241_s2 + $0x4d8] sm:$0xff]  ;;  %v3791_v12 = vld [vmem:[%s10241_s2 + $0x4d0] sm:$0xff] }
0x1ab6   : > { %v7162_v6 = vpack.i.bf16 %v9146_v63, %v9149_v18 }
0x1ab8   : > { %7163 = vrot.lane.b32.xlu2 %v7162_v6, %s10264_s14 }
0x1ab9   : > { %7178 = vrot.lane.b32.xlu0 %v7162_v6, %s10262_s15  ;;  %7173 = vrot.lane.b32.xlu1 %v7162_v6, %s7542_s26 }
0x1ac0   : > { %7183 = vrot.lane.b32.xlu2 %v7167_v36, %s10262_s15 }
0x1ac1   : > { %3936 = vperm.xlu0 %6475, %v3796_v19   ;;  %7188 = vrot.lane.b32.xlu1 %v7167_v36, %s10263_s20 }
0x1ac8   : > { %7193 = vrot.lane.b32.xlu2 %v7162_v6, %s10263_s20 }
0x1ac9   : > { %3921 = vperm.xlu0 %6475, %v3793_v33   ;;  %3931 = vperm.xlu1 %6476, %v3795_v27   ;;  %v4024_v27 = vld [vmem:[%s10242_s3 + $0x328] sm:$0xff] }
0x1ad0   : > { %3926 = vperm.xlu2 %6474, %v3794_v26  }
0x1ad3   : > { %v3608_v24 = vpop.f32.mrf.mxu3 }
0x1ad4   : > { %v9178_v41 = vadd.f32 %v3608_v24, %v3583_v23 }
0x1ad6   : > { %5965 = vst.msk [vmem:[%s429_s23] sm:$0xff] %vm482_vm0, %v9178_v41 }
0x1adb   : > { %v3611_v39 = vpop.f32.mrf.mxu3 }
0x1adc   : > { %v9195_v25 = vadd.f32 %v3611_v39, %v3584_v61 }
0x1ade   : > { %5966 = vst.msk [vmem:[%s429_s23 + $0x8] sm:$0xff] %vm482_vm0, %v9195_v25  ;;  %4063 = vmatpush.msra.mxu3 %v9195_v25 }
0x1ae0   : > { %4064 = vmatpush.msra.mxu3 %v9178_v41 }
0x1ae1   : > { %6296 = vmatmul.msk.f32.vlgmr.msra.gmra.mxu3 %vm678_vm8, %v4009_v56 }
0x1ae2   : > { %4628 = vmatpush.msrb.mxu3 %v4604_v57 }
0x1ae4   : > { %5143 = vmatpush.msra.mxu3 %v9195_v25 }
0x1ae6   : > { %5144 = vmatpush.msra.mxu3 %v9178_v41 }
0x1ae9   : > { %6297 = vmatmul.msk.f32.gmra.mxu3 %vm678_vm8, %v4010_v28 }
0x1af1   : > { %6298 = vmatmul.msk.f32.gmra.mxu3 %vm678_vm8, %v4011_v45 }
0x1af9   : > { %6299 = vmatmul.msk.f32.gmra.mxu3 %vm678_vm8, %v4012_v42 }
0x1b01   : > { %6300 = vmatmul.msk.f32.gmra.mxu3 %vm678_vm8, %v4013_v62 }
0x1b09   : > { %6301 = vmatmul.msk.f32.gmra.mxu3 %vm678_vm8, %v4014_v43 }
0x1b11   : > { %6302 = vmatmul.msk.f32.gmra.mxu3 %vm678_vm8, %v4015_v49 }
0x1b12   : > { %v7164_v50 = vpop.permute.xlu2 %7163 }
0x1b13   : > { %v7165_v53 = vunpack.i.l.bf16 %v7164_v50  ;;  %v7166_v35 = vunpack.i.h.bf16 %v7164_v50 }
0x1b19   : > { %6303 = vmatmul.msk.f32.gmra.mxu3 %vm678_vm8, %v4016_v48 }
0x1b1a   : > { %v7184_v32 = vpop.permute.xlu2 %7183 }
0x1b1b   : > { %v7185_v2 = vunpack.i.l.bf16 %v7184_v32  ;;  %v7186_v16 = vunpack.i.h.bf16 %v7184_v32 }
0x1b21   : > { %6320 = vmatmul.msk.f32.vlgmr.msrb.gmra.mxu3 %vm10278_vm3, %v9085_v8 }
0x1b23   : > { %v7159_v47 = vpop.permute.xlu1 %7158  ;;  %v7169_v58 = vpop.permute.xlu0 %7168 }
0x1b24   : > { %v7160_v51 = vunpack.i.l.bf16 %v7159_v47  ;;  %v7161_v52 = vunpack.i.h.bf16 %v7159_v47  ;;  %v7170_v60 = vunpack.i.l.bf16 %v7169_v58  ;;  %v7171_v0 = vunpack.i.h.bf16 %v7169_v58 }
0x1b26   : > { %3951 = vmatpush.msrb.mxu0 %v7160_v51 }
0x1b28   : > { %3952 = vmatpush.msrb.mxu0 %v7161_v52 }
0x1b29   : > { %6321 = vmatmul.msk.f32.gmra.mxu3 %vm10279_vm13, %v9083_v4  ;;  %v7194_v4 = vpop.permute.xlu2 %7193  ;;  %vm10285_vm13 = vmmov %vm10278_vm3 }
0x1b2a   : > { %3953 = vmatpush.msrb.mxu0 %v7165_v53  ;;  %v7195_v36 = vunpack.i.l.bf16 %v7194_v4 }
0x1b2b   : > { %v7174_v59 = vpop.permute.xlu1 %7173  ;;  %v7179_v15 = vpop.permute.xlu0 %7178 }
0x1b2c   : > { %3954 = vmatpush.msrb.mxu0 %v7166_v35  ;;  %v7175_v54 = vunpack.i.l.bf16 %v7174_v59  ;;  %v7176_v8 = vunpack.i.h.bf16 %v7174_v59  ;;  %v7180_v30 = vunpack.i.l.bf16 %v7179_v15  ;;  %v7181_v13 = vunpack.i.h.bf16 %v7179_v15 }
0x1b2e   : > { %3955 = vmatpush.msrb.mxu0 %v7170_v60  ;;  %v4022_v60 = vld [vmem:[%s10242_s3 + $0x318] sm:$0xff] }
0x1b30   : > { %3956 = vmatpush.msrb.mxu0 %v7171_v0 }
0x1b31   : > { %6322 = vmatmul.msk.f32.gmra.mxu3 %vm10280_vm4, %v9073_v9  ;;  %v7196_v9 = vunpack.i.h.bf16 %v7194_v4  ;;  %v3927_v45 = vpop.permute.xlu2 %3926  ;;  %v4023_v4 = vld [vmem:[%s10242_s3 + $0x320] sm:$0xff]  ;;  %vm10286_vm4 = vmmov %vm10278_vm3 }
0x1b32   : > { %3957 = vmatpush.msrb.mxu0 %v7175_v54 }
0x1b33   : > { %v7189_v1 = vpop.permute.xlu1 %7188  ;;  %v3937_v24 = vpop.permute.xlu0 %3936 }
0x1b34   : > { %v7190_v3 = vunpack.i.l.bf16 %v7189_v1  ;;  %3958 = vmatpush.msrb.mxu0 %v7176_v8  ;;  %v7191_v22 = vunpack.i.h.bf16 %v7189_v1  ;;  %v4019_v8 = vld [vmem:[%s10242_s3 + $0x300] sm:$0xff] }
0x1b36   : > { %3959 = vmatpush.msrb.mxu0 %v7185_v2  ;;  %3992 = vmatpush.msra.mxu2 %v7190_v3  ;;  %v4020_v2 = vld [vmem:[%s10242_s3 + $0x308] sm:$0xff] }
0x1b38   : > { %3960 = vmatpush.msrb.mxu0 %v7186_v16  ;;  %3993 = vmatpush.msra.mxu2 %v7191_v22 }
0x1b39   : > { %6323 = vmatmul.msk.f32.gmra.mxu3 %vm10281_vm5, %v9075_v11  ;;  %v3785_v11 = vld [vmem:[%s10241_s2 + $0x4a0] sm:$0xff]  ;;  %vm10287_vm5 = vmmov %vm10278_vm3 }
0x1b3a   : > { %3961 = vmatpush.msrb.mxu0 %v7180_v30  ;;  %3994 = vmatpush.msra.mxu2 %v7195_v36 }
0x1b3b   : > { %v3922_v39 = vpop.permute.xlu0 %3921  ;;  %v3932_v50 = vpop.permute.xlu1 %3931 }
0x1b3c   : > { %3962 = vmatpush.msrb.mxu0 %v7181_v13  ;;  %3995 = vmatpush.msra.mxu2 %v7196_v9 }
0x1b3d   : > { %6292 = vmatmul.msk.f32.vlgmr.msra.gmra.mxu2 %vm932_vm12, %v3786_v21 }
0x1b3e   : > { %3963 = vmatpush.msrb.mxu0 %v9135_v17  ;;  %4549 = vmatpush.msrb.mxu2 %v9193_v55  ;;  %v3787_v17 = vld [vmem:[%s10241_s2 + $0x4b0] sm:$0xff] }
0x1b40   : > { %4590 = vmatpush.msra.mxu2 %v9188_v44  ;;  %3964 = vmatpush.msrb.mxu0 %v9132_v46  ;;  %v3790_v46 = vld [vmem:[%s10241_s2 + $0x4c8] sm:$0xff] }
0x1b42   : > { %3965 = vmatpush.msrb.mxu0 %v9149_v18 }
0x1b44   : > { %3966 = vmatpush.msrb.mxu0 %v9146_v63 }
0x1b45   : > { %3967 = vmatmul.f32.vlgmr.msrb.gmra.mxu0 %v3785_v11  ;;  %6293 = vmatmul.msk.f32.gmra.mxu2 %vm932_vm12, %v3788_v20 }
0x1b4d   : > { %3970 = vmatmul.f32.gmra.mxu0 %v3787_v17  ;;  %6294 = vmatmul.msk.f32.gmra.mxu2 %vm932_vm12, %v3790_v46 }
0x1b55   : > { %3973 = vmatmul.f32.gmra.mxu0 %v3789_v34  ;;  %6295 = vmatmul.msk.f32.gmra.mxu2 %vm932_vm12, %v3792_v31 }
0x1b5d   : > { %3976 = vmatmul.f32.gmra.mxu0 %v3791_v12 }
0x1b64   : > { %v9279_v7 = vpop.f32.mrf.mxu3 }
0x1b6c   : > { %v9281_v5 = vpop.f32.mrf.mxu3 }
0x1b74   : > { %v4072_v63 = vpop.f32.mrf.mxu3 }
0x1b75   : > { %v4073_v1 = vadd.f32 %v4072_v63, %v4019_v8 }
0x1b7c   : > { %v4075_v18 = vpop.f32.mrf.mxu3 }
0x1b7d   : > { %v4076_v3 = vadd.f32 %v4075_v18, %v4020_v2 }
0x1b84   : > { %v9283_v6 = vpop.f32.mrf.mxu3 }
0x1b8c   : > { %v4081_v19 = vpop.f32.mrf.mxu3 }
0x1b8d   : > { %v4082_v54 = vadd.f32 %v4081_v19, %v4022_v60 }
0x1b94   : > { %v4084_v33 = vpop.f32.mrf.mxu3 }
0x1b95   : > { %v4085_v15 = vadd.f32 %v4084_v33, %v4023_v4 }
0x1b9c   : > { %v4087_v26 = vpop.f32.mrf.mxu3 }
0x1b9d   : > { %v4088_v23 = vadd.f32 %v4087_v26, %v4024_v27 }
0x1b9f   : > { %4195 = vperm.xlu0 %6475, %v4088_v23  }
0x1bc0   : > { %v3997_v61 = vpop.f32.mrf.mxu2 }
0x1bc2   : > { %v3968_v44 = vpop.f32.mrf.mxu0 }
0x1bc3   : > { %v3969_v55 = vadd.f32 %v3968_v44, %v3922_v39 }
0x1bc5   : > { %v3998_v56 = vadd.f32 %v3997_v61, %v3969_v55  ;;  %v4017_v61 = vld [vmem:[%s10242_s3 + $0x2f0] sm:$0xff]  ;;  %v4018_v55 = vld [vmem:[%s10242_s3 + $0x2f8] sm:$0xff] }
0x1bc6   : > { %v4067_v44 = vadd.f32 %v9279_v7, %v4017_v61 }
0x1bc7   : > { %v4090_v57 = vsel %vm10282_vm6, %v3998_v56, 0.0  ;;  %vm10288_vm6 = vmmov %vm10278_vm3 }
0x1bc8   : > { %4091 = vadd.xlane.f32.xlu1 %v4090_v57  ;;  %v4000_v28 = vpop.f32.mrf.mxu2 }
0x1bca   : > { %v3971_v42 = vpop.f32.mrf.mxu0 }
0x1bcb   : > { %v3972_v62 = vadd.f32 %v3971_v42, %v3927_v45 }
0x1bcd   : > { %v4001_v43 = vadd.f32 %v4000_v28, %v3972_v62 }
0x1bcf   : > { %v4093_v49 = vsel %vm10283_vm9, %v4001_v43, 0.0 }
0x1bd0   : > { %4094 = vadd.xlane.f32.xlu0 %v4093_v49  ;;  %v4003_v48 = vpop.f32.mrf.mxu2 }
0x1bd2   : > { %v3974_v47 = vpop.f32.mrf.mxu0 }
0x1bd3   : > { %v3975_v51 = vadd.f32 %v3974_v47, %v3932_v50 }
0x1bd5   : > { %v4004_v52 = vadd.f32 %v4003_v48, %v3975_v51 }
0x1bd7   : > { %v4096_v53 = vsel %vm10284_vm14, %v4004_v52, 0.0 }
0x1bd8   : > { %4097 = vadd.xlane.f32.xlu2 %v4096_v53  ;;  %v4006_v35 = vpop.f32.mrf.mxu2 }
0x1bda   : > { %v3977_v58 = vpop.f32.mrf.mxu0 }
0x1bdb   : > { %v3978_v32 = vadd.f32 %v3977_v58, %v3937_v24  ;;  %v4021_v24 = vld [vmem:[%s10242_s3 + $0x310] sm:$0xff] }
0x1bdc   : > { %v4079_v39 = vadd.f32 %v9283_v6, %v4021_v24 }
0x1bdd   : > { %v4007_v59 = vadd.f32 %v4006_v35, %v3978_v32 }
0x1bdf   : > { %v4099_v0 = vsel %vm10278_vm3, %v4007_v59, 0.0 }
0x1be0   : > { %4100 = vadd.xlane.f32.xlu1 %v4099_v0 }
0x1be4   : > { %4185 = vperm.xlu0 %6475, %v4082_v54  }
0x1bec   : > { %4214 = vperm.xlu0 %6475, %v4073_v1  }
0x1bf0   : > { %4219 = vperm.xlu2 %6474, %v4076_v3  }
0x1bf9   : > { %4190 = vperm.xlu1 %6476, %v4085_v15  }
0x1c11   : > { %v9304_v16 = vpop.permute.xlu0 %4195 }
0x1c3b   : > { %v4092_v22 = vpop.xlane.xlu1 %4091 }
0x1c3c   : > { %v4102_v36 = vmul.f32 %v4092_v22, %v8333_v38 }
0x1c3e   : > { %v9307_v30 = vsub.f32 %v3998_v56, %v4102_v36  ;;  %v4070_v56 = vadd.f32 %v9281_v5, %v4018_v55 }
0x1c40   : > { %v4110_v9 = vmul.f32 %v9307_v30, %v9307_v30 }
0x1c42   : > { %v4114_v13 = vsel %vm10285_vm13, %v4110_v9, 0.0 }
0x1c43   : > { %v4095_v21 = vpop.xlane.xlu0 %4094  ;;  %4115 = vadd.xlane.f32.xlu2 %v4114_v13 }
0x1c44   : > { %v4103_v11 = vmul.f32 %v4095_v21, %v8333_v38 }
0x1c46   : > { %v9313_v20 = vsub.f32 %v4001_v43, %v4103_v11 }
0x1c48   : > { %v4111_v17 = vmul.f32 %v9313_v20, %v9313_v20 }
0x1c4a   : > { %v4117_v46 = vsel %vm10286_vm4, %v4111_v17, 0.0 }
0x1c4b   : > { %v4098_v34 = vpop.xlane.xlu2 %4097  ;;  %4118 = vadd.xlane.f32.xlu1 %v4117_v46 }
0x1c4c   : > { %v4104_v31 = vmul.f32 %v4098_v34, %v8333_v38 }
0x1c4e   : > { %v9319_v12 = vsub.f32 %v4004_v52, %v4104_v31 }
0x1c50   : > { %v4112_v63 = vmul.f32 %v9319_v12, %v9319_v12 }
0x1c52   : > { %v4120_v18 = vsel %vm10287_vm5, %v4112_v63, 0.0 }
0x1c53   : > { %4121 = vadd.xlane.f32.xlu0 %v4120_v18  ;;  %v4101_v19 = vpop.xlane.xlu1 %4100  ;;  %v9342_v57 = vpop.permute.xlu2 %4219 }
0x1c54   : > { %v4105_v33 = vmul.f32 %v4101_v19, %v8333_v38 }
0x1c56   : > { %v9325_v27 = vsub.f32 %v4007_v59, %v4105_v33  ;;  %v4186_v28 = vpop.permute.xlu0 %4185 }
0x1c58   : > { %v4113_v26 = vmul.f32 %v9325_v27, %v9325_v27 }
0x1c5a   : > { %v4123_v23 = vsel %vm10288_vm6, %v4113_v26, 0.0 }
0x1c5b   : > { %4124 = vadd.xlane.f32.xlu2 %v4123_v23 }
0x1c5e   : > { %v9347_v43 = vpop.permute.xlu0 %4214 }
0x1c64   : > { %4180 = vperm.xlu1 %6476, %v4079_v39  }
0x1c67   : > { %4204 = vperm.xlu0 %6475, %v4067_v44  }
0x1c6b   : > { %v9344_v45 = vpop.permute.xlu1 %4190 }
0x1c73   : > { %4209 = vperm.xlu2 %6474, %v4070_v56  }
0x1cb6   : > { %v4116_v42 = vpop.xlane.xlu2 %4115 }
0x1cb7   : > { %v4126_v62 = vmul.f32 %v4116_v42, %v8333_v38 }
0x1cb9   : > { %v4130_v6 = vadd.f32 1e-05, %v4126_v62 }
0x1cbb   : > { %7493 = vrsqrt.f32 %v4130_v6  ;;  %vm4140_vm14 = vweird.f32 %v4130_v6 }
0x1cbe   : > { %v4119_v7 = vpop.xlane.xlu1 %4118 }
0x1cbf   : > { %v4127_v49 = vmul.f32 %v4119_v7, %v8333_v38 }
0x1cc1   : > { %v7494_v48 = vpop.eup %7493  ;;  %v4131_v50 = vadd.f32 1e-05, %v4127_v49 }
0x1cc2   : > { %v4135_v47 = vmul.f32 %v7494_v48, %v4130_v6  ;;  %vm4141_vm9 = vweird.f32 %v7494_v48 }
0x1cc3   : > { %7495 = vrsqrt.f32 %v4131_v50  ;;  %vm4142_vm13 = vmor %vm4140_vm14, %vm4141_vm9  ;;  %vm4150_vm4 = vweird.f32 %v4131_v50 }
0x1cc4   : > { %v4136_v5 = vmul.f32 %v7494_v48, %v4135_v47 }
0x1cc6   : > { %v4137_v51 = vmul.f32 0.5, %v4136_v5  ;;  %v4122_v52 = vpop.xlane.xlu0 %4121 }
0x1cc7   : > { %v4128_v53 = vmul.f32 %v4122_v52, %v8333_v38 }
0x1cc8   : > { %v4138_v32 = vsub.f32 1.5, %v4137_v51 }
0x1cc9   : > { %v7496_v58 = vpop.eup %7495  ;;  %v4132_v35 = vadd.f32 1e-05, %v4128_v53 }
0x1cca   : > { %v4145_v59 = vmul.f32 %v7496_v58, %v4131_v50  ;;  %v4139_v8 = vmul.f32 %v7494_v48, %v4138_v32  ;;  %vm4151_vm3 = vweird.f32 %v7496_v58 }
0x1ccb   : > { %7497 = vrsqrt.f32 %v4132_v35  ;;  %vm4152_vm5 = vmor %vm4150_vm4, %vm4151_vm3  ;;  %vm4160_vm9 = vweird.f32 %v4132_v35 }
0x1ccc   : > { %v4146_v60 = vmul.f32 %v7496_v58, %v4145_v59  ;;  %v4143_v36 = vsel %vm4142_vm13, %v7494_v48, %v4139_v8 }
0x1ccd   : > { %v4174_v11 = vmul.f32 %v4143_v36, %v9307_v30 }
0x1cce   : > { %v4147_v0 = vmul.f32 0.5, %v4146_v60  ;;  %v4125_v54 = vpop.xlane.xlu2 %4124 }
0x1ccf   : > { %v4129_v1 = vmul.f32 %v4125_v54, %v8333_v38 }
0x1cd0   : > { %v4148_v2 = vsub.f32 1.5, %v4147_v0 }
0x1cd1   : > { %v7498_v3 = vpop.eup %7497  ;;  %v4133_v4 = vadd.f32 1e-05, %v4129_v1 }
0x1cd2   : > { %v4155_v15 = vmul.f32 %v7498_v3, %v4132_v35  ;;  %v4149_v22 = vmul.f32 %v7496_v58, %v4148_v2  ;;  %vm4161_vm6 = vweird.f32 %v7498_v3 }
0x1cd3   : > { %7499 = vrsqrt.f32 %v4133_v4  ;;  %vm4162_vm14 = vmor %vm4160_vm9, %vm4161_vm6  ;;  %vm4170_vm13 = vweird.f32 %v4133_v4 }
0x1cd4   : > { %v4156_v9 = vmul.f32 %v7498_v3, %v4155_v15  ;;  %v4153_v13 = vsel %vm4152_vm5, %v7496_v58, %v4149_v22 }
0x1cd5   : > { %v4175_v21 = vmul.f32 %v4153_v13, %v9313_v20 }
0x1cd6   : > { %v4157_v17 = vmul.f32 0.5, %v4156_v9  ;;  %v4181_v38 = vpop.permute.xlu1 %4180  ;;  %v4210_v63 = vpop.permute.xlu2 %4209 }
0x1cd7   : > { %v4199_v46 = vmul.f32 %v4186_v28, %v4175_v21  ;;  %v4198_v34 = vmul.f32 %v4181_v38, %v4174_v11 }
0x1cd8   : > { %v4158_v31 = vsub.f32 1.5, %v4157_v17 }
0x1cd9   : > { %v7500_v18 = vpop.eup %7499  ;;  %v9354_v19 = vadd.f32 %v4210_v63, %v4199_v46  ;;  %v4205_v33 = vpop.permute.xlu0 %4204 }
0x1cda   : > { %v4159_v26 = vmul.f32 %v7498_v3, %v4158_v31  ;;  %v4165_v23 = vmul.f32 %v7500_v18, %v4133_v4  ;;  %v9356_v24 = vadd.f32 %v4205_v33, %v4198_v34  ;;  %vm4171_vm3 = vweird.f32 %v7500_v18 }
0x1cdb   : > { %v4227_v20 = vmax.f32 %v9354_v19, 0.0  ;;  %vm4172_vm4 = vmor %vm4170_vm13, %vm4171_vm3 }
0x1cdc   : > { %v4163_v30 = vsel %vm4162_vm14, %v7498_v3, %v4159_v26  ;;  %v4166_v61 = vmul.f32 %v7500_v18, %v4165_v23  ;;  %v4226_v39 = vmax.f32 %v9356_v24, 0.0 }
0x1cdd   : > { %v4176_v56 = vmul.f32 %v4163_v30, %v9319_v12 }
0x1cde   : > { %v4167_v44 = vmul.f32 0.5, %v4166_v61  ;;  %v7197_v55 = vpack.i.bf16 %v4226_v39, %v4227_v20 }
0x1cdf   : > { %v4200_v62 = vmul.f32 %v9344_v45, %v4176_v56  ;;  %v4252_v56 = vld [vmem:[%s10242_s3 + $0x2a0] sm:$0xff] }
0x1ce0   : > { %v4168_v28 = vsub.f32 1.5, %v4167_v44  ;;  %7198 = vrot.lane.b32.xlu2 %v7197_v55, %s7542_s26  ;;  %v4253_v44 = vld [vmem:[%s10242_s3 + $0x2a8] sm:$0xff] }
0x1ce1   : > { %v4224_v49 = vadd.f32 %v9347_v43, %v4200_v62  ;;  %v4247_v62 = vld [vmem:[%s10242_s3 + $0x278] sm:$0xff] }
0x1ce2   : > { %v4169_v42 = vmul.f32 %v7500_v18, %v4168_v28  ;;  %v4248_v28 = vld [vmem:[%s10242_s3 + $0x280] sm:$0xff] }
0x1ce3   : > { %v4228_v47 = vmax.f32 %v4224_v49, 0.0 }
0x1ce4   : > { %v4173_v6 = vsel %vm4172_vm4, %v7500_v18, %v4169_v42  ;;  %v4246_v42 = vld [vmem:[%s10242_s3 + $0x270] sm:$0xff] }
0x1ce5   : > { %v4177_v7 = vmul.f32 %v4173_v6, %v9325_v27  ;;  %v4249_v6 = vld [vmem:[%s10242_s3 + $0x288] sm:$0xff] }
0x1ce7   : > { %v4201_v48 = vmul.f32 %v9304_v16, %v4177_v7 }
0x1ce9   : > { %v4225_v50 = vadd.f32 %v9342_v57, %v4201_v48 }
0x1ceb   : > { %v4229_v12 = vmax.f32 %v4225_v50, 0.0 }
0x1ced   : > { %v7212_v5 = vpack.i.bf16 %v4228_v47, %v4229_v12 }
0x1cef   : > { %7213 = vrot.lane.b32.xlu0 %v7212_v5, %s10277_s21  ;;  %7203 = vrot.lane.b32.xlu1 %v7212_v5, %s7542_s26 }
0x1cf0   : > { %7208 = vrot.lane.b32.xlu2 %v7212_v5, %s7540_s24 }
0x1cf7   : > { %7223 = vrot.lane.b32.xlu1 %v7212_v5, %s7541_s25  ;;  %7218 = vrot.lane.b32.xlu0 %v7197_v55, %s7540_s24 }
0x1cf8   : > { %7233 = vrot.lane.b32.xlu2 %v7197_v55, %s7541_s25 }
0x1cff   : > { %7228 = vrot.lane.b32.xlu1 %v7197_v55, %s10277_s21  ;;  %v4251_v55 = vld [vmem:[%s10242_s3 + $0x298] sm:$0xff] }
0x1d3a   : > { %v7199_v16 = vpop.permute.xlu2 %7198 }
0x1d3b   : > { %v7201_v9 = vunpack.i.h.bf16 %v7199_v16  ;;  %v7200_v13 = vunpack.i.l.bf16 %v7199_v16 }
0x1d3d   : > { %v4306_v46 = vsel %vm482_vm0, %v7201_v9, %v4226_v39  ;;  %v4307_v34 = vsel %vm482_vm0, %v7200_v13, %v4227_v20  ;;  %v4250_v39 = vld [vmem:[%s10242_s3 + $0x290] sm:$0xff]  ;;  %v4238_v13 = vld [vmem:[%s10241_s2 + $0x520] sm:$0xff] }
0x1d3e   : > { %v4236_v9 = vld [vmem:[%s10241_s2 + $0x510] sm:$0xff] }
0x1d4a   : > { %v7209_v51 = vpop.permute.xlu2 %7208 }
0x1d4b   : > { %v7211_v58 = vunpack.i.h.bf16 %v7209_v51  ;;  %v7210_v35 = vunpack.i.l.bf16 %v7209_v51 }
0x1d52   : > { %v7234_v17 = vpop.permute.xlu2 %7233 }
0x1d53   : > { %v7236_v18 = vunpack.i.h.bf16 %v7234_v17  ;;  %v7235_v19 = vunpack.i.l.bf16 %v7234_v17  ;;  %v4243_v17 = vld [vmem:[%s10241_s2 + $0x548] sm:$0xff] }
0x1d61   : > { %v7204_v27 = vpop.permute.xlu1 %7203  ;;  %v7214_v57 = vpop.permute.xlu0 %7213 }
0x1d62   : > { %v7206_v45 = vunpack.i.h.bf16 %v7204_v27  ;;  %v7205_v43 = vunpack.i.l.bf16 %v7204_v27  ;;  %v7216_v60 = vunpack.i.h.bf16 %v7214_v57  ;;  %v7215_v0 = vunpack.i.l.bf16 %v7214_v57 }
0x1d64   : > { %v4308_v52 = vsel %vm482_vm0, %v7206_v45, %v4228_v47  ;;  %v4309_v53 = vsel %vm482_vm0, %v7205_v43, %v4229_v12 }
0x1d65   : > { %v4312_v32 = vsel %vm485_vm1, %v4308_v52, %v7211_v58  ;;  %v4313_v59 = vsel %vm485_vm1, %v4309_v53, %v7210_v35 }
0x1d66   : > { %v4316_v2 = vsel %vm3857_vm15, %v4312_v32, %v7216_v60  ;;  %v4317_v3 = vsel %vm3857_vm15, %v4313_v59, %v7215_v0 }
0x1d69   : > { %v7224_v54 = vpop.permute.xlu1 %7223  ;;  %v7219_v4 = vpop.permute.xlu0 %7218 }
0x1d6a   : > { %v7226_v8 = vunpack.i.h.bf16 %v7224_v54  ;;  %v7225_v1 = vunpack.i.l.bf16 %v7224_v54  ;;  %v7221_v21 = vunpack.i.h.bf16 %v7219_v4  ;;  %v7220_v11 = vunpack.i.l.bf16 %v7219_v4  ;;  %v4233_v4 = vld [vmem:[%s10241_s2 + $0x4f8] sm:$0xff] }
0x1d6c   : > { %v9381_v15 = vsel %vm3862_vm2, %v4316_v2, %v7226_v8  ;;  %v9384_v22 = vsel %vm3862_vm2, %v4317_v3, %v7225_v1  ;;  %v4310_v33 = vsel %vm485_vm1, %v4306_v46, %v7221_v21  ;;  %v4311_v26 = vsel %vm485_vm1, %v4307_v34, %v7220_v11  ;;  %v4231_v2 = vld [vmem:[%s10241_s2 + $0x4e8] sm:$0xff]  ;;  %v4230_v3 = vld [vmem:[%s10241_s2 + $0x4e0] sm:$0xff]  ;;  %v4241_v21 = vld [vmem:[%s10241_s2 + $0x538] sm:$0xff] }
0x1d6d   : > { %v7247_v36 = vpack.i.bf16 %v9381_v15, %v9384_v22  ;;  %v4240_v11 = vld [vmem:[%s10241_s2 + $0x530] sm:$0xff]  ;;  %v4245_v46 = vld [vmem:[%s10241_s2 + $0x558] sm:$0xff] }
0x1d6e   : > { %v4244_v34 = vld [vmem:[%s10241_s2 + $0x550] sm:$0xff] }
0x1d6f   : > { %7248 = vrot.lane.b32.xlu2 %v7247_v36, %s7542_s26  ;;  %7238 = vrot.lane.b32.xlu0 %v7247_v36, %s10264_s14 }
0x1d71   : > { %v7229_v38 = vpop.permute.xlu1 %7228 }
0x1d72   : > { %v7231_v31 = vunpack.i.h.bf16 %v7229_v38  ;;  %v7230_v63 = vunpack.i.l.bf16 %v7229_v38  ;;  %v4242_v38 = vld [vmem:[%s10241_s2 + $0x540] sm:$0xff] }
0x1d74   : > { %v4314_v23 = vsel %vm3857_vm15, %v4310_v33, %v7231_v31  ;;  %v4315_v24 = vsel %vm3857_vm15, %v4311_v26, %v7230_v63  ;;  %v4642_v31 = vld [vmem:[%s10241_s2 + $0x660] sm:$0xff]  ;;  %v4643_v63 = vld [vmem:[%s10241_s2 + $0x670] sm:$0xff]  ;;  %vm10289_vm15 = vcmask 64512  }
0x1d75   : > { %v9397_v30 = vsel %vm3862_vm2, %v4314_v23, %v7236_v18  ;;  %v9400_v61 = vsel %vm3862_vm2, %v4315_v24, %v7235_v19  ;;  %v4644_v18 = vld [vmem:[%s10241_s2 + $0x680] sm:$0xff]  ;;  %v4645_v19 = vld [vmem:[%s10241_s2 + $0x690] sm:$0xff]  ;;  %vm10290_vm2 = vmmov %vm10289_vm15 }
0x1d76   : > { %v7242_v20 = vpack.i.bf16 %v9397_v30, %v9400_v61  ;;  %v4646_v33 = vld [vmem:[%s10241_s2 + $0x6a0] sm:$0xff]  ;;  %v4647_v26 = vld [vmem:[%s10241_s2 + $0x6b0] sm:$0xff]  ;;  %vm10291_vm5 = vmmov %vm10290_vm2 }
0x1d77   : > { %v4648_v23 = vld [vmem:[%s10241_s2 + $0x6c0] sm:$0xff]  ;;  %vm10292_vm6 = vmmov %vm10290_vm2 }
0x1d78   : > { %7243 = vrot.lane.b32.xlu1 %v7242_v20, %s10264_s14  ;;  %7263 = vrot.lane.b32.xlu2 %v7242_v20, %s10262_s15  ;;  %vm10293_vm9 = vmmov %vm10290_vm2 }
0x1d79   : > { %7253 = vrot.lane.b32.xlu0 %v7242_v20, %s7542_s26  ;;  %vm10294_vm14 = vmmov %vm10290_vm2 }
0x1d7a   : > { %vm10295_vm3 = vmmov %vm10290_vm2 }
0x1d7b   : > { %vm10296_vm13 = vmmov %vm10290_vm2 }
0x1d80   : > { %7258 = vrot.lane.b32.xlu1 %v7247_v36, %s10262_s15  ;;  %4396 = vperm.xlu2 %6474, %v4250_v39  }
0x1d81   : > { %7268 = vrot.lane.b32.xlu0 %v7247_v36, %s10263_s20  ;;  %v4234_v36 = vld [vmem:[%s10241_s2 + $0x500] sm:$0xff] }
0x1d88   : > { %7273 = vrot.lane.b32.xlu1 %v7242_v20, %s10263_s20  ;;  %4411 = vperm.xlu2 %6474, %v4253_v44  }
0x1d89   : > { %4401 = vperm.xlu0 %6475, %v4251_v55  }
0x1d90   : > { %4406 = vperm.xlu1 %6476, %v4252_v56   ;;  %4386 = vperm.xlu2 %6474, %v4248_v28  }
0x1d91   : > { %4376 = vperm.xlu0 %6475, %v4246_v42  }
0x1d98   : > { %4381 = vperm.xlu1 %6476, %v4247_v62  }
0x1d99   : > { %4391 = vperm.xlu0 %6475, %v4249_v6  }
0x1dc9   : > { %v7249_v5 = vpop.permute.xlu2 %7248 }
0x1dca   : > { %v7250_v27 = vunpack.i.l.bf16 %v7249_v5  ;;  %v7251_v57 = vunpack.i.h.bf16 %v7249_v5 }
0x1dd2   : > { %v7264_v32 = vpop.permute.xlu2 %7263 }
0x1dd3   : > { %v7265_v0 = vunpack.i.l.bf16 %v7264_v32  ;;  %v7266_v8 = vunpack.i.h.bf16 %v7264_v32 }
0x1dda   : > { %v4397_v20 = vpop.permute.xlu2 %4396 }
0x1de1   : > { %v7239_v7 = vpop.permute.xlu0 %7238 }
0x1de2   : > { %v7240_v49 = vunpack.i.l.bf16 %v7239_v7  ;;  %v7241_v48 = vunpack.i.h.bf16 %v7239_v7  ;;  %v4412_v62 = vpop.permute.xlu2 %4411 }
0x1de4   : > { %4438 = vmatpush.msra.mxu1 %v7240_v49 }
0x1de6   : > { %4439 = vmatpush.msra.mxu1 %v7241_v48 }
0x1dea   : > { %v7244_v50 = vpop.permute.xlu1 %7243 }
0x1deb   : > { %v7245_v47 = vunpack.i.l.bf16 %v7244_v50  ;;  %v7254_v12 = vpop.permute.xlu0 %7253  ;;  %v7246_v16 = vunpack.i.h.bf16 %v7244_v50 }
0x1dec   : > { %v7255_v43 = vunpack.i.l.bf16 %v7254_v12  ;;  %v7256_v53 = vunpack.i.h.bf16 %v7254_v12 }
0x1ded   : > { %4440 = vmatpush.msra.mxu1 %v7245_v47  ;;  %v4387_v47 = vpop.permute.xlu2 %4386 }
0x1def   : > { %4441 = vmatpush.msra.mxu1 %v7246_v16 }
0x1df1   : > { %4442 = vmatpush.msra.mxu1 %v7250_v27 }
0x1df2   : > { %v7259_v45 = vpop.permute.xlu1 %7258 }
0x1df3   : > { %v7269_v51 = vpop.permute.xlu0 %7268  ;;  %4443 = vmatpush.msra.mxu1 %v7251_v57  ;;  %v7260_v35 = vunpack.i.l.bf16 %v7259_v45  ;;  %v7261_v59 = vunpack.i.h.bf16 %v7259_v45 }
0x1df4   : > { %v7270_v52 = vunpack.i.l.bf16 %v7269_v51  ;;  %v7271_v58 = vunpack.i.h.bf16 %v7269_v51 }
0x1df5   : > { %4444 = vmatpush.msra.mxu1 %v7255_v43 }
0x1df6   : > { %4491 = vmatpush.msra.mxu0 %v7270_v52 }
0x1df7   : > { %4445 = vmatpush.msra.mxu1 %v7256_v53 }
0x1df8   : > { %4492 = vmatpush.msra.mxu0 %v7271_v58 }
0x1df9   : > { %4446 = vmatpush.msra.mxu1 %v7260_v35 }
0x1dfa   : > { %v7274_v60 = vpop.permute.xlu1 %7273 }
0x1dfb   : > { %v7275_v54 = vunpack.i.l.bf16 %v7274_v60  ;;  %4447 = vmatpush.msra.mxu1 %v7261_v59  ;;  %v7276_v1 = vunpack.i.h.bf16 %v7274_v60  ;;  %v4402_v24 = vpop.permute.xlu0 %4401 }
0x1dfd   : > { %4448 = vmatpush.msra.mxu1 %v7265_v0  ;;  %4493 = vmatpush.msra.mxu0 %v7275_v54 }
0x1dff   : > { %4449 = vmatpush.msra.mxu1 %v7266_v8  ;;  %4494 = vmatpush.msra.mxu0 %v7276_v1 }
0x1e00   : > { %6304 = vmatmul.msk.f32.vlgmr.msra.gmra.mxu0 %vm932_vm12, %v4231_v2 }
0x1e01   : > { %4450 = vmatpush.msra.mxu1 %v9384_v22  ;;  %v4235_v22 = vld [vmem:[%s10241_s2 + $0x508] sm:$0xff] }
0x1e02   : > { %v4407_v39 = vpop.permute.xlu1 %4406 }
0x1e03   : > { %4451 = vmatpush.msra.mxu1 %v9381_v15  ;;  %v4232_v15 = vld [vmem:[%s10241_s2 + $0x4f0] sm:$0xff]  ;;  %v4377_v44 = vpop.permute.xlu0 %4376 }
0x1e05   : > { %4452 = vmatpush.msra.mxu1 %v9400_v61 }
0x1e07   : > { %4453 = vmatpush.msra.mxu1 %v9397_v30  ;;  %v4649_v30 = vld [vmem:[%s10241_s2 + $0x6d0] sm:$0xff] }
0x1e08   : > { %4454 = vmatmul.f32.vlgmr.msra.gmra.mxu1 %v4230_v3  ;;  %6305 = vmatmul.msk.f32.gmra.mxu0 %vm932_vm12, %v4233_v4 }
0x1e09   : > { %4696 = vmatpush.msrb.mxu1 %v9195_v25 }
0x1e0a   : > { %v4382_v6 = vpop.permute.xlu1 %4381 }
0x1e0b   : > { %4697 = vmatpush.msrb.mxu1 %v9178_v41  ;;  %v4392_v57 = vpop.permute.xlu0 %4391 }
0x1e0d   : > { %5586 = vmatpush.msra.mxu1 %v9195_v25  ;;  %v4237_v25 = vld [vmem:[%s10241_s2 + $0x518] sm:$0xff] }
0x1e0f   : > { %5587 = vmatpush.msra.mxu1 %v9178_v41  ;;  %v4239_v41 = vld [vmem:[%s10241_s2 + $0x528] sm:$0xff] }
0x1e10   : > { %4457 = vmatmul.f32.gmra.mxu1 %v4232_v15  ;;  %6306 = vmatmul.msk.f32.gmra.mxu0 %vm932_vm12, %v4235_v22 }
0x1e18   : > { %4460 = vmatmul.f32.gmra.mxu1 %v4234_v36  ;;  %6307 = vmatmul.msk.f32.gmra.mxu0 %vm932_vm12, %v4237_v25 }
0x1e20   : > { %4463 = vmatmul.f32.gmra.mxu1 %v4236_v9  ;;  %6308 = vmatmul.msk.f32.gmra.mxu0 %vm932_vm12, %v4239_v41 }
0x1e28   : > { %4466 = vmatmul.f32.gmra.mxu1 %v4238_v13  ;;  %6309 = vmatmul.msk.f32.gmra.mxu0 %vm932_vm12, %v4241_v21 }
0x1e30   : > { %4469 = vmatmul.f32.gmra.mxu1 %v4240_v11  ;;  %6310 = vmatmul.msk.f32.gmra.mxu0 %vm932_vm12, %v4243_v17  ;;  %v4656_v11 = vld [vmem:[%s10242_s3 + $0x360] sm:$0xff] }
0x1e38   : > { %4472 = vmatmul.f32.gmra.mxu1 %v4242_v38  ;;  %6311 = vmatmul.msk.f32.gmra.mxu0 %vm932_vm12, %v4245_v46  ;;  %v4657_v46 = vld [vmem:[%s10242_s3 + $0x368] sm:$0xff] }
0x1e40   : > { %4475 = vmatmul.f32.gmra.mxu1 %v4244_v34 }
0x1e48   : > { %6324 = vmatmul.msk.f32.vlgmr.msrb.gmra.mxu1 %vm678_vm8, %v4642_v31 }
0x1e50   : > { %6325 = vmatmul.msk.f32.gmra.mxu1 %vm678_vm8, %v4643_v63 }
0x1e58   : > { %6326 = vmatmul.msk.f32.gmra.mxu1 %vm678_vm8, %v4644_v18 }
0x1e60   : > { %6327 = vmatmul.msk.f32.gmra.mxu1 %vm678_vm8, %v4645_v19 }
0x1e68   : > { %6328 = vmatmul.msk.f32.gmra.mxu1 %vm678_vm8, %v4646_v33 }
0x1e70   : > { %6329 = vmatmul.msk.f32.gmra.mxu1 %vm678_vm8, %v4647_v26 }
0x1e78   : > { %6330 = vmatmul.msk.f32.gmra.mxu1 %vm678_vm8, %v4648_v23 }
0x1e7d   : > { %v4496_v61 = vpop.f32.mrf.mxu0 }
0x1e80   : > { %6331 = vmatmul.msk.f32.gmra.mxu1 %vm678_vm8, %v4649_v30 }
0x1e85   : > { %v4455_v55 = vpop.f32.mrf.mxu1  ;;  %v4499_v56 = vpop.f32.mrf.mxu0 }
0x1e86   : > { %v4456_v28 = vadd.f32 %v4455_v55, %v4377_v44 }
0x1e88   : > { %v4497_v42 = vadd.f32 %v4496_v61, %v4456_v28 }
0x1e8d   : > { %v4458_v7 = vpop.f32.mrf.mxu1  ;;  %v4502_v49 = vpop.f32.mrf.mxu0 }
0x1e8e   : > { %v4459_v48 = vadd.f32 %v4458_v7, %v4382_v6  ;;  %v4652_v7 = vld [vmem:[%s10242_s3 + $0x340] sm:$0xff] }
0x1e90   : > { %v4500_v50 = vadd.f32 %v4499_v56, %v4459_v48  ;;  %v4653_v48 = vld [vmem:[%s10242_s3 + $0x348] sm:$0xff] }
0x1e95   : > { %v4461_v12 = vpop.f32.mrf.mxu1  ;;  %v4505_v5 = vpop.f32.mrf.mxu0 }
0x1e96   : > { %v4462_v16 = vadd.f32 %v4461_v12, %v4387_v47 }
0x1e98   : > { %v4503_v27 = vadd.f32 %v4502_v49, %v4462_v16 }
0x1e9d   : > { %v4464_v45 = vpop.f32.mrf.mxu1  ;;  %v4508_v51 = vpop.f32.mrf.mxu0 }
0x1e9e   : > { %v4465_v43 = vadd.f32 %v4464_v45, %v4392_v57 }
0x1ea0   : > { %v4506_v52 = vadd.f32 %v4505_v5, %v4465_v43 }
0x1ea5   : > { %v4467_v53 = vpop.f32.mrf.mxu1  ;;  %v4511_v32 = vpop.f32.mrf.mxu0 }
0x1ea6   : > { %v4468_v58 = vadd.f32 %v4467_v53, %v4397_v20 }
0x1ea8   : > { %v4509_v35 = vadd.f32 %v4508_v51, %v4468_v58 }
0x1eaa   : > { %6312 = vmatmul.msk.f32.vlgmr.msrb.gmra.mxu2 %vm10289_vm15, %v4509_v35 }
0x1ead   : > { %v4470_v59 = vpop.f32.mrf.mxu1  ;;  %v4514_v54 = vpop.f32.mrf.mxu0 }
0x1eae   : > { %v4471_v60 = vadd.f32 %v4470_v59, %v4402_v24 }
0x1eb0   : > { %v4512_v0 = vadd.f32 %v4511_v32, %v4471_v60 }
0x1eb2   : > { %6313 = vmatmul.msk.f32.gmra.mxu2 %vm10290_vm2, %v4512_v0 }
0x1eb5   : > { %v4473_v8 = vpop.f32.mrf.mxu1  ;;  %v4517_v4 = vpop.f32.mrf.mxu0 }
0x1eb6   : > { %v4474_v1 = vadd.f32 %v4473_v8, %v4407_v39 }
0x1eb8   : > { %v4515_v2 = vadd.f32 %v4514_v54, %v4474_v1 }
0x1eba   : > { %6314 = vmatmul.msk.f32.gmra.mxu2 %vm10291_vm5, %v4515_v2 }
0x1ebd   : > { %v4476_v3 = vpop.f32.mrf.mxu1 }
0x1ebe   : > { %v4477_v15 = vadd.f32 %v4476_v3, %v4412_v62  ;;  %v4651_v3 = vld [vmem:[%s10242_s3 + $0x338] sm:$0xff] }
0x1ec0   : > { %v4518_v22 = vadd.f32 %v4517_v4, %v4477_v15 }
0x1ec2   : > { %6315 = vmatmul.msk.f32.gmra.mxu2 %vm10292_vm6, %v4518_v22  ;;  %v4650_v22 = vld [vmem:[%s10242_s3 + $0x330] sm:$0xff] }
0x1ec5   : > { %v9534_v36 = vpop.f32.mrf.mxu1 }
0x1eca   : > { %6316 = vmatmul.msk.f32.vlgmr.msra.gmra.mxu2 %vm10293_vm9, %v4497_v42  ;;  %v4655_v42 = vld [vmem:[%s10242_s3 + $0x358] sm:$0xff] }
0x1ecd   : > { %v9537_v25 = vpop.f32.mrf.mxu1 }
0x1ece   : > { %v4703_v15 = vadd.f32 %v9537_v25, %v4651_v3  ;;  %v5089_v25 = vld [vmem:[%s10241_s2 + $0x6e0] sm:$0xff] }
0x1ecf   : > { %6336 = vmatmul.msk.f32.vlgmr.msra.gmra.mxu3 %vm678_vm8, %v5089_v25 }
0x1ed2   : > { %6317 = vmatmul.msk.f32.gmra.mxu2 %vm10294_vm14, %v4500_v50 }
0x1ed5   : > { %v4705_v9 = vpop.f32.mrf.mxu1 }
0x1ed6   : > { %v4706_v49 = vadd.f32 %v4705_v9, %v4652_v7  ;;  %v4700_v9 = vadd.f32 %v9534_v36, %v4650_v22 }
0x1eda   : > { %6318 = vmatmul.msk.f32.gmra.mxu2 %vm10295_vm3, %v4503_v27 }
0x1edd   : > { %v4708_v41 = vpop.f32.mrf.mxu1 }
0x1ede   : > { %v4709_v50 = vadd.f32 %v4708_v41, %v4653_v48  ;;  %v4654_v41 = vld [vmem:[%s10242_s3 + $0x350] sm:$0xff] }
0x1ee2   : > { %6319 = vmatmul.msk.f32.gmra.mxu2 %vm10296_vm13, %v4506_v52 }
0x1ee5   : > { %v9542_v13 = vpop.f32.mrf.mxu1 }
0x1eed   : > { %v4714_v21 = vpop.f32.mrf.mxu1 }
0x1eee   : > { %v4715_v6 = vadd.f32 %v4714_v21, %v4655_v42  ;;  %v4712_v21 = vadd.f32 %v9542_v13, %v4654_v41 }
0x1ef5   : > { %v4717_v17 = vpop.f32.mrf.mxu1 }
0x1ef6   : > { %v4718_v38 = vadd.f32 %v4717_v17, %v4656_v11 }
0x1ef8   : > { %4823 = vperm.xlu0 %6475, %v4718_v38  }
0x1efd   : > { %v4720_v34 = vpop.f32.mrf.mxu1 }
0x1efe   : > { %v4721_v31 = vadd.f32 %v4720_v34, %v4657_v46  ;;  %v5090_v46 = vld [vmem:[%s10241_s2 + $0x6f0] sm:$0xff] }
0x1eff   : > { %6337 = vmatmul.msk.f32.gmra.mxu3 %vm678_vm8, %v5090_v46 }
0x1f00   : > { %4828 = vperm.xlu2 %6474, %v4721_v31  }
0x1f2d   : > { %v4551_v63 = vpop.f32.mrf.mxu2 }
0x1f35   : > { %v4554_v18 = vpop.f32.mrf.mxu2 }
0x1f3d   : > { %v4557_v19 = vpop.f32.mrf.mxu2 }
0x1f45   : > { %v4560_v33 = vpop.f32.mrf.mxu2 }
0x1f4d   : > { %v4592_v26 = vpop.f32.mrf.mxu2 }
0x1f4e   : > { %v4593_v23 = vadd.f32 %v4592_v26, %v4551_v63 }
0x1f50   : > { %v4723_v24 = vsel %vm678_vm8, %v4593_v23, 0.0 }
0x1f51   : > { %4724 = vadd.xlane.f32.xlu2 %v4723_v24 }
0x1f55   : > { %v4595_v30 = vpop.f32.mrf.mxu2 }
0x1f56   : > { %v4596_v61 = vadd.f32 %v4595_v30, %v4554_v18 }
0x1f58   : > { %v4726_v20 = vsel %vm678_vm8, %v4596_v61, 0.0 }
0x1f59   : > { %4727 = vadd.xlane.f32.xlu0 %v4726_v20 }
0x1f5a   : > { %v9563_v47 = vpop.permute.xlu2 %4828 }
0x1f5d   : > { %v4598_v39 = vpop.f32.mrf.mxu2 }
0x1f5e   : > { %v4599_v44 = vadd.f32 %v4598_v39, %v4557_v19  ;;  %v5091_v19 = vld [vmem:[%s10241_s2 + $0x700] sm:$0xff] }
0x1f5f   : > { %6338 = vmatmul.msk.f32.gmra.mxu3 %vm678_vm8, %v5091_v19 }
0x1f60   : > { %v4729_v55 = vsel %vm678_vm8, %v4599_v44, 0.0 }
0x1f61   : > { %4730 = vadd.xlane.f32.xlu2 %v4729_v55  ;;  %v9630_v55 = vpop.f32.mrf.mxu3 }
0x1f65   : > { %v4601_v56 = vpop.f32.mrf.mxu2 }
0x1f66   : > { %v4602_v28 = vadd.f32 %v4601_v56, %v4560_v33 }
0x1f68   : > { %v4732_v62 = vsel %vm678_vm8, %v4602_v28, 0.0 }
0x1f69   : > { %4733 = vadd.xlane.f32.xlu1 %v4732_v62 }
0x1f6a   : > { %v9565_v12 = vpop.permute.xlu0 %4823 }
0x1f6d   : > { %4818 = vperm.xlu0 %6475, %v4715_v6  }
0x1f79   : > { %4847 = vperm.xlu2 %6474, %v4706_v49  }
0x1f82   : > { %4852 = vperm.xlu1 %6476, %v4709_v50   ;;  %v5093_v50 = vld [vmem:[%s10241_s2 + $0x720] sm:$0xff] }
0x1fc4   : > { %v4725_v5 = vpop.xlane.xlu2 %4724 }
0x1fc5   : > { %v4735_v16 = vmul.f32 %v4725_v5, %v7785_v10 }
0x1fc7   : > { %v9568_v27 = vsub.f32 %v4593_v23, %v4735_v16 }
0x1fc9   : > { %v4743_v57 = vmul.f32 %v9568_v27, %v9568_v27 }
0x1fcb   : > { %v4747_v45 = vsel %vm678_vm8, %v4743_v57, 0.0 }
0x1fcc   : > { %v4728_v43 = vpop.xlane.xlu0 %4727  ;;  %4748 = vadd.xlane.f32.xlu1 %v4747_v45 }
0x1fcd   : > { %v4736_v51 = vmul.f32 %v4728_v43, %v7785_v10  ;;  %v4633_v43 = vpop.f32.mrf.mxu3 }
0x1fcf   : > { %v9574_v52 = vsub.f32 %v4596_v61, %v4736_v51 }
0x1fd1   : > { %v4744_v53 = vmul.f32 %v9574_v52, %v9574_v52 }
0x1fd3   : > { %v4750_v58 = vsel %vm678_vm8, %v4744_v53, 0.0 }
0x1fd4   : > { %4751 = vadd.xlane.f32.xlu0 %v4750_v58  ;;  %v4731_v35 = vpop.xlane.xlu2 %4730 }
0x1fd5   : > { %v4737_v32 = vmul.f32 %v4731_v35, %v7785_v10 }
0x1fd7   : > { %v9580_v59 = vsub.f32 %v4599_v44, %v4737_v32  ;;  %v5092_v44 = vld [vmem:[%s10241_s2 + $0x710] sm:$0xff] }
0x1fd8   : > { %6339 = vmatmul.msk.f32.gmra.mxu3 %vm678_vm8, %v5092_v44 }
0x1fd9   : > { %v4745_v60 = vmul.f32 %v9580_v59, %v9580_v59 }
0x1fdb   : > { %v4753_v0 = vsel %vm678_vm8, %v4745_v60, 0.0 }
0x1fdc   : > { %v4734_v54 = vpop.xlane.xlu1 %4733  ;;  %4754 = vadd.xlane.f32.xlu2 %v4753_v0  ;;  %v9615_v34 = vpop.permute.xlu2 %4847  ;;  %v5094_v0 = vld [vmem:[%s10241_s2 + $0x730] sm:$0xff] }
0x1fdd   : > { %v4738_v8 = vmul.f32 %v4734_v54, %v7785_v10 }
0x1fdf   : > { %v9586_v1 = vsub.f32 %v4602_v28, %v4738_v8  ;;  %v9608_v17 = vpop.permute.xlu0 %4818 }
0x1fe0   : > { %6340 = vmatmul.msk.f32.gmra.mxu3 %vm678_vm8, %v5093_v50 }
0x1fe1   : > { %v4746_v2 = vmul.f32 %v9586_v1, %v9586_v1 }
0x1fe3   : > { %v4756_v4 = vsel %vm678_vm8, %v4746_v2, 0.0 }
0x1fe4   : > { %4757 = vadd.xlane.f32.xlu1 %v4756_v4 }
0x1fe8   : > { %4842 = vperm.xlu0 %6475, %v4703_v15   ;;  %6341 = vmatmul.msk.f32.gmra.mxu3 %vm678_vm8, %v5094_v0 }
0x1ff4   : > { %4837 = vperm.xlu2 %6474, %v4700_v9   ;;  %v9603_v11 = vpop.permute.xlu1 %4852 }
0x1ffd   : > { %4813 = vperm.xlu1 %6476, %v4712_v21   ;;  %v4636_v21 = vpop.f32.mrf.mxu3 }
0x203f   : > { %v4749_v38 = vpop.xlane.xlu1 %4748 }
0x2040   : > { %v4759_v36 = vmul.f32 %v4749_v38, %v7785_v10 }
0x2042   : > { %v4763_v63 = vadd.f32 1e-05, %v4759_v36 }
0x2044   : > { %vm4773_vm3 = vweird.f32 %v4763_v63 }
0x2047   : > { %v4752_v13 = vpop.xlane.xlu0 %4751 }
0x2048   : > { %v4760_v31 = vmul.f32 %v4752_v13, %v7785_v10 }
0x204a   : > { %v4764_v18 = vadd.f32 1e-05, %v4760_v31 }
0x204c   : > { %7501 = vrsqrt.f32 %v4764_v18  ;;  %vm4783_vm15 = vweird.f32 %v4764_v18 }
0x204d   : > { %7503 = vrsqrt.f32 %v4763_v63 }
0x204f   : > { %v4755_v33 = vpop.xlane.xlu2 %4754 }
0x2050   : > { %v4761_v26 = vmul.f32 %v4755_v33, %v7785_v10 }
0x2052   : > { %v7502_v23 = vpop.eup %7501  ;;  %v4765_v24 = vadd.f32 1e-05, %v4761_v26 }
0x2053   : > { %v9624_v30 = vpop.eup %7503  ;;  %v4778_v61 = vmul.f32 %v7502_v23, %v4764_v18  ;;  %vm4784_vm4 = vweird.f32 %v7502_v23 }
0x2054   : > { %7505 = vrsqrt.f32 %v4765_v24  ;;  %v4768_v39 = vmul.f32 %v9624_v30, %v4763_v63  ;;  %vm4785_vm5 = vmor %vm4783_vm15, %vm4784_vm4  ;;  %vm4793_vm6 = vweird.f32 %v4765_v24  ;;  %vm4774_vm14 = vweird.f32 %v9624_v30 }
0x2055   : > { %v4779_v20 = vmul.f32 %v7502_v23, %v4778_v61  ;;  %vm4775_vm4 = vmor %vm4773_vm3, %vm4774_vm14 }
0x2056   : > { %v4769_v6 = vmul.f32 %v9624_v30, %v4768_v39 }
0x2057   : > { %v4780_v56 = vmul.f32 0.5, %v4779_v20  ;;  %v4758_v28 = vpop.xlane.xlu1 %4757  ;;  %v4838_v19 = vpop.permute.xlu2 %4837 }
0x2058   : > { %v4762_v42 = vmul.f32 %v4758_v28, %v7785_v10  ;;  %v4770_v16 = vmul.f32 0.5, %v4769_v6 }
0x2059   : > { %v4781_v49 = vsub.f32 1.5, %v4780_v56 }
0x205a   : > { %v7506_v62 = vpop.eup %7505  ;;  %v4766_v7 = vadd.f32 1e-05, %v4762_v42  ;;  %v4771_v58 = vsub.f32 1.5, %v4770_v16  ;;  %v4843_v36 = vpop.permute.xlu0 %4842 }
0x205b   : > { %v4788_v48 = vmul.f32 %v7506_v62, %v4765_v24  ;;  %v4782_v45 = vmul.f32 %v7502_v23, %v4781_v49  ;;  %vm4794_vm2 = vweird.f32 %v7506_v62 }
0x205c   : > { %7507 = vrsqrt.f32 %v4766_v7  ;;  %vm4795_vm9 = vmor %vm4793_vm6, %vm4794_vm2  ;;  %v4772_v15 = vmul.f32 %v9624_v30, %v4771_v58  ;;  %vm4803_vm15 = vweird.f32 %v4766_v7 }
0x205d   : > { %v4789_v5 = vmul.f32 %v7506_v62, %v4788_v48  ;;  %v4786_v60 = vsel %vm4785_vm5, %v7502_v23, %v4782_v45 }
0x205e   : > { %v4808_v3 = vmul.f32 %v4786_v60, %v9574_v52  ;;  %v4776_v52 = vsel %vm4775_vm4, %v9624_v30, %v4772_v15 }
0x205f   : > { %v4790_v57 = vmul.f32 0.5, %v4789_v5 }
0x2060   : > { %v4832_v41 = vmul.f32 %v9608_v17, %v4808_v3  ;;  %v4807_v17 = vmul.f32 %v4776_v52, %v9568_v27 }
0x2061   : > { %v4791_v51 = vsub.f32 1.5, %v4790_v57 }
0x2062   : > { %v7508_v53 = vpop.eup %7507 }
0x2063   : > { %v4792_v35 = vmul.f32 %v7506_v62, %v4791_v51  ;;  %v4798_v32 = vmul.f32 %v7508_v53, %v4766_v7  ;;  %vm4804_vm13 = vweird.f32 %v7508_v53 }
0x2064   : > { %vm4805_vm2 = vmor %vm4803_vm15, %vm4804_vm13 }
0x2065   : > { %v4796_v54 = vsel %vm4795_vm9, %v7506_v62, %v4792_v35  ;;  %v4799_v8 = vmul.f32 %v7508_v53, %v4798_v32 }
0x2066   : > { %v4809_v2 = vmul.f32 %v4796_v54, %v9580_v59  ;;  %v5095_v59 = vld [vmem:[%s10241_s2 + $0x740] sm:$0xff] }
0x2067   : > { %v4800_v4 = vmul.f32 0.5, %v4799_v8  ;;  %6342 = vmatmul.msk.f32.gmra.mxu3 %vm678_vm8, %v5095_v59 }
0x2068   : > { %v4833_v9 = vmul.f32 %v9565_v12, %v4809_v2  ;;  %v4856_v12 = vadd.f32 %v4843_v36, %v4832_v41 }
0x2069   : > { %v4801_v22 = vsub.f32 1.5, %v4800_v4 }
0x206a   : > { %v4857_v46 = vadd.f32 %v9615_v34, %v4833_v9  ;;  %v4860_v23 = vmax.f32 %v4856_v12, 0.0  ;;  %v4639_v34 = vpop.f32.mrf.mxu3 }
0x206b   : > { %v4802_v25 = vmul.f32 %v7508_v53, %v4801_v22 }
0x206c   : > { %v4861_v33 = vmax.f32 %v4857_v46, 0.0  ;;  %v9666_v39 = vadd.f32 %v4860_v23, %v4633_v43 }
0x206d   : > { %v4806_v38 = vsel %vm4805_vm2, %v7508_v53, %v4802_v25 }
0x206e   : > { %v4810_v13 = vmul.f32 %v4806_v38, %v9586_v1  ;;  %v5096_v1 = vld [vmem:[%s10241_s2 + $0x750] sm:$0xff]  ;;  %v9662_v27 = vadd.f32 %v4861_v33, %v4636_v21 }
0x206f   : > { %v4814_v31 = vpop.permute.xlu1 %4813  ;;  %6343 = vmatmul.msk.f32.gmra.mxu3 %vm678_vm8, %v5096_v1  ;;  %v4877_v1 = vld [vmem:[%s10242_s3 + $0x2c0] sm:$0xff] }
0x2070   : > { %v4834_v63 = vmul.f32 %v9563_v47, %v4810_v13  ;;  %v4831_v18 = vmul.f32 %v4814_v31, %v4807_v17 }
0x2072   : > { %v4858_v26 = vadd.f32 %v9603_v11, %v4834_v63  ;;  %v4855_v24 = vadd.f32 %v4838_v19, %v4831_v18 }
0x2074   : > { %v4862_v30 = vmax.f32 %v4858_v26, 0.0  ;;  %v4859_v61 = vmax.f32 %v4855_v24, 0.0  ;;  %v4878_v24 = vld [vmem:[%s10242_s3 + $0x2c8] sm:$0xff] }
0x2076   : > { %v9664_v20 = vadd.f32 %v4862_v30, %v4639_v34  ;;  %v9669_v47 = vadd.f32 %v4859_v61, %v9630_v55  ;;  %v9684_v55 = vpop.f32.mrf.mxu3  ;;  %v4875_v61 = vld [vmem:[%s10242_s3 + $0x2b0] sm:$0xff]  ;;  %v5103_v34 = vld [vmem:[%s10242_s3 + $0x3a0] sm:$0xff] }
0x2078   : > { %v7292_v11 = vpack.i.bf16 %v9662_v27, %v9664_v20  ;;  %v7277_v44 = vpack.i.bf16 %v9669_v47, %v9666_v39 }
0x207a   : > { %7293 = vrot.lane.b32.xlu2 %v7292_v11, %s10277_s21  ;;  %7283 = vrot.lane.b32.xlu1 %v7292_v11, %s7542_s26 }
0x207b   : > { %7278 = vrot.lane.b32.xlu0 %v7277_v44, %s7542_s26 }
0x207e   : > { %v9686_v56 = vpop.f32.mrf.mxu3 }
0x2082   : > { %7303 = vrot.lane.b32.xlu1 %v7292_v11, %s7541_s25  ;;  %7298 = vrot.lane.b32.xlu2 %v7277_v44, %s7540_s24 }
0x2083   : > { %7288 = vrot.lane.b32.xlu0 %v7292_v11, %s7540_s24  ;;  %v5104_v11 = vld [vmem:[%s10242_s3 + $0x3a8] sm:$0xff] }
0x2086   : > { %v9688_v28 = vpop.f32.mrf.mxu3 }
0x208a   : > { %7308 = vrot.lane.b32.xlu1 %v7277_v44, %s10277_s21 }
0x208b   : > { %7313 = vrot.lane.b32.xlu0 %v7277_v44, %s7541_s25 }
0x208e   : > { %v9690_v6 = vpop.f32.mrf.mxu3 }
0x2096   : > { %v9698_v8 = vpop.f32.mrf.mxu3 }
0x209e   : > { %v9728_v23 = vpop.f32.mrf.mxu3 }
0x20d4   : > { %v7294_v7 = vpop.permute.xlu2 %7293 }
0x20d5   : > { %v7296_v16 = vunpack.i.h.bf16 %v7294_v7  ;;  %v7295_v57 = vunpack.i.l.bf16 %v7294_v7 }
0x20dc   : > { %v7299_v2 = vpop.permute.xlu2 %7298 }
0x20dd   : > { %v7301_v25 = vunpack.i.h.bf16 %v7299_v2  ;;  %v7300_v52 = vunpack.i.l.bf16 %v7299_v2 }
0x20ea   : > { %v5164_v30 = vpop.f32.mrf.mxu3 }
0x20ec   : > { %v7284_v42 = vpop.permute.xlu1 %7283 }
0x20ed   : > { %v7279_v62 = vpop.permute.xlu0 %7278  ;;  %v7286_v49 = vunpack.i.h.bf16 %v7284_v42  ;;  %v7285_v48 = vunpack.i.l.bf16 %v7284_v42  ;;  %v4876_v42 = vld [vmem:[%s10242_s3 + $0x2b8] sm:$0xff] }
0x20ee   : > { %v7281_v58 = vunpack.i.h.bf16 %v7279_v62  ;;  %v7280_v35 = vunpack.i.l.bf16 %v7279_v62  ;;  %v5165_v62 = vadd.f32 %v5164_v30, %v5103_v34 }
0x20ef   : > { %v4933_v51 = vsel %vm482_vm0, %v7286_v49, %v9662_v27  ;;  %v4934_v53 = vsel %vm482_vm0, %v7285_v48, %v9664_v20 }
0x20f0   : > { %v4931_v9 = vsel %vm482_vm0, %v7281_v58, %v9669_v47  ;;  %v4932_v41 = vsel %vm482_vm0, %v7280_v35, %v9666_v39 }
0x20f1   : > { %v4935_v13 = vsel %vm485_vm1, %v4931_v9, %v7301_v25  ;;  %v4936_v12 = vsel %vm485_vm1, %v4932_v41, %v7300_v52 }
0x20f2   : > { %v5167_v44 = vpop.f32.mrf.mxu3 }
0x20f3   : > { %v5168_v7 = vadd.f32 %v5167_v44, %v5104_v11 }
0x20f4   : > { %v7304_v50 = vpop.permute.xlu1 %7303 }
0x20f5   : > { %v7289_v5 = vpop.permute.xlu0 %7288  ;;  %v7306_v32 = vunpack.i.h.bf16 %v7304_v50  ;;  %v7305_v60 = vunpack.i.l.bf16 %v7304_v50 }
0x20f6   : > { %v7291_v45 = vunpack.i.h.bf16 %v7289_v5  ;;  %v7290_v43 = vunpack.i.l.bf16 %v7289_v5 }
0x20f8   : > { %v4937_v0 = vsel %vm485_vm1, %v4933_v51, %v7291_v45  ;;  %v4938_v54 = vsel %vm485_vm1, %v4934_v53, %v7290_v43 }
0x20f9   : > { %v4941_v3 = vsel %vm850_vm10, %v4937_v0, %v7296_v16  ;;  %v4942_v4 = vsel %vm850_vm10, %v4938_v54, %v7295_v57 }
0x20fa   : > { %v9703_v15 = vsel %vm855_vm11, %v4941_v3, %v7306_v32  ;;  %v9706_v22 = vsel %vm855_vm11, %v4942_v4, %v7305_v60 }
0x20fb   : > { %v7327_v21 = vpack.i.bf16 %v9703_v15, %v9706_v22 }
0x20fc   : > { %v7309_v59 = vpop.permute.xlu1 %7308 }
0x20fd   : > { %v7311_v38 = vunpack.i.h.bf16 %v7309_v59  ;;  %v7310_v36 = vunpack.i.l.bf16 %v7309_v59  ;;  %v7314_v46 = vpop.permute.xlu0 %7313  ;;  %7328 = vrot.lane.b32.xlu0 %v7327_v21, %s7542_s26  ;;  %7318 = vrot.lane.b32.xlu2 %v7327_v21, %s10264_s14  ;;  %v4868_v59 = vld [vmem:[%s10241_s2 + $0x568] sm:$0xff] }
0x20fe   : > { %v7316_v17 = vunpack.i.h.bf16 %v7314_v46  ;;  %v7315_v31 = vunpack.i.l.bf16 %v7314_v46  ;;  %v4871_v46 = vld [vmem:[%s10241_s2 + $0x580] sm:$0xff] }
0x20ff   : > { %v4939_v63 = vsel %vm850_vm10, %v4935_v13, %v7311_v38  ;;  %v4940_v18 = vsel %vm850_vm10, %v4936_v12, %v7310_v36  ;;  %v4867_v38 = vld [vmem:[%s10241_s2 + $0x560] sm:$0xff]  ;;  %v4870_v36 = vld [vmem:[%s10241_s2 + $0x578] sm:$0xff]  ;;  %v4873_v12 = vld [vmem:[%s10241_s2 + $0x590] sm:$0xff] }
0x2100   : > { %v9721_v19 = vsel %vm855_vm11, %v4939_v63, %v7316_v17  ;;  %v9724_v33 = vsel %vm855_vm11, %v4940_v18, %v7315_v31  ;;  %v4874_v13 = vld [vmem:[%s10241_s2 + $0x598] sm:$0xff] }
0x2101   : > { %v7322_v26 = vpack.i.bf16 %v9721_v19, %v9724_v33 }
0x2103   : > { %7323 = vrot.lane.b32.xlu1 %v7322_v26, %s10264_s14 }
0x2105   : > { %7338 = vrot.lane.b32.xlu0 %v7322_v26, %s10262_s15  ;;  %7333 = vrot.lane.b32.xlu2 %v7322_v26, %s7542_s26 }
0x210b   : > { %7343 = vrot.lane.b32.xlu1 %v7327_v21, %s10262_s15 }
0x210d   : > { %5016 = vperm.xlu0 %6475, %v4878_v24   ;;  %7348 = vrot.lane.b32.xlu2 %v7327_v21, %s10263_s20 }
0x2113   : > { %7353 = vrot.lane.b32.xlu1 %v7322_v26, %s10263_s20 }
0x2115   : > { %5001 = vperm.xlu0 %6475, %v4875_v61   ;;  %5011 = vperm.xlu2 %6474, %v4877_v1  }
0x211b   : > { %5006 = vperm.xlu1 %6476, %v4876_v42  }
0x211d   : > { %5275 = vperm.xlu0 %6475, %v5168_v7   ;;  %5270 = vperm.xlu2 %6474, %v5165_v62  }
0x2157   : > { %v7319_v49 = vpop.permute.xlu2 %7318 }
0x2158   : > { %v7320_v48 = vunpack.i.l.bf16 %v7319_v49  ;;  %v7321_v50 = vunpack.i.h.bf16 %v7319_v49 }
0x215a   : > { %5031 = vmatpush.msrb.mxu0 %v7320_v48 }
0x215c   : > { %5032 = vmatpush.msrb.mxu0 %v7321_v50 }
0x215f   : > { %v7334_v5 = vpop.permute.xlu2 %7333 }
0x2160   : > { %v7335_v0 = vunpack.i.l.bf16 %v7334_v5  ;;  %v7336_v54 = vunpack.i.h.bf16 %v7334_v5 }
0x2167   : > { %v7349_v16 = vpop.permute.xlu2 %7348 }
0x2168   : > { %v7350_v57 = vunpack.i.l.bf16 %v7349_v16  ;;  %v7351_v45 = vunpack.i.h.bf16 %v7349_v16 }
0x216a   : > { %5072 = vmatpush.msrb.mxu2 %v7350_v57 }
0x216c   : > { %5073 = vmatpush.msrb.mxu2 %v7351_v45  ;;  %v5102_v45 = vld [vmem:[%s10242_s3 + $0x398] sm:$0xff] }
0x216f   : > { %v7329_v53 = vpop.permute.xlu0 %7328  ;;  %v5012_v42 = vpop.permute.xlu2 %5011 }
0x2170   : > { %v7330_v35 = vunpack.i.l.bf16 %v7329_v53  ;;  %v7331_v32 = vunpack.i.h.bf16 %v7329_v53  ;;  %v5100_v53 = vld [vmem:[%s10242_s3 + $0x388] sm:$0xff] }
0x2175   : > { %v7324_v43 = vpop.permute.xlu1 %7323 }
0x2176   : > { %v7325_v51 = vunpack.i.l.bf16 %v7324_v43  ;;  %v7326_v58 = vunpack.i.h.bf16 %v7324_v43 }
0x2177   : > { %v7339_v3 = vpop.permute.xlu0 %7338 }
0x2178   : > { %5033 = vmatpush.msrb.mxu0 %v7325_v51  ;;  %v7340_v41 = vunpack.i.l.bf16 %v7339_v3  ;;  %v7341_v25 = vunpack.i.h.bf16 %v7339_v3  ;;  %v5162_v51 = vadd.f32 %v9728_v23, %v5102_v45 }
0x217a   : > { %5034 = vmatpush.msrb.mxu0 %v7326_v58  ;;  %v5156_v58 = vadd.f32 %v9690_v6, %v5100_v53  ;;  %v5535_v53 = vld [vmem:[%s10241_s2 + $0x790] sm:$0xff] }
0x217c   : > { %5035 = vmatpush.msrb.mxu0 %v7330_v35  ;;  %v5099_v35 = vld [vmem:[%s10242_s3 + $0x380] sm:$0xff] }
0x217d   : > { %v7344_v60 = vpop.permute.xlu1 %7343 }
0x217e   : > { %5036 = vmatpush.msrb.mxu0 %v7331_v32  ;;  %v7345_v2 = vunpack.i.l.bf16 %v7344_v60  ;;  %v7346_v4 = vunpack.i.h.bf16 %v7344_v60  ;;  %v5153_v32 = vadd.f32 %v9688_v28, %v5099_v35  ;;  %v9802_v60 = vpop.permute.xlu2 %5270 }
0x217f   : > { %v5017_v17 = vpop.permute.xlu0 %5016 }
0x2180   : > { %5037 = vmatpush.msrb.mxu0 %v7335_v0 }
0x2182   : > { %5038 = vmatpush.msrb.mxu0 %v7336_v54 }
0x2184   : > { %5039 = vmatpush.msrb.mxu0 %v7345_v2 }
0x2185   : > { %v7354_v9 = vpop.permute.xlu1 %7353 }
0x2186   : > { %v7355_v21 = vunpack.i.l.bf16 %v7354_v9  ;;  %5040 = vmatpush.msrb.mxu0 %v7346_v4  ;;  %v7356_v52 = vunpack.i.h.bf16 %v7354_v9 }
0x2187   : > { %v5002_v63 = vpop.permute.xlu0 %5001 }
0x2188   : > { %5041 = vmatpush.msrb.mxu0 %v7340_v41  ;;  %5074 = vmatpush.msrb.mxu2 %v7355_v21 }
0x218a   : > { %5042 = vmatpush.msrb.mxu0 %v7341_v25  ;;  %5075 = vmatpush.msrb.mxu2 %v7356_v52 }
0x218b   : > { %6332 = vmatmul.msk.f32.vlgmr.msrb.gmra.mxu2 %vm932_vm12, %v4868_v59 }
0x218c   : > { %5043 = vmatpush.msrb.mxu0 %v9706_v22  ;;  %v4869_v22 = vld [vmem:[%s10241_s2 + $0x570] sm:$0xff] }
0x218d   : > { %v5007_v30 = vpop.permute.xlu1 %5006 }
0x218e   : > { %5044 = vmatpush.msrb.mxu0 %v9703_v15  ;;  %v4872_v15 = vld [vmem:[%s10241_s2 + $0x588] sm:$0xff] }
0x218f   : > { %v9804_v0 = vpop.permute.xlu0 %5275 }
0x2190   : > { %5045 = vmatpush.msrb.mxu0 %v9724_v33 }
0x2192   : > { %5046 = vmatpush.msrb.mxu0 %v9721_v19 }
0x2193   : > { %5047 = vmatmul.f32.vlgmr.msrb.gmra.mxu0 %v4867_v38  ;;  %6333 = vmatmul.msk.f32.gmra.mxu2 %vm932_vm12, %v4870_v36 }
0x219b   : > { %5050 = vmatmul.f32.gmra.mxu0 %v4869_v22  ;;  %6334 = vmatmul.msk.f32.gmra.mxu2 %vm932_vm12, %v4872_v15 }
0x21a3   : > { %5053 = vmatmul.f32.gmra.mxu0 %v4871_v46  ;;  %6335 = vmatmul.msk.f32.gmra.mxu2 %vm932_vm12, %v4874_v13 }
0x21ab   : > { %5056 = vmatmul.f32.gmra.mxu0 %v4873_v12 }
0x220e   : > { %v5077_v31 = vpop.f32.mrf.mxu2 }
0x2210   : > { %v5048_v18 = vpop.f32.mrf.mxu0 }
0x2211   : > { %v5049_v19 = vadd.f32 %v5048_v18, %v5002_v63  ;;  %v5101_v63 = vld [vmem:[%s10242_s3 + $0x390] sm:$0xff] }
0x2212   : > { %v5159_v18 = vadd.f32 %v9698_v8, %v5101_v63 }
0x2213   : > { %v5078_v33 = vadd.f32 %v5077_v31, %v5049_v19  ;;  %v5098_v19 = vld [vmem:[%s10242_s3 + $0x378] sm:$0xff] }
0x2215   : > { %v5170_v26 = vsel %vm678_vm8, %v5078_v33, 0.0 }
0x2216   : > { %5171 = vadd.xlane.f32.xlu2 %v5170_v26  ;;  %v5080_v24 = vpop.f32.mrf.mxu2 }
0x2218   : > { %v5051_v61 = vpop.f32.mrf.mxu0 }
0x2219   : > { %v5052_v1 = vadd.f32 %v5051_v61, %v5007_v30  ;;  %v5532_v61 = vld [vmem:[%s10241_s2 + $0x760] sm:$0xff] }
0x221a   : > { %6348 = vmatmul.msk.f32.vlgmr.msra.gmra.mxu1 %vm678_vm8, %v5532_v61 }
0x221b   : > { %v5081_v34 = vadd.f32 %v5080_v24, %v5052_v1 }
0x221d   : > { %v5173_v11 = vsel %vm678_vm8, %v5081_v34, 0.0 }
0x221e   : > { %5174 = vadd.xlane.f32.xlu0 %v5173_v11  ;;  %v5083_v44 = vpop.f32.mrf.mxu2  ;;  %v5533_v11 = vld [vmem:[%s10241_s2 + $0x770] sm:$0xff] }
0x2220   : > { %v5054_v62 = vpop.f32.mrf.mxu0 }
0x2221   : > { %v5055_v7 = vadd.f32 %v5054_v62, %v5012_v42 }
0x2222   : > { %6349 = vmatmul.msk.f32.gmra.mxu1 %vm678_vm8, %v5533_v11 }
0x2223   : > { %v5084_v49 = vadd.f32 %v5083_v44, %v5055_v7 }
0x2225   : > { %v5176_v48 = vsel %vm678_vm8, %v5084_v49, 0.0 }
0x2226   : > { %5177 = vadd.xlane.f32.xlu1 %v5176_v48  ;;  %v5086_v5 = vpop.f32.mrf.mxu2  ;;  %v5534_v48 = vld [vmem:[%s10241_s2 + $0x780] sm:$0xff] }
0x2228   : > { %v5057_v50 = vpop.f32.mrf.mxu0 }
0x2229   : > { %v5058_v16 = vadd.f32 %v5057_v50, %v5017_v17  ;;  %v5097_v17 = vld [vmem:[%s10242_s3 + $0x370] sm:$0xff] }
0x222a   : > { %v5147_v31 = vadd.f32 %v9684_v55, %v5097_v17  ;;  %6350 = vmatmul.msk.f32.gmra.mxu1 %vm678_vm8, %v5534_v48 }
0x222b   : > { %v5087_v57 = vadd.f32 %v5086_v5, %v5058_v16 }
0x222d   : > { %v5179_v43 = vsel %vm678_vm8, %v5087_v57, 0.0 }
0x222e   : > { %5180 = vadd.xlane.f32.xlu2 %v5179_v43 }
0x2232   : > { %5265 = vperm.xlu0 %6475, %v5162_v51   ;;  %6351 = vmatmul.msk.f32.gmra.mxu1 %vm678_vm8, %v5535_v53 }
0x223f   : > { %5299 = vperm.xlu1 %6476, %v5156_v58  }
0x2246   : > { %5294 = vperm.xlu2 %6474, %v5153_v32  }
0x2289   : > { %v5172_v23 = vpop.xlane.xlu2 %5171 }
0x228a   : > { %v5182_v54 = vmul.f32 %v5172_v23, %v7785_v10 }
0x228c   : > { %v9807_v2 = vsub.f32 %v5078_v33, %v5182_v54  ;;  %v5150_v33 = vadd.f32 %v9686_v56, %v5098_v19 }
0x228e   : > { %v5190_v6 = vmul.f32 %v9807_v2, %v9807_v2 }
0x2290   : > { %v5194_v3 = vsel %vm678_vm8, %v5190_v6, 0.0 }
0x2291   : > { %v5175_v4 = vpop.xlane.xlu0 %5174  ;;  %5195 = vadd.xlane.f32.xlu1 %v5194_v3 }
0x2292   : > { %v5183_v9 = vmul.f32 %v5175_v4, %v7785_v10 }
0x2294   : > { %v9813_v28 = vsub.f32 %v5081_v34, %v5183_v9 }
0x2296   : > { %v5191_v41 = vmul.f32 %v9813_v28, %v9813_v28 }
0x2298   : > { %v5197_v21 = vsel %vm678_vm8, %v5191_v41, 0.0  ;;  %v5536_v41 = vld [vmem:[%s10241_s2 + $0x7a0] sm:$0xff] }
0x2299   : > { %v5178_v25 = vpop.xlane.xlu1 %5177  ;;  %5198 = vadd.xlane.f32.xlu2 %v5197_v21  ;;  %6352 = vmatmul.msk.f32.gmra.mxu1 %vm678_vm8, %v5536_v41 }
0x229a   : > { %v5184_v52 = vmul.f32 %v5178_v25, %v7785_v10 }
0x229c   : > { %v9819_v59 = vsub.f32 %v5084_v49, %v5184_v52 }
0x229e   : > { %v5192_v38 = vmul.f32 %v9819_v59, %v9819_v59 }
0x22a0   : > { %v5200_v36 = vsel %vm678_vm8, %v5192_v38, 0.0 }
0x22a1   : > { %5201 = vadd.xlane.f32.xlu0 %v5200_v36  ;;  %v5181_v22 = vpop.xlane.xlu2 %5180 }
0x22a2   : > { %v5185_v15 = vmul.f32 %v5181_v22, %v7785_v10 }
0x22a4   : > { %v9825_v46 = vsub.f32 %v5087_v57, %v5185_v15  ;;  %v9851_v1 = vpop.permute.xlu0 %5265 }
0x22a6   : > { %v5193_v13 = vmul.f32 %v9825_v46, %v9825_v46 }
0x22a8   : > { %v5203_v12 = vsel %vm678_vm8, %v5193_v13, 0.0 }
0x22a9   : > { %5204 = vadd.xlane.f32.xlu1 %v5203_v12  ;;  %v9844_v24 = vpop.permute.xlu2 %5294 }
0x22b1   : > { %5284 = vperm.xlu2 %6474, %v5147_v31   ;;  %v9842_v26 = vpop.permute.xlu1 %5299 }
0x22b5   : > { %5260 = vperm.xlu0 %6475, %v5159_v18  }
0x22c2   : > { %5289 = vperm.xlu1 %6476, %v5150_v33   ;;  %v5537_v33 = vld [vmem:[%s10241_s2 + $0x7b0] sm:$0xff] }
0x22c3   : > { %6353 = vmatmul.msk.f32.gmra.mxu1 %vm678_vm8, %v5537_v33 }
0x2304   : > { %v5196_v55 = vpop.xlane.xlu1 %5195 }
0x2305   : > { %v5206_v30 = vmul.f32 %v5196_v55, %v7785_v10 }
0x2307   : > { %v5210_v8 = vadd.f32 1e-05, %v5206_v30 }
0x2309   : > { %7509 = vrsqrt.f32 %v5210_v8  ;;  %vm5220_vm9 = vweird.f32 %v5210_v8 }
0x230c   : > { %v5199_v34 = vpop.xlane.xlu2 %5198 }
0x230d   : > { %v5207_v56 = vmul.f32 %v5199_v34, %v7785_v10 }
0x230f   : > { %v5211_v44 = vadd.f32 1e-05, %v5207_v56  ;;  %v7510_v42 = vpop.eup %7509 }
0x2310   : > { %v5215_v49 = vmul.f32 %v7510_v42, %v5210_v8  ;;  %vm5221_vm5 = vweird.f32 %v7510_v42 }
0x2311   : > { %7511 = vrsqrt.f32 %v5211_v44  ;;  %vm5222_vm13 = vmor %vm5220_vm9, %vm5221_vm5  ;;  %vm5230_vm15 = vweird.f32 %v5211_v44 }
0x2312   : > { %v5216_v57 = vmul.f32 %v7510_v42, %v5215_v49 }
0x2314   : > { %v5202_v62 = vpop.xlane.xlu0 %5201  ;;  %v5217_v58 = vmul.f32 0.5, %v5216_v57  ;;  %v5285_v56 = vpop.permute.xlu2 %5284  ;;  %v5539_v57 = vld [vmem:[%s10241_s2 + $0x7d0] sm:$0xff] }
0x2315   : > { %v5208_v7 = vmul.f32 %v5202_v62, %v7785_v10  ;;  %v5538_v62 = vld [vmem:[%s10241_s2 + $0x7c0] sm:$0xff] }
0x2316   : > { %v5218_v6 = vsub.f32 1.5, %v5217_v58  ;;  %6354 = vmatmul.msk.f32.gmra.mxu1 %vm678_vm8, %v5538_v62 }
0x2317   : > { %v7512_v50 = vpop.eup %7511  ;;  %v5212_v5 = vadd.f32 1e-05, %v5208_v7 }
0x2318   : > { %v5225_v16 = vmul.f32 %v7512_v50, %v5211_v44  ;;  %v5219_v25 = vmul.f32 %v7510_v42, %v5218_v6  ;;  %vm5231_vm14 = vweird.f32 %v7512_v50 }
0x2319   : > { %7513 = vrsqrt.f32 %v5212_v5  ;;  %vm5240_vm3 = vweird.f32 %v5212_v5  ;;  %vm5232_vm2 = vmor %vm5230_vm15, %vm5231_vm14 }
0x231a   : > { %v5226_v45 = vmul.f32 %v7512_v50, %v5225_v16  ;;  %v5223_v12 = vsel %vm5222_vm13, %v7510_v42, %v5219_v25 }
0x231b   : > { %v5254_v19 = vmul.f32 %v5223_v12, %v9807_v2 }
0x231c   : > { %v5205_v43 = vpop.xlane.xlu1 %5204  ;;  %v5227_v23 = vmul.f32 0.5, %v5226_v45 }
0x231d   : > { %v5209_v51 = vmul.f32 %v5205_v43, %v7785_v10 }
0x231e   : > { %v5228_v4 = vsub.f32 1.5, %v5227_v23  ;;  %6355 = vmatmul.msk.f32.gmra.mxu1 %vm678_vm8, %v5539_v57 }
0x231f   : > { %v7514_v35 = vpop.eup %7513  ;;  %v5213_v32 = vadd.f32 1e-05, %v5209_v51 }
0x2320   : > { %v5235_v54 = vmul.f32 %v7514_v35, %v5212_v5  ;;  %vm5241_vm6 = vweird.f32 %v7514_v35  ;;  %v5229_v22 = vmul.f32 %v7512_v50, %v5228_v4 }
0x2321   : > { %7515 = vrsqrt.f32 %v5213_v32  ;;  %vm5242_vm4 = vmor %vm5240_vm3, %vm5241_vm6  ;;  %vm5250_vm6 = vweird.f32 %v5213_v32 }
0x2322   : > { %v5236_v3 = vmul.f32 %v7514_v35, %v5235_v54  ;;  %v5233_v63 = vsel %vm5232_vm2, %v7512_v50, %v5229_v22 }
0x2323   : > { %v5255_v61 = vmul.f32 %v5233_v63, %v9813_v28 }
0x2324   : > { %v5237_v9 = vmul.f32 0.5, %v5236_v3 }
0x2325   : > { %v5279_v44 = vmul.f32 %v9851_v1, %v5255_v61 }
0x2326   : > { %v5238_v21 = vsub.f32 1.5, %v5237_v9 }
0x2327   : > { %v7516_v52 = vpop.eup %7515  ;;  %v5261_v31 = vpop.permute.xlu0 %5260 }
0x2328   : > { %v5239_v38 = vmul.f32 %v7514_v35, %v5238_v21  ;;  %v5245_v36 = vmul.f32 %v7516_v52, %v5213_v32  ;;  %vm5251_vm5 = vweird.f32 %v7516_v52  ;;  %v5278_v30 = vmul.f32 %v5261_v31, %v5254_v19 }
0x2329   : > { %vm5252_vm9 = vmor %vm5250_vm6, %vm5251_vm5 }
0x232a   : > { %v5243_v15 = vsel %vm5242_vm4, %v7514_v35, %v5239_v38  ;;  %v5246_v13 = vmul.f32 %v7516_v52, %v5245_v36  ;;  %v5302_v11 = vadd.f32 %v5285_v56, %v5278_v30 }
0x232b   : > { %v5256_v18 = vmul.f32 %v5243_v15, %v9819_v59 }
0x232c   : > { %v5247_v17 = vmul.f32 0.5, %v5246_v13  ;;  %v5306_v48 = vmax.f32 %v5302_v11, 0.0 }
0x232d   : > { %v5280_v34 = vmul.f32 %v9802_v60, %v5256_v18 }
0x232e   : > { %v5248_v55 = vsub.f32 1.5, %v5247_v17 }
0x232f   : > { %v5304_v28 = vadd.f32 %v9844_v24, %v5280_v34 }
0x2330   : > { %v5249_v8 = vmul.f32 %v7516_v52, %v5248_v55 }
0x2332   : > { %v5253_v59 = vsel %vm5252_vm9, %v7516_v52, %v5249_v8  ;;  %vm10298_vm9 = vcmask 64512  }
0x2333   : > { %v5257_v2 = vmul.f32 %v5253_v59, %v9825_v46  ;;  %v5308_v46 = vmax.f32 %v5304_v28, 0.0 }
0x2334   : > { %v5290_v42 = vpop.permute.xlu1 %5289 }
0x2335   : > { %v5281_v7 = vmul.f32 %v9804_v0, %v5257_v2  ;;  %v5303_v49 = vadd.f32 %v5290_v42, %v5279_v44  ;;  %v9901_v0 = vpop.f32.mrf.mxu1 }
0x2337   : > { %v5305_v60 = vadd.f32 %v9842_v26, %v5281_v7  ;;  %v5307_v50 = vmax.f32 %v5303_v49, 0.0 }
0x2339   : > { %v5309_v5 = vmax.f32 %v5305_v60, 0.0  ;;  %v7357_v16 = vpack.i.bf16 %v5306_v48, %v5307_v50 }
0x233b   : > { %7358 = vrot.lane.b32.xlu1 %v7357_v16, %s7542_s26  ;;  %v7372_v1 = vpack.i.bf16 %v5308_v46, %v5309_v5 }
0x233d   : > { %7373 = vrot.lane.b32.xlu2 %v7372_v1, %s10277_s21  ;;  %7363 = vrot.lane.b32.xlu0 %v7372_v1, %s7542_s26  ;;  %v9903_v26 = vpop.f32.mrf.mxu1 }
0x2343   : > { %7368 = vrot.lane.b32.xlu1 %v7372_v1, %s7540_s24 }
0x2345   : > { %7383 = vrot.lane.b32.xlu0 %v7372_v1, %s7541_s25  ;;  %7378 = vrot.lane.b32.xlu2 %v7357_v16, %s7540_s24  ;;  %v9905_v24 = vpop.f32.mrf.mxu1  ;;  %s7560_s24 = smov 56  }
0x234b   : > { %7393 = vrot.lane.b32.xlu1 %v7357_v16, %s7541_s25  ;;  %s7561_s25 = smov 88  }
0x234d   : > { %7388 = vrot.lane.b32.xlu0 %v7357_v16, %s10277_s21  ;;  %v9907_v51 = vpop.f32.mrf.mxu1  ;;  %v5547_v16 = vld [vmem:[%s10242_s3 + $0x3e8] sm:$0xff]  ;;  %s7562_s21 = smov 72  }
0x2355   : > { %v9915_v15 = vpop.f32.mrf.mxu1 }
0x235d   : > { %v9939_v49 = vpop.f32.mrf.mxu1 }
0x2397   : > { %v7374_v53 = vpop.permute.xlu2 %7373 }
0x2398   : > { %v7376_v6 = vunpack.i.h.bf16 %v7374_v53  ;;  %v7375_v3 = vunpack.i.l.bf16 %v7374_v53 }
0x239f   : > { %v7379_v18 = vpop.permute.xlu2 %7378 }
0x23a0   : > { %v7381_v30 = vunpack.i.h.bf16 %v7379_v18  ;;  %v7380_v61 = vunpack.i.l.bf16 %v7379_v18 }
0x23ad   : > { %v7359_v45 = vpop.permute.xlu1 %7358 }
0x23ae   : > { %v7361_v13 = vunpack.i.h.bf16 %v7359_v45  ;;  %v7360_v12 = vunpack.i.l.bf16 %v7359_v45  ;;  %v5319_v45 = vld [vmem:[%s10242_s3 + $0x2d8] sm:$0xff] }
0x23af   : > { %v7364_v43 = vpop.permute.xlu0 %7363 }
0x23b0   : > { %v7366_v58 = vunpack.i.h.bf16 %v7364_v43  ;;  %v7365_v35 = vunpack.i.l.bf16 %v7364_v43  ;;  %v5374_v19 = vsel %vm482_vm0, %v7361_v13, %v5306_v48  ;;  %v5375_v33 = vsel %vm482_vm0, %v7360_v12, %v5307_v50  ;;  %v5321_v48 = vld [vmem:[%s10242_s3 + $0x2e8] sm:$0xff]  ;;  %v9949_v50 = vpop.f32.mrf.mxu1 }
0x23b1   : > { %v5378_v11 = vsel %vm485_vm1, %v5374_v19, %v7381_v30  ;;  %v5379_v44 = vsel %vm485_vm1, %v5375_v33, %v7380_v61  ;;  %v5310_v30 = vld [vmem:[%s10241_s2 + $0x5a0] sm:$0xff]  ;;  %v5313_v61 = vld [vmem:[%s10241_s2 + $0x5b8] sm:$0xff] }
0x23b2   : > { %v5376_v4 = vsel %vm482_vm0, %v7366_v58, %v5308_v46  ;;  %v5377_v9 = vsel %vm482_vm0, %v7365_v35, %v5309_v5  ;;  %v5318_v46 = vld [vmem:[%s10242_s3 + $0x2d0] sm:$0xff]  ;;  %v5320_v5 = vld [vmem:[%s10242_s3 + $0x2e0] sm:$0xff] }
0x23b5   : > { %v7369_v32 = vpop.permute.xlu1 %7368 }
0x23b6   : > { %v7371_v23 = vunpack.i.h.bf16 %v7369_v32  ;;  %v7370_v54 = vunpack.i.l.bf16 %v7369_v32 }
0x23b7   : > { %v7384_v41 = vpop.permute.xlu0 %7383 }
0x23b8   : > { %v5380_v21 = vsel %vm485_vm1, %v5376_v4, %v7371_v23  ;;  %v5381_v25 = vsel %vm485_vm1, %v5377_v9, %v7370_v54  ;;  %v7386_v52 = vunpack.i.h.bf16 %v7384_v41  ;;  %v7385_v38 = vunpack.i.l.bf16 %v7384_v41  ;;  %v5610_v1 = vpop.f32.mrf.mxu1 }
0x23b9   : > { %v5384_v36 = vsel %vm850_vm10, %v5380_v21, %v7376_v6  ;;  %v5385_v22 = vsel %vm850_vm10, %v5381_v25, %v7375_v3  ;;  %v5611_v57 = vadd.f32 %v5610_v1, %v5547_v16 }
0x23ba   : > { %v9918_v17 = vsel %vm855_vm11, %v5384_v36, %v7386_v52  ;;  %v9921_v31 = vsel %vm855_vm11, %v5385_v22, %v7385_v38 }
0x23bb   : > { %v7407_v63 = vpack.i.bf16 %v9918_v17, %v9921_v31 }
0x23bd   : > { %7408 = vrot.lane.b32.xlu1 %v7407_v63, %s7542_s26  ;;  %7398 = vrot.lane.b32.xlu2 %v7407_v63, %s10264_s14  ;;  %v7394_v55 = vpop.permute.xlu1 %7393 }
0x23be   : > { %v7396_v59 = vunpack.i.h.bf16 %v7394_v55  ;;  %v7395_v2 = vunpack.i.l.bf16 %v7394_v55  ;;  %v5311_v55 = vld [vmem:[%s10241_s2 + $0x5a8] sm:$0xff] }
0x23bf   : > { %v7389_v8 = vpop.permute.xlu0 %7388 }
0x23c0   : > { %v7391_v34 = vunpack.i.h.bf16 %v7389_v8  ;;  %v7390_v56 = vunpack.i.l.bf16 %v7389_v8  ;;  %v5314_v8 = vld [vmem:[%s10241_s2 + $0x5c0] sm:$0xff] }
0x23c2   : > { %v5382_v42 = vsel %vm850_vm10, %v5378_v11, %v7391_v34  ;;  %v5383_v62 = vsel %vm850_vm10, %v5379_v44, %v7390_v56  ;;  %v5317_v34 = vld [vmem:[%s10241_s2 + $0x5d8] sm:$0xff]  ;;  %v5316_v56 = vld [vmem:[%s10241_s2 + $0x5d0] sm:$0xff] }
0x23c3   : > { %v9934_v28 = vsel %vm855_vm11, %v5382_v42, %v7396_v59  ;;  %v9937_v7 = vsel %vm855_vm11, %v5383_v62, %v7395_v2 }
0x23c4   : > { %v7402_v60 = vpack.i.bf16 %v9934_v28, %v9937_v7 }
0x23c6   : > { %7403 = vrot.lane.b32.xlu0 %v7402_v60, %s10264_s14  ;;  %7418 = vrot.lane.b32.xlu1 %v7402_v60, %s10262_s15  ;;  %s7564_s14 = smov 112  }
0x23c7   : > { %7413 = vrot.lane.b32.xlu2 %v7402_v60, %s7542_s26  ;;  %s7566_s26 = smov 104  }
0x23ce   : > { %7423 = vrot.lane.b32.xlu0 %v7407_v63, %s10262_s15  ;;  %5459 = vperm.xlu1 %6476, %v5321_v48  }
0x23cf   : > { %7428 = vrot.lane.b32.xlu2 %v7407_v63, %s10263_s20 }
0x23d6   : > { %7433 = vrot.lane.b32.xlu0 %v7402_v60, %s10263_s20  ;;  %5444 = vperm.xlu1 %6476, %v5318_v46   ;;  %s7554_s20 = smov 16  }
0x23d7   : > { %5454 = vperm.xlu2 %6474, %v5320_v5  }
0x23de   : > { %5449 = vperm.xlu0 %6475, %v5319_v45   ;;  %5718 = vperm.xlu1 %6476, %v5611_v57  }
0x2417   : > { %v7399_v43 = vpop.permute.xlu2 %7398 }
0x2418   : > { %v7400_v53 = vunpack.i.l.bf16 %v7399_v43  ;;  %v7401_v58 = vunpack.i.h.bf16 %v7399_v43 }
0x241a   : > { %5474 = vmatpush.msra.mxu0 %v7400_v53 }
0x241c   : > { %5475 = vmatpush.msra.mxu0 %v7401_v58 }
0x2421   : > { %v7414_v35 = vpop.permute.xlu2 %7413 }
0x2422   : > { %v7415_v52 = vunpack.i.l.bf16 %v7414_v35  ;;  %v7416_v38 = vunpack.i.h.bf16 %v7414_v35 }
0x2429   : > { %v7429_v32 = vpop.permute.xlu2 %7428 }
0x242a   : > { %v7430_v23 = vunpack.i.l.bf16 %v7429_v32  ;;  %v7431_v54 = vunpack.i.h.bf16 %v7429_v32 }
0x242c   : > { %5515 = vmatpush.msra.mxu2 %v7430_v23 }
0x242e   : > { %5516 = vmatpush.msra.mxu2 %v7431_v54 }
0x242f   : > { %v7409_v4 = vpop.permute.xlu1 %7408 }
0x2430   : > { %v7410_v41 = vunpack.i.l.bf16 %v7409_v4  ;;  %v7411_v21 = vunpack.i.h.bf16 %v7409_v4  ;;  %v5543_v4 = vld [vmem:[%s10242_s3 + $0x3c8] sm:$0xff] }
0x2431   : > { %v5455_v57 = vpop.permute.xlu2 %5454 }
0x2438   : > { %v7404_v6 = vpop.permute.xlu0 %7403  ;;  %v7419_v22 = vpop.permute.xlu1 %7418 }
0x2439   : > { %v7405_v3 = vunpack.i.l.bf16 %v7404_v6  ;;  %v7406_v9 = vunpack.i.h.bf16 %v7404_v6  ;;  %v7420_v63 = vunpack.i.l.bf16 %v7419_v22  ;;  %v7421_v19 = vunpack.i.h.bf16 %v7419_v22 }
0x243b   : > { %5476 = vmatpush.msra.mxu0 %v7405_v3  ;;  %v5545_v3 = vld [vmem:[%s10242_s3 + $0x3d8] sm:$0xff] }
0x243d   : > { %5477 = vmatpush.msra.mxu0 %v7406_v9  ;;  %v5605_v9 = vadd.f32 %v9939_v49, %v5545_v3  ;;  %v5901_v3 = vrot.slane %v8907_v14, 4 }
0x243f   : > { %5478 = vmatpush.msra.mxu0 %v7410_v41  ;;  %v5599_v41 = vadd.f32 %v9907_v51, %v5543_v4  ;;  %v5909_v4 = vrot.slane %v8907_v14, 6 }
0x2440   : > { %v7424_v25 = vpop.permute.xlu0 %7423  ;;  %v5460_v59 = vpop.permute.xlu1 %5459 }
0x2441   : > { %5479 = vmatpush.msra.mxu0 %v7411_v21  ;;  %v7425_v36 = vunpack.i.l.bf16 %v7424_v25  ;;  %v7426_v13 = vunpack.i.h.bf16 %v7424_v25  ;;  %v5542_v21 = vld [vmem:[%s10242_s3 + $0x3c0] sm:$0xff] }
0x2442   : > { %v5596_v25 = vadd.f32 %v9905_v24, %v5542_v21 }
0x2443   : > { %5480 = vmatpush.msra.mxu0 %v7415_v52  ;;  %v5546_v52 = vld [vmem:[%s10242_s3 + $0x3e0] sm:$0xff] }
0x2445   : > { %5481 = vmatpush.msra.mxu0 %v7416_v38  ;;  %v5608_v38 = vadd.f32 %v9949_v50, %v5546_v52  ;;  %v5925_v52 = vrot.slane %v8904_v29, 2 }
0x2447   : > { %5482 = vmatpush.msra.mxu0 %v7425_v36 }
0x2448   : > { %v7434_v12 = vpop.permute.xlu0 %7433  ;;  %v5445_v11 = vpop.permute.xlu1 %5444 }
0x2449   : > { %v7435_v18 = vunpack.i.l.bf16 %v7434_v12  ;;  %5483 = vmatpush.msra.mxu0 %v7426_v13  ;;  %v7436_v33 = vunpack.i.h.bf16 %v7434_v12 }
0x244b   : > { %5484 = vmatpush.msra.mxu0 %v7420_v63  ;;  %5517 = vmatpush.msra.mxu2 %v7435_v18 }
0x244d   : > { %5485 = vmatpush.msra.mxu0 %v7421_v19  ;;  %5518 = vmatpush.msra.mxu2 %v7436_v33 }
0x244e   : > { %6344 = vmatmul.msk.f32.vlgmr.msra.gmra.mxu2 %vm932_vm12, %v5311_v55 }
0x244f   : > { %5486 = vmatpush.msra.mxu0 %v9921_v31  ;;  %v5312_v31 = vld [vmem:[%s10241_s2 + $0x5b0] sm:$0xff] }
0x2450   : > { %v5450_v60 = vpop.permute.xlu0 %5449  ;;  %v10018_v36 = vpop.permute.xlu1 %5718 }
0x2451   : > { %5487 = vmatpush.msra.mxu0 %v9918_v17  ;;  %v5315_v17 = vld [vmem:[%s10241_s2 + $0x5c8] sm:$0xff] }
0x2453   : > { %5488 = vmatpush.msra.mxu0 %v9937_v7 }
0x2455   : > { %5489 = vmatpush.msra.mxu0 %v9934_v28 }
0x2456   : > { %5490 = vmatmul.f32.vlgmr.msra.gmra.mxu0 %v5310_v30  ;;  %6345 = vmatmul.msk.f32.gmra.mxu2 %vm932_vm12, %v5313_v61 }
0x245e   : > { %5493 = vmatmul.f32.gmra.mxu0 %v5312_v31  ;;  %6346 = vmatmul.msk.f32.gmra.mxu2 %vm932_vm12, %v5315_v17 }
0x2466   : > { %5496 = vmatmul.f32.gmra.mxu0 %v5314_v8  ;;  %6347 = vmatmul.msk.f32.gmra.mxu2 %vm932_vm12, %v5317_v34 }
0x246e   : > { %5499 = vmatmul.f32.gmra.mxu0 %v5316_v56 }
0x24d1   : > { %v5520_v2 = vpop.f32.mrf.mxu2 }
0x24d3   : > { %v5491_v44 = vpop.f32.mrf.mxu0 }
0x24d4   : > { %v5492_v42 = vadd.f32 %v5491_v44, %v5445_v11  ;;  %v5541_v44 = vld [vmem:[%s10242_s3 + $0x3b8] sm:$0xff] }
0x24d6   : > { %v5521_v62 = vadd.f32 %v5520_v2, %v5492_v42  ;;  %v5544_v2 = vld [vmem:[%s10242_s3 + $0x3d0] sm:$0xff] }
0x24d7   : > { %v5602_v11 = vadd.f32 %v9915_v15, %v5544_v2  ;;  %v5759_v42 = vld [vmem:[%s10242_s3 + $0x3f0] sm:$0xff]  ;;  %v5805_v15 = vrot.slane %v8934_v37, 2 }
0x24d8   : > { %v5613_v28 = vsel %vm678_vm8, %v5521_v62, 0.0 }
0x24d9   : > { %5614 = vadd.xlane.f32.xlu2 %v5613_v28  ;;  %v5523_v7 = vpop.f32.mrf.mxu2  ;;  %v5593_v28 = vadd.f32 %v9903_v26, %v5541_v44  ;;  %v5817_v26 = vrot.slane %v8934_v37, 5 }
0x24db   : > { %v5494_v48 = vpop.f32.mrf.mxu0 }
0x24dc   : > { %v5495_v46 = vadd.f32 %v5494_v48, %v5450_v60  ;;  %v5760_v60 = vld [vmem:[%s10242_s3 + $0x3f8] sm:$0xff]  ;;  %v5801_v48 = vrot.slane %v8934_v37, 1 }
0x24de   : > { %v5524_v5 = vadd.f32 %v5523_v7, %v5495_v46  ;;  %v5809_v46 = vrot.slane %v8934_v37, 3 }
0x24e0   : > { %v5616_v16 = vsel %vm678_vm8, %v5524_v5, 0.0 }
0x24e1   : > { %5617 = vadd.xlane.f32.xlu1 %v5616_v16  ;;  %v5526_v1 = vpop.f32.mrf.mxu2  ;;  %v5825_v16 = vrot.slane %v8934_v37, 7 }
0x24e3   : > { %v5497_v45 = vpop.f32.mrf.mxu0 }
0x24e4   : > { %v5498_v43 = vadd.f32 %v5497_v45, %v5455_v57  ;;  %v5833_v57 = vrot.slane %v8928_v40, 1  ;;  %v5837_v45 = vrot.slane %v8928_v40, 2 }
0x24e6   : > { %v5527_v53 = vadd.f32 %v5526_v1, %v5498_v43  ;;  %v5841_v1 = vrot.slane %v8928_v40, 3  ;;  %v5853_v43 = vrot.slane %v8928_v40, 6 }
0x24e8   : > { %v5619_v58 = vsel %vm678_vm8, %v5527_v53, 0.0 }
0x24e9   : > { %5620 = vadd.xlane.f32.xlu0 %v5619_v58  ;;  %v5529_v32 = vpop.f32.mrf.mxu2  ;;  %v5849_v58 = vrot.slane %v8928_v40, 5 }
0x24eb   : > { %v5500_v35 = vpop.f32.mrf.mxu0 }
0x24ec   : > { %v5501_v23 = vadd.f32 %v5500_v35, %v5460_v59  ;;  %v5893_v35 = vrot.slane %v8907_v14, 2 }
0x24ee   : > { %v5530_v54 = vadd.f32 %v5529_v32, %v5501_v23  ;;  %v5857_v32 = vrot.slane %v8928_v40, 7  ;;  %v5889_v23 = vrot.slane %v8907_v14, 1 }
0x24f0   : > { %v5622_v6 = vsel %vm678_vm8, %v5530_v54, 0.0 }
0x24f1   : > { %5623 = vadd.xlane.f32.xlu2 %v5622_v6  ;;  %v5897_v6 = vrot.slane %v8907_v14, 3 }
0x24fa   : > { %5708 = vperm.xlu1 %6476, %v5605_v9   ;;  %v5913_v9 = vrot.slane %v8907_v14, 7 }
0x24fd   : > { %5742 = vperm.xlu0 %6475, %v5599_v41   ;;  %v5929_v41 = vrot.slane %v8904_v29, 3 }
0x2505   : > { %5737 = vperm.xlu0 %6475, %v5596_v25   ;;  %v5921_v25 = vrot.slane %v8904_v29, 1 }
0x2509   : > { %5713 = vperm.xlu2 %6474, %v5608_v38  }
0x254c   : > { %v5615_v49 = vpop.xlane.xlu2 %5614 }
0x254d   : > { %v5625_v51 = vmul.f32 %v5615_v49, %v7785_v10 }
0x254f   : > { %v10021_v22 = vsub.f32 %v5521_v62, %v5625_v51  ;;  %v5540_v62 = vld [vmem:[%s10242_s3 + $0x3b0] sm:$0xff]  ;;  %v5933_v51 = vrot.slane %v8904_v29, 4 }
0x2550   : > { %v5590_v7 = vadd.f32 %v9901_v0, %v5540_v62  ;;  %v5813_v0 = vrot.slane %v8934_v37, 4 }
0x2551   : > { %v5633_v13 = vmul.f32 %v10021_v22, %v10021_v22 }
0x2553   : > { %v5637_v24 = vsel %vm678_vm8, %v5633_v13, 0.0 }
0x2554   : > { %v5618_v12 = vpop.xlane.xlu1 %5617  ;;  %5638 = vadd.xlane.f32.xlu0 %v5637_v24  ;;  %v5937_v24 = vrot.slane %v8904_v29, 5 }
0x2555   : > { %v5626_v63 = vmul.f32 %v5618_v12, %v7785_v10 }
0x2557   : > { %v10027_v18 = vsub.f32 %v5524_v5, %v5626_v63  ;;  %v5821_v5 = vrot.slane %v8934_v37, 6 }
0x2559   : > { %v5634_v50 = vmul.f32 %v10027_v18, %v10027_v18 }
0x255b   : > { %v5640_v19 = vsel %vm678_vm8, %v5634_v50, 0.0 }
0x255c   : > { %v5621_v33 = vpop.xlane.xlu0 %5620  ;;  %5641 = vadd.xlane.f32.xlu2 %v5640_v19 }
0x255d   : > { %v5627_v55 = vmul.f32 %v5621_v33, %v7785_v10 }
0x255f   : > { %v10033_v30 = vsub.f32 %v5527_v53, %v5627_v55  ;;  %v5845_v53 = vrot.slane %v8928_v40, 4 }
0x2561   : > { %v5635_v61 = vmul.f32 %v10033_v30, %v10033_v30 }
0x2563   : > { %v5643_v31 = vsel %vm678_vm8, %v5635_v61, 0.0 }
0x2564   : > { %5644 = vadd.xlane.f32.xlu1 %v5643_v31  ;;  %v5624_v17 = vpop.xlane.xlu2 %5623 }
0x2565   : > { %v5628_v8 = vmul.f32 %v5624_v17, %v7785_v10 }
0x2567   : > { %v10039_v34 = vsub.f32 %v5530_v54, %v5628_v8  ;;  %v5905_v54 = vrot.slane %v8907_v14, 5 }
0x2569   : > { %v5636_v56 = vmul.f32 %v10039_v34, %v10039_v34 }
0x256b   : > { %v5646_v59 = vsel %vm678_vm8, %v5636_v56, 0.0 }
0x256c   : > { %5647 = vadd.xlane.f32.xlu0 %v5646_v59  ;;  %v10117_v38 = vpop.permute.xlu2 %5713  ;;  %v10124_v12 = vpop.permute.xlu1 %5708 }
0x2574   : > { %5703 = vperm.xlu2 %6474, %v5602_v11  }
0x257c   : > { %5763 = vperm.xlu2 %6474, %v5759_v42  }
0x257d   : > { %5732 = vperm.xlu1 %6476, %v5593_v28  }
0x2580   : > { %5727 = vperm.xlu0 %6475, %v5590_v7  }
0x2584   : > { %5806 = vrot.lane.b32.xlu2 %v5805_v15, %s7554_s20 }
0x2585   : > { %5768 = vperm.xlu1 %6476, %v5760_v60  }
0x2588   : > { %5802 = vrot.lane.b32.xlu0 %v5801_v48, %s10297_s28 }
0x258c   : > { %5818 = vrot.lane.b32.xlu2 %v5817_v26, %s7555_s16 }
0x258d   : > { %5810 = vrot.lane.b32.xlu1 %v5809_v46, %s7556_s22 }
0x2590   : > { %5814 = vrot.lane.b32.xlu0 %v5813_v0, %s7557_s29 }
0x2594   : > { %5830 = vrot.lane.b32.xlu2 %v8928_v40, %s7558_s27  ;;  %v10102_v40 = vpop.permute.xlu0 %5742 }
0x2595   : > { %5822 = vrot.lane.b32.xlu1 %v5821_v5, %s7559_s30 }
0x2598   : > { %5826 = vrot.lane.b32.xlu0 %v5825_v16, %s7560_s24 }
0x259c   : > { %5842 = vrot.lane.b32.xlu2 %v5841_v1, %s7561_s25  ;;  %v10111_v21 = vpop.permute.xlu0 %5737 }
0x259d   : > { %5834 = vrot.lane.b32.xlu1 %v5833_v57, %s7562_s21 }
0x25a0   : > { %5838 = vrot.lane.b32.xlu0 %v5837_v45, %s7563_s19 }
0x25a4   : > { %5854 = vrot.lane.b32.xlu2 %v5853_v43, %s7564_s14 }
0x25a5   : > { %5846 = vrot.lane.b32.xlu1 %v5845_v53, %s7565_s12 }
0x25a8   : > { %5850 = vrot.lane.b32.xlu0 %v5849_v58, %s7566_s26 }
0x25ac   : > { %5894 = vrot.lane.b32.xlu2 %v5893_v35, %s7554_s20 }
0x25ad   : > { %5858 = vrot.lane.b32.xlu1 %v5857_v32, %s7567_s13 }
0x25b0   : > { %5890 = vrot.lane.b32.xlu0 %v5889_v23, %s10297_s28 }
0x25b4   : > { %5906 = vrot.lane.b32.xlu2 %v5905_v54, %s7555_s16 }
0x25b5   : > { %5898 = vrot.lane.b32.xlu1 %v5897_v6, %s7556_s22 }
0x25b8   : > { %5902 = vrot.lane.b32.xlu0 %v5901_v3, %s7557_s29 }
0x25bc   : > { %5918 = vrot.lane.b32.xlu2 %v8904_v29, %s7558_s27 }
0x25bd   : > { %5910 = vrot.lane.b32.xlu1 %v5909_v4, %s7559_s30 }
0x25c0   : > { %5914 = vrot.lane.b32.xlu0 %v5913_v9, %s7560_s24 }
0x25c4   : > { %5930 = vrot.lane.b32.xlu2 %v5929_v41, %s7561_s25  ;;  %s421_s25 = scalar_lea.vmem %s10247_s8, %s10301_s18 }
0x25c5   : > { %5922 = vrot.lane.b32.xlu1 %v5921_v25, %s7562_s21 }
0x25c7   : > { %v5639_v49 = vpop.xlane.xlu0 %5638 }
0x25c8   : > { %5926 = vrot.lane.b32.xlu0 %v5925_v52, %s7563_s19  ;;  %v5649_v13 = vmul.f32 %v5639_v49, %v7785_v10 }
0x25ca   : > { %v5653_v19 = vadd.f32 1e-05, %v5649_v13 }
0x25cc   : > { %vm5663_vm4 = vweird.f32 %v5653_v19 }
0x25cd   : > { %5934 = vrot.lane.b32.xlu1 %v5933_v51, %s7565_s12 }
0x25cf   : > { %v5642_v63 = vpop.xlane.xlu2 %5641 }
0x25d0   : > { %v5650_v50 = vmul.f32 %v5642_v63, %v7785_v10  ;;  %5938 = vrot.lane.b32.xlu0 %v5937_v24, %s7566_s26 }
0x25d2   : > { %v5654_v33 = vadd.f32 1e-05, %v5650_v50 }
0x25d4   : > { %7517 = vrsqrt.f32 %v5654_v33  ;;  %vm5673_vm14 = vweird.f32 %v5654_v33 }
0x25d5   : > { %7519 = vrsqrt.f32 %v5653_v19 }
0x25d7   : > { %v5645_v55 = vpop.xlane.xlu1 %5644  ;;  %v5704_v61 = vpop.permute.xlu2 %5703 }
0x25d8   : > { %v5651_v31 = vmul.f32 %v5645_v55, %v7785_v10 }
0x25da   : > { %v7518_v17 = vpop.eup %7517  ;;  %v5655_v8 = vadd.f32 1e-05, %v5651_v31 }
0x25db   : > { %v7520_v56 = vpop.eup %7519  ;;  %v5668_v59 = vmul.f32 %v7518_v17, %v5654_v33  ;;  %vm5674_vm11 = vweird.f32 %v7518_v17 }
0x25dc   : > { %7521 = vrsqrt.f32 %v5655_v8  ;;  %v5658_v2 = vmul.f32 %v7520_v56, %v5653_v19  ;;  %vm5683_vm1 = vweird.f32 %v5655_v8  ;;  %vm5664_vm3 = vweird.f32 %v7520_v56  ;;  %vm5675_vm13 = vmor %vm5673_vm14, %vm5674_vm11 }
0x25dd   : > { %v5669_v42 = vmul.f32 %v7518_v17, %v5668_v59  ;;  %vm5665_vm2 = vmor %vm5663_vm4, %vm5664_vm3  ;;  %vm5871_vm11 = vcmask 523264   ;;  %vm5873_vm14 = vcmask 588800   ;;  %vm5875_vm3 = vcmask 654336  }
0x25de   : > { %v5659_v15 = vmul.f32 %v7520_v56, %v5658_v2  ;;  %vm5879_vm4 = vcmask 785408  }
0x25df   : > { %v5648_v11 = vpop.xlane.xlu0 %5647  ;;  %v10130_v62 = vpop.permute.xlu2 %5763  ;;  %v5670_v48 = vmul.f32 0.5, %v5669_v42 }
0x25e0   : > { %v5652_v44 = vmul.f32 %v5648_v11, %v7785_v10  ;;  %v5660_v46 = vmul.f32 0.5, %v5659_v15 }
0x25e1   : > { %v5671_v5 = vsub.f32 1.5, %v5670_v48 }
0x25e2   : > { %v7522_v28 = vpop.eup %7521  ;;  %v5656_v7 = vadd.f32 1e-05, %v5652_v44  ;;  %v5661_v57 = vsub.f32 1.5, %v5660_v46 }
0x25e3   : > { %v5678_v60 = vmul.f32 %v7522_v28, %v5655_v8  ;;  %vm5684_vm0 = vweird.f32 %v7522_v28  ;;  %v5672_v35 = vmul.f32 %v7518_v17, %v5671_v5 }
0x25e4   : > { %7523 = vrsqrt.f32 %v5656_v7  ;;  %vm5685_vm10 = vmor %vm5683_vm1, %vm5684_vm0  ;;  %v5662_v32 = vmul.f32 %v7520_v56, %v5661_v57  ;;  %vm5693_vm5 = vweird.f32 %v5656_v7  ;;  %vm5863_vm0 = vcmask 195584  }
0x25e5   : > { %v5679_v26 = vmul.f32 %v7522_v28, %v5678_v60  ;;  %v5676_v4 = vsel %vm5675_vm13, %v7518_v17, %v5672_v35  ;;  %vm5866_vm1 = vcmask 326656   ;;  %vm5877_vm13 = vcmask 719872  }
0x25e6   : > { %v5666_v41 = vsel %vm5665_vm2, %v7520_v56, %v5662_v32  ;;  %v5698_v52 = vmul.f32 %v5676_v4, %v10027_v18  ;;  %vm5883_vm2 = vcmask 916480  }
0x25e7   : > { %v5680_v0 = vmul.f32 0.5, %v5679_v26  ;;  %v5807_v43 = vpop.permute.xlu2 %5806  ;;  %v5697_v24 = vmul.f32 %v5666_v41, %v10021_v22 }
0x25e8   : > { %v5722_v19 = vmul.f32 %v10124_v12, %v5698_v52 }
0x25e9   : > { %v5681_v16 = vsub.f32 1.5, %v5680_v0  ;;  %v5721_v55 = vmul.f32 %v5704_v61, %v5697_v24 }
0x25ea   : > { %v7524_v1 = vpop.eup %7523 }
0x25eb   : > { %v5682_v45 = vmul.f32 %v7522_v28, %v5681_v16  ;;  %v5688_v10 = vmul.f32 %v7524_v1, %v5656_v7  ;;  %vm5694_vm15 = vweird.f32 %v7524_v1 }
0x25ec   : > { %vm5695_vm6 = vmor %vm5693_vm5, %vm5694_vm15  ;;  %vm5881_vm15 = vcmask 850944   ;;  %vm5885_vm5 = vcmask 982016  }
0x25ed   : > { %v5686_v53 = vsel %vm5685_vm10, %v7522_v28, %v5682_v45  ;;  %v5689_v58 = vmul.f32 %v7524_v1, %v5688_v10  ;;  %vm5869_vm10 = vcmask 457728  }
0x25ee   : > { %v5699_v6 = vmul.f32 %v5686_v53, %v10033_v30 }
0x25ef   : > { %v5690_v23 = vmul.f32 0.5, %v5689_v58  ;;  %v5733_v54 = vpop.permute.xlu1 %5732  ;;  %v5819_v13 = vpop.permute.xlu2 %5818 }
0x25f0   : > { %v5723_v49 = vmul.f32 %v10117_v38, %v5699_v6  ;;  %v5746_v31 = vadd.f32 %v5733_v54, %v5722_v19 }
0x25f1   : > { %v5691_v3 = vsub.f32 1.5, %v5690_v23 }
0x25f2   : > { %v5728_v9 = vpop.permute.xlu0 %5727  ;;  %v5747_v33 = vadd.f32 %v10111_v21, %v5723_v49  ;;  %v5750_v59 = vmax.f32 %v5746_v31, 0.0 }
0x25f3   : > { %v5692_v25 = vmul.f32 %v7524_v1, %v5691_v3  ;;  %v5745_v38 = vadd.f32 %v5728_v9, %v5721_v55 }
0x25f4   : > { %v5751_v56 = vmax.f32 %v5747_v33, 0.0  ;;  %v5754_v12 = vadd.f32 %v5750_v59, %v9666_v39 }
0x25f5   : > { %v5696_v51 = vsel %vm5695_vm6, %v7524_v1, %v5692_v25  ;;  %v5749_v11 = vmax.f32 %v5745_v38, 0.0  ;;  %vm10299_vm6 = vmmov %vm10298_vm9 }
0x25f6   : > { %v5700_v30 = vmul.f32 %v5696_v51, %v10039_v34 }
0x25f7   : > { %v10137_v63 = vpop.permute.xlu1 %5768  ;;  %v5831_v34 = vpop.permute.xlu2 %5830  ;;  %v5753_v61 = vadd.f32 %v5749_v11, %v9669_v47  ;;  %v5758_v47 = vld [vmem:[%s10241_s2 + $0x7f0] sm:$0xff] }
0x25f8   : > { %v5724_v50 = vmul.f32 %v10018_v36, %v5700_v30  ;;  %v5755_v36 = vadd.f32 %v5751_v56, %v9662_v27 }
0x25fa   : > { %v5803_v17 = vpop.permute.xlu0 %5802  ;;  %v5748_v18 = vadd.f32 %v10102_v40, %v5724_v50  ;;  %v5757_v40 = vld [vmem:[%s10241_s2 + $0x7e0] sm:$0xff] }
0x25fc   : > { %v5752_v8 = vmax.f32 %v5748_v18, 0.0 }
0x25fe   : > { %v5756_v22 = vadd.f32 %v5752_v8, %v9664_v20  ;;  %v5861_v20 = vsel %vm10298_vm9, %v8934_v37, %v5803_v17 }
0x25ff   : > { %v5811_v2 = vpop.permute.xlu1 %5810  ;;  %v5843_v27 = vpop.permute.xlu2 %5842  ;;  %v5862_v39 = vsel %vm678_vm8, %v5861_v20, %v5807_v43 }
0x2600   : > { %5789 = vmatpush.msrb.mxu0 %v5756_v22  ;;  %v5864_v28 = vsel %vm5863_vm0, %v5862_v39, %v5811_v2 }
0x2602   : > { %v5815_v21 = vpop.permute.xlu0 %5814  ;;  %5790 = vmatpush.msrb.mxu0 %v5755_v36 }
0x2603   : > { %v5865_v7 = vsel %vm932_vm12, %v5864_v28, %v5815_v21 }
0x2604   : > { %5791 = vmatpush.msrb.mxu0 %v5754_v12  ;;  %v5867_v37 = vsel %vm5866_vm1, %v5865_v7, %v5819_v13  ;;  %v5945_v7 = vrot.slane %v8904_v29, 7 }
0x2606   : > { %5792 = vmatpush.msrb.mxu0 %v5753_v61 }
0x2607   : > { %v5823_v44 = vpop.permute.xlu1 %5822  ;;  %6356 = vmatmul.msk.f32.vlgmr.msrb.gmra.mxu0 %vm932_vm12, %v5757_v40  ;;  %v5855_v46 = vpop.permute.xlu2 %5854 }
0x2608   : > { %v5868_v60 = vsel %vm636_vm7, %v5867_v37, %v5823_v44 }
0x260a   : > { %v5827_v42 = vpop.permute.xlu0 %5826 }
0x260b   : > { %v5870_v48 = vsel %vm5869_vm10, %v5868_v60, %v5827_v42 }
0x260c   : > { %v5872_v0 = vsel %vm5871_vm11, %v5870_v48, %v5831_v34 }
0x260f   : > { %v5835_v15 = vpop.permute.xlu1 %5834  ;;  %6357 = vmatmul.msk.f32.gmra.mxu0 %vm932_vm12, %v5758_v47  ;;  %v5895_v53 = vpop.permute.xlu2 %5894 }
0x2610   : > { %v5874_v5 = vsel %vm5873_vm14, %v5872_v0, %v5835_v15 }
0x2612   : > { %v5839_v26 = vpop.permute.xlu0 %5838 }
0x2613   : > { %v5876_v16 = vsel %vm5875_vm3, %v5874_v5, %v5839_v26 }
0x2614   : > { %v5878_v57 = vsel %vm5877_vm13, %v5876_v16, %v5843_v27 }
0x2617   : > { %v5847_v1 = vpop.permute.xlu1 %5846  ;;  %v5907_v6 = vpop.permute.xlu2 %5906 }
0x2618   : > { %v5880_v10 = vsel %vm5879_vm4, %v5878_v57, %v5847_v1 }
0x261a   : > { %v5851_v45 = vpop.permute.xlu0 %5850 }
0x261b   : > { %v5882_v43 = vsel %vm5881_vm15, %v5880_v10, %v5851_v45 }
0x261c   : > { %v5884_v35 = vsel %vm5883_vm2, %v5882_v43, %v5855_v46 }
0x261f   : > { %v5859_v58 = vpop.permute.xlu1 %5858  ;;  %v5919_v51 = vpop.permute.xlu2 %5918 }
0x2620   : > { %v5886_v32 = vsel %vm5885_vm5, %v5884_v35, %v5859_v58 }
0x2621   : > { %5887 = vst [vmem:[%s421_s25] sm:$0x1] %v5886_v32 }
0x2622   : > { %v5891_v23 = vpop.permute.xlu0 %5890 }
0x2623   : > { %v5949_v54 = vsel %vm10299_vm6, %v8907_v14, %v5891_v23 }
0x2624   : > { %v5950_v4 = vsel %vm678_vm8, %v5949_v54, %v5895_v53 }
0x2627   : > { %v5899_v3 = vpop.permute.xlu1 %5898  ;;  %v5931_v55 = vpop.permute.xlu2 %5930 }
0x2628   : > { %v5951_v9 = vsel %vm5863_vm0, %v5950_v4, %v5899_v3  ;;  %v6045_v4 = vlaneseq }
0x262a   : > { %v5903_v41 = vpop.permute.xlu0 %5902 }
0x262b   : > { %v5952_v25 = vsel %vm932_vm12, %v5951_v9, %v5903_v41 }
0x262c   : > { %v5953_v52 = vsel %vm5866_vm1, %v5952_v25, %v5907_v6 }
0x262f   : > { %v5911_v49 = vpop.permute.xlu1 %5910 }
0x2630   : > { %v5954_v13 = vsel %vm636_vm7, %v5953_v52, %v5911_v49 }
0x2632   : > { %v5915_v24 = vpop.permute.xlu0 %5914 }
0x2633   : > { %v5955_v30 = vsel %vm5869_vm10, %v5954_v13, %v5915_v24 }
0x2634   : > { %v5956_v14 = vsel %vm5871_vm11, %v5955_v30, %v5919_v51 }
0x2637   : > { %v5923_v50 = vpop.permute.xlu1 %5922 }
0x2638   : > { %v5957_v19 = vsel %vm5873_vm14, %v5956_v14, %v5923_v50 }
0x263a   : > { %v5927_v33 = vpop.permute.xlu0 %5926 }
0x263b   : > { %v5958_v31 = vsel %vm5875_vm3, %v5957_v19, %v5927_v33 }
0x263c   : > { %v5959_v17 = vsel %vm5877_vm13, %v5958_v31, %v5931_v55 }
0x263f   : > { %v5935_v18 = vpop.permute.xlu1 %5934 }
0x2640   : > { %v5960_v38 = vsel %vm5879_vm4, %v5959_v17, %v5935_v18 }
0x2642   : > { %v5939_v8 = vpop.permute.xlu0 %5938 }
0x2643   : > { %v10189_v56 = vsel %vm5881_vm15, %v5960_v38, %v5939_v8 }
0x2684   : > { %v5794_v59 = vpop.f32.mrf.mxu0 }
0x2685   : > { %v5795_v22 = vadd.f32 %v5794_v59, %v10130_v62 }
0x2687   : > { %v5976_v34 = vrot.slane %v5795_v22, 3  ;;  %v5972_v2 = vrot.slane %v5795_v22, 2  ;;  %v5968_v11 = vrot.slane %v5795_v22, 1  ;;  %v5988_v36 = vrot.slane %v5795_v22, 6 }
0x2688   : > { %v5984_v12 = vrot.slane %v5795_v22, 5  ;;  %v5980_v61 = vrot.slane %v5795_v22, 4  ;;  %v5992_v47 = vrot.slane %v5795_v22, 7 }
0x2689   : > { %5977 = vrot.lane.b32.xlu2 %v5976_v34, %s7559_s30  ;;  %5973 = vrot.lane.b32.xlu1 %v5972_v2, %s7557_s29 }
0x268a   : > { %5969 = vrot.lane.b32.xlu0 %v5968_v11, %s7554_s20 }
0x268c   : > { %v5797_v21 = vpop.f32.mrf.mxu0 }
0x268d   : > { %v5798_v62 = vadd.f32 %v5797_v21, %v10137_v63  ;;  %v5941_v63 = vrot.slane %v8904_v29, 6 }
0x268f   : > { %v5997_v40 = vrot.slane %v5798_v62, 1  ;;  %v6001_v44 = vrot.slane %v5798_v62, 2  ;;  %v6009_v20 = vrot.slane %v5798_v62, 4  ;;  %v6005_v27 = vrot.slane %v5798_v62, 3 }
0x2690   : > { %v6013_v42 = vrot.slane %v5798_v62, 5  ;;  %v6021_v39 = vrot.slane %v5798_v62, 7  ;;  %v6017_v28 = vrot.slane %v5798_v62, 6 }
0x2691   : > { %5989 = vrot.lane.b32.xlu2 %v5988_v36, %s7565_s12  ;;  %5985 = vrot.lane.b32.xlu1 %v5984_v12, %s7563_s19 }
0x2692   : > { %5981 = vrot.lane.b32.xlu0 %v5980_v61, %s7558_s27 }
0x2699   : > { %5998 = vrot.lane.b32.xlu2 %v5997_v40, %s7554_s20  ;;  %6002 = vrot.lane.b32.xlu1 %v6001_v44, %s7557_s29  ;;  %s6209_s20 = sshll.u32 %s10301_s18, 1 }
0x269a   : > { %6010 = vrot.lane.b32.xlu0 %v6009_v20, %s7558_s27 }
0x26a1   : > { %6006 = vrot.lane.b32.xlu2 %v6005_v27, %s7559_s30  ;;  %6014 = vrot.lane.b32.xlu1 %v6013_v42, %s7563_s19  ;;  %s424_s30 = scalar_lea.vmem %s10248_s9, %s10301_s18 }
0x26a2   : > { %6022 = vrot.lane.b32.xlu0 %v6021_v39, %s7564_s14 }
0x26a9   : > { %6018 = vrot.lane.b32.xlu2 %v6017_v28, %s7565_s12  ;;  %5942 = vrot.lane.b32.xlu1 %v5941_v63, %s7564_s14 }
0x26aa   : > { %5993 = vrot.lane.b32.xlu0 %v5992_v47, %s7564_s14  ;;  %s433_s14 = scalar_lea.vmem %s10250_s11, %s6209_s20 }
0x26b1   : > { %5946 = vrot.lane.b32.xlu2 %v5945_v7, %s7567_s13 }
0x26e3   : > { %v5978_v15 = vpop.permute.xlu2 %5977 }
0x26eb   : > { %v5990_v37 = vpop.permute.xlu2 %5989 }
0x26f3   : > { %v5999_v26 = vpop.permute.xlu2 %5998 }
0x26f4   : > { %v6032_v1 = vsel %vm678_vm8, %v5798_v62, %v5999_v26 }
0x26fb   : > { %v5974_v60 = vpop.permute.xlu1 %5973  ;;  %v6007_v5 = vpop.permute.xlu2 %6006 }
0x26fc   : > { %v5970_v48 = vpop.permute.xlu0 %5969 }
0x26fd   : > { %v6025_v29 = vsel %vm678_vm8, %v5795_v22, %v5970_v48  ;;  %vm6042_vm8 = vcmask 1040384  }
0x26fe   : > { %v6026_v43 = vsel %vm932_vm12, %v6025_v29, %v5974_v60 }
0x26ff   : > { %v6027_v54 = vsel %vm636_vm7, %v6026_v43, %v5978_v15 }
0x2703   : > { %v5986_v46 = vpop.permute.xlu1 %5985  ;;  %v6019_v53 = vpop.permute.xlu2 %6018 }
0x2704   : > { %v5982_v0 = vpop.permute.xlu0 %5981 }
0x2705   : > { %v6028_v6 = vsel %vm5871_vm11, %v6027_v54, %v5982_v0 }
0x2706   : > { %v6029_v9 = vsel %vm5875_vm3, %v6028_v6, %v5986_v46 }
0x2707   : > { %v6030_v24 = vsel %vm5879_vm4, %v6029_v9, %v5990_v37 }
0x270b   : > { %v6003_v16 = vpop.permute.xlu1 %6002  ;;  %v5947_v52 = vpop.permute.xlu2 %5946 }
0x270c   : > { %v6011_v57 = vpop.permute.xlu0 %6010  ;;  %v6033_v45 = vsel %vm932_vm12, %v6032_v1, %v6003_v16 }
0x270d   : > { %v6034_v10 = vsel %vm636_vm7, %v6033_v45, %v6007_v5  ;;  %vm6047_vm7 = vcmp.lt.s32.totalorder %v6045_v4, 256 }
0x270e   : > { %v6035_v58 = vsel %vm5871_vm11, %v6034_v10, %v6011_v57 }
0x2713   : > { %v6015_v35 = vpop.permute.xlu1 %6014 }
0x2714   : > { %v6036_v32 = vsel %vm5875_vm3, %v6035_v58, %v6015_v35  ;;  %v6023_v23 = vpop.permute.xlu0 %6022 }
0x2715   : > { %v6037_v3 = vsel %vm5879_vm4, %v6036_v32, %v6019_v53 }
0x2716   : > { %v6038_v41 = vsel %vm5883_vm2, %v6037_v3, %v6023_v23 }
0x2717   : > { %v6041_v49 = vrot.slane %v6038_v41, 7 }
0x271b   : > { %v5943_v25 = vpop.permute.xlu1 %5942 }
0x271c   : > { %v5962_v51 = vsel %vm5883_vm2, %v10189_v56, %v5943_v25  ;;  %v5994_v13 = vpop.permute.xlu0 %5993 }
0x271d   : > { %v5963_v30 = vsel %vm5885_vm5, %v5962_v51, %v5947_v52  ;;  %v6031_v50 = vsel %vm5883_vm2, %v6030_v24, %v5994_v13 }
0x271e   : > { %5964 = vst [vmem:[%s424_s30] sm:$0x1] %v5963_v30  ;;  %v6043_v14 = vsel %vm6042_vm8, %v6031_v50, %v6041_v49 }
0x271f   : > { %6049 = vst.msk [vmem:[%s433_s14] sm:$0x3] %vm6047_vm7, %v6043_v14 }
0x2720 PF: > { %s22_s17 = sadd.s32 1, %s7537_s17  }
0x2721   : > { %p19_p4 = scmp.ge.s32.totalorder %s22_s17, 4  }
0x2723   :  { %21 = sbr.rel (!%p19_p4) target bundleno = 1 (0x1), region = 121 }

</bundles_post_ra>
